<compile_context>
chip_gen: v7x
topology: tpu7x:2x2x1
jax: 0.10.0
libtpu: 0.0.40
codegen_flags: <defaults>
</compile_context>

<pallas_src>
import math

import jax
import jax.numpy as jnp
from jax import lax
from jax.experimental import pallas as pl
from jax.experimental.pallas import tpu as pltpu  # noqa: F401  (TPU backend)

LATENT_DIM = 64
NUM_EMBEDDINGS = 1024
COMMITMENT_COST = 0.25


# --------------------------- in-kernel building blocks ---------------------------

def _rows_select(src, n_out, start, stride):
    """rows_out[m, :] = src[start + stride*m, :]  via a one-hot selection matmul (MXU)."""
    n_src = src.shape[0]
    out_row = lax.broadcasted_iota(jnp.int32, (n_out, n_src), 0)
    src_row = lax.broadcasted_iota(jnp.int32, (n_out, n_src), 1)
    sel = (src_row == start + stride * out_row).astype(src.dtype)
    return jnp.dot(sel, src, preferred_element_type=jnp.float32)


def _conv1d_s2(a, w, bias, relu):
    """PyTorch Conv1d(kernel_size=4, stride=2, padding=1) on a length-major activation.

    a: (L, C_in)   w: (4*C_in, C_out) with rows ordered [k*C_in + c]   bias: (1, C_out)
    returns (L//2, C_out)
    """
    L, C = a.shape
    Lo = (L + 2 - 4) // 2 + 1
    zrow = jnp.zeros((1, C), a.dtype)
    ap = jnp.concatenate([zrow, a, zrow], axis=0)              # (L+2, C); ap[i] = x[i-1]
    taps = [_rows_select(ap, Lo, k, 2) for k in range(4)]      # tap k: x[2m - 1 + k]
    patches = jnp.concatenate(taps, axis=1)                    # (Lo, 4*C)
    y = jnp.dot(patches, w, preferred_element_type=jnp.float32) + bias
    return jnp.maximum(y, 0.0) if relu else y


def _deconv1d_s2(a, w_even, w_odd, bias, act):
    """PyTorch ConvTranspose1d(kernel_size=4, stride=2, padding=1), even/odd decomposition.

      out[2m]   = x[m-1] . w[:,:,3] + x[m]   . w[:,:,1]
      out[2m+1] = x[m]   . w[:,:,2] + x[m+1] . w[:,:,0]

    a: (L, C_in)   w_even/w_odd: (2*C_in, C_out)   bias: (1, C_out)   returns (2L, C_out).
    Only the non-zero taps of the zero-dilated formulation are computed.
    """
    L, C = a.shape
    zrow = jnp.zeros((1, C), a.dtype)
    ap = jnp.concatenate([zrow, a, zrow], axis=0)                        # ap[i] = x[i-1]
    p_even = jnp.concatenate([ap[0:L, :], ap[1:L + 1, :]], axis=1)       # [x[m-1], x[m]]
    p_odd = jnp.concatenate([ap[1:L + 1, :], ap[2:L + 2, :]], axis=1)    # [x[m],   x[m+1]]
    even = jnp.dot(p_even, w_even, preferred_element_type=jnp.float32)   # (L, C_out)
    odd = jnp.dot(p_odd, w_odd, preferred_element_type=jnp.float32)      # (L, C_out)
    # Interleave rows (out[2m]=even[m], out[2m+1]=odd[m]) with one-hot matmuls (robust
    # alternative to a sublane-strided store / generic reshape).
    Lo = 2 * L
    out_row = lax.broadcasted_iota(jnp.int32, (Lo, L), 0)
    src_row = lax.broadcasted_iota(jnp.int32, (Lo, L), 1)
    s_even = (out_row == 2 * src_row).astype(even.dtype)
    s_odd = (out_row == 2 * src_row + 1).astype(odd.dtype)
    y = (jnp.dot(s_even, even, preferred_element_type=jnp.float32)
         + jnp.dot(s_odd, odd, preferred_element_type=jnp.float32)) + bias
    if act == "relu":
        y = jnp.maximum(y, 0.0)
    elif act == "tanh":
        y = jnp.tanh(y)
    return y


def _vq_lookup(z, emb, e_sq):
    """Nearest codebook row per row of z.  z: (T, D)  emb: (E, D)  e_sq: (1, E) -> (T, D)."""
    E = emb.shape[0]
    scores = lax.dot_general(z, emb, (((1,), (1,)), ((), ())),
                             preferred_element_type=jnp.float32)          # (T, E) = z @ emb.T
    metric = e_sq - 2.0 * scores        # argmin_e ||z - e||^2 ; ||z||^2 dropped (row-constant)
    mmin = jnp.min(metric, axis=1, keepdims=True)
    col = lax.broadcasted_iota(jnp.int32, metric.shape, 1)
    idx = jnp.min(jnp.where(metric == mmin, col, E), axis=1, keepdims=True)   # first argmin
    onehot = (col == idx).astype(jnp.float32)                             # (T, E)
    return jnp.dot(onehot, emb, preferred_element_type=jnp.float32)       # (T, D) gather


def _torch_view_TD_as_DT(q):
    """Reinterpret the row-major (T, D) buffer as (D, T): torch `.view(B, D, T)` semantics.

    out[g*(D//T) + u, t] = q[g, u*T + t].   Requires T | D (true here: T=8, D=64).
    Built with D//T tiny one-hot matmuls so no Mosaic generic reshape is needed.
    """
    T, D = q.shape
    chunks = D // T
    out_row = lax.broadcasted_iota(jnp.int32, (D, T), 0)
    src_row = lax.broadcasted_iota(jnp.int32, (D, T), 1)
    out = jnp.zeros((D, T), jnp.float32)
    for u in range(chunks):
        sel = (out_row == chunks * src_row + u).astype(jnp.float32)       # (D, T)
        out = out + jnp.dot(sel, q[:, u * T:(u + 1) * T],
                            preferred_element_type=jnp.float32)
    return out


# --------------------------------- fused kernel ----------------------------------

def _vqvae_kernel(x_ref,
                  we1_ref, be1_ref, we2_ref, be2_ref, we3_ref, be3_ref,
                  emb_ref, esq_ref,
                  wd1e_ref, wd1o_ref, bd1_ref,
                  wd2e_ref, wd2o_ref, bd2_ref,
                  wd3e_ref, wd3o_ref, bd3_ref,
                  recon_ref, loss_ref, zq_ref):
    emb = emb_ref[...]                                   # (E, D), VMEM-resident codebook
    e_sq = esq_ref[...]                                  # (1, E)
    B, D, T = zq_ref.shape
    sq_err = jnp.zeros((1, 1), jnp.float32)

    for b in range(B):                                   # B=2: static unroll
        # ----- encoder: Conv1d(k=4, s=2, p=1) + ReLU, x3 (Dropout == identity) -----
        a = x_ref[b]                                     # (L, C_in) length-major
        a = _conv1d_s2(a, we1_ref[...], be1_ref[...], relu=True)
        a = _conv1d_s2(a, we2_ref[...], be2_ref[...], relu=True)
        z = _conv1d_s2(a, we3_ref[...], be3_ref[...], relu=True)     # (T, D)

        # ----- vector quantizer -----
        q_flat = _vq_lookup(z, emb, e_sq)                # (T, D) codebook rows
        q_ncl = _torch_view_TD_as_DT(q_flat)             # (D, T), faithful to torch .view()
        diff = q_ncl - jnp.transpose(z)                  # compare against z in (D, T) layout
        ssq = jnp.sum(diff * diff, axis=1, keepdims=True)
        sq_err = sq_err + jnp.sum(ssq, axis=0, keepdims=True)

        # ----- F.normalize(z_q, dim=-1) (over the length axis of the NCL tensor) -----
        norm = jnp.sqrt(jnp.sum(q_ncl * q_ncl, axis=1, keepdims=True))
        zq_ncl = q_ncl / jnp.maximum(norm, 1e-12)
        zq_ref[b] = zq_ncl                               # (D, T) NCL output

        # ----- decoder: ConvTranspose1d(k=4, s=2, p=1) x3 -----
        a = jnp.transpose(zq_ncl)                        # (T, D) length-major
        a = _deconv1d_s2(a, wd1e_ref[...], wd1o_ref[...], bd1_ref[...], "relu")
        a = _deconv1d_s2(a, wd2e_ref[...], wd2o_ref[...], bd2_ref[...], "relu")
        y = _deconv1d_s2(a, wd3e_ref[...], wd3o_ref[...], bd3_ref[...], "tanh")
        recon_ref[b] = y                                 # (L, C_out=1) length-major

    # loss = mse(q.detach(), z) + 0.25 * mse(q, z.detach())   (forward value)
    loss_ref[...] = sq_err * ((1.0 + COMMITMENT_COST) / float(B * D * T))


# --------------------------------- forward wrapper -------------------------------

def vqvae_forward(params, x):
    B, C_in, L = x.shape
    emb = params["emb"]
    E, D = emb.shape
    T = L // 8                       # three stride-2 convs
    assert D % T == 0                # required by the in-kernel torch-.view reinterpretation

    def enc_w(w):                    # Conv1d weight (C_out, C_in, K) -> (K*C_in, C_out)
        C_out, Ci, K = w.shape
        return jnp.transpose(w, (2, 1, 0)).reshape(K * Ci, C_out)

    def dec_w(w):                    # ConvTranspose1d weight (C_in, C_out, K) -> even/odd halves
        w_even = jnp.concatenate([w[:, :, 3], w[:, :, 1]], axis=0)   # (2*C_in, C_out)
        w_odd = jnp.concatenate([w[:, :, 2], w[:, :, 0]], axis=0)
        return w_even, w_odd

    x_lc = jnp.transpose(x, (0, 2, 1))                    # (B, L, C_in) length-major
    e_sq = jnp.sum(emb * emb, axis=1)[None, :]            # (1, E), computed once per call

    wd1e, wd1o = dec_w(params["d1_w"])
    wd2e, wd2o = dec_w(params["d2_w"])
    wd3e, wd3o = dec_w(params["d3_w"])

    # Advisory scheduling hint for XLA around the fused custom call (VQ matmuls dominate).
    cost = pl.CostEstimate(
        flops=int(4 * B * T * D * E + 8 * B * L * 64 * 128),
        transcendentals=int(2 * B * L),
        bytes_accessed=int(4 * (E * D + E + B * (2 * L * C_in + 2 * D * T) + 8 * 256 * 64)),
    )

    recon_lc, loss, z_q = pl.pallas_call(
        _vqvae_kernel,
        out_shape=(
            jax.ShapeDtypeStruct((B, L, C_in), jnp.float32),   # reconstruction, length-major
            jax.ShapeDtypeStruct((1, 1), jnp.float32),         # vq loss
            jax.ShapeDtypeStruct((B, D, T), jnp.float32),      # normalized z_q (NCL)
        ),
        cost_estimate=cost,
    )(
        x_lc,
        enc_w(params["e1_w"]), params["e1_b"].reshape(1, -1),
        enc_w(params["e2_w"]), params["e2_b"].reshape(1, -1),
        enc_w(params["e3_w"]), params["e3_b"].reshape(1, -1),
        emb, e_sq,
        wd1e, wd1o, params["d1_b"].reshape(1, -1),
        wd2e, wd2o, params["d2_b"].reshape(1, -1),
        wd3e, wd3o, params["d3_b"].reshape(1, -1),
    )

    x_recon = jnp.transpose(recon_lc, (0, 2, 1))           # back to NCL (B, C_in, L)
    return x_recon, loss[0, 0], z_q


# ---------------------------------- parameter init --------------------------------

def init_params(key):
    ks = jax.random.split(key, 13)

    def uconv(k, shape, fan_in):
        bound = 1.0 / math.sqrt(fan_in)
        return jax.random.uniform(k, shape, jnp.float32, -bound, bound)

    p = {}
    # encoder Conv1d weights: (C_out, C_in, K)
    p["e1_w"] = uconv(ks[0], (32, 1, 4), 1 * 4)
    p["e1_b"] = uconv(ks[1], (32,), 1 * 4)
    p["e2_w"] = uconv(ks[2], (64, 32, 4), 32 * 4)
    p["e2_b"] = uconv(ks[3], (64,), 32 * 4)
    p["e3_w"] = uconv(ks[4], (LATENT_DIM, 64, 4), 64 * 4)
    p["e3_b"] = uconv(ks[5], (LATENT_DIM,), 64 * 4)
    # codebook: uniform(-1/num_embeddings, 1/num_embeddings)
    p["emb"] = jax.random.uniform(ks[6], (NUM_EMBEDDINGS, LATENT_DIM), jnp.float32,
                                  -1.0 / NUM_EMBEDDINGS, 1.0 / NUM_EMBEDDINGS)
    # decoder ConvTranspose1d weights: (C_in, C_out, K)
    p["d1_w"] = uconv(ks[7], (LATENT_DIM, 64, 4), 64 * 4)
    p["d1_b"] = uconv(ks[8], (64,), 64 * 4)
    p["d2_w"] = uconv(ks[9], (64, 32, 4), 32 * 4)
    p["d2_b"] = uconv(ks[10], (32,), 32 * 4)
    p["d3_w"] = uconv(ks[11], (32, 1, 4), 1 * 4)
    p["d3_b"] = uconv(ks[12], (1,), 1 * 4)
    return p


# --------------------------------------- main -------------------------------------

if __name__ == "__main__":
    key = jax.random.PRNGKey(0)
    k_param, k_x = jax.random.split(key)
    params = init_params(k_param)

    # input: (batch=2, in_channels=1, length=64) -> latent length 8
    x = jax.random.normal(k_x, (2, 1, 64), jnp.float32)

    fwd = jax.jit(vqvae_forward)
    x_recon, vq_loss, z_q = fwd(params, x)
    jax.block_until_ready((x_recon, vq_loss, z_q))

    assert x_recon.shape == (2, 1, 64)
    assert z_q.shape == (2, LATENT_DIM, 8)
    assert vq_loss.shape == ()
    assert bool(jnp.all(jnp.isfinite(x_recon))) and bool(jnp.isfinite(vq_loss))
    print("KERNEL_OK")
</pallas_src>

<mosaic_0001>
module attributes {stable_mosaic.version = 11 : i64} {
  func.func @_vqvae_kernel(%arg0: memref<2x64x1xf32, #tpu.memory_space<vmem>>, %arg1: memref<4x32xf32, #tpu.memory_space<vmem>>, %arg2: memref<1x32xf32, #tpu.memory_space<vmem>>, %arg3: memref<128x64xf32, #tpu.memory_space<vmem>>, %arg4: memref<1x64xf32, #tpu.memory_space<vmem>>, %arg5: memref<256x64xf32, #tpu.memory_space<vmem>>, %arg6: memref<1x64xf32, #tpu.memory_space<vmem>>, %arg7: memref<1024x64xf32, #tpu.memory_space<vmem>>, %arg8: memref<1x1024xf32, #tpu.memory_space<vmem>>, %arg9: memref<128x64xf32, #tpu.memory_space<vmem>>, %arg10: memref<128x64xf32, #tpu.memory_space<vmem>>, %arg11: memref<1x64xf32, #tpu.memory_space<vmem>>, %arg12: memref<128x32xf32, #tpu.memory_space<vmem>>, %arg13: memref<128x32xf32, #tpu.memory_space<vmem>>, %arg14: memref<1x32xf32, #tpu.memory_space<vmem>>, %arg15: memref<64x1xf32, #tpu.memory_space<vmem>>, %arg16: memref<64x1xf32, #tpu.memory_space<vmem>>, %arg17: memref<1x1xf32, #tpu.memory_space<vmem>>, %arg18: memref<2x64x1xf32, #tpu.memory_space<vmem>>, %arg19: memref<1x1xf32, #tpu.memory_space<vmem>>, %arg20: memref<2x64x8xf32, #tpu.memory_space<vmem>>) attributes {dimension_semantics = [], scalar_prefetch = 0 : i64, scratch_operands = 0 : i64, tpu.core_type = #tpu.core_type<tc>} {
    %c0 = arith.constant 0 : index
    %c0_0 = arith.constant 0 : index
    %0 = vector.load %arg7[%c0, %c0_0] : memref<1024x64xf32, #tpu.memory_space<vmem>>, vector<1024x64xf32>
    %c0_1 = arith.constant 0 : index
    %c0_2 = arith.constant 0 : index
    %1 = vector.load %arg8[%c0_1, %c0_2] : memref<1x1024xf32, #tpu.memory_space<vmem>>, vector<1x1024xf32>
    %cst = arith.constant 0.000000e+00 : f32
    %2 = vector.broadcast %cst : f32 to vector<1x1xf32>
    %c0_3 = arith.constant 0 : index
    %c0_4 = arith.constant 0 : index
    %c0_5 = arith.constant 0 : index
    %3 = vector.load %arg0[%c0_3, %c0_4, %c0_5] : memref<2x64x1xf32, #tpu.memory_space<vmem>>, vector<1x64x1xf32>
    %4 = vector.shape_cast %3 : vector<1x64x1xf32> to vector<64x1xf32>
    %c0_6 = arith.constant 0 : index
    %c0_7 = arith.constant 0 : index
    %5 = vector.load %arg1[%c0_6, %c0_7] : memref<4x32xf32, #tpu.memory_space<vmem>>, vector<4x32xf32>
    %c0_8 = arith.constant 0 : index
    %c0_9 = arith.constant 0 : index
    %6 = vector.load %arg2[%c0_8, %c0_9] : memref<1x32xf32, #tpu.memory_space<vmem>>, vector<1x32xf32>
    %cst_10 = arith.constant 0.000000e+00 : f32
    %7 = vector.broadcast %cst_10 : f32 to vector<1x1xf32>
    %8 = tpu.concatenate %7, %4, %7 in 0 : vector<1x1xf32>, vector<64x1xf32>, vector<1x1xf32> -> vector<66x1xf32>
    %9 = tpu.iota {dimensions = array<i32: 0>} : vector<32x66xi32>
    %10 = tpu.iota {dimensions = array<i32: 1>} : vector<32x66xi32>
    %c2_i32 = arith.constant 2 : i32
    %11 = vector.broadcast %c2_i32 : i32 to vector<32x66xi32>
    %12 = arith.muli %11, %9 : vector<32x66xi32>
    %c0_i32 = arith.constant 0 : i32
    %13 = vector.broadcast %c0_i32 : i32 to vector<32x66xi32>
    %14 = arith.addi %13, %12 : vector<32x66xi32>
    %15 = arith.cmpi eq, %10, %14 : vector<32x66xi32>
    %16 = arith.extui %15 : vector<32x66xi1> to vector<32x66xi32>
    %17 = arith.sitofp %16 : vector<32x66xi32> to vector<32x66xf32>
    %cst_11 = arith.constant dense<0.000000e+00> : vector<32x1xf32>
    %18 = tpu.matmul %17, %8, %cst_11 {dimension_numbers = #tpu.dot_dimension_numbers<[1], [0], [0], [1], [0, 0, 1, 1], [], []>} : vector<32x66xf32>, vector<66x1xf32>, vector<32x1xf32> -> vector<32x1xf32>
    %19 = tpu.iota {dimensions = array<i32: 0>} : vector<32x66xi32>
    %20 = tpu.iota {dimensions = array<i32: 1>} : vector<32x66xi32>
    %c2_i32_12 = arith.constant 2 : i32
    %21 = vector.broadcast %c2_i32_12 : i32 to vector<32x66xi32>
    %22 = arith.muli %21, %19 : vector<32x66xi32>
    %c1_i32 = arith.constant 1 : i32
    %23 = vector.broadcast %c1_i32 : i32 to vector<32x66xi32>
    %24 = arith.addi %23, %22 : vector<32x66xi32>
    %25 = arith.cmpi eq, %20, %24 : vector<32x66xi32>
    %26 = arith.extui %25 : vector<32x66xi1> to vector<32x66xi32>
    %27 = arith.sitofp %26 : vector<32x66xi32> to vector<32x66xf32>
    %cst_13 = arith.constant dense<0.000000e+00> : vector<32x1xf32>
    %28 = tpu.matmul %27, %8, %cst_13 {dimension_numbers = #tpu.dot_dimension_numbers<[1], [0], [0], [1], [0, 0, 1, 1], [], []>} : vector<32x66xf32>, vector<66x1xf32>, vector<32x1xf32> -> vector<32x1xf32>
    %29 = tpu.iota {dimensions = array<i32: 0>} : vector<32x66xi32>
    %30 = tpu.iota {dimensions = array<i32: 1>} : vector<32x66xi32>
    %c2_i32_14 = arith.constant 2 : i32
    %31 = vector.broadcast %c2_i32_14 : i32 to vector<32x66xi32>
    %32 = arith.muli %31, %29 : vector<32x66xi32>
    %c2_i32_15 = arith.constant 2 : i32
    %33 = vector.broadcast %c2_i32_15 : i32 to vector<32x66xi32>
    %34 = arith.addi %33, %32 : vector<32x66xi32>
    %35 = arith.cmpi eq, %30, %34 : vector<32x66xi32>
    %36 = arith.extui %35 : vector<32x66xi1> to vector<32x66xi32>
    %37 = arith.sitofp %36 : vector<32x66xi32> to vector<32x66xf32>
    %cst_16 = arith.constant dense<0.000000e+00> : vector<32x1xf32>
    %38 = tpu.matmul %37, %8, %cst_16 {dimension_numbers = #tpu.dot_dimension_numbers<[1], [0], [0], [1], [0, 0, 1, 1], [], []>} : vector<32x66xf32>, vector<66x1xf32>, vector<32x1xf32> -> vector<32x1xf32>
    %39 = tpu.iota {dimensions = array<i32: 0>} : vector<32x66xi32>
    %40 = tpu.iota {dimensions = array<i32: 1>} : vector<32x66xi32>
    %c2_i32_17 = arith.constant 2 : i32
    %41 = vector.broadcast %c2_i32_17 : i32 to vector<32x66xi32>
    %42 = arith.muli %41, %39 : vector<32x66xi32>
    %c3_i32 = arith.constant 3 : i32
    %43 = vector.broadcast %c3_i32 : i32 to vector<32x66xi32>
    %44 = arith.addi %43, %42 : vector<32x66xi32>
    %45 = arith.cmpi eq, %40, %44 : vector<32x66xi32>
    %46 = arith.extui %45 : vector<32x66xi1> to vector<32x66xi32>
    %47 = arith.sitofp %46 : vector<32x66xi32> to vector<32x66xf32>
    %cst_18 = arith.constant dense<0.000000e+00> : vector<32x1xf32>
    %48 = tpu.matmul %47, %8, %cst_18 {dimension_numbers = #tpu.dot_dimension_numbers<[1], [0], [0], [1], [0, 0, 1, 1], [], []>} : vector<32x66xf32>, vector<66x1xf32>, vector<32x1xf32> -> vector<32x1xf32>
    %49 = tpu.concatenate %18, %28, %38, %48 in 1 : vector<32x1xf32>, vector<32x1xf32>, vector<32x1xf32>, vector<32x1xf32> -> vector<32x4xf32>
    %cst_19 = arith.constant dense<0.000000e+00> : vector<32x32xf32>
    %50 = tpu.matmul %49, %5, %cst_19 {dimension_numbers = #tpu.dot_dimension_numbers<[1], [0], [0], [1], [0, 0, 1, 1], [], []>} : vector<32x4xf32>, vector<4x32xf32>, vector<32x32xf32> -> vector<32x32xf32>
    %51 = vector.broadcast %6 : vector<1x32xf32> to vector<32x32xf32>
    %52 = arith.addf %50, %51 : vector<32x32xf32>
    %cst_20 = arith.constant 0.000000e+00 : f32
    %53 = vector.broadcast %cst_20 : f32 to vector<32x32xf32>
    %54 = arith.maximumf %52, %53 : vector<32x32xf32>
    %c0_21 = arith.constant 0 : index
    %c0_22 = arith.constant 0 : index
    %55 = vector.load %arg3[%c0_21, %c0_22] : memref<128x64xf32, #tpu.memory_space<vmem>>, vector<128x64xf32>
    %c0_23 = arith.constant 0 : index
    %c0_24 = arith.constant 0 : index
    %56 = vector.load %arg4[%c0_23, %c0_24] : memref<1x64xf32, #tpu.memory_space<vmem>>, vector<1x64xf32>
    %cst_25 = arith.constant 0.000000e+00 : f32
    %57 = vector.broadcast %cst_25 : f32 to vector<1x32xf32>
    %58 = tpu.concatenate %57, %54, %57 in 0 : vector<1x32xf32>, vector<32x32xf32>, vector<1x32xf32> -> vector<34x32xf32>
    %59 = tpu.iota {dimensions = array<i32: 0>} : vector<16x34xi32>
    %60 = tpu.iota {dimensions = array<i32: 1>} : vector<16x34xi32>
    %c2_i32_26 = arith.constant 2 : i32
    %61 = vector.broadcast %c2_i32_26 : i32 to vector<16x34xi32>
    %62 = arith.muli %61, %59 : vector<16x34xi32>
    %c0_i32_27 = arith.constant 0 : i32
    %63 = vector.broadcast %c0_i32_27 : i32 to vector<16x34xi32>
    %64 = arith.addi %63, %62 : vector<16x34xi32>
    %65 = arith.cmpi eq, %60, %64 : vector<16x34xi32>
    %66 = arith.extui %65 : vector<16x34xi1> to vector<16x34xi32>
    %67 = arith.sitofp %66 : vector<16x34xi32> to vector<16x34xf32>
    %cst_28 = arith.constant dense<0.000000e+00> : vector<16x32xf32>
    %68 = tpu.matmul %67, %58, %cst_28 {dimension_numbers = #tpu.dot_dimension_numbers<[1], [0], [0], [1], [0, 0, 1, 1], [], []>} : vector<16x34xf32>, vector<34x32xf32>, vector<16x32xf32> -> vector<16x32xf32>
    %69 = tpu.iota {dimensions = array<i32: 0>} : vector<16x34xi32>
    %70 = tpu.iota {dimensions = array<i32: 1>} : vector<16x34xi32>
    %c2_i32_29 = arith.constant 2 : i32
    %71 = vector.broadcast %c2_i32_29 : i32 to vector<16x34xi32>
    %72 = arith.muli %71, %69 : vector<16x34xi32>
    %c1_i32_30 = arith.constant 1 : i32
    %73 = vector.broadcast %c1_i32_30 : i32 to vector<16x34xi32>
    %74 = arith.addi %73, %72 : vector<16x34xi32>
    %75 = arith.cmpi eq, %70, %74 : vector<16x34xi32>
    %76 = arith.extui %75 : vector<16x34xi1> to vector<16x34xi32>
    %77 = arith.sitofp %76 : vector<16x34xi32> to vector<16x34xf32>
    %cst_31 = arith.constant dense<0.000000e+00> : vector<16x32xf32>
    %78 = tpu.matmul %77, %58, %cst_31 {dimension_numbers = #tpu.dot_dimension_numbers<[1], [0], [0], [1], [0, 0, 1, 1], [], []>} : vector<16x34xf32>, vector<34x32xf32>, vector<16x32xf32> -> vector<16x32xf32>
    %79 = tpu.iota {dimensions = array<i32: 0>} : vector<16x34xi32>
    %80 = tpu.iota {dimensions = array<i32: 1>} : vector<16x34xi32>
    %c2_i32_32 = arith.constant 2 : i32
    %81 = vector.broadcast %c2_i32_32 : i32 to vector<16x34xi32>
    %82 = arith.muli %81, %79 : vector<16x34xi32>
    %c2_i32_33 = arith.constant 2 : i32
    %83 = vector.broadcast %c2_i32_33 : i32 to vector<16x34xi32>
    %84 = arith.addi %83, %82 : vector<16x34xi32>
    %85 = arith.cmpi eq, %80, %84 : vector<16x34xi32>
    %86 = arith.extui %85 : vector<16x34xi1> to vector<16x34xi32>
    %87 = arith.sitofp %86 : vector<16x34xi32> to vector<16x34xf32>
    %cst_34 = arith.constant dense<0.000000e+00> : vector<16x32xf32>
    %88 = tpu.matmul %87, %58, %cst_34 {dimension_numbers = #tpu.dot_dimension_numbers<[1], [0], [0], [1], [0, 0, 1, 1], [], []>} : vector<16x34xf32>, vector<34x32xf32>, vector<16x32xf32> -> vector<16x32xf32>
    %89 = tpu.iota {dimensions = array<i32: 0>} : vector<16x34xi32>
    %90 = tpu.iota {dimensions = array<i32: 1>} : vector<16x34xi32>
    %c2_i32_35 = arith.constant 2 : i32
    %91 = vector.broadcast %c2_i32_35 : i32 to vector<16x34xi32>
    %92 = arith.muli %91, %89 : vector<16x34xi32>
    %c3_i32_36 = arith.constant 3 : i32
    %93 = vector.broadcast %c3_i32_36 : i32 to vector<16x34xi32>
    %94 = arith.addi %93, %92 : vector<16x34xi32>
    %95 = arith.cmpi eq, %90, %94 : vector<16x34xi32>
    %96 = arith.extui %95 : vector<16x34xi1> to vector<16x34xi32>
    %97 = arith.sitofp %96 : vector<16x34xi32> to vector<16x34xf32>
    %cst_37 = arith.constant dense<0.000000e+00> : vector<16x32xf32>
    %98 = tpu.matmul %97, %58, %cst_37 {dimension_numbers = #tpu.dot_dimension_numbers<[1], [0], [0], [1], [0, 0, 1, 1], [], []>} : vector<16x34xf32>, vector<34x32xf32>, vector<16x32xf32> -> vector<16x32xf32>
    %99 = tpu.concatenate %68, %78, %88, %98 in 1 : vector<16x32xf32>, vector<16x32xf32>, vector<16x32xf32>, vector<16x32xf32> -> vector<16x128xf32>
    %cst_38 = arith.constant dense<0.000000e+00> : vector<16x64xf32>
    %100 = tpu.matmul %99, %55, %cst_38 {dimension_numbers = #tpu.dot_dimension_numbers<[1], [0], [0], [1], [0, 0, 1, 1], [], []>} : vector<16x128xf32>, vector<128x64xf32>, vector<16x64xf32> -> vector<16x64xf32>
    %101 = vector.broadcast %56 : vector<1x64xf32> to vector<16x64xf32>
    %102 = arith.addf %100, %101 : vector<16x64xf32>
    %cst_39 = arith.constant 0.000000e+00 : f32
    %103 = vector.broadcast %cst_39 : f32 to vector<16x64xf32>
    %104 = arith.maximumf %102, %103 : vector<16x64xf32>
    %c0_40 = arith.constant 0 : index
    %c0_41 = arith.constant 0 : index
    %105 = vector.load %arg5[%c0_40, %c0_41] : memref<256x64xf32, #tpu.memory_space<vmem>>, vector<256x64xf32>
    %c0_42 = arith.constant 0 : index
    %c0_43 = arith.constant 0 : index
    %106 = vector.load %arg6[%c0_42, %c0_43] : memref<1x64xf32, #tpu.memory_space<vmem>>, vector<1x64xf32>
    %cst_44 = arith.constant 0.000000e+00 : f32
    %107 = vector.broadcast %cst_44 : f32 to vector<1x64xf32>
    %108 = tpu.concatenate %107, %104, %107 in 0 : vector<1x64xf32>, vector<16x64xf32>, vector<1x64xf32> -> vector<18x64xf32>
    %109 = tpu.iota {dimensions = array<i32: 0>} : vector<8x18xi32>
    %110 = tpu.iota {dimensions = array<i32: 1>} : vector<8x18xi32>
    %c2_i32_45 = arith.constant 2 : i32
    %111 = vector.broadcast %c2_i32_45 : i32 to vector<8x18xi32>
    %112 = arith.muli %111, %109 : vector<8x18xi32>
    %c0_i32_46 = arith.constant 0 : i32
    %113 = vector.broadcast %c0_i32_46 : i32 to vector<8x18xi32>
    %114 = arith.addi %113, %112 : vector<8x18xi32>
    %115 = arith.cmpi eq, %110, %114 : vector<8x18xi32>
    %116 = arith.extui %115 : vector<8x18xi1> to vector<8x18xi32>
    %117 = arith.sitofp %116 : vector<8x18xi32> to vector<8x18xf32>
    %cst_47 = arith.constant dense<0.000000e+00> : vector<8x64xf32>
    %118 = tpu.matmul %117, %108, %cst_47 {dimension_numbers = #tpu.dot_dimension_numbers<[1], [0], [0], [1], [0, 0, 1, 1], [], []>} : vector<8x18xf32>, vector<18x64xf32>, vector<8x64xf32> -> vector<8x64xf32>
    %119 = tpu.iota {dimensions = array<i32: 0>} : vector<8x18xi32>
    %120 = tpu.iota {dimensions = array<i32: 1>} : vector<8x18xi32>
    %c2_i32_48 = arith.constant 2 : i32
    %121 = vector.broadcast %c2_i32_48 : i32 to vector<8x18xi32>
    %122 = arith.muli %121, %119 : vector<8x18xi32>
    %c1_i32_49 = arith.constant 1 : i32
    %123 = vector.broadcast %c1_i32_49 : i32 to vector<8x18xi32>
    %124 = arith.addi %123, %122 : vector<8x18xi32>
    %125 = arith.cmpi eq, %120, %124 : vector<8x18xi32>
    %126 = arith.extui %125 : vector<8x18xi1> to vector<8x18xi32>
    %127 = arith.sitofp %126 : vector<8x18xi32> to vector<8x18xf32>
    %cst_50 = arith.constant dense<0.000000e+00> : vector<8x64xf32>
    %128 = tpu.matmul %127, %108, %cst_50 {dimension_numbers = #tpu.dot_dimension_numbers<[1], [0], [0], [1], [0, 0, 1, 1], [], []>} : vector<8x18xf32>, vector<18x64xf32>, vector<8x64xf32> -> vector<8x64xf32>
    %129 = tpu.iota {dimensions = array<i32: 0>} : vector<8x18xi32>
    %130 = tpu.iota {dimensions = array<i32: 1>} : vector<8x18xi32>
    %c2_i32_51 = arith.constant 2 : i32
    %131 = vector.broadcast %c2_i32_51 : i32 to vector<8x18xi32>
    %132 = arith.muli %131, %129 : vector<8x18xi32>
    %c2_i32_52 = arith.constant 2 : i32
    %133 = vector.broadcast %c2_i32_52 : i32 to vector<8x18xi32>
    %134 = arith.addi %133, %132 : vector<8x18xi32>
    %135 = arith.cmpi eq, %130, %134 : vector<8x18xi32>
    %136 = arith.extui %135 : vector<8x18xi1> to vector<8x18xi32>
    %137 = arith.sitofp %136 : vector<8x18xi32> to vector<8x18xf32>
    %cst_53 = arith.constant dense<0.000000e+00> : vector<8x64xf32>
    %138 = tpu.matmul %137, %108, %cst_53 {dimension_numbers = #tpu.dot_dimension_numbers<[1], [0], [0], [1], [0, 0, 1, 1], [], []>} : vector<8x18xf32>, vector<18x64xf32>, vector<8x64xf32> -> vector<8x64xf32>
    %139 = tpu.iota {dimensions = array<i32: 0>} : vector<8x18xi32>
    %140 = tpu.iota {dimensions = array<i32: 1>} : vector<8x18xi32>
    %c2_i32_54 = arith.constant 2 : i32
    %141 = vector.broadcast %c2_i32_54 : i32 to vector<8x18xi32>
    %142 = arith.muli %141, %139 : vector<8x18xi32>
    %c3_i32_55 = arith.constant 3 : i32
    %143 = vector.broadcast %c3_i32_55 : i32 to vector<8x18xi32>
    %144 = arith.addi %143, %142 : vector<8x18xi32>
    %145 = arith.cmpi eq, %140, %144 : vector<8x18xi32>
    %146 = arith.extui %145 : vector<8x18xi1> to vector<8x18xi32>
    %147 = arith.sitofp %146 : vector<8x18xi32> to vector<8x18xf32>
    %cst_56 = arith.constant dense<0.000000e+00> : vector<8x64xf32>
    %148 = tpu.matmul %147, %108, %cst_56 {dimension_numbers = #tpu.dot_dimension_numbers<[1], [0], [0], [1], [0, 0, 1, 1], [], []>} : vector<8x18xf32>, vector<18x64xf32>, vector<8x64xf32> -> vector<8x64xf32>
    %149 = tpu.concatenate %118, %128, %138, %148 in 1 : vector<8x64xf32>, vector<8x64xf32>, vector<8x64xf32>, vector<8x64xf32> -> vector<8x256xf32>
    %cst_57 = arith.constant dense<0.000000e+00> : vector<8x64xf32>
    %150 = tpu.matmul %149, %105, %cst_57 {dimension_numbers = #tpu.dot_dimension_numbers<[1], [0], [0], [1], [0, 0, 1, 1], [], []>} : vector<8x256xf32>, vector<256x64xf32>, vector<8x64xf32> -> vector<8x64xf32>
    %151 = vector.broadcast %106 : vector<1x64xf32> to vector<8x64xf32>
    %152 = arith.addf %150, %151 : vector<8x64xf32>
    %cst_58 = arith.constant 0.000000e+00 : f32
    %153 = vector.broadcast %cst_58 : f32 to vector<8x64xf32>
    %154 = arith.maximumf %152, %153 : vector<8x64xf32>
    %cst_59 = arith.constant dense<0.000000e+00> : vector<8x1024xf32>
    %155 = tpu.matmul %154, %0, %cst_59 {dimension_numbers = #tpu.dot_dimension_numbers<[1], [1], [0], [0], [0, 0, 1, 0], [], []>} : vector<8x64xf32>, vector<1024x64xf32>, vector<8x1024xf32> -> vector<8x1024xf32>
    %cst_60 = arith.constant 2.000000e+00 : f32
    %156 = vector.broadcast %cst_60 : f32 to vector<8x1024xf32>
    %157 = arith.mulf %156, %155 : vector<8x1024xf32>
    %158 = vector.broadcast %1 : vector<1x1024xf32> to vector<8x1024xf32>
    %159 = arith.subf %158, %157 : vector<8x1024xf32>
    %cst_61 = arith.constant dense<0x7F800000> : vector<8xf32>
    %160 = vector.multi_reduction <minimumf>, %159, %cst_61 [1] : vector<8x1024xf32> to vector<8xf32>
    %161 = vector.shape_cast %160 : vector<8xf32> to vector<8x1xf32>
    %162 = tpu.iota {dimensions = array<i32: 1>} : vector<8x1024xi32>
    %163 = vector.broadcast %161 : vector<8x1xf32> to vector<8x1024xf32>
    %164 = arith.cmpf oeq, %159, %163 : vector<8x1024xf32>
    %c1024_i32 = arith.constant 1024 : i32
    %165 = vector.broadcast %c1024_i32 : i32 to vector<8x1024xi32>
    %166 = arith.select %164, %162, %165 : vector<8x1024xi1>, vector<8x1024xi32>
    %cst_62 = arith.constant dense<2147483647> : vector<8xi32>
    %167 = vector.multi_reduction <minsi>, %166, %cst_62 [1] : vector<8x1024xi32> to vector<8xi32>
    %168 = vector.shape_cast %167 : vector<8xi32> to vector<8x1xi32>
    %169 = vector.broadcast %168 : vector<8x1xi32> to vector<8x1024xi32>
    %170 = arith.cmpi eq, %162, %169 : vector<8x1024xi32>
    %171 = arith.extui %170 : vector<8x1024xi1> to vector<8x1024xi32>
    %172 = arith.sitofp %171 : vector<8x1024xi32> to vector<8x1024xf32>
    %cst_63 = arith.constant dense<0.000000e+00> : vector<8x64xf32>
    %173 = tpu.matmul %172, %0, %cst_63 {dimension_numbers = #tpu.dot_dimension_numbers<[1], [0], [0], [1], [0, 0, 1, 1], [], []>} : vector<8x1024xf32>, vector<1024x64xf32>, vector<8x64xf32> -> vector<8x64xf32>
    %174 = tpu.iota {dimensions = array<i32: 0>} : vector<64x8xi32>
    %175 = tpu.iota {dimensions = array<i32: 1>} : vector<64x8xi32>
    %cst_64 = arith.constant 0.000000e+00 : f32
    %176 = vector.broadcast %cst_64 : f32 to vector<64x8xf32>
    %c8_i32 = arith.constant 8 : i32
    %177 = vector.broadcast %c8_i32 : i32 to vector<64x8xi32>
    %178 = arith.muli %177, %175 : vector<64x8xi32>
    %c0_i32_65 = arith.constant 0 : i32
    %179 = vector.broadcast %c0_i32_65 : i32 to vector<64x8xi32>
    %180 = arith.addi %178, %179 : vector<64x8xi32>
    %181 = arith.cmpi eq, %174, %180 : vector<64x8xi32>
    %182 = arith.extui %181 : vector<64x8xi1> to vector<64x8xi32>
    %183 = arith.sitofp %182 : vector<64x8xi32> to vector<64x8xf32>
    %184 = vector.extract_strided_slice %173 {offsets = [0, 0], sizes = [8, 8], strides = [1, 1]} : vector<8x64xf32> to vector<8x8xf32>
    %cst_66 = arith.constant dense<0.000000e+00> : vector<64x8xf32>
    %185 = tpu.matmul %183, %184, %cst_66 {dimension_numbers = #tpu.dot_dimension_numbers<[1], [0], [0], [1], [0, 0, 1, 1], [], []>} : vector<64x8xf32>, vector<8x8xf32>, vector<64x8xf32> -> vector<64x8xf32>
    %186 = arith.addf %176, %185 : vector<64x8xf32>
    %c8_i32_67 = arith.constant 8 : i32
    %187 = vector.broadcast %c8_i32_67 : i32 to vector<64x8xi32>
    %188 = arith.muli %187, %175 : vector<64x8xi32>
    %c1_i32_68 = arith.constant 1 : i32
    %189 = vector.broadcast %c1_i32_68 : i32 to vector<64x8xi32>
    %190 = arith.addi %188, %189 : vector<64x8xi32>
    %191 = arith.cmpi eq, %174, %190 : vector<64x8xi32>
    %192 = arith.extui %191 : vector<64x8xi1> to vector<64x8xi32>
    %193 = arith.sitofp %192 : vector<64x8xi32> to vector<64x8xf32>
    %194 = vector.extract_strided_slice %173 {offsets = [0, 8], sizes = [8, 8], strides = [1, 1]} : vector<8x64xf32> to vector<8x8xf32>
    %cst_69 = arith.constant dense<0.000000e+00> : vector<64x8xf32>
    %195 = tpu.matmul %193, %194, %cst_69 {dimension_numbers = #tpu.dot_dimension_numbers<[1], [0], [0], [1], [0, 0, 1, 1], [], []>} : vector<64x8xf32>, vector<8x8xf32>, vector<64x8xf32> -> vector<64x8xf32>
    %196 = arith.addf %186, %195 : vector<64x8xf32>
    %c8_i32_70 = arith.constant 8 : i32
    %197 = vector.broadcast %c8_i32_70 : i32 to vector<64x8xi32>
    %198 = arith.muli %197, %175 : vector<64x8xi32>
    %c2_i32_71 = arith.constant 2 : i32
    %199 = vector.broadcast %c2_i32_71 : i32 to vector<64x8xi32>
    %200 = arith.addi %198, %199 : vector<64x8xi32>
    %201 = arith.cmpi eq, %174, %200 : vector<64x8xi32>
    %202 = arith.extui %201 : vector<64x8xi1> to vector<64x8xi32>
    %203 = arith.sitofp %202 : vector<64x8xi32> to vector<64x8xf32>
    %204 = vector.extract_strided_slice %173 {offsets = [0, 16], sizes = [8, 8], strides = [1, 1]} : vector<8x64xf32> to vector<8x8xf32>
    %cst_72 = arith.constant dense<0.000000e+00> : vector<64x8xf32>
    %205 = tpu.matmul %203, %204, %cst_72 {dimension_numbers = #tpu.dot_dimension_numbers<[1], [0], [0], [1], [0, 0, 1, 1], [], []>} : vector<64x8xf32>, vector<8x8xf32>, vector<64x8xf32> -> vector<64x8xf32>
    %206 = arith.addf %196, %205 : vector<64x8xf32>
    %c8_i32_73 = arith.constant 8 : i32
    %207 = vector.broadcast %c8_i32_73 : i32 to vector<64x8xi32>
    %208 = arith.muli %207, %175 : vector<64x8xi32>
    %c3_i32_74 = arith.constant 3 : i32
    %209 = vector.broadcast %c3_i32_74 : i32 to vector<64x8xi32>
    %210 = arith.addi %208, %209 : vector<64x8xi32>
    %211 = arith.cmpi eq, %174, %210 : vector<64x8xi32>
    %212 = arith.extui %211 : vector<64x8xi1> to vector<64x8xi32>
    %213 = arith.sitofp %212 : vector<64x8xi32> to vector<64x8xf32>
    %214 = vector.extract_strided_slice %173 {offsets = [0, 24], sizes = [8, 8], strides = [1, 1]} : vector<8x64xf32> to vector<8x8xf32>
    %cst_75 = arith.constant dense<0.000000e+00> : vector<64x8xf32>
    %215 = tpu.matmul %213, %214, %cst_75 {dimension_numbers = #tpu.dot_dimension_numbers<[1], [0], [0], [1], [0, 0, 1, 1], [], []>} : vector<64x8xf32>, vector<8x8xf32>, vector<64x8xf32> -> vector<64x8xf32>
    %216 = arith.addf %206, %215 : vector<64x8xf32>
    %c8_i32_76 = arith.constant 8 : i32
    %217 = vector.broadcast %c8_i32_76 : i32 to vector<64x8xi32>
    %218 = arith.muli %217, %175 : vector<64x8xi32>
    %c4_i32 = arith.constant 4 : i32
    %219 = vector.broadcast %c4_i32 : i32 to vector<64x8xi32>
    %220 = arith.addi %218, %219 : vector<64x8xi32>
    %221 = arith.cmpi eq, %174, %220 : vector<64x8xi32>
    %222 = arith.extui %221 : vector<64x8xi1> to vector<64x8xi32>
    %223 = arith.sitofp %222 : vector<64x8xi32> to vector<64x8xf32>
    %224 = vector.extract_strided_slice %173 {offsets = [0, 32], sizes = [8, 8], strides = [1, 1]} : vector<8x64xf32> to vector<8x8xf32>
    %cst_77 = arith.constant dense<0.000000e+00> : vector<64x8xf32>
    %225 = tpu.matmul %223, %224, %cst_77 {dimension_numbers = #tpu.dot_dimension_numbers<[1], [0], [0], [1], [0, 0, 1, 1], [], []>} : vector<64x8xf32>, vector<8x8xf32>, vector<64x8xf32> -> vector<64x8xf32>
    %226 = arith.addf %216, %225 : vector<64x8xf32>
    %c8_i32_78 = arith.constant 8 : i32
    %227 = vector.broadcast %c8_i32_78 : i32 to vector<64x8xi32>
    %228 = arith.muli %227, %175 : vector<64x8xi32>
    %c5_i32 = arith.constant 5 : i32
    %229 = vector.broadcast %c5_i32 : i32 to vector<64x8xi32>
    %230 = arith.addi %228, %229 : vector<64x8xi32>
    %231 = arith.cmpi eq, %174, %230 : vector<64x8xi32>
    %232 = arith.extui %231 : vector<64x8xi1> to vector<64x8xi32>
    %233 = arith.sitofp %232 : vector<64x8xi32> to vector<64x8xf32>
    %234 = vector.extract_strided_slice %173 {offsets = [0, 40], sizes = [8, 8], strides = [1, 1]} : vector<8x64xf32> to vector<8x8xf32>
    %cst_79 = arith.constant dense<0.000000e+00> : vector<64x8xf32>
    %235 = tpu.matmul %233, %234, %cst_79 {dimension_numbers = #tpu.dot_dimension_numbers<[1], [0], [0], [1], [0, 0, 1, 1], [], []>} : vector<64x8xf32>, vector<8x8xf32>, vector<64x8xf32> -> vector<64x8xf32>
    %236 = arith.addf %226, %235 : vector<64x8xf32>
    %c8_i32_80 = arith.constant 8 : i32
    %237 = vector.broadcast %c8_i32_80 : i32 to vector<64x8xi32>
    %238 = arith.muli %237, %175 : vector<64x8xi32>
    %c6_i32 = arith.constant 6 : i32
    %239 = vector.broadcast %c6_i32 : i32 to vector<64x8xi32>
    %240 = arith.addi %238, %239 : vector<64x8xi32>
    %241 = arith.cmpi eq, %174, %240 : vector<64x8xi32>
    %242 = arith.extui %241 : vector<64x8xi1> to vector<64x8xi32>
    %243 = arith.sitofp %242 : vector<64x8xi32> to vector<64x8xf32>
    %244 = vector.extract_strided_slice %173 {offsets = [0, 48], sizes = [8, 8], strides = [1, 1]} : vector<8x64xf32> to vector<8x8xf32>
    %cst_81 = arith.constant dense<0.000000e+00> : vector<64x8xf32>
    %245 = tpu.matmul %243, %244, %cst_81 {dimension_numbers = #tpu.dot_dimension_numbers<[1], [0], [0], [1], [0, 0, 1, 1], [], []>} : vector<64x8xf32>, vector<8x8xf32>, vector<64x8xf32> -> vector<64x8xf32>
    %246 = arith.addf %236, %245 : vector<64x8xf32>
    %c8_i32_82 = arith.constant 8 : i32
    %247 = vector.broadcast %c8_i32_82 : i32 to vector<64x8xi32>
    %248 = arith.muli %247, %175 : vector<64x8xi32>
    %c7_i32 = arith.constant 7 : i32
    %249 = vector.broadcast %c7_i32 : i32 to vector<64x8xi32>
    %250 = arith.addi %248, %249 : vector<64x8xi32>
    %251 = arith.cmpi eq, %174, %250 : vector<64x8xi32>
    %252 = arith.extui %251 : vector<64x8xi1> to vector<64x8xi32>
    %253 = arith.sitofp %252 : vector<64x8xi32> to vector<64x8xf32>
    %254 = vector.extract_strided_slice %173 {offsets = [0, 56], sizes = [8, 8], strides = [1, 1]} : vector<8x64xf32> to vector<8x8xf32>
    %cst_83 = arith.constant dense<0.000000e+00> : vector<64x8xf32>
    %255 = tpu.matmul %253, %254, %cst_83 {dimension_numbers = #tpu.dot_dimension_numbers<[1], [0], [0], [1], [0, 0, 1, 1], [], []>} : vector<64x8xf32>, vector<8x8xf32>, vector<64x8xf32> -> vector<64x8xf32>
    %256 = arith.addf %246, %255 : vector<64x8xf32>
    %257 = tpu.transpose %154, [1, 0] : vector<8x64xf32> -> vector<64x8xf32>
    %258 = arith.subf %256, %257 : vector<64x8xf32>
    %259 = arith.mulf %258, %258 : vector<64x8xf32>
    %cst_84 = arith.constant dense<0.000000e+00> : vector<64xf32>
    %260 = vector.multi_reduction <add>, %259, %cst_84 [1] : vector<64x8xf32> to vector<64xf32>
    %261 = vector.shape_cast %260 : vector<64xf32> to vector<64x1xf32>
    %cst_85 = arith.constant dense<0.000000e+00> : vector<1xf32>
    %262 = vector.multi_reduction <add>, %261, %cst_85 [0] : vector<64x1xf32> to vector<1xf32>
    %263 = vector.shape_cast %262 : vector<1xf32> to vector<1x1xf32>
    %264 = arith.addf %2, %263 : vector<1x1xf32>
    %265 = arith.mulf %256, %256 : vector<64x8xf32>
    %cst_86 = arith.constant dense<0.000000e+00> : vector<64xf32>
    %266 = vector.multi_reduction <add>, %265, %cst_86 [1] : vector<64x8xf32> to vector<64xf32>
    %267 = vector.shape_cast %266 : vector<64xf32> to vector<64x1xf32>
    %268 = math.sqrt %267 : vector<64x1xf32>
    %cst_87 = arith.constant 9.99999996E-13 : f32
    %269 = vector.broadcast %cst_87 : f32 to vector<64x1xf32>
    %270 = arith.maximumf %268, %269 : vector<64x1xf32>
    %271 = vector.broadcast %270 : vector<64x1xf32> to vector<64x8xf32>
    %272 = arith.divf %256, %271 : vector<64x8xf32>
    %c0_88 = arith.constant 0 : index
    %c0_89 = arith.constant 0 : index
    %c0_90 = arith.constant 0 : index
    %273 = vector.load %arg20[%c0_88, %c0_89, %c0_90] : memref<2x64x8xf32, #tpu.memory_space<vmem>>, vector<1x64x8xf32>
    %274 = vector.shape_cast %273 : vector<1x64x8xf32> to vector<64x8xf32>
    %275 = vector.shape_cast %272 : vector<64x8xf32> to vector<1x64x8xf32>
    tpu.vector_store %arg20[%c0_88, %c0_89, %c0_90], %275 {strides = array<i32>} : memref<2x64x8xf32, #tpu.memory_space<vmem>>, vector<1x64x8xf32>,
    %276 = tpu.transpose %272, [1, 0] : vector<64x8xf32> -> vector<8x64xf32>
    %c0_91 = arith.constant 0 : index
    %c0_92 = arith.constant 0 : index
    %277 = vector.load %arg9[%c0_91, %c0_92] : memref<128x64xf32, #tpu.memory_space<vmem>>, vector<128x64xf32>
    %c0_93 = arith.constant 0 : index
    %c0_94 = arith.constant 0 : index
    %278 = vector.load %arg10[%c0_93, %c0_94] : memref<128x64xf32, #tpu.memory_space<vmem>>, vector<128x64xf32>
    %c0_95 = arith.constant 0 : index
    %c0_96 = arith.constant 0 : index
    %279 = vector.load %arg11[%c0_95, %c0_96] : memref<1x64xf32, #tpu.memory_space<vmem>>, vector<1x64xf32>
    %cst_97 = arith.constant 0.000000e+00 : f32
    %280 = vector.broadcast %cst_97 : f32 to vector<1x64xf32>
    %281 = tpu.concatenate %280, %276, %280 in 0 : vector<1x64xf32>, vector<8x64xf32>, vector<1x64xf32> -> vector<10x64xf32>
    %282 = vector.extract_strided_slice %281 {offsets = [0, 0], sizes = [8, 64], strides = [1, 1]} : vector<10x64xf32> to vector<8x64xf32>
    %283 = vector.extract_strided_slice %281 {offsets = [1, 0], sizes = [8, 64], strides = [1, 1]} : vector<10x64xf32> to vector<8x64xf32>
    %284 = tpu.concatenate %282, %283 in 1 : vector<8x64xf32>, vector<8x64xf32> -> vector<8x128xf32>
    %285 = vector.extract_strided_slice %281 {offsets = [1, 0], sizes = [8, 64], strides = [1, 1]} : vector<10x64xf32> to vector<8x64xf32>
    %286 = vector.extract_strided_slice %281 {offsets = [2, 0], sizes = [8, 64], strides = [1, 1]} : vector<10x64xf32> to vector<8x64xf32>
    %287 = tpu.concatenate %285, %286 in 1 : vector<8x64xf32>, vector<8x64xf32> -> vector<8x128xf32>
    %cst_98 = arith.constant dense<0.000000e+00> : vector<8x64xf32>
    %288 = tpu.matmul %284, %277, %cst_98 {dimension_numbers = #tpu.dot_dimension_numbers<[1], [0], [0], [1], [0, 0, 1, 1], [], []>} : vector<8x128xf32>, vector<128x64xf32>, vector<8x64xf32> -> vector<8x64xf32>
    %cst_99 = arith.constant dense<0.000000e+00> : vector<8x64xf32>
    %289 = tpu.matmul %287, %278, %cst_99 {dimension_numbers = #tpu.dot_dimension_numbers<[1], [0], [0], [1], [0, 0, 1, 1], [], []>} : vector<8x128xf32>, vector<128x64xf32>, vector<8x64xf32> -> vector<8x64xf32>
    %290 = tpu.iota {dimensions = array<i32: 0>} : vector<16x8xi32>
    %291 = tpu.iota {dimensions = array<i32: 1>} : vector<16x8xi32>
    %c2_i32_100 = arith.constant 2 : i32
    %292 = vector.broadcast %c2_i32_100 : i32 to vector<16x8xi32>
    %293 = arith.muli %292, %291 : vector<16x8xi32>
    %294 = arith.cmpi eq, %290, %293 : vector<16x8xi32>
    %295 = arith.extui %294 : vector<16x8xi1> to vector<16x8xi32>
    %296 = arith.sitofp %295 : vector<16x8xi32> to vector<16x8xf32>
    %c2_i32_101 = arith.constant 2 : i32
    %297 = vector.broadcast %c2_i32_101 : i32 to vector<16x8xi32>
    %298 = arith.muli %297, %291 : vector<16x8xi32>
    %c1_i32_102 = arith.constant 1 : i32
    %299 = vector.broadcast %c1_i32_102 : i32 to vector<16x8xi32>
    %300 = arith.addi %298, %299 : vector<16x8xi32>
    %301 = arith.cmpi eq, %290, %300 : vector<16x8xi32>
    %302 = arith.extui %301 : vector<16x8xi1> to vector<16x8xi32>
    %303 = arith.sitofp %302 : vector<16x8xi32> to vector<16x8xf32>
    %cst_103 = arith.constant dense<0.000000e+00> : vector<16x64xf32>
    %304 = tpu.matmul %296, %288, %cst_103 {dimension_numbers = #tpu.dot_dimension_numbers<[1], [0], [0], [1], [0, 0, 1, 1], [], []>} : vector<16x8xf32>, vector<8x64xf32>, vector<16x64xf32> -> vector<16x64xf32>
    %cst_104 = arith.constant dense<0.000000e+00> : vector<16x64xf32>
    %305 = tpu.matmul %303, %289, %cst_104 {dimension_numbers = #tpu.dot_dimension_numbers<[1], [0], [0], [1], [0, 0, 1, 1], [], []>} : vector<16x8xf32>, vector<8x64xf32>, vector<16x64xf32> -> vector<16x64xf32>
    %306 = arith.addf %304, %305 : vector<16x64xf32>
    %307 = vector.broadcast %279 : vector<1x64xf32> to vector<16x64xf32>
    %308 = arith.addf %306, %307 : vector<16x64xf32>
    %cst_105 = arith.constant 0.000000e+00 : f32
    %309 = vector.broadcast %cst_105 : f32 to vector<16x64xf32>
    %310 = arith.maximumf %308, %309 : vector<16x64xf32>
    %c0_106 = arith.constant 0 : index
    %c0_107 = arith.constant 0 : index
    %311 = vector.load %arg12[%c0_106, %c0_107] : memref<128x32xf32, #tpu.memory_space<vmem>>, vector<128x32xf32>
    %c0_108 = arith.constant 0 : index
    %c0_109 = arith.constant 0 : index
    %312 = vector.load %arg13[%c0_108, %c0_109] : memref<128x32xf32, #tpu.memory_space<vmem>>, vector<128x32xf32>
    %c0_110 = arith.constant 0 : index
    %c0_111 = arith.constant 0 : index
    %313 = vector.load %arg14[%c0_110, %c0_111] : memref<1x32xf32, #tpu.memory_space<vmem>>, vector<1x32xf32>
    %cst_112 = arith.constant 0.000000e+00 : f32
    %314 = vector.broadcast %cst_112 : f32 to vector<1x64xf32>
    %315 = tpu.concatenate %314, %310, %314 in 0 : vector<1x64xf32>, vector<16x64xf32>, vector<1x64xf32> -> vector<18x64xf32>
    %316 = vector.extract_strided_slice %315 {offsets = [0, 0], sizes = [16, 64], strides = [1, 1]} : vector<18x64xf32> to vector<16x64xf32>
    %317 = vector.extract_strided_slice %315 {offsets = [1, 0], sizes = [16, 64], strides = [1, 1]} : vector<18x64xf32> to vector<16x64xf32>
    %318 = tpu.concatenate %316, %317 in 1 : vector<16x64xf32>, vector<16x64xf32> -> vector<16x128xf32>
    %319 = vector.extract_strided_slice %315 {offsets = [1, 0], sizes = [16, 64], strides = [1, 1]} : vector<18x64xf32> to vector<16x64xf32>
    %320 = vector.extract_strided_slice %315 {offsets = [2, 0], sizes = [16, 64], strides = [1, 1]} : vector<18x64xf32> to vector<16x64xf32>
    %321 = tpu.concatenate %319, %320 in 1 : vector<16x64xf32>, vector<16x64xf32> -> vector<16x128xf32>
    %cst_113 = arith.constant dense<0.000000e+00> : vector<16x32xf32>
    %322 = tpu.matmul %318, %311, %cst_113 {dimension_numbers = #tpu.dot_dimension_numbers<[1], [0], [0], [1], [0, 0, 1, 1], [], []>} : vector<16x128xf32>, vector<128x32xf32>, vector<16x32xf32> -> vector<16x32xf32>
    %cst_114 = arith.constant dense<0.000000e+00> : vector<16x32xf32>
    %323 = tpu.matmul %321, %312, %cst_114 {dimension_numbers = #tpu.dot_dimension_numbers<[1], [0], [0], [1], [0, 0, 1, 1], [], []>} : vector<16x128xf32>, vector<128x32xf32>, vector<16x32xf32> -> vector<16x32xf32>
    %324 = tpu.iota {dimensions = array<i32: 0>} : vector<32x16xi32>
    %325 = tpu.iota {dimensions = array<i32: 1>} : vector<32x16xi32>
    %c2_i32_115 = arith.constant 2 : i32
    %326 = vector.broadcast %c2_i32_115 : i32 to vector<32x16xi32>
    %327 = arith.muli %326, %325 : vector<32x16xi32>
    %328 = arith.cmpi eq, %324, %327 : vector<32x16xi32>
    %329 = arith.extui %328 : vector<32x16xi1> to vector<32x16xi32>
    %330 = arith.sitofp %329 : vector<32x16xi32> to vector<32x16xf32>
    %c2_i32_116 = arith.constant 2 : i32
    %331 = vector.broadcast %c2_i32_116 : i32 to vector<32x16xi32>
    %332 = arith.muli %331, %325 : vector<32x16xi32>
    %c1_i32_117 = arith.constant 1 : i32
    %333 = vector.broadcast %c1_i32_117 : i32 to vector<32x16xi32>
    %334 = arith.addi %332, %333 : vector<32x16xi32>
    %335 = arith.cmpi eq, %324, %334 : vector<32x16xi32>
    %336 = arith.extui %335 : vector<32x16xi1> to vector<32x16xi32>
    %337 = arith.sitofp %336 : vector<32x16xi32> to vector<32x16xf32>
    %cst_118 = arith.constant dense<0.000000e+00> : vector<32x32xf32>
    %338 = tpu.matmul %330, %322, %cst_118 {dimension_numbers = #tpu.dot_dimension_numbers<[1], [0], [0], [1], [0, 0, 1, 1], [], []>} : vector<32x16xf32>, vector<16x32xf32>, vector<32x32xf32> -> vector<32x32xf32>
    %cst_119 = arith.constant dense<0.000000e+00> : vector<32x32xf32>
    %339 = tpu.matmul %337, %323, %cst_119 {dimension_numbers = #tpu.dot_dimension_numbers<[1], [0], [0], [1], [0, 0, 1, 1], [], []>} : vector<32x16xf32>, vector<16x32xf32>, vector<32x32xf32> -> vector<32x32xf32>
    %340 = arith.addf %338, %339 : vector<32x32xf32>
    %341 = vector.broadcast %313 : vector<1x32xf32> to vector<32x32xf32>
    %342 = arith.addf %340, %341 : vector<32x32xf32>
    %cst_120 = arith.constant 0.000000e+00 : f32
    %343 = vector.broadcast %cst_120 : f32 to vector<32x32xf32>
    %344 = arith.maximumf %342, %343 : vector<32x32xf32>
    %c0_121 = arith.constant 0 : index
    %c0_122 = arith.constant 0 : index
    %345 = vector.load %arg15[%c0_121, %c0_122] : memref<64x1xf32, #tpu.memory_space<vmem>>, vector<64x1xf32>
    %c0_123 = arith.constant 0 : index
    %c0_124 = arith.constant 0 : index
    %346 = vector.load %arg16[%c0_123, %c0_124] : memref<64x1xf32, #tpu.memory_space<vmem>>, vector<64x1xf32>
    %c0_125 = arith.constant 0 : index
    %c0_126 = arith.constant 0 : index
    %347 = vector.load %arg17[%c0_125, %c0_126] : memref<1x1xf32, #tpu.memory_space<vmem>>, vector<1x1xf32>
    %cst_127 = arith.constant 0.000000e+00 : f32
    %348 = vector.broadcast %cst_127 : f32 to vector<1x32xf32>
    %349 = tpu.concatenate %348, %344, %348 in 0 : vector<1x32xf32>, vector<32x32xf32>, vector<1x32xf32> -> vector<34x32xf32>
    %350 = vector.extract_strided_slice %349 {offsets = [0, 0], sizes = [32, 32], strides = [1, 1]} : vector<34x32xf32> to vector<32x32xf32>
    %351 = vector.extract_strided_slice %349 {offsets = [1, 0], sizes = [32, 32], strides = [1, 1]} : vector<34x32xf32> to vector<32x32xf32>
    %352 = tpu.concatenate %350, %351 in 1 : vector<32x32xf32>, vector<32x32xf32> -> vector<32x64xf32>
    %353 = vector.extract_strided_slice %349 {offsets = [1, 0], sizes = [32, 32], strides = [1, 1]} : vector<34x32xf32> to vector<32x32xf32>
    %354 = vector.extract_strided_slice %349 {offsets = [2, 0], sizes = [32, 32], strides = [1, 1]} : vector<34x32xf32> to vector<32x32xf32>
    %355 = tpu.concatenate %353, %354 in 1 : vector<32x32xf32>, vector<32x32xf32> -> vector<32x64xf32>
    %cst_128 = arith.constant dense<0.000000e+00> : vector<32x1xf32>
    %356 = tpu.matmul %352, %345, %cst_128 {dimension_numbers = #tpu.dot_dimension_numbers<[1], [0], [0], [1], [0, 0, 1, 1], [], []>} : vector<32x64xf32>, vector<64x1xf32>, vector<32x1xf32> -> vector<32x1xf32>
    %cst_129 = arith.constant dense<0.000000e+00> : vector<32x1xf32>
    %357 = tpu.matmul %355, %346, %cst_129 {dimension_numbers = #tpu.dot_dimension_numbers<[1], [0], [0], [1], [0, 0, 1, 1], [], []>} : vector<32x64xf32>, vector<64x1xf32>, vector<32x1xf32> -> vector<32x1xf32>
    %358 = tpu.iota {dimensions = array<i32: 0>} : vector<64x32xi32>
    %359 = tpu.iota {dimensions = array<i32: 1>} : vector<64x32xi32>
    %c2_i32_130 = arith.constant 2 : i32
    %360 = vector.broadcast %c2_i32_130 : i32 to vector<64x32xi32>
    %361 = arith.muli %360, %359 : vector<64x32xi32>
    %362 = arith.cmpi eq, %358, %361 : vector<64x32xi32>
    %363 = arith.extui %362 : vector<64x32xi1> to vector<64x32xi32>
    %364 = arith.sitofp %363 : vector<64x32xi32> to vector<64x32xf32>
    %c2_i32_131 = arith.constant 2 : i32
    %365 = vector.broadcast %c2_i32_131 : i32 to vector<64x32xi32>
    %366 = arith.muli %365, %359 : vector<64x32xi32>
    %c1_i32_132 = arith.constant 1 : i32
    %367 = vector.broadcast %c1_i32_132 : i32 to vector<64x32xi32>
    %368 = arith.addi %366, %367 : vector<64x32xi32>
    %369 = arith.cmpi eq, %358, %368 : vector<64x32xi32>
    %370 = arith.extui %369 : vector<64x32xi1> to vector<64x32xi32>
    %371 = arith.sitofp %370 : vector<64x32xi32> to vector<64x32xf32>
    %cst_133 = arith.constant dense<0.000000e+00> : vector<64x1xf32>
    %372 = tpu.matmul %364, %356, %cst_133 {dimension_numbers = #tpu.dot_dimension_numbers<[1], [0], [0], [1], [0, 0, 1, 1], [], []>} : vector<64x32xf32>, vector<32x1xf32>, vector<64x1xf32> -> vector<64x1xf32>
    %cst_134 = arith.constant dense<0.000000e+00> : vector<64x1xf32>
    %373 = tpu.matmul %371, %357, %cst_134 {dimension_numbers = #tpu.dot_dimension_numbers<[1], [0], [0], [1], [0, 0, 1, 1], [], []>} : vector<64x32xf32>, vector<32x1xf32>, vector<64x1xf32> -> vector<64x1xf32>
    %374 = arith.addf %372, %373 : vector<64x1xf32>
    %375 = vector.broadcast %347 : vector<1x1xf32> to vector<64x1xf32>
    %376 = arith.addf %374, %375 : vector<64x1xf32>
    %377 = math.tanh %376 : vector<64x1xf32>
    %c0_135 = arith.constant 0 : index
    %c0_136 = arith.constant 0 : index
    %c0_137 = arith.constant 0 : index
    %378 = vector.load %arg18[%c0_135, %c0_136, %c0_137] : memref<2x64x1xf32, #tpu.memory_space<vmem>>, vector<1x64x1xf32>
    %379 = vector.shape_cast %378 : vector<1x64x1xf32> to vector<64x1xf32>
    %380 = vector.shape_cast %377 : vector<64x1xf32> to vector<1x64x1xf32>
    tpu.vector_store %arg18[%c0_135, %c0_136, %c0_137], %380 {strides = array<i32>} : memref<2x64x1xf32, #tpu.memory_space<vmem>>, vector<1x64x1xf32>,
    %c1 = arith.constant 1 : index
    %c0_138 = arith.constant 0 : index
    %c0_139 = arith.constant 0 : index
    %381 = vector.load %arg0[%c1, %c0_138, %c0_139] : memref<2x64x1xf32, #tpu.memory_space<vmem>>, vector<1x64x1xf32>
    %382 = vector.shape_cast %381 : vector<1x64x1xf32> to vector<64x1xf32>
    %c0_140 = arith.constant 0 : index
    %c0_141 = arith.constant 0 : index
    %383 = vector.load %arg1[%c0_140, %c0_141] : memref<4x32xf32, #tpu.memory_space<vmem>>, vector<4x32xf32>
    %c0_142 = arith.constant 0 : index
    %c0_143 = arith.constant 0 : index
    %384 = vector.load %arg2[%c0_142, %c0_143] : memref<1x32xf32, #tpu.memory_space<vmem>>, vector<1x32xf32>
    %cst_144 = arith.constant 0.000000e+00 : f32
    %385 = vector.broadcast %cst_144 : f32 to vector<1x1xf32>
    %386 = tpu.concatenate %385, %382, %385 in 0 : vector<1x1xf32>, vector<64x1xf32>, vector<1x1xf32> -> vector<66x1xf32>
    %387 = tpu.iota {dimensions = array<i32: 0>} : vector<32x66xi32>
    %388 = tpu.iota {dimensions = array<i32: 1>} : vector<32x66xi32>
    %c2_i32_145 = arith.constant 2 : i32
    %389 = vector.broadcast %c2_i32_145 : i32 to vector<32x66xi32>
    %390 = arith.muli %389, %387 : vector<32x66xi32>
    %c0_i32_146 = arith.constant 0 : i32
    %391 = vector.broadcast %c0_i32_146 : i32 to vector<32x66xi32>
    %392 = arith.addi %391, %390 : vector<32x66xi32>
    %393 = arith.cmpi eq, %388, %392 : vector<32x66xi32>
    %394 = arith.extui %393 : vector<32x66xi1> to vector<32x66xi32>
    %395 = arith.sitofp %394 : vector<32x66xi32> to vector<32x66xf32>
    %cst_147 = arith.constant dense<0.000000e+00> : vector<32x1xf32>
    %396 = tpu.matmul %395, %386, %cst_147 {dimension_numbers = #tpu.dot_dimension_numbers<[1], [0], [0], [1], [0, 0, 1, 1], [], []>} : vector<32x66xf32>, vector<66x1xf32>, vector<32x1xf32> -> vector<32x1xf32>
    %397 = tpu.iota {dimensions = array<i32: 0>} : vector<32x66xi32>
    %398 = tpu.iota {dimensions = array<i32: 1>} : vector<32x66xi32>
    %c2_i32_148 = arith.constant 2 : i32
    %399 = vector.broadcast %c2_i32_148 : i32 to vector<32x66xi32>
    %400 = arith.muli %399, %397 : vector<32x66xi32>
    %c1_i32_149 = arith.constant 1 : i32
    %401 = vector.broadcast %c1_i32_149 : i32 to vector<32x66xi32>
    %402 = arith.addi %401, %400 : vector<32x66xi32>
    %403 = arith.cmpi eq, %398, %402 : vector<32x66xi32>
    %404 = arith.extui %403 : vector<32x66xi1> to vector<32x66xi32>
    %405 = arith.sitofp %404 : vector<32x66xi32> to vector<32x66xf32>
    %cst_150 = arith.constant dense<0.000000e+00> : vector<32x1xf32>
    %406 = tpu.matmul %405, %386, %cst_150 {dimension_numbers = #tpu.dot_dimension_numbers<[1], [0], [0], [1], [0, 0, 1, 1], [], []>} : vector<32x66xf32>, vector<66x1xf32>, vector<32x1xf32> -> vector<32x1xf32>
    %407 = tpu.iota {dimensions = array<i32: 0>} : vector<32x66xi32>
    %408 = tpu.iota {dimensions = array<i32: 1>} : vector<32x66xi32>
    %c2_i32_151 = arith.constant 2 : i32
    %409 = vector.broadcast %c2_i32_151 : i32 to vector<32x66xi32>
    %410 = arith.muli %409, %407 : vector<32x66xi32>
    %c2_i32_152 = arith.constant 2 : i32
    %411 = vector.broadcast %c2_i32_152 : i32 to vector<32x66xi32>
    %412 = arith.addi %411, %410 : vector<32x66xi32>
    %413 = arith.cmpi eq, %408, %412 : vector<32x66xi32>
    %414 = arith.extui %413 : vector<32x66xi1> to vector<32x66xi32>
    %415 = arith.sitofp %414 : vector<32x66xi32> to vector<32x66xf32>
    %cst_153 = arith.constant dense<0.000000e+00> : vector<32x1xf32>
    %416 = tpu.matmul %415, %386, %cst_153 {dimension_numbers = #tpu.dot_dimension_numbers<[1], [0], [0], [1], [0, 0, 1, 1], [], []>} : vector<32x66xf32>, vector<66x1xf32>, vector<32x1xf32> -> vector<32x1xf32>
    %417 = tpu.iota {dimensions = array<i32: 0>} : vector<32x66xi32>
    %418 = tpu.iota {dimensions = array<i32: 1>} : vector<32x66xi32>
    %c2_i32_154 = arith.constant 2 : i32
    %419 = vector.broadcast %c2_i32_154 : i32 to vector<32x66xi32>
    %420 = arith.muli %419, %417 : vector<32x66xi32>
    %c3_i32_155 = arith.constant 3 : i32
    %421 = vector.broadcast %c3_i32_155 : i32 to vector<32x66xi32>
    %422 = arith.addi %421, %420 : vector<32x66xi32>
    %423 = arith.cmpi eq, %418, %422 : vector<32x66xi32>
    %424 = arith.extui %423 : vector<32x66xi1> to vector<32x66xi32>
    %425 = arith.sitofp %424 : vector<32x66xi32> to vector<32x66xf32>
    %cst_156 = arith.constant dense<0.000000e+00> : vector<32x1xf32>
    %426 = tpu.matmul %425, %386, %cst_156 {dimension_numbers = #tpu.dot_dimension_numbers<[1], [0], [0], [1], [0, 0, 1, 1], [], []>} : vector<32x66xf32>, vector<66x1xf32>, vector<32x1xf32> -> vector<32x1xf32>
    %427 = tpu.concatenate %396, %406, %416, %426 in 1 : vector<32x1xf32>, vector<32x1xf32>, vector<32x1xf32>, vector<32x1xf32> -> vector<32x4xf32>
    %cst_157 = arith.constant dense<0.000000e+00> : vector<32x32xf32>
    %428 = tpu.matmul %427, %383, %cst_157 {dimension_numbers = #tpu.dot_dimension_numbers<[1], [0], [0], [1], [0, 0, 1, 1], [], []>} : vector<32x4xf32>, vector<4x32xf32>, vector<32x32xf32> -> vector<32x32xf32>
    %429 = vector.broadcast %384 : vector<1x32xf32> to vector<32x32xf32>
    %430 = arith.addf %428, %429 : vector<32x32xf32>
    %cst_158 = arith.constant 0.000000e+00 : f32
    %431 = vector.broadcast %cst_158 : f32 to vector<32x32xf32>
    %432 = arith.maximumf %430, %431 : vector<32x32xf32>
    %c0_159 = arith.constant 0 : index
    %c0_160 = arith.constant 0 : index
    %433 = vector.load %arg3[%c0_159, %c0_160] : memref<128x64xf32, #tpu.memory_space<vmem>>, vector<128x64xf32>
    %c0_161 = arith.constant 0 : index
    %c0_162 = arith.constant 0 : index
    %434 = vector.load %arg4[%c0_161, %c0_162] : memref<1x64xf32, #tpu.memory_space<vmem>>, vector<1x64xf32>
    %cst_163 = arith.constant 0.000000e+00 : f32
    %435 = vector.broadcast %cst_163 : f32 to vector<1x32xf32>
    %436 = tpu.concatenate %435, %432, %435 in 0 : vector<1x32xf32>, vector<32x32xf32>, vector<1x32xf32> -> vector<34x32xf32>
    %437 = tpu.iota {dimensions = array<i32: 0>} : vector<16x34xi32>
    %438 = tpu.iota {dimensions = array<i32: 1>} : vector<16x34xi32>
    %c2_i32_164 = arith.constant 2 : i32
    %439 = vector.broadcast %c2_i32_164 : i32 to vector<16x34xi32>
    %440 = arith.muli %439, %437 : vector<16x34xi32>
    %c0_i32_165 = arith.constant 0 : i32
    %441 = vector.broadcast %c0_i32_165 : i32 to vector<16x34xi32>
    %442 = arith.addi %441, %440 : vector<16x34xi32>
    %443 = arith.cmpi eq, %438, %442 : vector<16x34xi32>
    %444 = arith.extui %443 : vector<16x34xi1> to vector<16x34xi32>
    %445 = arith.sitofp %444 : vector<16x34xi32> to vector<16x34xf32>
    %cst_166 = arith.constant dense<0.000000e+00> : vector<16x32xf32>
    %446 = tpu.matmul %445, %436, %cst_166 {dimension_numbers = #tpu.dot_dimension_numbers<[1], [0], [0], [1], [0, 0, 1, 1], [], []>} : vector<16x34xf32>, vector<34x32xf32>, vector<16x32xf32> -> vector<16x32xf32>
    %447 = tpu.iota {dimensions = array<i32: 0>} : vector<16x34xi32>
    %448 = tpu.iota {dimensions = array<i32: 1>} : vector<16x34xi32>
    %c2_i32_167 = arith.constant 2 : i32
    %449 = vector.broadcast %c2_i32_167 : i32 to vector<16x34xi32>
    %450 = arith.muli %449, %447 : vector<16x34xi32>
    %c1_i32_168 = arith.constant 1 : i32
    %451 = vector.broadcast %c1_i32_168 : i32 to vector<16x34xi32>
    %452 = arith.addi %451, %450 : vector<16x34xi32>
    %453 = arith.cmpi eq, %448, %452 : vector<16x34xi32>
    %454 = arith.extui %453 : vector<16x34xi1> to vector<16x34xi32>
    %455 = arith.sitofp %454 : vector<16x34xi32> to vector<16x34xf32>
    %cst_169 = arith.constant dense<0.000000e+00> : vector<16x32xf32>
    %456 = tpu.matmul %455, %436, %cst_169 {dimension_numbers = #tpu.dot_dimension_numbers<[1], [0], [0], [1], [0, 0, 1, 1], [], []>} : vector<16x34xf32>, vector<34x32xf32>, vector<16x32xf32> -> vector<16x32xf32>
    %457 = tpu.iota {dimensions = array<i32: 0>} : vector<16x34xi32>
    %458 = tpu.iota {dimensions = array<i32: 1>} : vector<16x34xi32>
    %c2_i32_170 = arith.constant 2 : i32
    %459 = vector.broadcast %c2_i32_170 : i32 to vector<16x34xi32>
    %460 = arith.muli %459, %457 : vector<16x34xi32>
    %c2_i32_171 = arith.constant 2 : i32
    %461 = vector.broadcast %c2_i32_171 : i32 to vector<16x34xi32>
    %462 = arith.addi %461, %460 : vector<16x34xi32>
    %463 = arith.cmpi eq, %458, %462 : vector<16x34xi32>
    %464 = arith.extui %463 : vector<16x34xi1> to vector<16x34xi32>
    %465 = arith.sitofp %464 : vector<16x34xi32> to vector<16x34xf32>
    %cst_172 = arith.constant dense<0.000000e+00> : vector<16x32xf32>
    %466 = tpu.matmul %465, %436, %cst_172 {dimension_numbers = #tpu.dot_dimension_numbers<[1], [0], [0], [1], [0, 0, 1, 1], [], []>} : vector<16x34xf32>, vector<34x32xf32>, vector<16x32xf32> -> vector<16x32xf32>
    %467 = tpu.iota {dimensions = array<i32: 0>} : vector<16x34xi32>
    %468 = tpu.iota {dimensions = array<i32: 1>} : vector<16x34xi32>
    %c2_i32_173 = arith.constant 2 : i32
    %469 = vector.broadcast %c2_i32_173 : i32 to vector<16x34xi32>
    %470 = arith.muli %469, %467 : vector<16x34xi32>
    %c3_i32_174 = arith.constant 3 : i32
    %471 = vector.broadcast %c3_i32_174 : i32 to vector<16x34xi32>
    %472 = arith.addi %471, %470 : vector<16x34xi32>
    %473 = arith.cmpi eq, %468, %472 : vector<16x34xi32>
    %474 = arith.extui %473 : vector<16x34xi1> to vector<16x34xi32>
    %475 = arith.sitofp %474 : vector<16x34xi32> to vector<16x34xf32>
    %cst_175 = arith.constant dense<0.000000e+00> : vector<16x32xf32>
    %476 = tpu.matmul %475, %436, %cst_175 {dimension_numbers = #tpu.dot_dimension_numbers<[1], [0], [0], [1], [0, 0, 1, 1], [], []>} : vector<16x34xf32>, vector<34x32xf32>, vector<16x32xf32> -> vector<16x32xf32>
    %477 = tpu.concatenate %446, %456, %466, %476 in 1 : vector<16x32xf32>, vector<16x32xf32>, vector<16x32xf32>, vector<16x32xf32> -> vector<16x128xf32>
    %cst_176 = arith.constant dense<0.000000e+00> : vector<16x64xf32>
    %478 = tpu.matmul %477, %433, %cst_176 {dimension_numbers = #tpu.dot_dimension_numbers<[1], [0], [0], [1], [0, 0, 1, 1], [], []>} : vector<16x128xf32>, vector<128x64xf32>, vector<16x64xf32> -> vector<16x64xf32>
    %479 = vector.broadcast %434 : vector<1x64xf32> to vector<16x64xf32>
    %480 = arith.addf %478, %479 : vector<16x64xf32>
    %cst_177 = arith.constant 0.000000e+00 : f32
    %481 = vector.broadcast %cst_177 : f32 to vector<16x64xf32>
    %482 = arith.maximumf %480, %481 : vector<16x64xf32>
    %c0_178 = arith.constant 0 : index
    %c0_179 = arith.constant 0 : index
    %483 = vector.load %arg5[%c0_178, %c0_179] : memref<256x64xf32, #tpu.memory_space<vmem>>, vector<256x64xf32>
    %c0_180 = arith.constant 0 : index
    %c0_181 = arith.constant 0 : index
    %484 = vector.load %arg6[%c0_180, %c0_181] : memref<1x64xf32, #tpu.memory_space<vmem>>, vector<1x64xf32>
    %cst_182 = arith.constant 0.000000e+00 : f32
    %485 = vector.broadcast %cst_182 : f32 to vector<1x64xf32>
    %486 = tpu.concatenate %485, %482, %485 in 0 : vector<1x64xf32>, vector<16x64xf32>, vector<1x64xf32> -> vector<18x64xf32>
    %487 = tpu.iota {dimensions = array<i32: 0>} : vector<8x18xi32>
    %488 = tpu.iota {dimensions = array<i32: 1>} : vector<8x18xi32>
    %c2_i32_183 = arith.constant 2 : i32
    %489 = vector.broadcast %c2_i32_183 : i32 to vector<8x18xi32>
    %490 = arith.muli %489, %487 : vector<8x18xi32>
    %c0_i32_184 = arith.constant 0 : i32
    %491 = vector.broadcast %c0_i32_184 : i32 to vector<8x18xi32>
    %492 = arith.addi %491, %490 : vector<8x18xi32>
    %493 = arith.cmpi eq, %488, %492 : vector<8x18xi32>
    %494 = arith.extui %493 : vector<8x18xi1> to vector<8x18xi32>
    %495 = arith.sitofp %494 : vector<8x18xi32> to vector<8x18xf32>
    %cst_185 = arith.constant dense<0.000000e+00> : vector<8x64xf32>
    %496 = tpu.matmul %495, %486, %cst_185 {dimension_numbers = #tpu.dot_dimension_numbers<[1], [0], [0], [1], [0, 0, 1, 1], [], []>} : vector<8x18xf32>, vector<18x64xf32>, vector<8x64xf32> -> vector<8x64xf32>
    %497 = tpu.iota {dimensions = array<i32: 0>} : vector<8x18xi32>
    %498 = tpu.iota {dimensions = array<i32: 1>} : vector<8x18xi32>
    %c2_i32_186 = arith.constant 2 : i32
    %499 = vector.broadcast %c2_i32_186 : i32 to vector<8x18xi32>
    %500 = arith.muli %499, %497 : vector<8x18xi32>
    %c1_i32_187 = arith.constant 1 : i32
    %501 = vector.broadcast %c1_i32_187 : i32 to vector<8x18xi32>
    %502 = arith.addi %501, %500 : vector<8x18xi32>
    %503 = arith.cmpi eq, %498, %502 : vector<8x18xi32>
    %504 = arith.extui %503 : vector<8x18xi1> to vector<8x18xi32>
    %505 = arith.sitofp %504 : vector<8x18xi32> to vector<8x18xf32>
    %cst_188 = arith.constant dense<0.000000e+00> : vector<8x64xf32>
    %506 = tpu.matmul %505, %486, %cst_188 {dimension_numbers = #tpu.dot_dimension_numbers<[1], [0], [0], [1], [0, 0, 1, 1], [], []>} : vector<8x18xf32>, vector<18x64xf32>, vector<8x64xf32> -> vector<8x64xf32>
    %507 = tpu.iota {dimensions = array<i32: 0>} : vector<8x18xi32>
    %508 = tpu.iota {dimensions = array<i32: 1>} : vector<8x18xi32>
    %c2_i32_189 = arith.constant 2 : i32
    %509 = vector.broadcast %c2_i32_189 : i32 to vector<8x18xi32>
    %510 = arith.muli %509, %507 : vector<8x18xi32>
    %c2_i32_190 = arith.constant 2 : i32
    %511 = vector.broadcast %c2_i32_190 : i32 to vector<8x18xi32>
    %512 = arith.addi %511, %510 : vector<8x18xi32>
    %513 = arith.cmpi eq, %508, %512 : vector<8x18xi32>
    %514 = arith.extui %513 : vector<8x18xi1> to vector<8x18xi32>
    %515 = arith.sitofp %514 : vector<8x18xi32> to vector<8x18xf32>
    %cst_191 = arith.constant dense<0.000000e+00> : vector<8x64xf32>
    %516 = tpu.matmul %515, %486, %cst_191 {dimension_numbers = #tpu.dot_dimension_numbers<[1], [0], [0], [1], [0, 0, 1, 1], [], []>} : vector<8x18xf32>, vector<18x64xf32>, vector<8x64xf32> -> vector<8x64xf32>
    %517 = tpu.iota {dimensions = array<i32: 0>} : vector<8x18xi32>
    %518 = tpu.iota {dimensions = array<i32: 1>} : vector<8x18xi32>
    %c2_i32_192 = arith.constant 2 : i32
    %519 = vector.broadcast %c2_i32_192 : i32 to vector<8x18xi32>
    %520 = arith.muli %519, %517 : vector<8x18xi32>
    %c3_i32_193 = arith.constant 3 : i32
    %521 = vector.broadcast %c3_i32_193 : i32 to vector<8x18xi32>
    %522 = arith.addi %521, %520 : vector<8x18xi32>
    %523 = arith.cmpi eq, %518, %522 : vector<8x18xi32>
    %524 = arith.extui %523 : vector<8x18xi1> to vector<8x18xi32>
    %525 = arith.sitofp %524 : vector<8x18xi32> to vector<8x18xf32>
    %cst_194 = arith.constant dense<0.000000e+00> : vector<8x64xf32>
    %526 = tpu.matmul %525, %486, %cst_194 {dimension_numbers = #tpu.dot_dimension_numbers<[1], [0], [0], [1], [0, 0, 1, 1], [], []>} : vector<8x18xf32>, vector<18x64xf32>, vector<8x64xf32> -> vector<8x64xf32>
    %527 = tpu.concatenate %496, %506, %516, %526 in 1 : vector<8x64xf32>, vector<8x64xf32>, vector<8x64xf32>, vector<8x64xf32> -> vector<8x256xf32>
    %cst_195 = arith.constant dense<0.000000e+00> : vector<8x64xf32>
    %528 = tpu.matmul %527, %483, %cst_195 {dimension_numbers = #tpu.dot_dimension_numbers<[1], [0], [0], [1], [0, 0, 1, 1], [], []>} : vector<8x256xf32>, vector<256x64xf32>, vector<8x64xf32> -> vector<8x64xf32>
    %529 = vector.broadcast %484 : vector<1x64xf32> to vector<8x64xf32>
    %530 = arith.addf %528, %529 : vector<8x64xf32>
    %cst_196 = arith.constant 0.000000e+00 : f32
    %531 = vector.broadcast %cst_196 : f32 to vector<8x64xf32>
    %532 = arith.maximumf %530, %531 : vector<8x64xf32>
    %cst_197 = arith.constant dense<0.000000e+00> : vector<8x1024xf32>
    %533 = tpu.matmul %532, %0, %cst_197 {dimension_numbers = #tpu.dot_dimension_numbers<[1], [1], [0], [0], [0, 0, 1, 0], [], []>} : vector<8x64xf32>, vector<1024x64xf32>, vector<8x1024xf32> -> vector<8x1024xf32>
    %cst_198 = arith.constant 2.000000e+00 : f32
    %534 = vector.broadcast %cst_198 : f32 to vector<8x1024xf32>
    %535 = arith.mulf %534, %533 : vector<8x1024xf32>
    %536 = vector.broadcast %1 : vector<1x1024xf32> to vector<8x1024xf32>
    %537 = arith.subf %536, %535 : vector<8x1024xf32>
    %cst_199 = arith.constant dense<0x7F800000> : vector<8xf32>
    %538 = vector.multi_reduction <minimumf>, %537, %cst_199 [1] : vector<8x1024xf32> to vector<8xf32>
    %539 = vector.shape_cast %538 : vector<8xf32> to vector<8x1xf32>
    %540 = tpu.iota {dimensions = array<i32: 1>} : vector<8x1024xi32>
    %541 = vector.broadcast %539 : vector<8x1xf32> to vector<8x1024xf32>
    %542 = arith.cmpf oeq, %537, %541 : vector<8x1024xf32>
    %c1024_i32_200 = arith.constant 1024 : i32
    %543 = vector.broadcast %c1024_i32_200 : i32 to vector<8x1024xi32>
    %544 = arith.select %542, %540, %543 : vector<8x1024xi1>, vector<8x1024xi32>
    %cst_201 = arith.constant dense<2147483647> : vector<8xi32>
    %545 = vector.multi_reduction <minsi>, %544, %cst_201 [1] : vector<8x1024xi32> to vector<8xi32>
    %546 = vector.shape_cast %545 : vector<8xi32> to vector<8x1xi32>
    %547 = vector.broadcast %546 : vector<8x1xi32> to vector<8x1024xi32>
    %548 = arith.cmpi eq, %540, %547 : vector<8x1024xi32>
    %549 = arith.extui %548 : vector<8x1024xi1> to vector<8x1024xi32>
    %550 = arith.sitofp %549 : vector<8x1024xi32> to vector<8x1024xf32>
    %cst_202 = arith.constant dense<0.000000e+00> : vector<8x64xf32>
    %551 = tpu.matmul %550, %0, %cst_202 {dimension_numbers = #tpu.dot_dimension_numbers<[1], [0], [0], [1], [0, 0, 1, 1], [], []>} : vector<8x1024xf32>, vector<1024x64xf32>, vector<8x64xf32> -> vector<8x64xf32>
    %552 = tpu.iota {dimensions = array<i32: 0>} : vector<64x8xi32>
    %553 = tpu.iota {dimensions = array<i32: 1>} : vector<64x8xi32>
    %cst_203 = arith.constant 0.000000e+00 : f32
    %554 = vector.broadcast %cst_203 : f32 to vector<64x8xf32>
    %c8_i32_204 = arith.constant 8 : i32
    %555 = vector.broadcast %c8_i32_204 : i32 to vector<64x8xi32>
    %556 = arith.muli %555, %553 : vector<64x8xi32>
    %c0_i32_205 = arith.constant 0 : i32
    %557 = vector.broadcast %c0_i32_205 : i32 to vector<64x8xi32>
    %558 = arith.addi %556, %557 : vector<64x8xi32>
    %559 = arith.cmpi eq, %552, %558 : vector<64x8xi32>
    %560 = arith.extui %559 : vector<64x8xi1> to vector<64x8xi32>
    %561 = arith.sitofp %560 : vector<64x8xi32> to vector<64x8xf32>
    %562 = vector.extract_strided_slice %551 {offsets = [0, 0], sizes = [8, 8], strides = [1, 1]} : vector<8x64xf32> to vector<8x8xf32>
    %cst_206 = arith.constant dense<0.000000e+00> : vector<64x8xf32>
    %563 = tpu.matmul %561, %562, %cst_206 {dimension_numbers = #tpu.dot_dimension_numbers<[1], [0], [0], [1], [0, 0, 1, 1], [], []>} : vector<64x8xf32>, vector<8x8xf32>, vector<64x8xf32> -> vector<64x8xf32>
    %564 = arith.addf %554, %563 : vector<64x8xf32>
    %c8_i32_207 = arith.constant 8 : i32
    %565 = vector.broadcast %c8_i32_207 : i32 to vector<64x8xi32>
    %566 = arith.muli %565, %553 : vector<64x8xi32>
    %c1_i32_208 = arith.constant 1 : i32
    %567 = vector.broadcast %c1_i32_208 : i32 to vector<64x8xi32>
    %568 = arith.addi %566, %567 : vector<64x8xi32>
    %569 = arith.cmpi eq, %552, %568 : vector<64x8xi32>
    %570 = arith.extui %569 : vector<64x8xi1> to vector<64x8xi32>
    %571 = arith.sitofp %570 : vector<64x8xi32> to vector<64x8xf32>
    %572 = vector.extract_strided_slice %551 {offsets = [0, 8], sizes = [8, 8], strides = [1, 1]} : vector<8x64xf32> to vector<8x8xf32>
    %cst_209 = arith.constant dense<0.000000e+00> : vector<64x8xf32>
    %573 = tpu.matmul %571, %572, %cst_209 {dimension_numbers = #tpu.dot_dimension_numbers<[1], [0], [0], [1], [0, 0, 1, 1], [], []>} : vector<64x8xf32>, vector<8x8xf32>, vector<64x8xf32> -> vector<64x8xf32>
    %574 = arith.addf %564, %573 : vector<64x8xf32>
    %c8_i32_210 = arith.constant 8 : i32
    %575 = vector.broadcast %c8_i32_210 : i32 to vector<64x8xi32>
    %576 = arith.muli %575, %553 : vector<64x8xi32>
    %c2_i32_211 = arith.constant 2 : i32
    %577 = vector.broadcast %c2_i32_211 : i32 to vector<64x8xi32>
    %578 = arith.addi %576, %577 : vector<64x8xi32>
    %579 = arith.cmpi eq, %552, %578 : vector<64x8xi32>
    %580 = arith.extui %579 : vector<64x8xi1> to vector<64x8xi32>
    %581 = arith.sitofp %580 : vector<64x8xi32> to vector<64x8xf32>
    %582 = vector.extract_strided_slice %551 {offsets = [0, 16], sizes = [8, 8], strides = [1, 1]} : vector<8x64xf32> to vector<8x8xf32>
    %cst_212 = arith.constant dense<0.000000e+00> : vector<64x8xf32>
    %583 = tpu.matmul %581, %582, %cst_212 {dimension_numbers = #tpu.dot_dimension_numbers<[1], [0], [0], [1], [0, 0, 1, 1], [], []>} : vector<64x8xf32>, vector<8x8xf32>, vector<64x8xf32> -> vector<64x8xf32>
    %584 = arith.addf %574, %583 : vector<64x8xf32>
    %c8_i32_213 = arith.constant 8 : i32
    %585 = vector.broadcast %c8_i32_213 : i32 to vector<64x8xi32>
    %586 = arith.muli %585, %553 : vector<64x8xi32>
    %c3_i32_214 = arith.constant 3 : i32
    %587 = vector.broadcast %c3_i32_214 : i32 to vector<64x8xi32>
    %588 = arith.addi %586, %587 : vector<64x8xi32>
    %589 = arith.cmpi eq, %552, %588 : vector<64x8xi32>
    %590 = arith.extui %589 : vector<64x8xi1> to vector<64x8xi32>
    %591 = arith.sitofp %590 : vector<64x8xi32> to vector<64x8xf32>
    %592 = vector.extract_strided_slice %551 {offsets = [0, 24], sizes = [8, 8], strides = [1, 1]} : vector<8x64xf32> to vector<8x8xf32>
    %cst_215 = arith.constant dense<0.000000e+00> : vector<64x8xf32>
    %593 = tpu.matmul %591, %592, %cst_215 {dimension_numbers = #tpu.dot_dimension_numbers<[1], [0], [0], [1], [0, 0, 1, 1], [], []>} : vector<64x8xf32>, vector<8x8xf32>, vector<64x8xf32> -> vector<64x8xf32>
    %594 = arith.addf %584, %593 : vector<64x8xf32>
    %c8_i32_216 = arith.constant 8 : i32
    %595 = vector.broadcast %c8_i32_216 : i32 to vector<64x8xi32>
    %596 = arith.muli %595, %553 : vector<64x8xi32>
    %c4_i32_217 = arith.constant 4 : i32
    %597 = vector.broadcast %c4_i32_217 : i32 to vector<64x8xi32>
    %598 = arith.addi %596, %597 : vector<64x8xi32>
    %599 = arith.cmpi eq, %552, %598 : vector<64x8xi32>
    %600 = arith.extui %599 : vector<64x8xi1> to vector<64x8xi32>
    %601 = arith.sitofp %600 : vector<64x8xi32> to vector<64x8xf32>
    %602 = vector.extract_strided_slice %551 {offsets = [0, 32], sizes = [8, 8], strides = [1, 1]} : vector<8x64xf32> to vector<8x8xf32>
    %cst_218 = arith.constant dense<0.000000e+00> : vector<64x8xf32>
    %603 = tpu.matmul %601, %602, %cst_218 {dimension_numbers = #tpu.dot_dimension_numbers<[1], [0], [0], [1], [0, 0, 1, 1], [], []>} : vector<64x8xf32>, vector<8x8xf32>, vector<64x8xf32> -> vector<64x8xf32>
    %604 = arith.addf %594, %603 : vector<64x8xf32>
    %c8_i32_219 = arith.constant 8 : i32
    %605 = vector.broadcast %c8_i32_219 : i32 to vector<64x8xi32>
    %606 = arith.muli %605, %553 : vector<64x8xi32>
    %c5_i32_220 = arith.constant 5 : i32
    %607 = vector.broadcast %c5_i32_220 : i32 to vector<64x8xi32>
    %608 = arith.addi %606, %607 : vector<64x8xi32>
    %609 = arith.cmpi eq, %552, %608 : vector<64x8xi32>
    %610 = arith.extui %609 : vector<64x8xi1> to vector<64x8xi32>
    %611 = arith.sitofp %610 : vector<64x8xi32> to vector<64x8xf32>
    %612 = vector.extract_strided_slice %551 {offsets = [0, 40], sizes = [8, 8], strides = [1, 1]} : vector<8x64xf32> to vector<8x8xf32>
    %cst_221 = arith.constant dense<0.000000e+00> : vector<64x8xf32>
    %613 = tpu.matmul %611, %612, %cst_221 {dimension_numbers = #tpu.dot_dimension_numbers<[1], [0], [0], [1], [0, 0, 1, 1], [], []>} : vector<64x8xf32>, vector<8x8xf32>, vector<64x8xf32> -> vector<64x8xf32>
    %614 = arith.addf %604, %613 : vector<64x8xf32>
    %c8_i32_222 = arith.constant 8 : i32
    %615 = vector.broadcast %c8_i32_222 : i32 to vector<64x8xi32>
    %616 = arith.muli %615, %553 : vector<64x8xi32>
    %c6_i32_223 = arith.constant 6 : i32
    %617 = vector.broadcast %c6_i32_223 : i32 to vector<64x8xi32>
    %618 = arith.addi %616, %617 : vector<64x8xi32>
    %619 = arith.cmpi eq, %552, %618 : vector<64x8xi32>
    %620 = arith.extui %619 : vector<64x8xi1> to vector<64x8xi32>
    %621 = arith.sitofp %620 : vector<64x8xi32> to vector<64x8xf32>
    %622 = vector.extract_strided_slice %551 {offsets = [0, 48], sizes = [8, 8], strides = [1, 1]} : vector<8x64xf32> to vector<8x8xf32>
    %cst_224 = arith.constant dense<0.000000e+00> : vector<64x8xf32>
    %623 = tpu.matmul %621, %622, %cst_224 {dimension_numbers = #tpu.dot_dimension_numbers<[1], [0], [0], [1], [0, 0, 1, 1], [], []>} : vector<64x8xf32>, vector<8x8xf32>, vector<64x8xf32> -> vector<64x8xf32>
    %624 = arith.addf %614, %623 : vector<64x8xf32>
    %c8_i32_225 = arith.constant 8 : i32
    %625 = vector.broadcast %c8_i32_225 : i32 to vector<64x8xi32>
    %626 = arith.muli %625, %553 : vector<64x8xi32>
    %c7_i32_226 = arith.constant 7 : i32
    %627 = vector.broadcast %c7_i32_226 : i32 to vector<64x8xi32>
    %628 = arith.addi %626, %627 : vector<64x8xi32>
    %629 = arith.cmpi eq, %552, %628 : vector<64x8xi32>
    %630 = arith.extui %629 : vector<64x8xi1> to vector<64x8xi32>
    %631 = arith.sitofp %630 : vector<64x8xi32> to vector<64x8xf32>
    %632 = vector.extract_strided_slice %551 {offsets = [0, 56], sizes = [8, 8], strides = [1, 1]} : vector<8x64xf32> to vector<8x8xf32>
    %cst_227 = arith.constant dense<0.000000e+00> : vector<64x8xf32>
    %633 = tpu.matmul %631, %632, %cst_227 {dimension_numbers = #tpu.dot_dimension_numbers<[1], [0], [0], [1], [0, 0, 1, 1], [], []>} : vector<64x8xf32>, vector<8x8xf32>, vector<64x8xf32> -> vector<64x8xf32>
    %634 = arith.addf %624, %633 : vector<64x8xf32>
    %635 = tpu.transpose %532, [1, 0] : vector<8x64xf32> -> vector<64x8xf32>
    %636 = arith.subf %634, %635 : vector<64x8xf32>
    %637 = arith.mulf %636, %636 : vector<64x8xf32>
    %cst_228 = arith.constant dense<0.000000e+00> : vector<64xf32>
    %638 = vector.multi_reduction <add>, %637, %cst_228 [1] : vector<64x8xf32> to vector<64xf32>
    %639 = vector.shape_cast %638 : vector<64xf32> to vector<64x1xf32>
    %cst_229 = arith.constant dense<0.000000e+00> : vector<1xf32>
    %640 = vector.multi_reduction <add>, %639, %cst_229 [0] : vector<64x1xf32> to vector<1xf32>
    %641 = vector.shape_cast %640 : vector<1xf32> to vector<1x1xf32>
    %642 = arith.addf %264, %641 : vector<1x1xf32>
    %643 = arith.mulf %634, %634 : vector<64x8xf32>
    %cst_230 = arith.constant dense<0.000000e+00> : vector<64xf32>
    %644 = vector.multi_reduction <add>, %643, %cst_230 [1] : vector<64x8xf32> to vector<64xf32>
    %645 = vector.shape_cast %644 : vector<64xf32> to vector<64x1xf32>
    %646 = math.sqrt %645 : vector<64x1xf32>
    %cst_231 = arith.constant 9.99999996E-13 : f32
    %647 = vector.broadcast %cst_231 : f32 to vector<64x1xf32>
    %648 = arith.maximumf %646, %647 : vector<64x1xf32>
    %649 = vector.broadcast %648 : vector<64x1xf32> to vector<64x8xf32>
    %650 = arith.divf %634, %649 : vector<64x8xf32>
    %c1_232 = arith.constant 1 : index
    %c0_233 = arith.constant 0 : index
    %c0_234 = arith.constant 0 : index
    %651 = vector.load %arg20[%c1_232, %c0_233, %c0_234] : memref<2x64x8xf32, #tpu.memory_space<vmem>>, vector<1x64x8xf32>
    %652 = vector.shape_cast %651 : vector<1x64x8xf32> to vector<64x8xf32>
    %653 = vector.shape_cast %650 : vector<64x8xf32> to vector<1x64x8xf32>
    tpu.vector_store %arg20[%c1_232, %c0_233, %c0_234], %653 {strides = array<i32>} : memref<2x64x8xf32, #tpu.memory_space<vmem>>, vector<1x64x8xf32>,
    %654 = tpu.transpose %650, [1, 0] : vector<64x8xf32> -> vector<8x64xf32>
    %c0_235 = arith.constant 0 : index
    %c0_236 = arith.constant 0 : index
    %655 = vector.load %arg9[%c0_235, %c0_236] : memref<128x64xf32, #tpu.memory_space<vmem>>, vector<128x64xf32>
    %c0_237 = arith.constant 0 : index
    %c0_238 = arith.constant 0 : index
    %656 = vector.load %arg10[%c0_237, %c0_238] : memref<128x64xf32, #tpu.memory_space<vmem>>, vector<128x64xf32>
    %c0_239 = arith.constant 0 : index
    %c0_240 = arith.constant 0 : index
    %657 = vector.load %arg11[%c0_239, %c0_240] : memref<1x64xf32, #tpu.memory_space<vmem>>, vector<1x64xf32>
    %cst_241 = arith.constant 0.000000e+00 : f32
    %658 = vector.broadcast %cst_241 : f32 to vector<1x64xf32>
    %659 = tpu.concatenate %658, %654, %658 in 0 : vector<1x64xf32>, vector<8x64xf32>, vector<1x64xf32> -> vector<10x64xf32>
    %660 = vector.extract_strided_slice %659 {offsets = [0, 0], sizes = [8, 64], strides = [1, 1]} : vector<10x64xf32> to vector<8x64xf32>
    %661 = vector.extract_strided_slice %659 {offsets = [1, 0], sizes = [8, 64], strides = [1, 1]} : vector<10x64xf32> to vector<8x64xf32>
    %662 = tpu.concatenate %660, %661 in 1 : vector<8x64xf32>, vector<8x64xf32> -> vector<8x128xf32>
    %663 = vector.extract_strided_slice %659 {offsets = [1, 0], sizes = [8, 64], strides = [1, 1]} : vector<10x64xf32> to vector<8x64xf32>
    %664 = vector.extract_strided_slice %659 {offsets = [2, 0], sizes = [8, 64], strides = [1, 1]} : vector<10x64xf32> to vector<8x64xf32>
    %665 = tpu.concatenate %663, %664 in 1 : vector<8x64xf32>, vector<8x64xf32> -> vector<8x128xf32>
    %cst_242 = arith.constant dense<0.000000e+00> : vector<8x64xf32>
    %666 = tpu.matmul %662, %655, %cst_242 {dimension_numbers = #tpu.dot_dimension_numbers<[1], [0], [0], [1], [0, 0, 1, 1], [], []>} : vector<8x128xf32>, vector<128x64xf32>, vector<8x64xf32> -> vector<8x64xf32>
    %cst_243 = arith.constant dense<0.000000e+00> : vector<8x64xf32>
    %667 = tpu.matmul %665, %656, %cst_243 {dimension_numbers = #tpu.dot_dimension_numbers<[1], [0], [0], [1], [0, 0, 1, 1], [], []>} : vector<8x128xf32>, vector<128x64xf32>, vector<8x64xf32> -> vector<8x64xf32>
    %668 = tpu.iota {dimensions = array<i32: 0>} : vector<16x8xi32>
    %669 = tpu.iota {dimensions = array<i32: 1>} : vector<16x8xi32>
    %c2_i32_244 = arith.constant 2 : i32
    %670 = vector.broadcast %c2_i32_244 : i32 to vector<16x8xi32>
    %671 = arith.muli %670, %669 : vector<16x8xi32>
    %672 = arith.cmpi eq, %668, %671 : vector<16x8xi32>
    %673 = arith.extui %672 : vector<16x8xi1> to vector<16x8xi32>
    %674 = arith.sitofp %673 : vector<16x8xi32> to vector<16x8xf32>
    %c2_i32_245 = arith.constant 2 : i32
    %675 = vector.broadcast %c2_i32_245 : i32 to vector<16x8xi32>
    %676 = arith.muli %675, %669 : vector<16x8xi32>
    %c1_i32_246 = arith.constant 1 : i32
    %677 = vector.broadcast %c1_i32_246 : i32 to vector<16x8xi32>
    %678 = arith.addi %676, %677 : vector<16x8xi32>
    %679 = arith.cmpi eq, %668, %678 : vector<16x8xi32>
    %680 = arith.extui %679 : vector<16x8xi1> to vector<16x8xi32>
    %681 = arith.sitofp %680 : vector<16x8xi32> to vector<16x8xf32>
    %cst_247 = arith.constant dense<0.000000e+00> : vector<16x64xf32>
    %682 = tpu.matmul %674, %666, %cst_247 {dimension_numbers = #tpu.dot_dimension_numbers<[1], [0], [0], [1], [0, 0, 1, 1], [], []>} : vector<16x8xf32>, vector<8x64xf32>, vector<16x64xf32> -> vector<16x64xf32>
    %cst_248 = arith.constant dense<0.000000e+00> : vector<16x64xf32>
    %683 = tpu.matmul %681, %667, %cst_248 {dimension_numbers = #tpu.dot_dimension_numbers<[1], [0], [0], [1], [0, 0, 1, 1], [], []>} : vector<16x8xf32>, vector<8x64xf32>, vector<16x64xf32> -> vector<16x64xf32>
    %684 = arith.addf %682, %683 : vector<16x64xf32>
    %685 = vector.broadcast %657 : vector<1x64xf32> to vector<16x64xf32>
    %686 = arith.addf %684, %685 : vector<16x64xf32>
    %cst_249 = arith.constant 0.000000e+00 : f32
    %687 = vector.broadcast %cst_249 : f32 to vector<16x64xf32>
    %688 = arith.maximumf %686, %687 : vector<16x64xf32>
    %c0_250 = arith.constant 0 : index
    %c0_251 = arith.constant 0 : index
    %689 = vector.load %arg12[%c0_250, %c0_251] : memref<128x32xf32, #tpu.memory_space<vmem>>, vector<128x32xf32>
    %c0_252 = arith.constant 0 : index
    %c0_253 = arith.constant 0 : index
    %690 = vector.load %arg13[%c0_252, %c0_253] : memref<128x32xf32, #tpu.memory_space<vmem>>, vector<128x32xf32>
    %c0_254 = arith.constant 0 : index
    %c0_255 = arith.constant 0 : index
    %691 = vector.load %arg14[%c0_254, %c0_255] : memref<1x32xf32, #tpu.memory_space<vmem>>, vector<1x32xf32>
    %cst_256 = arith.constant 0.000000e+00 : f32
    %692 = vector.broadcast %cst_256 : f32 to vector<1x64xf32>
    %693 = tpu.concatenate %692, %688, %692 in 0 : vector<1x64xf32>, vector<16x64xf32>, vector<1x64xf32> -> vector<18x64xf32>
    %694 = vector.extract_strided_slice %693 {offsets = [0, 0], sizes = [16, 64], strides = [1, 1]} : vector<18x64xf32> to vector<16x64xf32>
    %695 = vector.extract_strided_slice %693 {offsets = [1, 0], sizes = [16, 64], strides = [1, 1]} : vector<18x64xf32> to vector<16x64xf32>
    %696 = tpu.concatenate %694, %695 in 1 : vector<16x64xf32>, vector<16x64xf32> -> vector<16x128xf32>
    %697 = vector.extract_strided_slice %693 {offsets = [1, 0], sizes = [16, 64], strides = [1, 1]} : vector<18x64xf32> to vector<16x64xf32>
    %698 = vector.extract_strided_slice %693 {offsets = [2, 0], sizes = [16, 64], strides = [1, 1]} : vector<18x64xf32> to vector<16x64xf32>
    %699 = tpu.concatenate %697, %698 in 1 : vector<16x64xf32>, vector<16x64xf32> -> vector<16x128xf32>
    %cst_257 = arith.constant dense<0.000000e+00> : vector<16x32xf32>
    %700 = tpu.matmul %696, %689, %cst_257 {dimension_numbers = #tpu.dot_dimension_numbers<[1], [0], [0], [1], [0, 0, 1, 1], [], []>} : vector<16x128xf32>, vector<128x32xf32>, vector<16x32xf32> -> vector<16x32xf32>
    %cst_258 = arith.constant dense<0.000000e+00> : vector<16x32xf32>
    %701 = tpu.matmul %699, %690, %cst_258 {dimension_numbers = #tpu.dot_dimension_numbers<[1], [0], [0], [1], [0, 0, 1, 1], [], []>} : vector<16x128xf32>, vector<128x32xf32>, vector<16x32xf32> -> vector<16x32xf32>
    %702 = tpu.iota {dimensions = array<i32: 0>} : vector<32x16xi32>
    %703 = tpu.iota {dimensions = array<i32: 1>} : vector<32x16xi32>
    %c2_i32_259 = arith.constant 2 : i32
    %704 = vector.broadcast %c2_i32_259 : i32 to vector<32x16xi32>
    %705 = arith.muli %704, %703 : vector<32x16xi32>
    %706 = arith.cmpi eq, %702, %705 : vector<32x16xi32>
    %707 = arith.extui %706 : vector<32x16xi1> to vector<32x16xi32>
    %708 = arith.sitofp %707 : vector<32x16xi32> to vector<32x16xf32>
    %c2_i32_260 = arith.constant 2 : i32
    %709 = vector.broadcast %c2_i32_260 : i32 to vector<32x16xi32>
    %710 = arith.muli %709, %703 : vector<32x16xi32>
    %c1_i32_261 = arith.constant 1 : i32
    %711 = vector.broadcast %c1_i32_261 : i32 to vector<32x16xi32>
    %712 = arith.addi %710, %711 : vector<32x16xi32>
    %713 = arith.cmpi eq, %702, %712 : vector<32x16xi32>
    %714 = arith.extui %713 : vector<32x16xi1> to vector<32x16xi32>
    %715 = arith.sitofp %714 : vector<32x16xi32> to vector<32x16xf32>
    %cst_262 = arith.constant dense<0.000000e+00> : vector<32x32xf32>
    %716 = tpu.matmul %708, %700, %cst_262 {dimension_numbers = #tpu.dot_dimension_numbers<[1], [0], [0], [1], [0, 0, 1, 1], [], []>} : vector<32x16xf32>, vector<16x32xf32>, vector<32x32xf32> -> vector<32x32xf32>
    %cst_263 = arith.constant dense<0.000000e+00> : vector<32x32xf32>
    %717 = tpu.matmul %715, %701, %cst_263 {dimension_numbers = #tpu.dot_dimension_numbers<[1], [0], [0], [1], [0, 0, 1, 1], [], []>} : vector<32x16xf32>, vector<16x32xf32>, vector<32x32xf32> -> vector<32x32xf32>
    %718 = arith.addf %716, %717 : vector<32x32xf32>
    %719 = vector.broadcast %691 : vector<1x32xf32> to vector<32x32xf32>
    %720 = arith.addf %718, %719 : vector<32x32xf32>
    %cst_264 = arith.constant 0.000000e+00 : f32
    %721 = vector.broadcast %cst_264 : f32 to vector<32x32xf32>
    %722 = arith.maximumf %720, %721 : vector<32x32xf32>
    %c0_265 = arith.constant 0 : index
    %c0_266 = arith.constant 0 : index
    %723 = vector.load %arg15[%c0_265, %c0_266] : memref<64x1xf32, #tpu.memory_space<vmem>>, vector<64x1xf32>
    %c0_267 = arith.constant 0 : index
    %c0_268 = arith.constant 0 : index
    %724 = vector.load %arg16[%c0_267, %c0_268] : memref<64x1xf32, #tpu.memory_space<vmem>>, vector<64x1xf32>
    %c0_269 = arith.constant 0 : index
    %c0_270 = arith.constant 0 : index
    %725 = vector.load %arg17[%c0_269, %c0_270] : memref<1x1xf32, #tpu.memory_space<vmem>>, vector<1x1xf32>
    %cst_271 = arith.constant 0.000000e+00 : f32
    %726 = vector.broadcast %cst_271 : f32 to vector<1x32xf32>
    %727 = tpu.concatenate %726, %722, %726 in 0 : vector<1x32xf32>, vector<32x32xf32>, vector<1x32xf32> -> vector<34x32xf32>
    %728 = vector.extract_strided_slice %727 {offsets = [0, 0], sizes = [32, 32], strides = [1, 1]} : vector<34x32xf32> to vector<32x32xf32>
    %729 = vector.extract_strided_slice %727 {offsets = [1, 0], sizes = [32, 32], strides = [1, 1]} : vector<34x32xf32> to vector<32x32xf32>
    %730 = tpu.concatenate %728, %729 in 1 : vector<32x32xf32>, vector<32x32xf32> -> vector<32x64xf32>
    %731 = vector.extract_strided_slice %727 {offsets = [1, 0], sizes = [32, 32], strides = [1, 1]} : vector<34x32xf32> to vector<32x32xf32>
    %732 = vector.extract_strided_slice %727 {offsets = [2, 0], sizes = [32, 32], strides = [1, 1]} : vector<34x32xf32> to vector<32x32xf32>
    %733 = tpu.concatenate %731, %732 in 1 : vector<32x32xf32>, vector<32x32xf32> -> vector<32x64xf32>
    %cst_272 = arith.constant dense<0.000000e+00> : vector<32x1xf32>
    %734 = tpu.matmul %730, %723, %cst_272 {dimension_numbers = #tpu.dot_dimension_numbers<[1], [0], [0], [1], [0, 0, 1, 1], [], []>} : vector<32x64xf32>, vector<64x1xf32>, vector<32x1xf32> -> vector<32x1xf32>
    %cst_273 = arith.constant dense<0.000000e+00> : vector<32x1xf32>
    %735 = tpu.matmul %733, %724, %cst_273 {dimension_numbers = #tpu.dot_dimension_numbers<[1], [0], [0], [1], [0, 0, 1, 1], [], []>} : vector<32x64xf32>, vector<64x1xf32>, vector<32x1xf32> -> vector<32x1xf32>
    %736 = tpu.iota {dimensions = array<i32: 0>} : vector<64x32xi32>
    %737 = tpu.iota {dimensions = array<i32: 1>} : vector<64x32xi32>
    %c2_i32_274 = arith.constant 2 : i32
    %738 = vector.broadcast %c2_i32_274 : i32 to vector<64x32xi32>
    %739 = arith.muli %738, %737 : vector<64x32xi32>
    %740 = arith.cmpi eq, %736, %739 : vector<64x32xi32>
    %741 = arith.extui %740 : vector<64x32xi1> to vector<64x32xi32>
    %742 = arith.sitofp %741 : vector<64x32xi32> to vector<64x32xf32>
    %c2_i32_275 = arith.constant 2 : i32
    %743 = vector.broadcast %c2_i32_275 : i32 to vector<64x32xi32>
    %744 = arith.muli %743, %737 : vector<64x32xi32>
    %c1_i32_276 = arith.constant 1 : i32
    %745 = vector.broadcast %c1_i32_276 : i32 to vector<64x32xi32>
    %746 = arith.addi %744, %745 : vector<64x32xi32>
    %747 = arith.cmpi eq, %736, %746 : vector<64x32xi32>
    %748 = arith.extui %747 : vector<64x32xi1> to vector<64x32xi32>
    %749 = arith.sitofp %748 : vector<64x32xi32> to vector<64x32xf32>
    %cst_277 = arith.constant dense<0.000000e+00> : vector<64x1xf32>
    %750 = tpu.matmul %742, %734, %cst_277 {dimension_numbers = #tpu.dot_dimension_numbers<[1], [0], [0], [1], [0, 0, 1, 1], [], []>} : vector<64x32xf32>, vector<32x1xf32>, vector<64x1xf32> -> vector<64x1xf32>
    %cst_278 = arith.constant dense<0.000000e+00> : vector<64x1xf32>
    %751 = tpu.matmul %749, %735, %cst_278 {dimension_numbers = #tpu.dot_dimension_numbers<[1], [0], [0], [1], [0, 0, 1, 1], [], []>} : vector<64x32xf32>, vector<32x1xf32>, vector<64x1xf32> -> vector<64x1xf32>
    %752 = arith.addf %750, %751 : vector<64x1xf32>
    %753 = vector.broadcast %725 : vector<1x1xf32> to vector<64x1xf32>
    %754 = arith.addf %752, %753 : vector<64x1xf32>
    %755 = math.tanh %754 : vector<64x1xf32>
    %c1_279 = arith.constant 1 : index
    %c0_280 = arith.constant 0 : index
    %c0_281 = arith.constant 0 : index
    %756 = vector.load %arg18[%c1_279, %c0_280, %c0_281] : memref<2x64x1xf32, #tpu.memory_space<vmem>>, vector<1x64x1xf32>
    %757 = vector.shape_cast %756 : vector<1x64x1xf32> to vector<64x1xf32>
    %758 = vector.shape_cast %755 : vector<64x1xf32> to vector<1x64x1xf32>
    tpu.vector_store %arg18[%c1_279, %c0_280, %c0_281], %758 {strides = array<i32>} : memref<2x64x1xf32, #tpu.memory_space<vmem>>, vector<1x64x1xf32>,
    %cst_282 = arith.constant 0.00122070313 : f32
    %759 = vector.broadcast %cst_282 : f32 to vector<1x1xf32>
    %760 = arith.mulf %642, %759 : vector<1x1xf32>
    %c0_283 = arith.constant 0 : index
    %c0_284 = arith.constant 0 : index
    %761 = vector.load %arg19[%c0_283, %c0_284] : memref<1x1xf32, #tpu.memory_space<vmem>>, vector<1x1xf32>
    tpu.vector_store %arg19[%c0_283, %c0_284], %760 {strides = array<i32>} : memref<1x1xf32, #tpu.memory_space<vmem>>, vector<1x1xf32>,
    return
  }
}

</mosaic_0001>

<bundles_post_ra>
// kernel: vqvae_forward.1
= control target key start
LH: loop header
LB: loop body
LE: loop exit
PB: predicated region body
PF: predicated region fallthrough
CT: control target
= control target key end

     0   :  { %s19185_s0 = inlined_call_operand.vmem [shape: f32[2,64,1], index: 0, kind: input, shape index: {}]   ;;  %s19186_s1 = inlined_call_operand.vmem [shape: f32[4,32], index: 1, kind: input, shape index: {}]   ;;  %s19187_s2 = inlined_call_operand.vmem [shape: f32[1,32], index: 2, kind: input, shape index: {}]   ;;  %s19188_s3 = inlined_call_operand.vmem [shape: f32[128,64], index: 3, kind: input, shape index: {}]   ;;  %s19189_s4 = inlined_call_operand.vmem [shape: f32[1,64], index: 4, kind: input, shape index: {}]   ;;  %s19190_s5 = inlined_call_operand.vmem [shape: f32[256,64], index: 5, kind: input, shape index: {}]   ;;  %s19191_s6 = inlined_call_operand.vmem [shape: f32[1,64], index: 6, kind: input, shape index: {}]   ;;  %s19192_s7 = inlined_call_operand.vmem [shape: f32[1024,64], index: 7, kind: input, shape index: {}]   ;;  %s19193_s8 = inlined_call_operand.vmem [shape: f32[1,1024], index: 8, kind: input, shape index: {}]   ;;  %s19194_s9 = inlined_call_operand.vmem [shape: f32[128,64], index: 9, kind: input, shape index: {}]   ;;  %s19195_s10 = inlined_call_operand.vmem [shape: f32[128,64], index: 10, kind: input, shape index: {}]   ;;  %s19196_s11 = inlined_call_operand.vmem [shape: f32[1,64], index: 11, kind: input, shape index: {}]   ;;  %s19197_s12 = inlined_call_operand.vmem [shape: f32[128,32], index: 12, kind: input, shape index: {}]   ;;  %s19198_s13 = inlined_call_operand.vmem [shape: f32[128,32], index: 13, kind: input, shape index: {}]   ;;  %s19199_s14 = inlined_call_operand.vmem [shape: f32[1,32], index: 14, kind: input, shape index: {}]   ;;  %s19200_s15 = inlined_call_operand.vmem [shape: f32[64,1], index: 15, kind: input, shape index: {}]   ;;  %s19201_s16 = inlined_call_operand.vmem [shape: f32[64,1], index: 16, kind: input, shape index: {}]   ;;  %s19202_s17 = inlined_call_operand.<no memory space> [shape: f32[1,1], index: 17, kind: input, shape index: {}]   ;;  %s19203_s18 = inlined_call_operand.vmem [shape: f32[2,64,1], index: 18, kind: output, shape index: {0}]   ;;  %s19204_s19 = inlined_call_operand.hbm [shape: f32[1,1], index: 19, kind: output, shape index: {1}]   ;;  %s19205_s20 = inlined_call_operand.vmem [shape: f32[2,64,8], index: 20, kind: output, shape index: {2}]  }
   0x1   :  { %19487 = sst [smem:[#allocation162_spill]] %s19185_s0  ;;  %v26_v0 = vstv %s19202_s17 }
   0x2   :  { %19488 = sst [smem:[#allocation163_spill]] %s19186_s1  ;;  %27 = vst [vmem:[#allocation2] sm:$0x1] %v26_v0 }
   0x3   :  { %19489 = sst [smem:[#allocation164_spill]] %s19187_s2 }
   0x4   :  { %19490 = sst [smem:[#allocation165_spill]] %s19188_s3 }
   0x5   :  { %19491 = sst [smem:[#allocation166_spill]] %s19189_s4 }
   0x6   :  { %19492 = sst [smem:[#allocation167_spill]] %s19191_s6 }
   0x7   :  { %19493 = sst [smem:[#allocation168_spill]] %s19204_s19 }
   0x8   :  { %s19494_s2 = sld [smem:[#allocation162_spill]]  ;;  %vm212_vm0 = vcmask 1040384   ;;  %v239_v4 = vlaneseq  ;;  %vm15243_vm2 = vmmov 1   ;;  %v19495_v10 = vmov 0 }
   0x9   :  { %vm10331_vm1 = vmneg %vm212_vm0 }
   0xa   :  { %vm15385_vm3 = vmpackc.low %vm15243_vm2, %vm10331_vm1  ;;  %v15395_v15 = vshrl.u32 %v239_v4, 7  ;;  %v15402_v20 = vand.u32 127, %v239_v4 }
   0xb   :  { %v19496_v10 = vsel %vm15385_vm3, 4294967295, %v19495_v10 }
   0xc   :  { %19497 = vst [vmem:[#allocation6_spill] sm:$0xff] %v19496_v10 }
   0xe   :  { %v194_v1 = vld [vmem:[%s19494_s2] sm:$0xff]  ;;  %v195_v2 = vld [vmem:[%s19494_s2 + $0x8] sm:$0xff]  ;;  %v196_v3 = vld [vmem:[%s19494_s2 + $0x10] sm:$0xff] }
   0xf   :  { %v213_v5 = vrot.slane %v194_v1, 7  ;;  %v214_v6 = vrot.slane %v195_v2, 7  ;;  %v197_v7 = vld [vmem:[%s19494_s2 + $0x18] sm:$0xff]  ;;  %v216_v8 = vrot.slane %v196_v3, 7  ;;  %v198_v9 = vld [vmem:[%s19494_s2 + $0x20] sm:$0xff]  ;;  %v199_v12 = vld [vmem:[%s19494_s2 + $0x28] sm:$0xff] }
  0x10   :  { %v218_v11 = vrot.slane %v197_v7, 7  ;;  %v220_v13 = vrot.slane %v198_v9, 7  ;;  %v200_v14 = vld [vmem:[%s19494_s2 + $0x30] sm:$0xff]  ;;  %v222_v18 = vrot.slane %v199_v12, 7  ;;  %v201_v19 = vld [vmem:[%s19494_s2 + $0x38] sm:$0xff] }
  0x11   :  { %v215_v16 = vsel %vm212_vm0, %v213_v5, %v214_v6  ;;  %v217_v17 = vsel %vm212_vm0, %v214_v6, %v216_v8 }
  0x12   :  { %28 = vsyncpa [#allocation4], 0  ;;  %v15404_v21 = vpack.c.bf16 %v215_v16, %v213_v5  ;;  %v219_v22 = vsel %vm212_vm0, %v216_v8, %v218_v11  ;;  %v221_v23 = vsel %vm212_vm0, %v218_v11, %v220_v13  ;;  %v224_v24 = vrot.slane %v200_v14, 7  ;;  %s19215_s24 = smov 1   ;;  %s19517_s26 = sld [smem:[#allocation163_spill]] }
  0x13   :  { %v15408_v25 = vpack.c.bf16 %v219_v22, %v217_v17  ;;  %v223_v26 = vsel %vm212_vm0, %v220_v13, %v222_v18  ;;  %v226_v27 = vrot.slane %v201_v19, 7  ;;  %v246_v28 = vmul.u32 2, %v15395_v15  ;;  %s19211_s27 = smov 2   ;;  %s19213_s17 = smov 3  }
  0x14   :  { %13557 = vmatprep.subr.msk.bf16.mxu0 %vm15385_vm3, %v15404_v21  ;;  %13575 = vmatprep.subr.msk.bf16.mxu1 %vm15385_vm3, %v15404_v21  ;;  %vm19336_vm4 = vcmask 539648   ;;  %v15426_v30 = vadd.s32 8, %v15395_v15  ;;  %v15430_v31 = vpack.c.bf16 %v223_v26, %v221_v23  ;;  %v19225_v32 = vmov 0.0   ;;  %s19518_s29 = sld [smem:[#allocation164_spill]]  ;;  %s19519_s21 = sld [smem:[#allocation165_spill]] }
  0x15   :  { %13560 = vmatpush3.bf16.msk.msra.mxu0 %vm15385_vm3, %v15404_v21  ;;  %13578 = vmatpush3.bf16.msk.msra.mxu1 %vm15385_vm3, %v15404_v21  ;;  %vm250_vm5 = vcmp.eq.s32.totalorder %v15402_v20, %v246_v28  ;;  %v364_v29 = vadd.s32 1, %v246_v28  ;;  %v225_v34 = vsel %vm212_vm0, %v222_v18, %v224_v24  ;;  %v227_v35 = vsel %vm212_vm0, %v224_v24, %v226_v27  ;;  %s19217_s1 = smov 32   ;;  %s19219_s22 = smov 96  }
  0x16   :  { %19498 = vst [vmem:[#allocation7_spill] sm:$0xff] %v15426_v30  ;;  %13562 = vmatprep.subr.bf16.mxu0 %v15408_v25  ;;  %13580 = vmatprep.subr.bf16.mxu1 %v15408_v25  ;;  %v15433_v33 = vsel %vm250_vm5, 1.0, %v19225_v32  ;;  %v15441_v36 = vadd.s32 16, %v15395_v15  ;;  %v247_v38 = vmul.u32 2, %v15426_v30  ;;  %v15448_v39 = vadd.s32 24, %v15395_v15  ;;  %s19221_s23 = smov 64  }
  0x17   :  { %19499 = vst [vmem:[#allocation8_spill] sm:$0xff] %v15433_v33  ;;  %12387 = vmatprep.mubr.msk.f32.mxu0 %vm19336_vm4, %v15433_v33  ;;  %vm368_vm6 = vcmp.eq.s32.totalorder %v15402_v20, %v364_v29  ;;  %v15454_v40 = vpack.c.bf16 %v227_v35, %v225_v34  ;;  %v15465_v44 = vsel %vm212_vm0, %v226_v27, 0.0  ;;  %vm19335_vm7 = vcmask 1041408   ;;  %s19520_s3 = sld [smem:[#allocation166_spill]]  ;;  %s19450_s19 = smov 88  }
  0x18   :  { %19500 = vst [vmem:[#allocation9_spill] sm:$0xff] %v15441_v36  ;;  %v15444_v37 = vsel %vm368_vm6, 1.0, %v19225_v32  ;;  %19502 = vst [vmem:[#allocation11_spill] sm:$0xff] %v15448_v39  ;;  %v248_v41 = vmul.u32 2, %v15441_v36  ;;  %v365_v42 = vadd.s32 1, %v247_v38  ;;  %v249_v43 = vmul.u32 2, %v15448_v39 }
  0x19   :  { %19501 = vst [vmem:[#allocation10_spill] sm:$0xff] %v15444_v37  ;;  %13564 = vmatpush3.bf16.msra.mxu0 %v15408_v25  ;;  %13582 = vmatpush3.bf16.msra.mxu1 %v15408_v25  ;;  %vm251_vm8 = vcmp.eq.s32.totalorder %v15402_v20, %v247_v38  ;;  %v590_v47 = vadd.s32 3, %v246_v28  ;;  %v477_v50 = vadd.s32 2, %v246_v28  ;;  %v478_v57 = vadd.s32 2, %v247_v38  ;;  %v202_v14 = vld [vmem:[%s19517_s26] sm:$0xf] }
  0x1a   :  { %13566 = vmatprep.subr.bf16.mxu0 %v15430_v31  ;;  %13584 = vmatprep.subr.bf16.mxu1 %v15430_v31  ;;  %v366_v45 = vadd.s32 1, %v248_v41  ;;  %vm369_vm9 = vcmp.eq.s32.totalorder %v15402_v20, %v365_v42  ;;  %v367_v46 = vadd.s32 1, %v249_v43  ;;  %v15476_v48 = vsel %vm251_vm8, 1.0, %v19225_v32  ;;  %v137_v36 = vld [vmem:[%s19192_s7 + $0x240] sm:$0xff]  ;;  %s19449_s28 = smov 80   ;;  %s15258_s4 = smov 120  }
  0x1b   :  { %12411 = vmatprep.mubr.msk.f32.mxu1 %vm19336_vm4, %v15444_v37  ;;  %19503 = vst [vmem:[#allocation12_spill] sm:$0xff] %v15476_v48  ;;  %v15479_v49 = vsel %vm369_vm9, 1.0, %v19225_v32  ;;  %vm252_vm12 = vcmp.eq.s32.totalorder %v15402_v20, %v248_v41  ;;  %vm594_vm13 = vcmp.eq.s32.totalorder %v15402_v20, %v590_v47  ;;  %vm253_vm14 = vcmp.eq.s32.totalorder %v15402_v20, %v249_v43  ;;  %s19448_s30 = smov 72   ;;  %s19766_s25 = smov 3  }
  0x1c   :  { %19504 = vst [vmem:[#allocation13_spill] sm:$0xff] %v15479_v49  ;;  %vm370_vm10 = vcmp.eq.s32.totalorder %v15402_v20, %v366_v45  ;;  %vm371_vm11 = vcmp.eq.s32.totalorder %v15402_v20, %v367_v46  ;;  %v15512_v53 = vsel %vm252_vm12, 1.0, %v19225_v32  ;;  %v15516_v54 = vsel %vm594_vm13, 1.0, %v19225_v32  ;;  %s19898_s0 = smov 80  }
  0x1d   :  { %13568 = vmatpush3.bf16.msra.mxu0 %v15430_v31  ;;  %13586 = vmatpush3.bf16.msra.mxu1 %v15430_v31  ;;  %v15494_v51 = vsel %vm370_vm10, 1.0, %v19225_v32  ;;  %v15503_v52 = vsel %vm371_vm11, 1.0, %v19225_v32  ;;  %19507 = vst [vmem:[#allocation16_spill] sm:$0xff] %v15512_v53  ;;  %19508 = vst [vmem:[#allocation17_spill] sm:$0xff] %v15516_v54  ;;  %vm481_vm15 = vcmp.eq.s32.totalorder %v15402_v20, %v477_v50  ;;  %v15528_v55 = vsel %vm253_vm14, 1.0, %v19225_v32 }
  0x1e   :  { %13570 = vmatprep.subr.bf16.mxu0 %v15454_v40  ;;  %13588 = vmatprep.subr.bf16.mxu1 %v15454_v40  ;;  %19505 = vst [vmem:[#allocation14_spill] sm:$0xff] %v15494_v51  ;;  %19506 = vst [vmem:[#allocation15_spill] sm:$0xff] %v15503_v52  ;;  %v15535_v56 = vsel %vm481_vm15, 1.0, %v19225_v32  ;;  %v591_v58 = vadd.s32 3, %v247_v38  ;;  %v479_v59 = vadd.s32 2, %v248_v41  ;;  %v592_v60 = vadd.s32 3, %v248_v41 }
  0x1f   :  { %19509 = vst [vmem:[#allocation18_spill] sm:$0xff] %v15528_v55  ;;  %19510 = vst [vmem:[#allocation19_spill] sm:$0xff] %v15535_v56  ;;  %vm482_vm1 = vcmp.eq.s32.totalorder %v15402_v20, %v478_v57  ;;  %v480_v61 = vadd.s32 2, %v249_v43  ;;  %v593_v62 = vadd.s32 3, %v249_v43  ;;  %vm19333_vm10 = vcmask 1043456  }
  0x20   :  { %vm595_vm2 = vcmp.eq.s32.totalorder %v15402_v20, %v591_v58  ;;  %vm483_vm5 = vcmp.eq.s32.totalorder %v15402_v20, %v479_v59  ;;  %vm596_vm6 = vcmp.eq.s32.totalorder %v15402_v20, %v592_v60  ;;  %v15558_v63 = vsel %vm482_vm1, 1.0, %v19225_v32 }
  0x21   :  { %13572 = vmatpush3.bf16.msra.mxu0 %v15454_v40  ;;  %13590 = vmatpush3.bf16.msra.mxu1 %v15454_v40  ;;  %19511 = vst [vmem:[#allocation20_spill] sm:$0xff] %v15558_v63  ;;  %v15561_v0 = vsel %vm595_vm2, 1.0, %v19225_v32  ;;  %v15564_v1 = vsel %vm483_vm5, 1.0, %v19225_v32  ;;  %vm484_vm8 = vcmp.eq.s32.totalorder %v15402_v20, %v480_v61  ;;  %v15568_v2 = vsel %vm596_vm6, 1.0, %v19225_v32 }
  0x22   :  { %12385 = vmatprep.subr.msk.mxu0 %vm19335_vm7, %v15465_v44  ;;  %12409 = vmatprep.subr.msk.mxu1 %vm19335_vm7, %v15465_v44  ;;  %19512 = vst [vmem:[#allocation21_spill] sm:$0xff] %v15561_v0  ;;  %19513 = vst [vmem:[#allocation22_spill] sm:$0xff] %v15564_v1  ;;  %vm597_vm9 = vcmp.eq.s32.totalorder %v15402_v20, %v593_v62  ;;  %v15582_v3 = vsel %vm484_vm8, 1.0, %v19225_v32  ;;  %vm19332_vm11 = vcmask 7168   ;;  %vm19331_vm12 = vcmask 15360  }
  0x23   :  { %19514 = vst [vmem:[#allocation23_spill] sm:$0xff] %v15568_v2  ;;  %19515 = vst [vmem:[#allocation24_spill] sm:$0xff] %v15582_v3  ;;  %v15587_v4 = vsel %vm597_vm9, 1.0, %v19225_v32  ;;  %vm19330_vm13 = vcmask 23552   ;;  %vm19329_vm14 = vcmask 31744   ;;  %vm19334_vm15 = vcmask 277504  }
  0x24   :  { %19516 = vst [vmem:[#allocation25_spill] sm:$0xff] %v15587_v4  ;;  %vm19337_vm1 = vcmask 261120   ;;  %vm19338_vm2 = vcmask 523264   ;;  %vm19328_vm5 = vcmask 785408   ;;  %vm15252_vm6 = vmmov 0  }
  0x25   :  { %12386 = vmatpush3.msk.msra.mxu0 %vm19335_vm7, %v15465_v44  ;;  %12410 = vmatpush3.msk.msra.mxu1 %vm19335_vm7, %v15465_v44  ;;  %vm19327_vm8 = vcmask 146432   ;;  %vm15879_vm9 = vmpackc.low %vm19338_vm2, %vm19338_vm2 }
  0x26   :  { %12388 = vmatmul.mubr.msk.f32.vlgmr.msra.gmra.mrb[0].mxu0 %vm19336_vm4, %v15476_v48  ;;  %12412 = vmatmul.mubr.msk.f32.vlgmr.msra.gmra.mrb[0].mxu1 %vm19336_vm4, %v15479_v49 }
  0x27   :  { %13593 = vmatprep.subr.msk.bf16.mxu0 %vm15385_vm3, %v15404_v21  ;;  %13611 = vmatprep.subr.msk.bf16.mxu1 %vm15385_vm3, %v15404_v21 }
  0x28   :  { %13596 = vmatpush3.bf16.msk.msra.mxu0 %vm15385_vm3, %v15404_v21  ;;  %13614 = vmatpush3.bf16.msk.msra.mxu1 %vm15385_vm3, %v15404_v21 }
  0x29   :  { %12414 = vmatprep.mubr.msk.f32.mxu1 %vm19336_vm4, %v15494_v51  ;;  %13598 = vmatprep.subr.bf16.mxu0 %v15408_v25 }
  0x2a   :  { %12415 = vmatmul.mubr.msk.f32.gmra.mrb[2].mxu1 %vm19336_vm4, %v15503_v52  ;;  %13616 = vmatprep.subr.bf16.mxu1 %v15408_v25 }
  0x2b   :  { %12390 = vmatprep.mubr.msk.f32.mxu0 %vm19336_vm4, %v15512_v53  ;;  %12459 = vmatprep.mubr.msk.f32.mxu1 %vm19336_vm4, %v15516_v54 }
  0x2c   :  { %13600 = vmatpush3.bf16.msra.mxu0 %v15408_v25  ;;  %13618 = vmatpush3.bf16.msra.mxu1 %v15408_v25 }
  0x2d   :  { %13602 = vmatprep.subr.bf16.mxu0 %v15430_v31  ;;  %13620 = vmatprep.subr.bf16.mxu1 %v15430_v31 }
  0x2e   :  { %12391 = vmatmul.mubr.msk.f32.gmra.mrb[2].mxu0 %vm19336_vm4, %v15528_v55 }
  0x2f   :  { %12435 = vmatprep.mubr.msk.f32.mxu0 %vm19336_vm4, %v15535_v56 }
  0x30   :  { %13604 = vmatpush3.bf16.msra.mxu0 %v15430_v31  ;;  %13622 = vmatpush3.bf16.msra.mxu1 %v15430_v31 }
  0x31   :  { %13606 = vmatprep.subr.bf16.mxu0 %v15454_v40  ;;  %13624 = vmatprep.subr.bf16.mxu1 %v15454_v40 }
  0x34   :  { %13608 = vmatpush3.bf16.msra.mxu0 %v15454_v40  ;;  %13626 = vmatpush3.bf16.msra.mxu1 %v15454_v40 }
  0x35   :  { %12433 = vmatprep.subr.msk.mxu0 %vm19335_vm7, %v15465_v44  ;;  %12457 = vmatprep.subr.msk.mxu1 %vm19335_vm7, %v15465_v44 }
  0x38   :  { %12434 = vmatpush3.msk.msra.mxu0 %vm19335_vm7, %v15465_v44  ;;  %12458 = vmatpush3.msk.msra.mxu1 %vm19335_vm7, %v15465_v44 }
  0x39   :  { %12436 = vmatmul.mubr.msk.f32.vlgmr.msra.gmra.mrb[4].mxu0 %vm19336_vm4, %v15558_v63  ;;  %12460 = vmatmul.mubr.msk.f32.vlgmr.msra.gmra.mrb[4].mxu1 %vm19336_vm4, %v15561_v0 }
  0x3a   :  { %12438 = vmatprep.mubr.msk.f32.mxu0 %vm19336_vm4, %v15564_v1  ;;  %12462 = vmatprep.mubr.msk.f32.mxu1 %vm19336_vm4, %v15568_v2 }
  0x3b   :  { %12465 = vmatprep.subr.msk.mxu0 %vm19333_vm10, %v202_v14 }
  0x3c   :  { %12466 = vmatpush3.msk.msra.mxu0 %vm19333_vm10, %v202_v14 }
  0x3d   :  { %12439 = vmatmul.mubr.msk.f32.gmra.mrb[6].mxu0 %vm19336_vm4, %v15582_v3  ;;  %12463 = vmatmul.mubr.msk.f32.gmra.mrb[6].mxu1 %vm19336_vm4, %v15587_v4  ;;  %v162_v3 = vld [vmem:[%s19192_s7 + $0x308] sm:$0xff] }
  0x3e   :  { %12483 = vmatprep.mubr.msk.f32.mxu1 %vm19334_vm15, %v15433_v33 }
  0xf9   :  { %v12389_v5 = vpop.f32.mrb[0].mxu0  ;;  %v12413_v6 = vpop.f32.mrb[0].mxu1 }
  0xfa   :  { %709 = vrot.lane.b32.xlu0 %v12413_v6, %s19215_s24  ;;  %v345_v7 = vpop.f32.mrb[1].mxu0  ;;  %v458_v8 = vpop.f32.mrb[1].mxu1 }
  0xfd   :  { %v12416_v9 = vpop.f32.mrb[2].mxu1 }
  0xfe   :  { %707 = vrot.lane.b32.xlu0 %v458_v8, %s19215_s24  ;;  %713 = vrot.lane.b32.xlu1 %v12416_v9, %s19215_s24  ;;  %v468_v11 = vpop.f32.mrb[3].mxu1 }
 0x101   :  { %v12392_v12 = vpop.f32.mrb[2].mxu0 }
 0x102   :  { %711 = vrot.lane.b32.xlu0 %v468_v11, %s19215_s24  ;;  %v355_v13 = vpop.f32.mrb[3].mxu0 }
 0x10c   :  { %v12437_v16 = vpop.f32.mrb[4].mxu0  ;;  %v12461_v17 = vpop.f32.mrb[4].mxu1 }
 0x10d   :  { %v684_v18 = vpop.f32.mrb[5].mxu1  ;;  %725 = vrot.lane.b32.xlu1 %v12437_v16, %s19211_s27  ;;  %v571_v19 = vpop.f32.mrb[5].mxu0 }
 0x10e   :  { %739 = vrot.lane.b32.xlu0 %v684_v18, %s19213_s17 }
 0x110   :  { %v12440_v21 = vpop.f32.mrb[6].mxu0  ;;  %v12464_v22 = vpop.f32.mrb[6].mxu1 }
 0x111   :  { %741 = vrot.lane.b32.xlu1 %v12461_v17, %s19213_s17  ;;  %v581_v23 = vpop.f32.mrb[7].mxu0  ;;  %v694_v24 = vpop.f32.mrb[7].mxu1 }
 0x112   :  { %727 = vrot.lane.b32.xlu0 %v581_v23, %s19211_s27 }
 0x115   :  { %723 = vrot.lane.b32.xlu1 %v571_v19, %s19211_s27 }
 0x116   :  { %743 = vrot.lane.b32.xlu0 %v694_v24, %s19213_s17 }
 0x119   :  { %729 = vrot.lane.b32.xlu1 %v12440_v21, %s19211_s27  ;;  %s15255_s27 = smov 112  }
 0x11d   :  { %745 = vrot.lane.b32.xlu1 %v12464_v22, %s19213_s17 }
 0x16c   :  { %v710_v25 = vpop.permute.xlu0 %709 }
 0x16d   :  { %v753_v41 = vsel %vm19332_vm11, %v12389_v5, %v710_v25  ;;  %v10371_v5 = vld [vmem:[%s19518_s29] ss:$0 sm:$0xff] }
 0x170   :  { %v708_v26 = vpop.permute.xlu0 %707  ;;  %v714_v27 = vpop.permute.xlu1 %713 }
 0x171   :  { %v752_v38 = vsel %vm19332_vm11, %v345_v7, %v708_v26  ;;  %v755_v59 = vsel %vm19332_vm11, %v12392_v12, %v714_v27 }
 0x174   :  { %v712_v28 = vpop.permute.xlu0 %711 }
 0x175   :  { %v754_v44 = vsel %vm19332_vm11, %v355_v13, %v712_v28 }
 0x17f   :  { %v726_v29 = vpop.permute.xlu1 %725 }
 0x180   :  { %v740_v31 = vpop.permute.xlu0 %739  ;;  %v758_v45 = vsel %vm19331_vm12, %v753_v41, %v726_v29  ;;  %v881_v41 = vld [vmem:[%s19519_s21 + $0x18] sm:$0xff] }
 0x183   :  { %v742_v34 = vpop.permute.xlu1 %741 }
 0x184   :  { %v728_v35 = vpop.permute.xlu0 %727  ;;  %v763_v47 = vsel %vm19330_vm13, %v758_v45, %v742_v34  ;;  %v878_v34 = vld [vmem:[%s19519_s21] sm:$0xff] }
 0x185   :  { %v759_v50 = vsel %vm19331_vm12, %v754_v44, %v728_v35  ;;  %v879_v35 = vld [vmem:[%s19519_s21 + $0x8] sm:$0xff] }
 0x186   :  { %v883_v44 = vld [vmem:[%s19519_s21 + $0x28] sm:$0xff] }
 0x187   :  { %v724_v40 = vpop.permute.xlu1 %723 }
 0x188   :  { %v757_v42 = vsel %vm19331_vm12, %v752_v38, %v724_v40  ;;  %v744_v43 = vpop.permute.xlu0 %743  ;;  %v880_v38 = vld [vmem:[%s19519_s21 + $0x10] sm:$0xff]  ;;  %v13667_v40 = vpack.c.bf16 %v879_v35, %v878_v34 }
 0x189   :  { %v762_v46 = vsel %vm19330_vm13, %v757_v42, %v740_v31  ;;  %v764_v57 = vsel %vm19330_vm13, %v759_v50, %v744_v43  ;;  %v13671_v42 = vpack.c.bf16 %v881_v41, %v880_v38  ;;  %v882_v43 = vld [vmem:[%s19519_s21 + $0x20] sm:$0xff] }
 0x18a   :  { %12467 = vmatprep.mubr.msk.f32.mxu0 %vm19329_vm14, %v762_v46  ;;  %v13675_v45 = vpack.c.bf16 %v883_v44, %v882_v43  ;;  %v884_v46 = vld [vmem:[%s19519_s21 + $0x30] sm:$0xff] }
 0x18b   :  { %12468 = vmatmul.mubr.msk.f32.vlgmr.msra.gmra.mrb[8].mxu0 %vm19329_vm14, %v763_v47  ;;  %v730_v58 = vpop.permute.xlu1 %729  ;;  %v885_v47 = vld [vmem:[%s19519_s21 + $0x38] sm:$0xff] }
 0x18c   :  { %12470 = vmatprep.mubr.msk.f32.mxu0 %vm19329_vm14, %v764_v57  ;;  %v760_v60 = vsel %vm19331_vm12, %v755_v59, %v730_v58  ;;  %v13679_v50 = vpack.c.bf16 %v885_v47, %v884_v46  ;;  %v886_v57 = vld [vmem:[%s19519_s21 + $0x40] sm:$0xff]  ;;  %v887_v58 = vld [vmem:[%s19519_s21 + $0x48] sm:$0xff]  ;;  %v19223_v46 = vmov 0.0|0.0  }
 0x18d   :  { %v13683_v59 = vpack.c.bf16 %v887_v58, %v886_v57  ;;  %v10397_v47 = vld [vmem:[%s19520_s3] ss:$0 sm:$0xff] }
 0x18f   :  { %v746_v61 = vpop.permute.xlu1 %745 }
 0x190   :  { %v765_v62 = vsel %vm19330_vm13, %v760_v60, %v746_v61  ;;  %v888_v60 = vld [vmem:[%s19519_s21 + $0x50] sm:$0xff]  ;;  %v889_v61 = vld [vmem:[%s19519_s21 + $0x58] sm:$0xff] }
 0x191   :  { %12471 = vmatmul.mubr.msk.f32.gmra.mrb[10].mxu0 %vm19329_vm14, %v765_v62  ;;  %v890_v62 = vld [vmem:[%s19519_s21 + $0x60] sm:$0xff] }
 0x192   :  { %12496 = vmatprep.mubr.msk.f32.mxu0 %vm19334_vm15, %v15444_v37 }
 0x25e   :  { %v12469_v6 = vpop.f32.mrb[8].mxu0 }
 0x25f   :  { %v861_v7 = vadd.f32 %v12469_v6, %v10371_v5  ;;  %v855_v8 = vpop.f32.mrb[9].mxu0  ;;  %v891_v6 = vld [vmem:[%s19519_s21 + $0x68] sm:$0xff] }
 0x260   :  { %v856_v9 = vadd.f32 %v10371_v5, %v855_v8 }
 0x261   :  { %v875_v11 = vmax.f32 %v861_v7, 0.0  ;;  %v13691_v7 = vpack.c.bf16 %v891_v6, %v890_v62 }
 0x262   :  { %v874_v12 = vmax.f32 %v856_v9, 0.0 }
 0x263   :  { %v900_v13 = vrot.slane %v875_v11, 7  ;;  %v892_v11 = vld [vmem:[%s19519_s21 + $0x70] sm:$0xff] }
 0x264   :  { %v899_v14 = vrot.slane %v874_v12, 7  ;;  %v12472_v16 = vpop.f32.mrb[10].mxu0  ;;  %v893_v12 = vld [vmem:[%s19519_s21 + $0x78] sm:$0xff] }
 0x265   :  { %v871_v17 = vadd.f32 %v12472_v16, %v10371_v5  ;;  %v865_v18 = vpop.f32.mrb[11].mxu0  ;;  %v13695_v16 = vpack.c.bf16 %v893_v12, %v892_v11  ;;  %v1366_v11 = vld [vmem:[%s19190_s5 + $0x88] sm:$0xff]  ;;  %v1349_v12 = vld [vmem:[%s19190_s5] sm:$0xff] }
 0x266   :  { %v901_v19 = vsel %vm212_vm0, %v899_v14, %v900_v13  ;;  %v866_v21 = vadd.f32 %v10371_v5, %v865_v18  ;;  %v13687_v5 = vpack.c.bf16 %v889_v61, %v888_v60 }
 0x267   :  { %v13627_v22 = vpack.c.bf16 %v901_v19, %v899_v14  ;;  %v877_v23 = vmax.f32 %v871_v17, 0.0 }
 0x268   :  { %v876_v24 = vmax.f32 %v866_v21, 0.0 }
 0x269   :  { %v904_v25 = vrot.slane %v877_v23, 7  ;;  %13629 = vmatprep.subr.msk.bf16.mxu1 %vm15385_vm3, %v13627_v22  ;;  %13639 = vmatprep.subr.msk.bf16.mxu0 %vm15385_vm3, %v13627_v22 }
 0x26a   :  { %v902_v26 = vrot.slane %v876_v24, 7  ;;  %13632 = vmatpush3.bf16.msk.msra.mxu1 %vm15385_vm3, %v13627_v22  ;;  %13642 = vmatpush3.bf16.msk.msra.mxu0 %vm15385_vm3, %v13627_v22 }
 0x26b   :  { %v912_v31 = vsel %vm212_vm0, %v904_v25, 0.0 }
 0x26c   :  { %v903_v27 = vsel %vm212_vm0, %v900_v13, %v902_v26  ;;  %v905_v28 = vsel %vm212_vm0, %v902_v26, %v904_v25 }
 0x26d   :  { %v13633_v29 = vpack.c.bf16 %v905_v28, %v903_v27 }
 0x26f   :  { %13634 = vmatprep.subr.bf16.mxu1 %v13633_v29  ;;  %13644 = vmatprep.subr.bf16.mxu0 %v13633_v29 }
 0x270   :  { %13636 = vmatpush3.bf16.msra.mxu1 %v13633_v29  ;;  %13646 = vmatpush3.bf16.msra.mxu0 %v13633_v29 }
 0x271   :  { %12481 = vmatprep.subr.msk.mxu1 %vm19335_vm7, %v912_v31  ;;  %12494 = vmatprep.subr.msk.mxu0 %vm19335_vm7, %v912_v31 }
 0x274   :  { %12482 = vmatpush3.msk.msra.mxu1 %vm19335_vm7, %v912_v31  ;;  %12495 = vmatpush3.msk.msra.mxu0 %vm19335_vm7, %v912_v31 }
 0x275   :  { %12484 = vmatmul.mubr.msk.f32.vlgmr.msra.gmra.mrb[8].mxu1 %vm19334_vm15, %v15476_v48  ;;  %12497 = vmatmul.mubr.msk.f32.vlgmr.msra.gmra.mrb[12].mxu0 %vm19334_vm15, %v15479_v49  ;;  %v133_v49 = vld [vmem:[%s19192_s7 + $0x220] sm:$0xff]  ;;  %v135_v48 = vld [vmem:[%s19192_s7 + $0x230] sm:$0xff] }
 0x276   :  { %13649 = vmatprep.subr.msk.bf16.mxu1 %vm15385_vm3, %v13627_v22  ;;  %13659 = vmatprep.subr.msk.bf16.mxu0 %vm15385_vm3, %v13627_v22 }
 0x277   :  { %13652 = vmatpush3.bf16.msk.msra.mxu1 %vm15385_vm3, %v13627_v22  ;;  %13662 = vmatpush3.bf16.msk.msra.mxu0 %vm15385_vm3, %v13627_v22 }
 0x278   :  { %13654 = vmatprep.subr.bf16.mxu1 %v13633_v29  ;;  %13664 = vmatprep.subr.bf16.mxu0 %v13633_v29 }
 0x279   :  { %12509 = vmatprep.mubr.msk.f32.mxu1 %vm19334_vm15, %v15535_v56  ;;  %12522 = vmatprep.mubr.msk.f32.mxu0 %vm19334_vm15, %v15516_v54 }
 0x27b   :  { %13656 = vmatpush3.bf16.msra.mxu1 %v13633_v29  ;;  %13666 = vmatpush3.bf16.msra.mxu0 %v13633_v29 }
 0x27c   :  { %12507 = vmatprep.subr.msk.mxu1 %vm19335_vm7, %v912_v31  ;;  %12520 = vmatprep.subr.msk.mxu0 %vm19335_vm7, %v912_v31 }
 0x27f   :  { %12508 = vmatpush3.msk.msra.mxu1 %vm19335_vm7, %v912_v31  ;;  %12521 = vmatpush3.msk.msra.mxu0 %vm19335_vm7, %v912_v31 }
 0x280   :  { %12510 = vmatmul.mubr.msk.f32.vlgmr.msra.gmra.mrb[10].mxu1 %vm19334_vm15, %v15558_v63  ;;  %12523 = vmatmul.mubr.msk.f32.vlgmr.msra.gmra.mrb[14].mxu0 %vm19334_vm15, %v15561_v0  ;;  %v179_v63 = vld [vmem:[%s19192_s7 + $0x390] sm:$0xff] }
 0x281   :  { %13668 = vmatprep.subr.bf16.mxu1 %v13667_v40  ;;  %13699 = vmatprep.subr.bf16.mxu0 %v19223_v46 }
 0x282   :  { %13670 = vmatpush3.bf16.msra.mxu1 %v13667_v40  ;;  %12566 = vmatprep.mubr.msk.f32.mxu0 %vm15252_vm6, %v19225_v32 }
 0x283   :  { %13672 = vmatprep.subr.bf16.mxu1 %v13671_v42 }
 0x286   :  { %13674 = vmatpush3.bf16.msra.mxu1 %v13671_v42 }
 0x287   :  { %13676 = vmatprep.subr.bf16.mxu1 %v13675_v45 }
 0x28a   :  { %13678 = vmatpush3.bf16.msra.mxu1 %v13675_v45 }
 0x28b   :  { %13680 = vmatprep.subr.bf16.mxu1 %v13679_v50 }
 0x28e   :  { %13682 = vmatpush3.bf16.msra.mxu1 %v13679_v50 }
 0x28f   :  { %13684 = vmatprep.subr.bf16.mxu1 %v13683_v59 }
 0x292   :  { %13686 = vmatpush3.bf16.msra.mxu1 %v13683_v59 }
 0x293   :  { %13688 = vmatprep.subr.bf16.mxu1 %v13687_v5 }
 0x296   :  { %13690 = vmatpush3.bf16.msra.mxu1 %v13687_v5 }
 0x297   :  { %13692 = vmatprep.subr.bf16.mxu1 %v13691_v7 }
 0x29a   :  { %13694 = vmatpush3.bf16.msra.mxu1 %v13691_v7 }
 0x29b   :  { %13696 = vmatprep.subr.bf16.mxu1 %v13695_v16 }
 0x29e   :  { %13698 = vmatpush3.bf16.msra.mxu1 %v13695_v16  ;;  %v1367_v16 = vld [vmem:[%s19190_s5 + $0x90] sm:$0xff] }
 0x348   :  { %v12485_v8 = vpop.f32.mrb[8].mxu1  ;;  %v12498_v9 = vpop.f32.mrb[12].mxu0 }
 0x349   :  { %v987_v13 = vpop.f32.mrb[9].mxu1  ;;  %v1066_v14 = vpop.f32.mrb[13].mxu0 }
 0x34a   :  { %v15073_v17 = vpack.i.bf16 %v12498_v9, %v1066_v14  ;;  %v1365_v9 = vld [vmem:[%s19190_s5 + $0x80] sm:$0xff]  ;;  %v1350_v14 = vld [vmem:[%s19190_s5 + $0x8] sm:$0xff] }
 0x34c   :  { %15074 = vrot.lane.b32.xlu0 %v15073_v17, %s19217_s1  ;;  %v1368_v17 = vld [vmem:[%s19190_s5 + $0x98] sm:$0xff]  ;;  %s19524_s1 = smov 64  }
 0x353   :  { %v12511_v18 = vpop.f32.mrb[10].mxu1  ;;  %v12524_v19 = vpop.f32.mrb[14].mxu0 }
 0x354   :  { %v1145_v21 = vpop.f32.mrb[11].mxu1  ;;  %v1224_v22 = vpop.f32.mrb[15].mxu0 }
 0x355   :  { %v15078_v23 = vpack.i.bf16 %v12511_v18, %v1145_v21  ;;  %v15083_v24 = vpack.i.bf16 %v12524_v19, %v1224_v22  ;;  %v13717_v18 = vpack.c.bf16 %v1350_v14, %v1349_v12  ;;  %v13719_v19 = vpack.c.bf16 %v1368_v17, %v1367_v16  ;;  %v1351_v21 = vld [vmem:[%s19190_s5 + $0x10] sm:$0xff]  ;;  %v1352_v22 = vld [vmem:[%s19190_s5 + $0x18] sm:$0xff] }
 0x356   :  { %v1379_v14 = vld [vmem:[%s19190_s5 + $0xf0] sm:$0xff]  ;;  %v1380_v16 = vld [vmem:[%s19190_s5 + $0xf8] sm:$0xff] }
 0x357   :  { %15084 = vrot.lane.b32.xlu0 %v15083_v24, %s19219_s22  ;;  %15079 = vrot.lane.b32.xlu1 %v15078_v23, %s19221_s23  ;;  %v1369_v23 = vld [vmem:[%s19190_s5 + $0xa0] sm:$0xff]  ;;  %v1370_v24 = vld [vmem:[%s19190_s5 + $0xa8] sm:$0xff]  ;;  %s19685_s22 = smov 32   ;;  %s19896_s23 = smov 104  }
 0x3be   :  { %v15075_v25 = vpop.permute.xlu0 %15074 }
 0x3bf   :  { %v15077_v26 = vunpack.i.h.bf16 %v15075_v25  ;;  %v15076_v27 = vunpack.i.l.bf16 %v15075_v25  ;;  %v13721_v25 = vpack.c.bf16 %v1352_v22, %v1351_v21  ;;  %v1364_v21 = vld [vmem:[%s19190_s5 + $0x78] sm:$0xff] }
 0x3c1   :  { %v1258_v40 = vsel %vm19337_vm1, %v987_v13, %v15076_v27  ;;  %v1259_v41 = vsel %vm19337_vm1, %v12485_v8, %v15077_v26  ;;  %v13715_v13 = vpack.c.bf16 %v1366_v11, %v1365_v9  ;;  %v13723_v26 = vpack.c.bf16 %v1370_v24, %v1369_v23  ;;  %v1353_v27 = vld [vmem:[%s19190_s5 + $0x20] sm:$0xff]  ;;  %v1362_v9 = vld [vmem:[%s19190_s5 + $0x68] sm:$0xff] }
 0x3c9   :  { %v15085_v28 = vpop.permute.xlu0 %15084  ;;  %v15080_v29 = vpop.permute.xlu1 %15079 }
 0x3ca   :  { %v15087_v31 = vunpack.i.h.bf16 %v15085_v28  ;;  %v15086_v34 = vunpack.i.l.bf16 %v15085_v28  ;;  %v15082_v35 = vunpack.i.h.bf16 %v15080_v29  ;;  %v15081_v38 = vunpack.i.l.bf16 %v15080_v29  ;;  %v1354_v28 = vld [vmem:[%s19190_s5 + $0x28] sm:$0xff]  ;;  %v1371_v29 = vld [vmem:[%s19190_s5 + $0xb0] sm:$0xff] }
 0x3cc   :  { %v1261_v42 = vsel %vm19338_vm2, %v1258_v40, %v15081_v38  ;;  %v1262_v43 = vsel %vm19338_vm2, %v1259_v41, %v15082_v35  ;;  %v1355_v38 = vld [vmem:[%s19190_s5 + $0x30] sm:$0xff]  ;;  %v1356_v40 = vld [vmem:[%s19190_s5 + $0x38] sm:$0xff]  ;;  %v1373_v41 = vld [vmem:[%s19190_s5 + $0xc0] sm:$0xff] }
 0x3cd   :  { %v1264_v44 = vsel %vm19328_vm5, %v1261_v42, %v15086_v34  ;;  %v1265_v45 = vsel %vm19328_vm5, %v1262_v43, %v15087_v31  ;;  %v1372_v31 = vld [vmem:[%s19190_s5 + $0xb8] sm:$0xff]  ;;  %v13725_v34 = vpack.c.bf16 %v1354_v28, %v1353_v27  ;;  %v1374_v42 = vld [vmem:[%s19190_s5 + $0xc8] sm:$0xff]  ;;  %v13729_v43 = vpack.c.bf16 %v1356_v40, %v1355_v38 }
 0x3ce   :  { %12557 = vmatprep.mubr.f32.mxu1 %v1264_v44  ;;  %v13727_v35 = vpack.c.bf16 %v1372_v31, %v1371_v29  ;;  %v13731_v44 = vpack.c.bf16 %v1374_v42, %v1373_v41  ;;  %v113_v31 = vld [vmem:[%s19192_s7 + $0x180] sm:$0xff]  ;;  %v66_v40 = vld [vmem:[%s19192_s7 + $0x8] sm:$0xff]  ;;  %v83_v42 = vld [vmem:[%s19192_s7 + $0x90] sm:$0xff] }
 0x3cf   :  { %12558 = vmatmul.mubr.f32.vlgmr.msra.gmra.mrb[12].mxu1 %v1265_v45  ;;  %v1357_v45 = vld [vmem:[%s19190_s5 + $0x40] sm:$0xff] }
 0x4a2   :  { %v12559_v50 = vpop.f32.mrb[12].mxu1 }
 0x4a3   :  { %v1344_v57 = vadd.f32 %v12559_v50, %v10397_v47  ;;  %v1338_v58 = vpop.f32.mrb[13].mxu1  ;;  %v1375_v50 = vld [vmem:[%s19190_s5 + $0xd0] sm:$0xff] }
 0x4a4   :  { %v1339_v59 = vadd.f32 %v10397_v47, %v1338_v58  ;;  %v1358_v47 = vld [vmem:[%s19190_s5 + $0x48] sm:$0xff] }
 0x4a5   :  { %v1348_v60 = vmax.f32 %v1344_v57, 0.0  ;;  %v1376_v57 = vld [vmem:[%s19190_s5 + $0xd8] sm:$0xff]  ;;  %v13733_v58 = vpack.c.bf16 %v1358_v47, %v1357_v45  ;;  %v67_v47 = vld [vmem:[%s19192_s7 + $0x10] sm:$0xff] }
 0x4a6   :  { %v1347_v61 = vmax.f32 %v1339_v59, 0.0  ;;  %v13735_v59 = vpack.c.bf16 %v1376_v57, %v1375_v50  ;;  %v68_v50 = vld [vmem:[%s19192_s7 + $0x18] sm:$0xff] }
 0x4a7   :  { %v1385_v62 = vrot.slane %v1348_v60, 7  ;;  %v1359_v60 = vld [vmem:[%s19190_s5 + $0x50] sm:$0xff] }
 0x4a8   :  { %v1384_v5 = vrot.slane %v1347_v61, 7  ;;  %v1360_v61 = vld [vmem:[%s19190_s5 + $0x58] sm:$0xff] }
 0x4a9   :  { %v1391_v8 = vsel %vm212_vm0, %v1385_v62, 0.0 }
 0x4aa   :  { %v1386_v6 = vsel %vm212_vm0, %v1384_v5, %v1385_v62  ;;  %v1377_v62 = vld [vmem:[%s19190_s5 + $0xe0] sm:$0xff] }
 0x4ab   :  { %v13700_v7 = vpack.c.bf16 %v1386_v6, %v1384_v5  ;;  %v1378_v5 = vld [vmem:[%s19190_s5 + $0xe8] sm:$0xff]  ;;  %v13737_v6 = vpack.c.bf16 %v1360_v61, %v1359_v60  ;;  %v85_v60 = vld [vmem:[%s19192_s7 + $0xa0] sm:$0xff] }
 0x4ac   :  { %v86_v61 = vld [vmem:[%s19192_s7 + $0xa8] sm:$0xff] }
 0x4ad   :  { %13702 = vmatpush3.bf16.msk.msra.mxu0 %vm15385_vm3, %v13700_v7 }
 0x4ae   :  { %12564 = vmatprep.subr.mxu0 %v19225_v32 }
 0x4b1   :  { %12565 = vmatpush3.msk.msra.mxu0 %vm19335_vm7, %v1391_v8 }
 0x4b2   :  { %12567 = vmatmul.mubr.msk.f32.vlgmr.msra.gmra.mrb[16].mxu0 %vm19327_vm8, %v15433_v33  ;;  %13703 = vmatprep.subr.bf16.mxu0 %v19223_v46 }
 0x4b3   :  { %13706 = vmatpush3.bf16.msk.msra.mxu0 %vm15385_vm3, %v13700_v7  ;;  %12575 = vmatprep.mubr.msk.f32.mxu0 %vm15252_vm6, %v19225_v32 }
 0x4b4   :  { %12573 = vmatprep.subr.mxu0 %v19225_v32 }
 0x4b7   :  { %12574 = vmatpush3.msk.msra.mxu0 %vm19335_vm7, %v1391_v8 }
 0x4b8   :  { %12576 = vmatmul.mubr.msk.f32.vlgmr.msra.gmra.mrb[18].mxu0 %vm19327_vm8, %v15444_v37  ;;  %13707 = vmatprep.subr.bf16.mxu0 %v19223_v46 }
 0x4b9   :  { %13710 = vmatpush3.bf16.msk.msra.mxu0 %vm15385_vm3, %v13700_v7  ;;  %12584 = vmatprep.mubr.msk.f32.mxu0 %vm15252_vm6, %v19225_v32 }
 0x4ba   :  { %12582 = vmatprep.subr.mxu0 %v19225_v32 }
 0x4bd   :  { %12583 = vmatpush3.msk.msra.mxu0 %vm19335_vm7, %v1391_v8 }
 0x4be   :  { %12585 = vmatmul.mubr.msk.f32.vlgmr.msra.gmra.mrb[20].mxu0 %vm19327_vm8, %v15535_v56  ;;  %13711 = vmatprep.subr.bf16.mxu0 %v19223_v46  ;;  %v180_v56 = vld [vmem:[%s19192_s7 + $0x398] sm:$0xff] }
 0x4bf   :  { %13714 = vmatpush3.bf16.msk.msra.mxu0 %vm15385_vm3, %v13700_v7  ;;  %12593 = vmatprep.mubr.msk.f32.mxu0 %vm15252_vm6, %v19225_v32  ;;  %v13739_v7 = vpack.c.bf16 %v1378_v5, %v1377_v62  ;;  %v15936_v62 = vpack.c.bf16 %v86_v61, %v85_v60  ;;  %v69_v5 = vld [vmem:[%s19192_s7 + $0x20] sm:$0xff]  ;;  %v115_v61 = vld [vmem:[%s19192_s7 + $0x190] sm:$0xff]  ;;  %v16295_v0 = vpack.c.bf16 %v180_v56, %v179_v63  ;;  %v132_v56 = vld [vmem:[%s19192_s7 + $0x218] sm:$0xff] }
 0x4c0   :  { %12591 = vmatprep.subr.mxu0 %v19225_v32  ;;  %v161_v32 = vld [vmem:[%s19192_s7 + $0x300] sm:$0xff]  ;;  %v163_v63 = vld [vmem:[%s19192_s7 + $0x310] sm:$0xff] }
 0x4c3   :  { %12592 = vmatpush3.msk.msra.mxu0 %vm19335_vm7, %v1391_v8  ;;  %v1361_v8 = vld [vmem:[%s19190_s5 + $0x60] sm:$0xff] }
 0x4c4   :  { %12594 = vmatmul.mubr.msk.f32.vlgmr.msra.gmra.mrb[22].mxu0 %vm19327_vm8, %v15516_v54  ;;  %13716 = vmatprep.subr.bf16.mxu0 %v13715_v13  ;;  %v13741_v11 = vpack.c.bf16 %v1362_v9, %v1361_v8  ;;  %v87_v8 = vld [vmem:[%s19192_s7 + $0xb0] sm:$0xff]  ;;  %v88_v9 = vld [vmem:[%s19192_s7 + $0xb8] sm:$0xff] }
 0x4c5   :  { %13718 = vmatpush3.bf16.msra.mxu0 %v13717_v18  ;;  %v13743_v18 = vpack.c.bf16 %v1380_v16, %v1379_v14  ;;  %v72_v14 = vld [vmem:[%s19192_s7 + $0x38] sm:$0xff] }
 0x4c6   :  { %13720 = vmatprep.subr.bf16.mxu0 %v13719_v19  ;;  %v1363_v19 = vld [vmem:[%s19190_s5 + $0x70] sm:$0xff] }
 0x4c7   :  { %v13745_v23 = vpack.c.bf16 %v1364_v21, %v1363_v19  ;;  %v73_v21 = vld [vmem:[%s19192_s7 + $0x40] sm:$0xff] }
 0x4c9   :  { %13722 = vmatpush3.bf16.msra.mxu0 %v13721_v25  ;;  %v81_v25 = vld [vmem:[%s19192_s7 + $0x80] sm:$0xff] }
 0x4ca   :  { %13724 = vmatprep.subr.bf16.mxu0 %v13723_v26  ;;  %v82_v26 = vld [vmem:[%s19192_s7 + $0x88] sm:$0xff] }
 0x4cb   :  { %v15883_v29 = vpack.c.bf16 %v82_v26, %v81_v25  ;;  %v91_v25 = vld [vmem:[%s19192_s7 + $0xd0] sm:$0xff]  ;;  %v92_v26 = vld [vmem:[%s19192_s7 + $0xd8] sm:$0xff] }
 0x4cd   :  { %13726 = vmatpush3.bf16.msra.mxu0 %v13725_v34  ;;  %v114_v34 = vld [vmem:[%s19192_s7 + $0x188] sm:$0xff]  ;;  %13749 = vmatprep.subr.msk.bf16.mxu1 %vm15879_vm9, %v15883_v29 }
 0x4ce   :  { %13728 = vmatprep.subr.bf16.mxu0 %v13727_v35  ;;  %v65_v35 = vld [vmem:[%s19192_s7] sm:$0xff]  ;;  %v15894_v38 = vpack.c.bf16 %v114_v34, %v113_v31  ;;  %v75_v31 = vld [vmem:[%s19192_s7 + $0x50] sm:$0xff]  ;;  %v76_v34 = vld [vmem:[%s19192_s7 + $0x58] sm:$0xff] }
 0x4cf   :  { %v15902_v41 = vpack.c.bf16 %v66_v40, %v65_v35  ;;  %v16016_v35 = vpack.c.bf16 %v76_v34, %v75_v31  ;;  %v93_v40 = vld [vmem:[%s19192_s7 + $0xe0] sm:$0xff]  ;;  %v102_v31 = vld [vmem:[%s19192_s7 + $0x128] sm:$0xff]  ;;  %v119_v34 = vld [vmem:[%s19192_s7 + $0x1b0] sm:$0xff] }
 0x4d0   :  { %19523 = vst [vmem:[#allocation26_spill] sm:$0xff] %v15894_v38 }
 0x4d1   :  { %13730 = vmatpush3.bf16.msra.mxu0 %v13729_v43  ;;  %v84_v43 = vld [vmem:[%s19192_s7 + $0x98] sm:$0xff]  ;;  %13752 = vmatpush3.bf16.xpose.msk.msra.mxu1 %vm15879_vm9, %v15902_v41 }
 0x4d2   :  { %13732 = vmatprep.subr.bf16.mxu0 %v13731_v44  ;;  %v15913_v44 = vpack.c.bf16 %v84_v43, %v83_v42  ;;  %v94_v42 = vld [vmem:[%s19192_s7 + $0xe8] sm:$0xff] }
 0x4d3   :  { %v16024_v43 = vpack.c.bf16 %v94_v42, %v93_v40  ;;  %v120_v40 = vld [vmem:[%s19192_s7 + $0x1b8] sm:$0xff] }
 0x4d4   :  { %13755 = vmatprep.subr.msk.bf16.mxu1 %vm15879_vm9, %v15913_v44 }
 0x4d5   :  { %13734 = vmatpush3.bf16.msra.mxu0 %v13733_v58 }
 0x4d6   :  { %13736 = vmatprep.subr.bf16.mxu0 %v13735_v59  ;;  %v15928_v59 = vpack.c.bf16 %v68_v50, %v67_v47  ;;  %v78_v47 = vld [vmem:[%s19192_s7 + $0x68] sm:$0xff] }
 0x4d9   :  { %13738 = vmatpush3.bf16.msra.mxu0 %v13737_v6  ;;  %13758 = vmatpush3.bf16.xpose.msk.msra.mxu1 %vm15879_vm9, %v15928_v59  ;;  %v70_v6 = vld [vmem:[%s19192_s7 + $0x28] sm:$0xff] }
 0x4da   :  { %13740 = vmatprep.subr.bf16.mxu0 %v13739_v7  ;;  %13761 = vmatprep.subr.msk.bf16.mxu1 %vm15879_vm9, %v15936_v62  ;;  %v15950_v7 = vpack.c.bf16 %v70_v6, %v69_v5  ;;  %v116_v5 = vld [vmem:[%s19192_s7 + $0x198] sm:$0xff] }
 0x4dd   :  { %13742 = vmatpush3.bf16.msra.mxu0 %v13741_v11  ;;  %v15958_v11 = vpack.c.bf16 %v88_v9, %v87_v8 }
 0x4de   :  { %13744 = vmatprep.subr.bf16.mxu0 %v13743_v18  ;;  %v90_v18 = vld [vmem:[%s19192_s7 + $0xc8] sm:$0xff] }
 0x4e1   :  { %13746 = vmatpush3.bf16.msra.mxu0 %v13745_v23  ;;  %13764 = vmatpush3.bf16.xpose.msk.msra.mxu1 %vm15879_vm9, %v15950_v7 }
 0x4e2   :  { %13797 = vmatprep.subr.msk.bf16.mxu0 %vm15879_vm9, %v15894_v38  ;;  %13767 = vmatprep.subr.msk.bf16.mxu1 %vm15879_vm9, %v15958_v11 }
 0x585   :  { %v15855_v12 = vpop.f32.mrb[16].mxu0 }
 0x586   :  { %v12568_v13 = vpop.f32.mrb[17].mxu0 }
 0x587   :  { %v71_v13 = vld [vmem:[%s19192_s7 + $0x30] sm:$0xff] }
 0x588   :  { %v15972_v16 = vpack.c.bf16 %v72_v14, %v71_v13 }
 0x58a   :  { %13770 = vmatpush3.bf16.xpose.msk.msra.mxu1 %vm15879_vm9, %v15972_v16 }
 0x58b   :  { %v1536_v17 = vpop.f32.mrb[18].mxu0 }
 0x58c   :  { %v12577_v22 = vpop.f32.mrb[19].mxu0 }
 0x58d   :  { %v74_v22 = vld [vmem:[%s19192_s7 + $0x48] sm:$0xff] }
 0x58e   :  { %v15994_v23 = vpack.c.bf16 %v74_v22, %v73_v21  ;;  %v118_v21 = vld [vmem:[%s19192_s7 + $0x1a8] sm:$0xff] }
 0x591   :  { %v15869_v24 = vpop.f32.mrb[20].mxu0 }
 0x592   :  { %v12586_v28 = vpop.f32.mrb[21].mxu0 }
 0x593   :  { %v16002_v28 = vpack.c.bf16 %v92_v26, %v91_v25  ;;  %v101_v26 = vld [vmem:[%s19192_s7 + $0x120] sm:$0xff] }
 0x594   :  { %v16103_v42 = vpack.c.bf16 %v102_v31, %v101_v26  ;;  %v125_v26 = vld [vmem:[%s19192_s7 + $0x1e0] sm:$0xff]  ;;  %v126_v31 = vld [vmem:[%s19192_s7 + $0x1e8] sm:$0xff] }
 0x596   :  { %19530 = vst [vmem:[#allocation32_spill] sm:$0xff] %v16103_v42 }
 0x597   :  { %v1680_v45 = vpop.f32.mrb[22].mxu0 }
 0x598   :  { %v15088_v57 = vpack.i.bf16 %v1536_v17, %v1680_v45  ;;  %v12595_v58 = vpop.f32.mrb[23].mxu0  ;;  %v89_v17 = vld [vmem:[%s19192_s7 + $0xc0] sm:$0xff] }
 0x599   :  { %v15980_v19 = vpack.c.bf16 %v90_v18, %v89_v17  ;;  %v77_v45 = vld [vmem:[%s19192_s7 + $0x60] sm:$0xff]  ;;  %v98_v58 = vld [vmem:[%s19192_s7 + $0x108] sm:$0xff]  ;;  %v16061_v17 = vpack.c.bf16 %v116_v5, %v115_v61  ;;  %v99_v18 = vld [vmem:[%s19192_s7 + $0x110] sm:$0xff] }
 0x59a   :  { %15089 = vrot.lane.b32.xlu1 %v15088_v57, %s19524_s1  ;;  %v16038_v50 = vpack.c.bf16 %v78_v47, %v77_v45  ;;  %v97_v57 = vld [vmem:[%s19192_s7 + $0x100] sm:$0xff]  ;;  %v16105_v45 = vpack.c.bf16 %v120_v40, %v119_v34  ;;  %v103_v47 = vld [vmem:[%s19192_s7 + $0x130] sm:$0xff]  ;;  %v16171_v40 = vpack.c.bf16 %v126_v31, %v125_v26 }
 0x59b   :  { %13773 = vmatprep.subr.msk.bf16.mxu1 %vm15879_vm9, %v15980_v19  ;;  %v16055_v9 = vpack.c.bf16 %v98_v58, %v97_v57  ;;  %19527 = vst [vmem:[#allocation29_spill] sm:$0xff] %v16061_v17  ;;  %v104_v57 = vld [vmem:[%s19192_s7 + $0x138] sm:$0xff]  ;;  %v121_v58 = vld [vmem:[%s19192_s7 + $0x1c0] sm:$0xff] }
 0x59c   :  { %13776 = vmatpush3.bf16.xpose.msk.msra.mxu1 %vm15879_vm9, %v15994_v23  ;;  %19525 = vst [vmem:[#allocation27_spill] sm:$0xff] %v16038_v50  ;;  %19531 = vst [vmem:[#allocation33_spill] sm:$0xff] %v16105_v45  ;;  %v16125_v61 = vpack.c.bf16 %v104_v57, %v103_v47  ;;  %v109_v47 = vld [vmem:[%s19192_s7 + $0x160] sm:$0xff]  ;;  %v110_v57 = vld [vmem:[%s19192_s7 + $0x168] sm:$0xff] }
 0x59d   :  { %13779 = vmatprep.subr.msk.bf16.mxu1 %vm15879_vm9, %v16002_v28  ;;  %19526 = vst [vmem:[#allocation28_spill] sm:$0xff] %v16055_v9  ;;  %19537 = vst [vmem:[#allocation39_spill] sm:$0xff] %v16171_v40 }
 0x59e   :  { %19532 = vst [vmem:[#allocation34_spill] sm:$0xff] %v16125_v61 }
 0x5a4   :  { %13782 = vmatpush3.bf16.xpose.msk.msra.mxu1 %vm15879_vm9, %v16016_v35 }
 0x5a5   :  { %13785 = vmatprep.subr.msk.bf16.mxu1 %vm15879_vm9, %v16024_v43 }
 0x5ac   :  { %13788 = vmatpush3.bf16.xpose.msk.msra.mxu1 %vm15879_vm9, %v16038_v50 }
 0x60c   :  { %v15090_v60 = vpop.permute.xlu1 %15089 }
 0x60d   :  { %v15092_v6 = vunpack.i.h.bf16 %v15090_v60  ;;  %v15091_v8 = vunpack.i.l.bf16 %v15090_v60  ;;  %v122_v60 = vld [vmem:[%s19192_s7 + $0x1c8] sm:$0xff] }
 0x60e   :  { %v16127_v5 = vpack.c.bf16 %v122_v60, %v121_v58  ;;  %v16185_v58 = vpack.c.bf16 %v110_v57, %v109_v47  ;;  %v95_v60 = vld [vmem:[%s19192_s7 + $0xf0] sm:$0xff]  ;;  %v112_v57 = vld [vmem:[%s19192_s7 + $0x178] sm:$0xff] }
 0x60f   :  { %v1693_v13 = vsel %vm19338_vm2, %v15869_v24, %v15091_v8  ;;  %v1692_v14 = vsel %vm19338_vm2, %v15855_v12, %v15092_v6  ;;  %v100_v12 = vld [vmem:[%s19192_s7 + $0x118] sm:$0xff]  ;;  %v117_v24 = vld [vmem:[%s19192_s7 + $0x1a0] sm:$0xff]  ;;  %v106_v8 = vld [vmem:[%s19192_s7 + $0x148] sm:$0xff] }
 0x610   :  { %1764 = vmatprep.mubr.f32.mxu0 %v1693_v13  ;;  %v16081_v22 = vpack.c.bf16 %v100_v12, %v99_v18  ;;  %v16083_v25 = vpack.c.bf16 %v118_v21, %v117_v24  ;;  %19533 = vst [vmem:[#allocation35_spill] sm:$0xff] %v16127_v5  ;;  %v105_v6 = vld [vmem:[%s19192_s7 + $0x140] sm:$0xff]  ;;  %v123_v13 = vld [vmem:[%s19192_s7 + $0x1d0] sm:$0xff]  ;;  %v108_v21 = vld [vmem:[%s19192_s7 + $0x158] sm:$0xff] }
 0x611   :  { %1765 = vmatmul.mubr.f32.vlgmr.msra.gmra.mrb[24].mxu0 %v1692_v14  ;;  %v124_v14 = vld [vmem:[%s19192_s7 + $0x1d8] sm:$0xff]  ;;  %v16147_v18 = vpack.c.bf16 %v106_v8, %v105_v6  ;;  %v107_v24 = vld [vmem:[%s19192_s7 + $0x150] sm:$0xff]  ;;  %19538 = vst [vmem:[#allocation40_spill] sm:$0xff] %v16185_v58 }
 0x612   :  { %13800 = vmatpush3.bf16.xpose.msk.msra.mxu0 %vm15879_vm9, %v16055_v9  ;;  %19528 = vst [vmem:[#allocation30_spill] sm:$0xff] %v16081_v22  ;;  %19529 = vst [vmem:[#allocation31_spill] sm:$0xff] %v16083_v25  ;;  %v16149_v12 = vpack.c.bf16 %v124_v14, %v123_v13  ;;  %v16169_v34 = vpack.c.bf16 %v108_v21, %v107_v24  ;;  %v96_v6 = vld [vmem:[%s19192_s7 + $0xf8] sm:$0xff]  ;;  %v127_v8 = vld [vmem:[%s19192_s7 + $0x1f0] sm:$0xff] }
 0x613   :  { %13803 = vmatprep.subr.msk.bf16.mxu0 %vm15879_vm9, %v16061_v17  ;;  %19534 = vst [vmem:[#allocation36_spill] sm:$0xff] %v16147_v18  ;;  %v16199_v13 = vpack.c.bf16 %v96_v6, %v95_v60  ;;  %v128_v14 = vld [vmem:[%s19192_s7 + $0x1f8] sm:$0xff]  ;;  %v79_v24 = vld [vmem:[%s19192_s7 + $0x70] sm:$0xff]  ;;  %v145_v6 = vld [vmem:[%s19192_s7 + $0x280] sm:$0xff] }
 0x614   :  { %19535 = vst [vmem:[#allocation37_spill] sm:$0xff] %v16149_v12  ;;  %19536 = vst [vmem:[#allocation38_spill] sm:$0xff] %v16169_v34  ;;  %v80_v21 = vld [vmem:[%s19192_s7 + $0x78] sm:$0xff]  ;;  %v16210_v26 = vpack.c.bf16 %v128_v14, %v127_v8  ;;  %v111_v47 = vld [vmem:[%s19192_s7 + $0x170] sm:$0xff] }
 0x615   :  { %19539 = vst [vmem:[#allocation41_spill] sm:$0xff] %v16199_v13  ;;  %v16212_v31 = vpack.c.bf16 %v80_v21, %v79_v24  ;;  %13791 = vmatprep.subr.msk.bf16.mxu1 %vm15879_vm9, %v16199_v13  ;;  %v16223_v60 = vpack.c.bf16 %v112_v57, %v111_v47  ;;  %v146_v8 = vld [vmem:[%s19192_s7 + $0x288] sm:$0xff]  ;;  %v177_v14 = vld [vmem:[%s19192_s7 + $0x380] sm:$0xff] }
 0x616   :  { %19540 = vst [vmem:[#allocation42_spill] sm:$0xff] %v16210_v26  ;;  %v16243_v24 = vpack.c.bf16 %v146_v8, %v145_v6  ;;  %v178_v21 = vld [vmem:[%s19192_s7 + $0x388] sm:$0xff]  ;;  %v10414_v6 = vld [vmem:[%s19191_s6] ss:$0 sm:$0xff]  ;;  %s19601_s6 = smov 96  }
 0x617   :  { %19541 = vst [vmem:[#allocation43_spill] sm:$0xff] %v16212_v31  ;;  %19542 = vst [vmem:[#allocation44_spill] sm:$0xff] %v16223_v60  ;;  %13794 = vmatpush3.bf16.xpose.msk.msra.mxu1 %vm15879_vm9, %v16212_v31  ;;  %v16248_v47 = vpack.c.bf16 %v178_v21, %v177_v14  ;;  %v129_v14 = vld [vmem:[%s19192_s7 + $0x200] sm:$0xff]  ;;  %v130_v21 = vld [vmem:[%s19192_s7 + $0x208] sm:$0xff] }
 0x618   :  { %19543 = vst [vmem:[#allocation45_spill] sm:$0xff] %v16243_v24  ;;  %13845 = vmatprep.subr.msk.bf16.mxu1 %vm15879_vm9, %v16243_v24  ;;  %v16285_v2 = vpack.c.bf16 %v130_v21, %v129_v14  ;;  %v150_v14 = vld [vmem:[%s19192_s7 + $0x2a8] sm:$0xff]  ;;  %v181_v21 = vld [vmem:[%s19192_s7 + $0x3a0] sm:$0xff] }
 0x619   :  { %19544 = vst [vmem:[#allocation46_spill] sm:$0xff] %v16248_v47 }
 0x61a   :  { %13806 = vmatpush3.bf16.xpose.msk.msra.mxu0 %vm15879_vm9, %v16081_v22 }
 0x61b   :  { %13809 = vmatprep.subr.msk.bf16.mxu0 %vm15879_vm9, %v16083_v25 }
 0x622   :  { %13812 = vmatpush3.bf16.xpose.msk.msra.mxu0 %vm15879_vm9, %v16103_v42 }
 0x623   :  { %13815 = vmatprep.subr.msk.bf16.mxu0 %vm15879_vm9, %v16105_v45 }
 0x62a   :  { %13818 = vmatpush3.bf16.xpose.msk.msra.mxu0 %vm15879_vm9, %v16125_v61 }
 0x62b   :  { %13821 = vmatprep.subr.msk.bf16.mxu0 %vm15879_vm9, %v16127_v5 }
 0x632   :  { %13824 = vmatpush3.bf16.xpose.msk.msra.mxu0 %vm15879_vm9, %v16147_v18 }
 0x633   :  { %13827 = vmatprep.subr.msk.bf16.mxu0 %vm15879_vm9, %v16149_v12 }
 0x63a   :  { %13830 = vmatpush3.bf16.xpose.msk.msra.mxu0 %vm15879_vm9, %v16169_v34 }
 0x63b   :  { %13833 = vmatprep.subr.msk.bf16.mxu0 %vm15879_vm9, %v16171_v40 }
 0x642   :  { %13836 = vmatpush3.bf16.xpose.msk.msra.mxu0 %vm15879_vm9, %v16185_v58 }
 0x643   :  { %13839 = vmatprep.subr.msk.bf16.mxu0 %vm15879_vm9, %v16210_v26 }
 0x64a   :  { %13842 = vmatpush3.bf16.xpose.msk.msra.mxu0 %vm15879_vm9, %v16223_v60 }
 0x64b   :  { %13893 = vmatprep.subr.msk.bf16.mxu0 %vm15879_vm9, %v16248_v47 }
 0x6e4   :  { %v11244_v57 = vpop.f32.mrb[24].mxu0 }
 0x6e5   :  { %v11245_v8 = vpop.f32.mrb[25].mxu0 }
 0x6e6   :  { %v11246_v46 = vadd.f32 %v11245_v8, %v11244_v57  ;;  %v147_v57 = vld [vmem:[%s19192_s7 + $0x290] sm:$0xff]  ;;  %v148_v8 = vld [vmem:[%s19192_s7 + $0x298] sm:$0xff] }
 0x6e8   :  { %v1767_v1 = vadd.f32 %v11246_v46, %v10414_v6  ;;  %v16287_v46 = vpack.c.bf16 %v162_v3, %v161_v32  ;;  %v16293_v6 = vpack.c.bf16 %v148_v8, %v147_v57  ;;  %v131_v32 = vld [vmem:[%s19192_s7 + $0x210] sm:$0xff]  ;;  %v149_v3 = vld [vmem:[%s19192_s7 + $0x2a0] sm:$0xff]  ;;  %v182_v57 = vld [vmem:[%s19192_s7 + $0x3a8] sm:$0xff] }
 0x6e9   :  { %v16341_v8 = vpack.c.bf16 %v132_v56, %v131_v32  ;;  %v16345_v52 = vpack.c.bf16 %v150_v14, %v149_v3  ;;  %v16347_v51 = vpack.c.bf16 %v182_v57, %v181_v21  ;;  %v134_v32 = vld [vmem:[%s19192_s7 + $0x228] sm:$0xff]  ;;  %v165_v56 = vld [vmem:[%s19192_s7 + $0x320] sm:$0xff]  ;;  %v152_v3 = vld [vmem:[%s19192_s7 + $0x2b8] sm:$0xff] }
 0x6ea   :  { %v16283_v4 = vmax.f32 %v1767_v1, 0.0  ;;  %v164_v1 = vld [vmem:[%s19192_s7 + $0x318] sm:$0xff]  ;;  %v183_v14 = vld [vmem:[%s19192_s7 + $0x3b0] sm:$0xff]  ;;  %v16385_v57 = vpack.c.bf16 %v134_v32, %v133_v49 }
 0x6eb   :  { %v16343_v54 = vpack.c.bf16 %v164_v1, %v163_v63  ;;  %v166_v63 = vld [vmem:[%s19192_s7 + $0x328] sm:$0xff]  ;;  %v151_v1 = vld [vmem:[%s19192_s7 + $0x2b0] sm:$0xff]  ;;  %v184_v21 = vld [vmem:[%s19192_s7 + $0x3b8] sm:$0xff] }
 0x6ec   :  { %19545 = vst [vmem:[#allocation47_spill] sm:$0xff] %v16283_v4  ;;  %11279 = vmatprep.mubr.msk.f32.mxu1 %vm19338_vm2, %v16283_v4  ;;  %11313 = vmatprep.mubr.msk.f32.mxu0 %vm19338_vm2, %v16283_v4  ;;  %19546 = vst [vmem:[#allocation48_spill] sm:$0xff] %v16385_v57  ;;  %v16387_v37 = vpack.c.bf16 %v166_v63, %v165_v56  ;;  %v16389_v55 = vpack.c.bf16 %v152_v3, %v151_v1  ;;  %v136_v49 = vld [vmem:[%s19192_s7 + $0x238] sm:$0xff]  ;;  %v167_v32 = vld [vmem:[%s19192_s7 + $0x330] sm:$0xff] }
 0x6ed   :  { %11280 = vmatmul.mubr.msk.f32.vlgmr.msra.gmra.mrb[14].mxu1 %vm19338_vm2, %v16283_v4  ;;  %11314 = vmatmul.mubr.msk.f32.vlgmr.msra.gmra.mrb[26].mxu0 %vm19338_vm2, %v16283_v4  ;;  %v16391_v53 = vpack.c.bf16 %v184_v21, %v183_v14  ;;  %v168_v56 = vld [vmem:[%s19192_s7 + $0x338] sm:$0xff]  ;;  %v153_v63 = vld [vmem:[%s19192_s7 + $0x2c0] sm:$0xff]  ;;  %v154_v1 = vld [vmem:[%s19192_s7 + $0x2c8] sm:$0xff]  ;;  %v16429_v21 = vpack.c.bf16 %v136_v49, %v135_v48 }
 0x6ee   :  { %13848 = vmatpush3.bf16.xpose.msk.msra.mxu1 %vm15879_vm9, %v16285_v2  ;;  %13896 = vmatpush3.bf16.xpose.msk.msra.mxu0 %vm15879_vm9, %v16287_v46  ;;  %19547 = vst [vmem:[#allocation49_spill] sm:$0xff] %v16387_v37  ;;  %19548 = vst [vmem:[#allocation50_spill] sm:$0xff] %v16389_v55  ;;  %v185_v3 = vld [vmem:[%s19192_s7 + $0x3c0] sm:$0xff]  ;;  %v186_v14 = vld [vmem:[%s19192_s7 + $0x3c8] sm:$0xff]  ;;  %v16431_v33 = vpack.c.bf16 %v168_v56, %v167_v32  ;;  %v16433_v10 = vpack.c.bf16 %v154_v1, %v153_v63 }
 0x6ef   :  { %11347 = vmatprep.mubr.msk.f32.mxu1 %vm19338_vm2, %v16283_v4  ;;  %11381 = vmatprep.mubr.msk.f32.mxu0 %vm19338_vm2, %v16283_v4  ;;  %19549 = vst [vmem:[#allocation51_spill] sm:$0xff] %v16391_v53  ;;  %19550 = vst [vmem:[#allocation52_spill] sm:$0xff] %v16429_v21  ;;  %v16435_v39 = vpack.c.bf16 %v186_v14, %v185_v3  ;;  %v138_v48 = vld [vmem:[%s19192_s7 + $0x248] sm:$0xff]  ;;  %v169_v49 = vld [vmem:[%s19192_s7 + $0x340] sm:$0xff] }
 0x6f0   :  { %13851 = vmatprep.subr.msk.bf16.mxu1 %vm15879_vm9, %v16293_v6  ;;  %13899 = vmatprep.subr.msk.bf16.mxu0 %vm15879_vm9, %v16295_v0  ;;  %19551 = vst [vmem:[#allocation53_spill] sm:$0xff] %v16431_v33  ;;  %19552 = vst [vmem:[#allocation54_spill] sm:$0xff] %v16433_v10  ;;  %v170_v32 = vld [vmem:[%s19192_s7 + $0x348] sm:$0xff]  ;;  %v155_v56 = vld [vmem:[%s19192_s7 + $0x2d0] sm:$0xff]  ;;  %v16473_v14 = vpack.c.bf16 %v138_v48, %v137_v36 }
 0x6f1   :  { %19553 = vst [vmem:[#allocation55_spill] sm:$0xff] %v16435_v39  ;;  %v156_v63 = vld [vmem:[%s19192_s7 + $0x2d8] sm:$0xff]  ;;  %v187_v1 = vld [vmem:[%s19192_s7 + $0x3d0] sm:$0xff]  ;;  %v16475_v30 = vpack.c.bf16 %v170_v32, %v169_v49  ;;  %v157_v32 = vld [vmem:[%s19192_s7 + $0x2e0] sm:$0xff] }
 0x6f2   :  { %v188_v3 = vld [vmem:[%s19192_s7 + $0x3d8] sm:$0xff]  ;;  %19554 = vst [vmem:[#allocation56_spill] sm:$0xff] %v16473_v14  ;;  %v171_v48 = vld [vmem:[%s19192_s7 + $0x350] sm:$0xff] }
 0x6f3   :  { %19555 = vst [vmem:[#allocation57_spill] sm:$0xff] %v16475_v30  ;;  %v140_v36 = vld [vmem:[%s19192_s7 + $0x258] sm:$0xff] }
 0x6f4   :  { %v172_v49 = vld [vmem:[%s19192_s7 + $0x358] sm:$0xff] }
 0x6f6   :  { %13854 = vmatpush3.bf16.xpose.msk.msra.mxu1 %vm15879_vm9, %v16341_v8  ;;  %13902 = vmatpush3.bf16.xpose.msk.msra.mxu0 %vm15879_vm9, %v16343_v54 }
 0x6f7   :  { %13857 = vmatprep.subr.msk.bf16.mxu1 %vm15879_vm9, %v16345_v52  ;;  %13905 = vmatprep.subr.msk.bf16.mxu0 %vm15879_vm9, %v16347_v51 }
 0x6fe   :  { %13860 = vmatpush3.bf16.xpose.msk.msra.mxu1 %vm15879_vm9, %v16385_v57  ;;  %13908 = vmatpush3.bf16.xpose.msk.msra.mxu0 %vm15879_vm9, %v16387_v37 }
 0x6ff   :  { %13863 = vmatprep.subr.msk.bf16.mxu1 %vm15879_vm9, %v16389_v55  ;;  %13911 = vmatprep.subr.msk.bf16.mxu0 %vm15879_vm9, %v16391_v53 }
 0x706   :  { %13866 = vmatpush3.bf16.xpose.msk.msra.mxu1 %vm15879_vm9, %v16429_v21  ;;  %13914 = vmatpush3.bf16.xpose.msk.msra.mxu0 %vm15879_vm9, %v16431_v33  ;;  %v139_v33 = vld [vmem:[%s19192_s7 + $0x250] sm:$0xff] }
 0x707   :  { %13869 = vmatprep.subr.msk.bf16.mxu1 %vm15879_vm9, %v16433_v10  ;;  %13917 = vmatprep.subr.msk.bf16.mxu0 %vm15879_vm9, %v16435_v39  ;;  %v16477_v39 = vpack.c.bf16 %v156_v63, %v155_v56  ;;  %v16479_v10 = vpack.c.bf16 %v188_v3, %v187_v1  ;;  %v158_v56 = vld [vmem:[%s19192_s7 + $0x2e8] sm:$0xff]  ;;  %v189_v63 = vld [vmem:[%s19192_s7 + $0x3e0] sm:$0xff]  ;;  %v16517_v3 = vpack.c.bf16 %v140_v36, %v139_v33 }
 0x708   :  { %v190_v1 = vld [vmem:[%s19192_s7 + $0x3e8] sm:$0xff]  ;;  %v173_v36 = vld [vmem:[%s19192_s7 + $0x360] sm:$0xff] }
 0x709   :  { %19556 = vst [vmem:[#allocation58_spill] sm:$0xff] %v16477_v39  ;;  %19557 = vst [vmem:[#allocation59_spill] sm:$0xff] %v16479_v10  ;;  %v142_v33 = vld [vmem:[%s19192_s7 + $0x268] sm:$0xff] }
 0x70a   :  { %19558 = vst [vmem:[#allocation60_spill] sm:$0xff] %v16517_v3 }
 0x70e   :  { %13872 = vmatpush3.bf16.xpose.msk.msra.mxu1 %vm15879_vm9, %v16473_v14  ;;  %13920 = vmatpush3.bf16.xpose.msk.msra.mxu0 %vm15879_vm9, %v16475_v30  ;;  %v16523_v30 = vpack.c.bf16 %v190_v1, %v189_v63  ;;  %v141_v14 = vld [vmem:[%s19192_s7 + $0x260] sm:$0xff]  ;;  %v192_v63 = vld [vmem:[%s19192_s7 + $0x3f8] sm:$0xff] }
 0x70f   :  { %13875 = vmatprep.subr.msk.bf16.mxu1 %vm15879_vm9, %v16477_v39  ;;  %13923 = vmatprep.subr.msk.bf16.mxu0 %vm15879_vm9, %v16479_v10  ;;  %v16519_v10 = vpack.c.bf16 %v172_v49, %v171_v48  ;;  %v16521_v39 = vpack.c.bf16 %v158_v56, %v157_v32  ;;  %v174_v48 = vld [vmem:[%s19192_s7 + $0x368] sm:$0xff]  ;;  %v159_v49 = vld [vmem:[%s19192_s7 + $0x2f0] sm:$0xff]  ;;  %v160_v32 = vld [vmem:[%s19192_s7 + $0x2f8] sm:$0xff]  ;;  %v16561_v1 = vpack.c.bf16 %v142_v33, %v141_v14 }
 0x710   :  { %19561 = vst [vmem:[#allocation63_spill] sm:$0xff] %v16523_v30  ;;  %v191_v56 = vld [vmem:[%s19192_s7 + $0x3f0] sm:$0xff]  ;;  %v144_v14 = vld [vmem:[%s19192_s7 + $0x278] sm:$0xff] }
 0x711   :  { %19559 = vst [vmem:[#allocation61_spill] sm:$0xff] %v16519_v10  ;;  %19560 = vst [vmem:[#allocation62_spill] sm:$0xff] %v16521_v39  ;;  %v175_v33 = vld [vmem:[%s19192_s7 + $0x370] sm:$0xff] }
 0x712   :  { %19562 = vst [vmem:[#allocation64_spill] sm:$0xff] %v16561_v1 }
 0x716   :  { %13878 = vmatpush3.bf16.xpose.msk.msra.mxu1 %vm15879_vm9, %v16517_v3  ;;  %13926 = vmatpush3.bf16.xpose.msk.msra.mxu0 %vm15879_vm9, %v16519_v10  ;;  %v16567_v10 = vpack.c.bf16 %v192_v63, %v191_v56  ;;  %v143_v3 = vld [vmem:[%s19192_s7 + $0x270] sm:$0xff] }
 0x717   :  { %13881 = vmatprep.subr.msk.bf16.mxu1 %vm15879_vm9, %v16521_v39  ;;  %13929 = vmatprep.subr.msk.bf16.mxu0 %vm15879_vm9, %v16523_v30  ;;  %v16563_v30 = vpack.c.bf16 %v174_v48, %v173_v36  ;;  %v16565_v39 = vpack.c.bf16 %v160_v32, %v159_v49  ;;  %v176_v36 = vld [vmem:[%s19192_s7 + $0x378] sm:$0xff]  ;;  %v16593_v48 = vpack.c.bf16 %v144_v14, %v143_v3  ;;  %v2453_v14 = vsub.s32 0, %v15395_v15 }
 0x718   :  { %19565 = vst [vmem:[#allocation67_spill] sm:$0xff] %v16567_v10  ;;  %v16595_v49 = vpack.c.bf16 %v176_v36, %v175_v33  ;;  %v2461_v33 = vsub.s32 2, %v15395_v15  ;;  %v2457_v36 = vsub.s32 1, %v15395_v15 }
 0x719   :  { %19563 = vst [vmem:[#allocation65_spill] sm:$0xff] %v16563_v30  ;;  %19564 = vst [vmem:[#allocation66_spill] sm:$0xff] %v16565_v39 }
 0x71a   :  { %19566 = vst [vmem:[#allocation68_spill] sm:$0xff] %v16593_v48  ;;  %19567 = vst [vmem:[#allocation69_spill] sm:$0xff] %v16595_v49 }
 0x71e   :  { %13884 = vmatpush3.bf16.xpose.msk.msra.mxu1 %vm15879_vm9, %v16561_v1  ;;  %13932 = vmatpush3.bf16.xpose.msk.msra.mxu0 %vm15879_vm9, %v16563_v30 }
 0x71f   :  { %13887 = vmatprep.subr.msk.bf16.mxu1 %vm15879_vm9, %v16565_v39  ;;  %13935 = vmatprep.subr.msk.bf16.mxu0 %vm15879_vm9, %v16567_v10 }
 0x726   :  { %13890 = vmatpush3.bf16.xpose.msk.msra.mxu1 %vm15879_vm9, %v16593_v48  ;;  %13938 = vmatpush3.bf16.xpose.msk.msra.mxu0 %vm15879_vm9, %v16595_v49 }
 0x727   :  { %13940 = vmatprep.subr.bf16.mxu1 %v15883_v29  ;;  %13972 = vmatprep.subr.bf16.mxu0 %v15894_v38 }
 0x72d   :  { %11348 = vmatmul.mubr.msk.f32.vlgmr.msra.gmra.mrb[16].mxu1 %vm19338_vm2, %v16283_v4  ;;  %11382 = vmatmul.mubr.msk.f32.vlgmr.msra.gmra.mrb[28].mxu0 %vm19338_vm2, %v16283_v4  ;;  %v2465_v4 = vsub.s32 3, %v15395_v15 }
 0x72e   :  { %13942 = vmatpush3.bf16.msra.mxu1 %v15902_v41  ;;  %13974 = vmatpush3.bf16.msra.mxu0 %v16055_v9 }
 0x72f   :  { %13944 = vmatprep.subr.bf16.mxu1 %v15913_v44  ;;  %13976 = vmatprep.subr.bf16.mxu0 %v16061_v17 }
 0x732   :  { %13946 = vmatpush3.bf16.msra.mxu1 %v15928_v59  ;;  %13978 = vmatpush3.bf16.msra.mxu0 %v16081_v22 }
 0x733   :  { %13948 = vmatprep.subr.bf16.mxu1 %v15936_v62  ;;  %13980 = vmatprep.subr.bf16.mxu0 %v16083_v25 }
 0x736   :  { %13950 = vmatpush3.bf16.msra.mxu1 %v15950_v7  ;;  %13982 = vmatpush3.bf16.msra.mxu0 %v16103_v42 }
 0x737   :  { %13952 = vmatprep.subr.bf16.mxu1 %v15958_v11  ;;  %13984 = vmatprep.subr.bf16.mxu0 %v16105_v45 }
 0x73a   :  { %13954 = vmatpush3.bf16.msra.mxu1 %v15972_v16  ;;  %13986 = vmatpush3.bf16.msra.mxu0 %v16125_v61 }
 0x73b   :  { %13956 = vmatprep.subr.bf16.mxu1 %v15980_v19  ;;  %13988 = vmatprep.subr.bf16.mxu0 %v16127_v5 }
 0x73e   :  { %13958 = vmatpush3.bf16.msra.mxu1 %v15994_v23  ;;  %13990 = vmatpush3.bf16.msra.mxu0 %v16147_v18 }
 0x73f   :  { %13960 = vmatprep.subr.bf16.mxu1 %v16002_v28  ;;  %13992 = vmatprep.subr.bf16.mxu0 %v16149_v12 }
 0x742   :  { %13962 = vmatpush3.bf16.msra.mxu1 %v16016_v35  ;;  %13994 = vmatpush3.bf16.msra.mxu0 %v16169_v34 }
 0x743   :  { %13964 = vmatprep.subr.bf16.mxu1 %v16024_v43  ;;  %13996 = vmatprep.subr.bf16.mxu0 %v16171_v40  ;;  %v2481_v40 = vsub.s32 7, %v15395_v15 }
 0x746   :  { %13966 = vmatpush3.bf16.msra.mxu1 %v16038_v50  ;;  %13998 = vmatpush3.bf16.msra.mxu0 %v16185_v58  ;;  %v2473_v58 = vsub.s32 5, %v15395_v15 }
 0x747   :  { %13968 = vmatprep.subr.bf16.mxu1 %v16199_v13  ;;  %14000 = vmatprep.subr.bf16.mxu0 %v16210_v26  ;;  %v2469_v26 = vsub.s32 4, %v15395_v15 }
 0x74a   :  { %13970 = vmatpush3.bf16.msra.mxu1 %v16212_v31  ;;  %14002 = vmatpush3.bf16.msra.mxu0 %v16223_v60  ;;  %v193_v60 = vld [vmem:[%s19193_s8] sm:$0xff]  ;;  %s19451_s8 = smov 104  }
 0x74b   :  { %14004 = vmatprep.subr.bf16.mxu1 %v16243_v24  ;;  %14036 = vmatprep.subr.bf16.mxu0 %v16248_v47  ;;  %v2477_v47 = vsub.s32 6, %v15395_v15  ;;  %v16652_v34 = vrot.slane %v193_v60, %v2453_v14  ;;  %v16654_v12 = vrot.slane %v193_v60, %v2461_v33  ;;  %v16656_v18 = vrot.slane %v193_v60, %v2457_v36 }
 0x74c   :  { %v16658_v5 = vrot.slane %v193_v60, %v2465_v4  ;;  %v16660_v42 = vrot.slane %v193_v60, %v2469_v26  ;;  %v16664_v24 = vrot.slane %v193_v60, %v2473_v58  ;;  %v16666_v14 = vrot.slane %v193_v60, %v2481_v40 }
 0x74d   :  { %19568 = vst [vmem:[#allocation70_spill] sm:$0xff] %v16652_v34  ;;  %19569 = vst [vmem:[#allocation71_spill] sm:$0xff] %v16654_v12  ;;  %v16662_v25 = vrot.slane %v193_v60, %v2477_v47 }
 0x74e   :  { %19570 = vst [vmem:[#allocation72_spill] sm:$0xff] %v16656_v18  ;;  %19571 = vst [vmem:[#allocation73_spill] sm:$0xff] %v16658_v5 }
 0x74f   :  { %19572 = vst [vmem:[#allocation74_spill] sm:$0xff] %v16660_v42  ;;  %19573 = vst [vmem:[#allocation75_spill] sm:$0xff] %v16662_v25 }
 0x750   :  { %19574 = vst [vmem:[#allocation76_spill] sm:$0xff] %v16664_v24  ;;  %19575 = vst [vmem:[#allocation77_spill] sm:$0xff] %v16666_v14 }
 0x7c0   :  { %v2224_v3 = vpop.f32.mrb[14].mxu1  ;;  %v2295_v32 = vpop.f32.mrb[26].mxu0 }
 0x7c1   :  { %v2226_v56 = vpop.f32.mrb[15].mxu1  ;;  %v2297_v63 = vpop.f32.mrb[27].mxu0  ;;  %v2442_v61 = vmul.f32 2.0, %v2224_v3  ;;  %v2444_v45 = vmul.f32 2.0, %v2295_v32 }
 0x7c2   :  { %v2443_v22 = vmul.f32 2.0, %v2226_v56  ;;  %v2445_v17 = vmul.f32 2.0, %v2297_v63 }
 0x7c3   :  { %v2491_v3 = vsub.f32 %v16652_v34, %v2442_v61  ;;  %v2493_v26 = vsub.f32 %v16654_v12, %v2444_v45  ;;  %v16677_v45 = vadd.s32 128, %v15402_v20 }
 0x7c4   :  { %v2492_v56 = vsub.f32 %v16656_v18, %v2443_v22  ;;  %v2494_v58 = vsub.f32 %v16658_v5, %v2445_v17  ;;  %v16683_v17 = vadd.s32 384, %v15402_v20 }
 0x7c5   :  { %19576 = vst [vmem:[#allocation78_spill] sm:$0xff] %v16677_v45 }
 0x7c6   :  { %19578 = vst [vmem:[#allocation80_spill] sm:$0xff] %v16683_v17 }
 0x800   :  { %v2366_v9 = vpop.f32.mrb[16].mxu1  ;;  %v2437_v38 = vpop.f32.mrb[28].mxu0 }
 0x801   :  { %v2446_v33 = vmul.f32 2.0, %v2366_v9  ;;  %v2448_v31 = vmul.f32 2.0, %v2437_v38  ;;  %v2368_v36 = vpop.f32.mrb[17].mxu1  ;;  %v2439_v13 = vpop.f32.mrb[29].mxu0 }
 0x802   :  { %v2447_v4 = vmul.f32 2.0, %v2368_v36  ;;  %v2449_v50 = vmul.f32 2.0, %v2439_v13 }
 0x803   :  { %v2495_v47 = vsub.f32 %v16660_v42, %v2446_v33  ;;  %v2497_v32 = vsub.f32 %v16662_v25, %v2448_v31  ;;  %v16680_v31 = vadd.s32 256, %v15402_v20  ;;  %v16689_v33 = vadd.s32 640, %v15402_v20 }
 0x804   :  { %v2496_v40 = vsub.f32 %v16664_v24, %v2447_v4  ;;  %v2498_v38 = vsub.f32 %v16666_v14, %v2449_v50  ;;  %v16686_v50 = vadd.s32 512, %v15402_v20  ;;  %v16692_v4 = vadd.s32 768, %v15402_v20 }
 0x805   :  { %v2499_v9 = vmin.f32 %v2491_v3, %v2495_v47  ;;  %v2501_v60 = vmin.f32 %v2493_v26, %v2497_v32  ;;  %19577 = vst [vmem:[#allocation79_spill] sm:$0xff] %v16680_v31  ;;  %19580 = vst [vmem:[#allocation82_spill] sm:$0xff] %v16689_v33 }
 0x806   :  { %v2500_v63 = vmin.f32 %v2492_v56, %v2496_v40  ;;  %v2502_v13 = vmin.f32 %v2494_v58, %v2498_v38  ;;  %19579 = vst [vmem:[#allocation81_spill] sm:$0xff] %v16686_v50  ;;  %19581 = vst [vmem:[#allocation83_spill] sm:$0xff] %v16692_v4 }
 0x808   :  { %v2503_v36 = vmin.f32 %v2499_v9, %v2500_v63  ;;  %v2504_v61 = vmin.f32 %v2501_v60, %v2502_v13 }
 0x80a   :  { %v2505_v34 = vmin.f32 %v2503_v36, %v2504_v61 }
 0x80c   :  { %2506 = vmin.xlane.f32.xlu0 %v2505_v34  ;;  %v16695_v34 = vadd.s32 896, %v15402_v20 }
 0x80e   :  { %19582 = vst [vmem:[#allocation84_spill] sm:$0xff] %v16695_v34 }
 0x899   :  { %v2507_v22 = vpop.xlane.xlu0 %2506 }
 0x89a   :  { %vm2515_vm8 = vcmp.eq.f32.partialorder %v2491_v3, %v2507_v22  ;;  %vm2516_vm5 = vcmp.eq.f32.partialorder %v2492_v56, %v2507_v22  ;;  %vm2517_vm14 = vcmp.eq.f32.partialorder %v2493_v26, %v2507_v22  ;;  %vm2518_vm13 = vcmp.eq.f32.partialorder %v2494_v58, %v2507_v22 }
 0x89b   :  { %vm2519_vm12 = vcmp.eq.f32.partialorder %v2495_v47, %v2507_v22  ;;  %vm2520_vm11 = vcmp.eq.f32.partialorder %v2496_v40, %v2507_v22  ;;  %vm2521_vm10 = vcmp.eq.f32.partialorder %v2497_v32, %v2507_v22  ;;  %vm2522_vm15 = vcmp.eq.f32.partialorder %v2498_v38, %v2507_v22 }
 0x89c   :  { %v2523_v9 = vsel %vm2515_vm8, %v15402_v20, 1024  ;;  %v2524_v60 = vsel %vm2516_vm5, %v16677_v45, 1024  ;;  %v2525_v63 = vsel %vm2517_vm14, %v16680_v31, 1024  ;;  %v2526_v13 = vsel %vm2518_vm13, %v16683_v17, 1024 }
 0x89d   :  { %v2527_v36 = vsel %vm2519_vm12, %v16686_v50, 1024  ;;  %v2528_v61 = vsel %vm2520_vm11, %v16689_v33, 1024  ;;  %v2529_v3 = vsel %vm2521_vm10, %v16692_v4, 1024  ;;  %v2530_v26 = vsel %vm2522_vm15, %v16695_v34, 1024 }
 0x89e   :  { %vm2531_vm7 = vcmp.lt.s32.totalorder %v2523_v9, %v2527_v36  ;;  %vm2533_vm4 = vcmp.lt.s32.totalorder %v2524_v60, %v2528_v61  ;;  %vm2535_vm1 = vcmp.lt.s32.totalorder %v2525_v63, %v2529_v3  ;;  %vm2537_vm2 = vcmp.lt.s32.totalorder %v2526_v13, %v2530_v26 }
 0x89f   :  { %v2532_v47 = vsel %vm2531_vm7, %v2523_v9, %v2527_v36  ;;  %v2534_v32 = vsel %vm2533_vm4, %v2524_v60, %v2528_v61  ;;  %v2536_v56 = vsel %vm2535_vm1, %v2525_v63, %v2529_v3  ;;  %v2538_v58 = vsel %vm2537_vm2, %v2526_v13, %v2530_v26  ;;  %v19589_v36 = vld [vmem:[#allocation59_spill] sm:$0xff]  ;;  %v19590_v61 = vld [vmem:[#allocation60_spill] sm:$0xff]  ;;  %v19591_v3 = vld [vmem:[#allocation61_spill] sm:$0xff] }
 0x8a0   :  { %vm2539_vm5 = vcmp.lt.s32.totalorder %v2532_v47, %v2534_v32  ;;  %vm2541_vm14 = vcmp.lt.s32.totalorder %v2536_v56, %v2538_v58  ;;  %v19592_v26 = vld [vmem:[#allocation62_spill] sm:$0xff] }
 0x8a1   :  { %v2540_v40 = vsel %vm2539_vm5, %v2532_v47, %v2534_v32  ;;  %v2542_v38 = vsel %vm2541_vm14, %v2536_v56, %v2538_v58  ;;  %v19593_v47 = vld [vmem:[#allocation63_spill] sm:$0xff]  ;;  %v16752_v32 = vmul.u32 8, %v15402_v20  ;;  %vm2921_vm5 = vcmask 64512  }
 0x8a2   :  { %vm2543_vm13 = vcmp.lt.s32.totalorder %v2540_v40, %v2542_v38  ;;  %v19594_v56 = vmov 0.0  }
 0x8a3   :  { %v2544_v22 = vsel %vm2543_vm13, %v2540_v40, %v2542_v38  ;;  %vm2868_vm14 = vcmp.eq.s32.totalorder %v15395_v15, %v16752_v32 }
 0x8a4   :  { %v2546_v14 = vshra.s32 %v2544_v22, 16  ;;  %v2545_v5 = vand.u32 65535, %v2544_v22  ;;  %v16757_v58 = vsel %vm2868_vm14, 1.0, %v19594_v56 }
 0x8a5   :  { %19595 = vst [vmem:[#allocation85_spill] sm:$0xff] %v16757_v58 }
 0x8a6   :  { %v2548_v24 = vcvt.s32.f32 %v2546_v14  ;;  %v2547_v25 = vcvt.s32.f32 %v2545_v5  ;;  %v19346_v14 = vmov 1.0   ;;  %v19585_v5 = vld [vmem:[#allocation55_spill] sm:$0xff] }
 0x8a8   :  { %2549 = vmin.xlane.f32.xlu1 %v2548_v24 }
 0x935   :  { %v2550_v18 = vpop.xlane.xlu1 %2549 }
 0x936   :  { %vm2551_vm10 = vcmp.eq.f32.partialorder %v2548_v24, %v2550_v18  ;;  %v2556_v12 = vcvt.f32.s32 %v2550_v18  ;;  %v19586_v18 = vld [vmem:[#allocation56_spill] sm:$0xff]  ;;  %v19588_v24 = vld [vmem:[#allocation58_spill] sm:$0xff] }
 0x937   :  { %v2552_v42 = vsel %vm2551_vm10, %v2547_v25, inf  ;;  %v19583_v25 = vld [vmem:[#allocation53_spill] sm:$0xff] }
 0x938   :  { %2553 = vmin.xlane.f32.xlu0 %v2552_v42  ;;  %v2557_v60 = vshll.u32 %v2556_v12, 16  ;;  %v19584_v42 = vld [vmem:[#allocation54_spill] sm:$0xff]  ;;  %v19587_v12 = vld [vmem:[#allocation57_spill] sm:$0xff] }
 0x9c5   :  { %v2554_v9 = vpop.xlane.xlu0 %2553 }
 0x9c6   :  { %v2555_v63 = vcvt.f32.s32 %v2554_v9 }
 0x9c8   :  { %v2558_v13 = vadd.s32 %v2557_v60, %v2555_v63 }
 0x9ca   :  { %vm2560_vm4 = vcmp.eq.s32.totalorder %v16677_v45, %v2558_v13  ;;  %vm2562_vm7 = vcmp.eq.s32.totalorder %v16683_v17, %v2558_v13  ;;  %vm2559_vm11 = vcmp.eq.s32.totalorder %v15402_v20, %v2558_v13  ;;  %vm2561_vm12 = vcmp.eq.s32.totalorder %v16680_v31, %v2558_v13  ;;  %v19596_v45 = vld [vmem:[#allocation7_spill] sm:$0xff] }
 0x9cb   :  { %10555 = vmatprep.mubr.msk.f32.mxu1 %vm2560_vm4, %v19346_v14  ;;  %10557 = vmatprep.mubr.msk.f32.mxu0 %vm2562_vm7, %v19346_v14  ;;  %vm2564_vm15 = vcmp.eq.s32.totalorder %v16689_v33, %v2558_v13  ;;  %vm2566_vm1 = vcmp.eq.s32.totalorder %v16695_v34, %v2558_v13  ;;  %vm2563_vm2 = vcmp.eq.s32.totalorder %v16686_v50, %v2558_v13 }
 0x9cc   :  { %10556 = vmatmul.mubr.msk.f32.vlgmr.msra.gmra.mrb[18].mxu1 %vm2559_vm11, %v19346_v14  ;;  %10558 = vmatmul.mubr.msk.f32.vlgmr.msra.gmra.mrb[30].mxu0 %vm2561_vm12, %v19346_v14  ;;  %vm2565_vm8 = vcmp.eq.s32.totalorder %v16692_v4, %v2558_v13  ;;  %vm2869_vm13 = vcmp.eq.s32.totalorder %v19596_v45, %v16752_v32 }
 0x9cd   :  { %14006 = vmatpush3.bf16.msra.mxu1 %v16285_v2  ;;  %14038 = vmatpush3.bf16.msra.mxu0 %v16287_v46 }
 0x9ce   :  { %10559 = vmatprep.mubr.msk.f32.mxu1 %vm2564_vm15, %v19346_v14  ;;  %10561 = vmatprep.mubr.msk.f32.mxu0 %vm2566_vm1, %v19346_v14 }
 0x9cf   :  { %14008 = vmatprep.subr.bf16.mxu1 %v16293_v6  ;;  %14040 = vmatprep.subr.bf16.mxu0 %v16295_v0 }
 0x9d1   :  { %14010 = vmatpush3.bf16.msra.mxu1 %v16341_v8  ;;  %14042 = vmatpush3.bf16.msra.mxu0 %v16343_v54 }
 0x9d2   :  { %14012 = vmatprep.subr.bf16.mxu1 %v16345_v52  ;;  %14044 = vmatprep.subr.bf16.mxu0 %v16347_v51 }
 0x9d5   :  { %14014 = vmatpush3.bf16.msra.mxu1 %v16385_v57  ;;  %14046 = vmatpush3.bf16.msra.mxu0 %v16387_v37 }
 0x9d6   :  { %14016 = vmatprep.subr.bf16.mxu1 %v16389_v55  ;;  %14048 = vmatprep.subr.bf16.mxu0 %v16391_v53 }
 0x9d9   :  { %14018 = vmatpush3.bf16.msra.mxu1 %v16429_v21  ;;  %14050 = vmatpush3.bf16.msra.mxu0 %v19583_v25 }
 0x9da   :  { %14020 = vmatprep.subr.bf16.mxu1 %v19584_v42  ;;  %14052 = vmatprep.subr.bf16.mxu0 %v19585_v5 }
 0x9dd   :  { %14022 = vmatpush3.bf16.msra.mxu1 %v19586_v18  ;;  %14054 = vmatpush3.bf16.msra.mxu0 %v19587_v12 }
 0x9de   :  { %14024 = vmatprep.subr.bf16.mxu1 %v19588_v24  ;;  %14056 = vmatprep.subr.bf16.mxu0 %v19589_v36 }
 0x9e1   :  { %14026 = vmatpush3.bf16.msra.mxu1 %v19590_v61  ;;  %14058 = vmatpush3.bf16.msra.mxu0 %v19591_v3 }
 0x9e2   :  { %14028 = vmatprep.subr.bf16.mxu1 %v19592_v26  ;;  %14060 = vmatprep.subr.bf16.mxu0 %v19593_v47 }
 0x9e5   :  { %14030 = vmatpush3.bf16.msra.mxu1 %v16561_v1  ;;  %14062 = vmatpush3.bf16.msra.mxu0 %v16563_v30 }
 0x9e6   :  { %14032 = vmatprep.subr.bf16.mxu1 %v16565_v39  ;;  %14064 = vmatprep.subr.bf16.mxu0 %v16567_v10 }
 0x9e9   :  { %14034 = vmatpush3.bf16.msra.mxu1 %v16593_v48  ;;  %14066 = vmatpush3.bf16.msra.mxu0 %v16595_v49  ;;  %v16766_v48 = vadd.s32 32, %v15395_v15 }
 0x9eb   :  { %vm2872_vm7 = vcmp.eq.s32.totalorder %v16766_v48, %v16752_v32 }
 0x9ec   :  { %10560 = vmatmul.mubr.msk.f32.vlgmr.msra.gmra.mrb[20].mxu1 %vm2563_vm2, %v19346_v14  ;;  %10562 = vmatmul.mubr.msk.f32.vlgmr.msra.gmra.mrb[32].mxu0 %vm2565_vm8, %v19346_v14 }
 0x9ed   :  { %12612 = vmatprep.mubr.msk.f32.mxu1 %vm2921_vm5, %v16757_v58  ;;  %v19597_v58 = vld [vmem:[#allocation9_spill] sm:$0xff] }
 0x9ee   :  { %vm2870_vm10 = vcmp.eq.s32.totalorder %v19597_v58, %v16752_v32 }
 0xa9f   :  { %v11415_v40 = vpop.f32.mrb[18].mxu1  ;;  %v11450_v38 = vpop.f32.mrb[30].mxu0 }
 0xaa0   :  { %v11416_v22 = vpop.f32.mrb[19].mxu1  ;;  %v11451_v9 = vpop.f32.mrb[31].mxu0 }
 0xaa1   :  { %v11417_v60 = vadd.f32 %v11416_v22, %v11415_v40  ;;  %v11452_v63 = vadd.f32 %v11451_v9, %v11450_v38  ;;  %v16801_v40 = vsel %vm2872_vm7, 1.0, %v19594_v56  ;;  %v16806_v38 = vadd.s32 2, %v16752_v32 }
 0xaa2   :  { %19603 = vst [vmem:[#allocation86_spill] sm:$0xff] %v16801_v40 }
 0xaa3   :  { %v2720_v13 = vadd.f32 %v11452_v63, %v11417_v60  ;;  %vm3181_vm1 = vcmp.eq.s32.totalorder %v15395_v15, %v16806_v38  ;;  %vm3182_vm8 = vcmp.eq.s32.totalorder %v19596_v45, %v16806_v38  ;;  %vm3183_vm14 = vcmp.eq.s32.totalorder %v19597_v58, %v16806_v38 }
 0xaa4   :  { %v16833_v63 = vsel %vm3181_vm1, 1.0, %v19594_v56 }
 0xaa5   :  { %19607 = vst [vmem:[#allocation90_spill] sm:$0xff] %v16833_v63 }
 0xabf   :  { %v11485_v14 = vpop.f32.mrb[20].mxu1  ;;  %v11520_v34 = vpop.f32.mrb[32].mxu0 }
 0xac0   :  { %v11486_v4 = vpop.f32.mrb[21].mxu1  ;;  %v11521_v33 = vpop.f32.mrb[33].mxu0 }
 0xac1   :  { %v11487_v50 = vadd.f32 %v11486_v4, %v11485_v14  ;;  %v11522_v17 = vadd.f32 %v11521_v33, %v11520_v34  ;;  %v16771_v4 = vsel %vm2869_vm13, 1.0, %v19594_v56  ;;  %v16782_v33 = vadd.s32 48, %v15395_v15 }
 0xac2   :  { %19598 = vst [vmem:[#allocation7_spill] sm:$0xff] %v16771_v4  ;;  %v16798_v14 = vadd.s32 56, %v15395_v15 }
 0xac3   :  { %v2790_v31 = vadd.f32 %v11487_v50, %v2720_v13  ;;  %v19599_v50 = vld [vmem:[#allocation11_spill] sm:$0xff]  ;;  %vm2874_vm12 = vcmp.eq.s32.totalorder %v16782_v33, %v16752_v32  ;;  %v16840_v13 = vadd.s32 1, %v16752_v32 }
 0xac4   :  { %vm2871_vm4 = vcmp.eq.s32.totalorder %v19599_v50, %v16752_v32  ;;  %v16818_v9 = vsel %vm2874_vm12, 1.0, %v19594_v56  ;;  %vm2875_vm15 = vcmp.eq.s32.totalorder %v16798_v14, %v16752_v32  ;;  %vm3184_vm13 = vcmp.eq.s32.totalorder %v19599_v50, %v16806_v38 }
 0xac5   :  { %v2860_v49 = vadd.f32 %v11522_v17, %v2790_v31  ;;  %v16776_v31 = vadd.s32 40, %v15395_v15  ;;  %v16779_v17 = vsel %vm2870_vm10, 1.0, %v19594_v56  ;;  %v16791_v34 = vsel %vm2871_vm4, 1.0, %v19594_v56  ;;  %19605 = vst [vmem:[#allocation88_spill] sm:$0xff] %v16818_v9 }
 0xac6   :  { %19600 = vst [vmem:[#allocation9_spill] sm:$0xff] %v16779_v17  ;;  %19602 = vst [vmem:[#allocation11_spill] sm:$0xff] %v16791_v34  ;;  %v16830_v60 = vsel %vm2875_vm15, 1.0, %v19594_v56  ;;  %vm2893_vm2 = vcmp.eq.s32.totalorder %v15395_v15, %v16840_v13  ;;  %vm3185_vm10 = vcmp.eq.s32.totalorder %v16766_v48, %v16806_v38  ;;  %vm2894_vm7 = vcmp.eq.s32.totalorder %v19596_v45, %v16840_v13 }
 0xac7   :  { %3370 = vrot.lane.b32.xlu1 %v2860_v49, %s19451_s8  ;;  %3205 = vrot.lane.b32.xlu0 %v2860_v49, %s15255_s27  ;;  %vm2873_vm11 = vcmp.eq.s32.totalorder %v16776_v31, %v16752_v32  ;;  %19606 = vst [vmem:[#allocation89_spill] sm:$0xff] %v16830_v60  ;;  %vm3186_vm4 = vcmp.eq.s32.totalorder %v16776_v31, %v16806_v38 }
 0xac8   :  { %12610 = vmatprep.subr.mxu1 %v2860_v49  ;;  %v16813_v22 = vsel %vm2873_vm11, 1.0, %v19594_v56  ;;  %vm3187_vm11 = vcmp.eq.s32.totalorder %v16782_v33, %v16806_v38  ;;  %vm2895_vm12 = vcmp.eq.s32.totalorder %v19597_v58, %v16840_v13  ;;  %vm3188_vm15 = vcmp.eq.s32.totalorder %v16798_v14, %v16806_v38 }
 0xac9   :  { %12611 = vmatpush3.msra.mxu1 %v2860_v49  ;;  %19604 = vst [vmem:[#allocation87_spill] sm:$0xff] %v16813_v22  ;;  %v16900_v10 = vsel %vm2895_vm12, 1.0, %v19594_v56  ;;  %vm2896_vm1 = vcmp.eq.s32.totalorder %v19599_v50, %v16840_v13  ;;  %v16914_v38 = vsel %vm3188_vm15, 1.0, %v19594_v56 }
 0xaca   :  { %12613 = vmatmul.mubr.msk.f32.vlgmr.msra.gmra.mrb[22].mxu1 %vm2921_vm5, %v16771_v4  ;;  %v16892_v4 = vsel %vm2894_vm7, 1.0, %v19594_v56  ;;  %19616 = vst [vmem:[#allocation99_spill] sm:$0xff] %v16900_v10  ;;  %19617 = vst [vmem:[#allocation100_spill] sm:$0xff] %v16914_v38 }
 0xacb   :  { %3535 = vrot.lane.b32.xlu1 %v2860_v49, %s19601_s6  ;;  %3700 = vrot.lane.b32.xlu0 %v2860_v49, %s19450_s19  ;;  %19614 = vst [vmem:[#allocation97_spill] sm:$0xff] %v16892_v4 }
 0xacc   :  { %12615 = vmatprep.mubr.msk.f32.mxu1 %vm2921_vm5, %v16779_v17  ;;  %v16870_v17 = vsel %vm3184_vm13, 1.0, %v19594_v56  ;;  %vm2898_vm13 = vcmp.eq.s32.totalorder %v16776_v31, %v16840_v13 }
 0xacd   :  { %19611 = vst [vmem:[#allocation94_spill] sm:$0xff] %v16870_v17 }
 0xace   :  { %12616 = vmatmul.mubr.msk.f32.gmra.mrb[24].mxu1 %vm2921_vm5, %v16791_v34 }
 0xacf   :  { %3865 = vrot.lane.b32.xlu1 %v2860_v49, %s19449_s28  ;;  %2918 = vrot.lane.b32.xlu0 %v2860_v49, %s15258_s4 }
 0xad0   :  { %12618 = vmatprep.mubr.msk.f32.mxu1 %vm2921_vm5, %v16801_v40 }
 0xad2   :  { %12619 = vmatmul.mubr.msk.f32.gmra.mrb[26].mxu1 %vm2921_vm5, %v16813_v22  ;;  %v16857_v22 = vsel %vm3183_vm14, 1.0, %v19594_v56 }
 0xad3   :  { %4030 = vrot.lane.b32.xlu1 %v2860_v49, %s19448_s30  ;;  %12621 = vmatprep.mubr.msk.f32.mxu1 %vm2921_vm5, %v16818_v9  ;;  %v16845_v49 = vsel %vm2893_vm2, 1.0, %v19594_v56  ;;  %v16854_v9 = vsel %vm3182_vm8, 1.0, %v19594_v56  ;;  %19610 = vst [vmem:[#allocation93_spill] sm:$0xff] %v16857_v22  ;;  %vm2897_vm8 = vcmp.eq.s32.totalorder %v16766_v48, %v16840_v13 }
 0xad4   :  { %19608 = vst [vmem:[#allocation91_spill] sm:$0xff] %v16845_v49  ;;  %12598 = vmatprep.mubr.msk.f32.mxu0 %vm2921_vm5, %v16845_v49  ;;  %19609 = vst [vmem:[#allocation92_spill] sm:$0xff] %v16854_v9  ;;  %v16895_v49 = vsel %vm3187_vm11, 1.0, %v19594_v56  ;;  %vm2900_vm11 = vcmp.eq.s32.totalorder %v16798_v14, %v16840_v13 }
 0xad5   :  { %19615 = vst [vmem:[#allocation98_spill] sm:$0xff] %v16895_v49 }
 0xad6   :  { %12622 = vmatmul.mubr.msk.f32.gmra.mrb[28].mxu1 %vm2921_vm5, %v16830_v60 }
 0xad7   :  { %12626 = vmatprep.mubr.msk.f32.mxu1 %vm2921_vm5, %v16833_v63 }
 0xb39   :  { %v3371_v60 = vpop.permute.xlu1 %3370  ;;  %v3206_v63 = vpop.permute.xlu0 %3205 }
 0xb3a   :  { %12624 = vmatprep.subr.mxu1 %v3206_v63 }
 0xb3b   :  { %12625 = vmatpush3.msra.mxu1 %v3206_v63  ;;  %v16873_v63 = vsel %vm3185_vm10, 1.0, %v19594_v56 }
 0xb3c   :  { %12627 = vmatmul.mubr.msk.f32.vlgmr.msra.gmra.mrb[22].mxu1 %vm2921_vm5, %v16854_v9  ;;  %12638 = vmatprep.subr.mxu1 %v3371_v60  ;;  %19612 = vst [vmem:[#allocation95_spill] sm:$0xff] %v16873_v63  ;;  %v16889_v9 = vsel %vm3186_vm4, 1.0, %v19594_v56  ;;  %vm2899_vm4 = vcmp.eq.s32.totalorder %v16782_v33, %v16840_v13  ;;  %v16968_v13 = vsel %vm2900_vm11, 1.0, %v19594_v56 }
 0xb3d   :  { %v3536_v40 = vpop.permute.xlu1 %3535  ;;  %v16865_v34 = vpop.permute.xlu0 %3700  ;;  %12639 = vmatpush3.msra.mxu1 %v3371_v60  ;;  %12629 = vmatprep.mubr.msk.f32.mxu1 %vm2921_vm5, %v16857_v22  ;;  %v3345_v60 = vadd.s32 3, %v16752_v32  ;;  %19613 = vst [vmem:[#allocation96_spill] sm:$0xff] %v16889_v9  ;;  %19627 = vst [vmem:[#allocation109_spill] sm:$0xff] %v16968_v13 }
 0xb3e   :  { %12652 = vmatprep.subr.mxu1 %v3536_v40 }
 0xb3f   :  { %vm3346_vm2 = vcmp.eq.s32.totalorder %v15395_v15, %v3345_v60  ;;  %vm3347_vm14 = vcmp.eq.s32.totalorder %v19596_v45, %v3345_v60  ;;  %vm3348_vm10 = vcmp.eq.s32.totalorder %v19597_v58, %v3345_v60  ;;  %vm3349_vm7 = vcmp.eq.s32.totalorder %v19599_v50, %v3345_v60 }
 0xb40   :  { %12630 = vmatmul.mubr.msk.f32.gmra.mrb[24].mxu1 %vm2921_vm5, %v16870_v17  ;;  %v16941_v17 = vsel %vm3347_vm14, 1.0, %v19594_v56  ;;  %vm3350_vm12 = vcmp.eq.s32.totalorder %v16766_v48, %v3345_v60  ;;  %vm3351_vm15 = vcmp.eq.s32.totalorder %v16776_v31, %v3345_v60 }
 0xb41   :  { %v2919_v22 = vpop.permute.xlu0 %2918  ;;  %12632 = vmatprep.mubr.msk.f32.mxu1 %vm2921_vm5, %v16873_v63  ;;  %v16922_v63 = vsel %vm3346_vm2, 1.0, %v19594_v56  ;;  %19622 = vst [vmem:[#allocation104_spill] sm:$0xff] %v16941_v17  ;;  %vm3353_vm2 = vcmp.eq.s32.totalorder %v16798_v14, %v3345_v60 }
 0xb42   :  { %12596 = vmatprep.subr.mxu0 %v2919_v22  ;;  %19619 = vst [vmem:[#allocation102_spill] sm:$0xff] %v16922_v63 }
 0xb43   :  { %12597 = vmatpush3.msra.mxu0 %v2919_v22  ;;  %v16919_v22 = vsel %vm2896_vm1, 1.0, %v19594_v56  ;;  %vm3352_vm1 = vcmp.eq.s32.totalorder %v16782_v33, %v3345_v60 }
 0xb44   :  { %12633 = vmatmul.mubr.msk.f32.gmra.mrb[26].mxu1 %vm2921_vm5, %v16889_v9  ;;  %12599 = vmatmul.mubr.msk.f32.vlgmr.msra.gmra.mrb[34].mxu0 %vm2921_vm5, %v16892_v4  ;;  %19618 = vst [vmem:[#allocation101_spill] sm:$0xff] %v16919_v22  ;;  %v16926_v9 = vsel %vm2897_vm8, 1.0, %v19594_v56 }
 0xb45   :  { %12635 = vmatprep.mubr.msk.f32.mxu1 %vm2921_vm5, %v16895_v49  ;;  %12601 = vmatprep.mubr.msk.f32.mxu0 %vm2921_vm5, %v16900_v10  ;;  %19620 = vst [vmem:[#allocation103_spill] sm:$0xff] %v16926_v9  ;;  %v19621_v49 = vmov 0.0|0.0   ;;  %v16946_v10 = vsel %vm2898_vm13, 1.0, %v19594_v56 }
 0xb46   :  { %14067 = vmatprep.subr.bf16.mxu0 %v19621_v49  ;;  %19623 = vst [vmem:[#allocation105_spill] sm:$0xff] %v16946_v10 }
 0xb48   :  { %12636 = vmatmul.mubr.msk.f32.gmra.mrb[28].mxu1 %vm2921_vm5, %v16914_v38  ;;  %12602 = vmatmul.mubr.msk.f32.gmra.mrb[36].mxu0 %vm2921_vm5, %v16919_v22  ;;  %v16949_v38 = vsel %vm3348_vm10, 1.0, %v19594_v56  ;;  %v16972_v22 = vsel %vm3350_vm12, 1.0, %v19594_v56 }
 0xb49   :  { %12640 = vmatprep.mubr.msk.f32.mxu1 %vm2921_vm5, %v16922_v63  ;;  %12604 = vmatprep.mubr.msk.f32.mxu0 %vm2921_vm5, %v16926_v9  ;;  %19624 = vst [vmem:[#allocation106_spill] sm:$0xff] %v16949_v38  ;;  %v16956_v63 = vsel %vm2899_vm4, 1.0, %v19594_v56  ;;  %v16965_v9 = vsel %vm3349_vm7, 1.0, %v19594_v56  ;;  %19628 = vst [vmem:[#allocation110_spill] sm:$0xff] %v16972_v22 }
 0xb4a   :  { %19625 = vst [vmem:[#allocation107_spill] sm:$0xff] %v16956_v63  ;;  %19626 = vst [vmem:[#allocation108_spill] sm:$0xff] %v16965_v9 }
 0xb4c   :  { %12641 = vmatmul.mubr.msk.f32.vlgmr.msra.gmra.mrb[22].mxu1 %vm2921_vm5, %v16941_v17  ;;  %12605 = vmatmul.mubr.msk.f32.gmra.mrb[38].mxu0 %vm2921_vm5, %v16946_v10  ;;  %v16991_v17 = vsel %vm3352_vm1, 1.0, %v19594_v56 }
 0xb4d   :  { %12653 = vmatpush3.msra.mxu1 %v3536_v40  ;;  %12643 = vmatprep.mubr.msk.f32.mxu1 %vm2921_vm5, %v16949_v38  ;;  %v3510_v40 = vadd.s32 4, %v16752_v32  ;;  %v16986_v38 = vsel %vm3351_vm15, 1.0, %v19594_v56  ;;  %19630 = vst [vmem:[#allocation112_spill] sm:$0xff] %v16991_v17 }
 0xb4e   :  { %12666 = vmatprep.subr.mxu1 %v16865_v34  ;;  %12607 = vmatprep.mubr.msk.f32.mxu0 %vm2921_vm5, %v16956_v63  ;;  %19629 = vst [vmem:[#allocation111_spill] sm:$0xff] %v16986_v38 }
 0xb4f   :  { %vm3511_vm8 = vcmp.eq.s32.totalorder %v15395_v15, %v3510_v40  ;;  %vm3512_vm14 = vcmp.eq.s32.totalorder %v19596_v45, %v3510_v40  ;;  %vm3513_vm13 = vcmp.eq.s32.totalorder %v19597_v58, %v3510_v40  ;;  %vm3514_vm10 = vcmp.eq.s32.totalorder %v19599_v50, %v3510_v40 }
 0xb50   :  { %12644 = vmatmul.mubr.msk.f32.gmra.mrb[24].mxu1 %vm2921_vm5, %v16965_v9  ;;  %12608 = vmatmul.mubr.msk.f32.gmra.mrb[40].mxu0 %vm2921_vm5, %v16968_v13  ;;  %v17003_v9 = vsel %vm3511_vm8, 1.0, %v19594_v56  ;;  %v17012_v60 = vsel %vm3512_vm14, 1.0, %v19594_v56  ;;  %vm3515_vm4 = vcmp.eq.s32.totalorder %v16766_v48, %v3510_v40  ;;  %vm3516_vm7 = vcmp.eq.s32.totalorder %v16776_v31, %v3510_v40 }
 0xb51   :  { %12646 = vmatprep.mubr.msk.f32.mxu1 %vm2921_vm5, %v16972_v22  ;;  %12740 = vmatprep.mubr.msk.f32.mxu0 %vm15252_vm6, %v19594_v56  ;;  %v17000_v22 = vsel %vm3353_vm2, 1.0, %v19594_v56  ;;  %19632 = vst [vmem:[#allocation114_spill] sm:$0xff] %v17003_v9  ;;  %19633 = vst [vmem:[#allocation115_spill] sm:$0xff] %v17012_v60  ;;  %vm3517_vm11 = vcmp.eq.s32.totalorder %v16782_v33, %v3510_v40  ;;  %v3675_v13 = vadd.s32 5, %v16752_v32 }
 0xb52   :  { %19631 = vst [vmem:[#allocation113_spill] sm:$0xff] %v17000_v22  ;;  %vm3518_vm12 = vcmp.eq.s32.totalorder %v16798_v14, %v3510_v40 }
 0xb53   :  { %vm3676_vm15 = vcmp.eq.s32.totalorder %v15395_v15, %v3675_v13  ;;  %vm3677_vm1 = vcmp.eq.s32.totalorder %v19596_v45, %v3675_v13  ;;  %vm3678_vm2 = vcmp.eq.s32.totalorder %v19597_v58, %v3675_v13  ;;  %vm3679_vm8 = vcmp.eq.s32.totalorder %v19599_v50, %v3675_v13 }
 0xb54   :  { %12647 = vmatmul.mubr.msk.f32.gmra.mrb[26].mxu1 %vm2921_vm5, %v16986_v38  ;;  %v3866_v38 = vpop.permute.xlu1 %3865  ;;  %v17062_v40 = vsel %vm3677_vm1, 1.0, %v19594_v56  ;;  %vm3680_vm14 = vcmp.eq.s32.totalorder %v16766_v48, %v3675_v13 }
 0xb55   :  { %12649 = vmatprep.mubr.msk.f32.mxu1 %vm2921_vm5, %v16991_v17  ;;  %v17015_v17 = vsel %vm3513_vm13, 1.0, %v19594_v56  ;;  %19641 = vst [vmem:[#allocation123_spill] sm:$0xff] %v17062_v40  ;;  %vm3681_vm13 = vcmp.eq.s32.totalorder %v16776_v31, %v3675_v13 }
 0xb56   :  { %19634 = vst [vmem:[#allocation116_spill] sm:$0xff] %v17015_v17 }
 0xb58   :  { %12650 = vmatmul.mubr.msk.f32.gmra.mrb[28].mxu1 %vm2921_vm5, %v17000_v22  ;;  %v17028_v22 = vsel %vm3515_vm4, 1.0, %v19594_v56  ;;  %vm3683_vm4 = vcmp.eq.s32.totalorder %v16798_v14, %v3675_v13 }
 0xb59   :  { %12654 = vmatprep.mubr.msk.f32.mxu1 %vm2921_vm5, %v17003_v9  ;;  %v17025_v9 = vsel %vm3514_vm10, 1.0, %v19594_v56  ;;  %19636 = vst [vmem:[#allocation118_spill] sm:$0xff] %v17028_v22  ;;  %vm3682_vm10 = vcmp.eq.s32.totalorder %v16782_v33, %v3675_v13 }
 0xb5a   :  { %19635 = vst [vmem:[#allocation117_spill] sm:$0xff] %v17025_v9 }
 0xb5c   :  { %12655 = vmatmul.mubr.msk.f32.vlgmr.msra.gmra.mrb[22].mxu1 %vm2921_vm5, %v17012_v60  ;;  %v3840_v60 = vadd.s32 6, %v16752_v32 }
 0xb5d   :  { %12667 = vmatpush3.msra.mxu1 %v16865_v34  ;;  %12657 = vmatprep.mubr.msk.f32.mxu1 %vm2921_vm5, %v17015_v17  ;;  %v17038_v34 = vsel %vm3516_vm7, 1.0, %v19594_v56  ;;  %v17041_v17 = vsel %vm3517_vm11, 1.0, %v19594_v56 }
 0xb5e   :  { %12680 = vmatprep.subr.mxu1 %v3866_v38  ;;  %19637 = vst [vmem:[#allocation119_spill] sm:$0xff] %v17038_v34  ;;  %19638 = vst [vmem:[#allocation120_spill] sm:$0xff] %v17041_v17  ;;  %vm3841_vm7 = vcmp.eq.s32.totalorder %v15395_v15, %v3840_v60  ;;  %vm3842_vm11 = vcmp.eq.s32.totalorder %v19596_v45, %v3840_v60  ;;  %vm3845_vm1 = vcmp.eq.s32.totalorder %v16766_v48, %v3840_v60 }
 0xb5f   :  { %v17111_v13 = vsel %vm3842_vm11, 1.0, %v19594_v56 }
 0xb60   :  { %12658 = vmatmul.mubr.msk.f32.gmra.mrb[24].mxu1 %vm2921_vm5, %v17025_v9  ;;  %v17050_v9 = vsel %vm3518_vm12, 1.0, %v19594_v56  ;;  %vm3843_vm12 = vcmp.eq.s32.totalorder %v19597_v58, %v3840_v60  ;;  %19649 = vst [vmem:[#allocation131_spill] sm:$0xff] %v17111_v13 }
 0xb61   :  { %12660 = vmatprep.mubr.msk.f32.mxu1 %vm2921_vm5, %v17028_v22  ;;  %19639 = vst [vmem:[#allocation121_spill] sm:$0xff] %v17050_v9  ;;  %v17053_v22 = vsel %vm3676_vm15, 1.0, %v19594_v56  ;;  %vm3844_vm15 = vcmp.eq.s32.totalorder %v19599_v50, %v3840_v60 }
 0xb62   :  { %19640 = vst [vmem:[#allocation122_spill] sm:$0xff] %v17053_v22 }
 0xb64   :  { %12661 = vmatmul.mubr.msk.f32.gmra.mrb[26].mxu1 %vm2921_vm5, %v17038_v34  ;;  %v4031_v34 = vpop.permute.xlu1 %4030 }
 0xb65   :  { %12663 = vmatprep.mubr.msk.f32.mxu1 %vm2921_vm5, %v17041_v17  ;;  %v17065_v17 = vsel %vm3678_vm2, 1.0, %v19594_v56  ;;  %vm3846_vm2 = vcmp.eq.s32.totalorder %v16776_v31, %v3840_v60 }
 0xb66   :  { %19642 = vst [vmem:[#allocation124_spill] sm:$0xff] %v17065_v17 }
 0xb68   :  { %12664 = vmatmul.mubr.msk.f32.gmra.mrb[28].mxu1 %vm2921_vm5, %v17050_v9  ;;  %v17077_v9 = vsel %vm3680_vm14, 1.0, %v19594_v56  ;;  %vm3848_vm14 = vcmp.eq.s32.totalorder %v16798_v14, %v3840_v60 }
 0xb69   :  { %12668 = vmatprep.mubr.msk.f32.mxu1 %vm2921_vm5, %v17053_v22  ;;  %v17074_v22 = vsel %vm3679_vm8, 1.0, %v19594_v56  ;;  %19644 = vst [vmem:[#allocation126_spill] sm:$0xff] %v17077_v9  ;;  %vm3847_vm8 = vcmp.eq.s32.totalorder %v16782_v33, %v3840_v60 }
 0xb6a   :  { %19643 = vst [vmem:[#allocation125_spill] sm:$0xff] %v17074_v22 }
 0xb6c   :  { %12669 = vmatmul.mubr.msk.f32.vlgmr.msra.gmra.mrb[22].mxu1 %vm2921_vm5, %v17062_v40 }
 0xb6d   :  { %12681 = vmatpush3.msra.mxu1 %v3866_v38  ;;  %12671 = vmatprep.mubr.msk.f32.mxu1 %vm2921_vm5, %v17065_v17  ;;  %v17087_v38 = vsel %vm3681_vm13, 1.0, %v19594_v56  ;;  %v17090_v17 = vsel %vm3682_vm10, 1.0, %v19594_v56 }
 0xb6e   :  { %12694 = vmatprep.subr.mxu1 %v4031_v34  ;;  %19645 = vst [vmem:[#allocation127_spill] sm:$0xff] %v17087_v38  ;;  %19646 = vst [vmem:[#allocation128_spill] sm:$0xff] %v17090_v17 }
 0xb70   :  { %12672 = vmatmul.mubr.msk.f32.gmra.mrb[24].mxu1 %vm2921_vm5, %v17074_v22  ;;  %v17099_v22 = vsel %vm3683_vm4, 1.0, %v19594_v56 }
 0xb71   :  { %12674 = vmatprep.mubr.msk.f32.mxu1 %vm2921_vm5, %v17077_v9  ;;  %19647 = vst [vmem:[#allocation129_spill] sm:$0xff] %v17099_v22  ;;  %v17102_v9 = vsel %vm3841_vm7, 1.0, %v19594_v56 }
 0xb72   :  { %19648 = vst [vmem:[#allocation130_spill] sm:$0xff] %v17102_v9 }
 0xb74   :  { %12675 = vmatmul.mubr.msk.f32.gmra.mrb[26].mxu1 %vm2921_vm5, %v17087_v38  ;;  %v4005_v38 = vadd.s32 7, %v16752_v32  ;;  %v17148_v32 = vsel %vm3848_vm14, 1.0, %v19594_v56 }
 0xb75   :  { %12677 = vmatprep.mubr.msk.f32.mxu1 %vm2921_vm5, %v17090_v17  ;;  %v17114_v17 = vsel %vm3843_vm12, 1.0, %v19594_v56  ;;  %19655 = vst [vmem:[#allocation137_spill] sm:$0xff] %v17148_v32 }
 0xb76   :  { %19650 = vst [vmem:[#allocation132_spill] sm:$0xff] %v17114_v17  ;;  %vm4006_vm13 = vcmp.eq.s32.totalorder %v15395_v15, %v4005_v38  ;;  %vm4007_vm10 = vcmp.eq.s32.totalorder %v19596_v45, %v4005_v38  ;;  %vm4008_vm4 = vcmp.eq.s32.totalorder %v19597_v58, %v4005_v38  ;;  %vm4009_vm7 = vcmp.eq.s32.totalorder %v19599_v50, %v4005_v38 }
 0xb77   :  { %v17160_v60 = vsel %vm4007_vm10, 1.0, %v19594_v56  ;;  %vm4010_vm11 = vcmp.eq.s32.totalorder %v16766_v48, %v4005_v38  ;;  %vm4011_vm12 = vcmp.eq.s32.totalorder %v16776_v31, %v4005_v38 }
 0xb78   :  { %12678 = vmatmul.mubr.msk.f32.gmra.mrb[28].mxu1 %vm2921_vm5, %v17099_v22  ;;  %v17123_v22 = vsel %vm3844_vm15, 1.0, %v19594_v56  ;;  %19657 = vst [vmem:[#allocation139_spill] sm:$0xff] %v17160_v60  ;;  %vm4012_vm15 = vcmp.eq.s32.totalorder %v16782_v33, %v4005_v38 }
 0xb79   :  { %12682 = vmatprep.mubr.msk.f32.mxu1 %vm2921_vm5, %v17102_v9  ;;  %19651 = vst [vmem:[#allocation133_spill] sm:$0xff] %v17123_v22  ;;  %v17126_v9 = vsel %vm3845_vm1, 1.0, %v19594_v56  ;;  %vm4013_vm1 = vcmp.eq.s32.totalorder %v16798_v14, %v4005_v38 }
 0xb7a   :  { %19652 = vst [vmem:[#allocation134_spill] sm:$0xff] %v17126_v9 }
 0xb7c   :  { %12683 = vmatmul.mubr.msk.f32.vlgmr.msra.gmra.mrb[22].mxu1 %vm2921_vm5, %v17111_v13 }
 0xb7d   :  { %12695 = vmatpush3.msra.mxu1 %v4031_v34  ;;  %12685 = vmatprep.mubr.msk.f32.mxu1 %vm2921_vm5, %v17114_v17  ;;  %v17136_v34 = vsel %vm3846_vm2, 1.0, %v19594_v56  ;;  %v17139_v17 = vsel %vm3847_vm8, 1.0, %v19594_v56 }
 0xb7e   :  { %19653 = vst [vmem:[#allocation135_spill] sm:$0xff] %v17136_v34  ;;  %19654 = vst [vmem:[#allocation136_spill] sm:$0xff] %v17139_v17 }
 0xb80   :  { %12686 = vmatmul.mubr.msk.f32.gmra.mrb[24].mxu1 %vm2921_vm5, %v17123_v22 }
 0xb81   :  { %12688 = vmatprep.mubr.msk.f32.mxu1 %vm2921_vm5, %v17126_v9  ;;  %v17151_v9 = vsel %vm4006_vm13, 1.0, %v19594_v56 }
 0xb82   :  { %19656 = vst [vmem:[#allocation138_spill] sm:$0xff] %v17151_v9 }
 0xb84   :  { %12689 = vmatmul.mubr.msk.f32.gmra.mrb[26].mxu1 %vm2921_vm5, %v17136_v34  ;;  %v17195_v34 = vsel %vm4013_vm1, 1.0, %v19594_v56 }
 0xb85   :  { %12691 = vmatprep.mubr.msk.f32.mxu1 %vm2921_vm5, %v17139_v17  ;;  %v17163_v17 = vsel %vm4008_vm4, 1.0, %v19594_v56  ;;  %19663 = vst [vmem:[#allocation145_spill] sm:$0xff] %v17195_v34 }
 0xb86   :  { %19658 = vst [vmem:[#allocation140_spill] sm:$0xff] %v17163_v17 }
 0xb88   :  { %12692 = vmatmul.mubr.msk.f32.gmra.mrb[28].mxu1 %vm2921_vm5, %v17148_v32  ;;  %v17172_v32 = vsel %vm4009_vm7, 1.0, %v19594_v56 }
 0xb89   :  { %12696 = vmatprep.mubr.msk.f32.mxu1 %vm2921_vm5, %v17151_v9  ;;  %19659 = vst [vmem:[#allocation141_spill] sm:$0xff] %v17172_v32  ;;  %v17175_v9 = vsel %vm4010_vm11, 1.0, %v19594_v56 }
 0xb8a   :  { %19660 = vst [vmem:[#allocation142_spill] sm:$0xff] %v17175_v9 }
 0xb8c   :  { %12697 = vmatmul.mubr.msk.f32.vlgmr.msra.gmra.mrb[22].mxu1 %vm2921_vm5, %v17160_v60  ;;  %v17184_v60 = vsel %vm4011_vm12, 1.0, %v19594_v56 }
 0xb8d   :  { %12699 = vmatprep.mubr.msk.f32.mxu1 %vm2921_vm5, %v17163_v17  ;;  %19661 = vst [vmem:[#allocation143_spill] sm:$0xff] %v17184_v60  ;;  %v17187_v17 = vsel %vm4012_vm15, 1.0, %v19594_v56 }
 0xb8e   :  { %19662 = vst [vmem:[#allocation144_spill] sm:$0xff] %v17187_v17 }
 0xb90   :  { %12700 = vmatmul.mubr.msk.f32.gmra.mrb[24].mxu1 %vm2921_vm5, %v17172_v32 }
 0xb91   :  { %12702 = vmatprep.mubr.msk.f32.mxu1 %vm2921_vm5, %v17175_v9 }
 0xb94   :  { %12703 = vmatmul.mubr.msk.f32.gmra.mrb[26].mxu1 %vm2921_vm5, %v17184_v60 }
 0xb95   :  { %12705 = vmatprep.mubr.msk.f32.mxu1 %vm2921_vm5, %v17187_v17 }
 0xb98   :  { %12706 = vmatmul.mubr.msk.f32.gmra.mrb[28].mxu1 %vm2921_vm5, %v17195_v34 }
 0xc17   :  { %v12600_v9 = vpop.f32.mrb[34].mxu0 }
 0xc18   :  { %v3012_v32 = vpop.f32.mrb[35].mxu0 }
 0xc1b   :  { %v12603_v22 = vpop.f32.mrb[36].mxu0 }
 0xc1c   :  { %v3022_v13 = vpop.f32.mrb[37].mxu0 }
 0xc1f   :  { %v12606_v40 = vpop.f32.mrb[38].mxu0 }
 0xc20   :  { %v3032_v63 = vpop.f32.mrb[39].mxu0 }
 0xc23   :  { %v12609_v10 = vpop.f32.mrb[40].mxu0 }
 0xc24   :  { %v3042_v38 = vpop.f32.mrb[41].mxu0 }
 0xc5f   :  { %v12698_v4 = vpop.f32.mrb[22].mxu1 }
 0xc60   :  { %v17199_v39 = vadd.f32 %v12698_v4, %v12600_v9  ;;  %v4123_v60 = vpop.f32.mrb[23].mxu1 }
 0xc61   :  { %v17201_v30 = vadd.f32 %v4123_v60, %v3012_v32 }
 0xc62   :  { %19664 = vst [vmem:[#allocation146_spill] sm:$0xff] %v17199_v39  ;;  %v4257_v17 = vmul.f32 %v17199_v39, %v17199_v39 }
 0xc63   :  { %19665 = vst [vmem:[#allocation147_spill] sm:$0xff] %v17201_v30  ;;  %v12701_v1 = vpop.f32.mrb[24].mxu1  ;;  %v4256_v34 = vmul.f32 %v17201_v30, %v17201_v30 }
 0xc64   :  { %v17207_v47 = vadd.f32 %v12701_v1, %v12603_v22  ;;  %v4133_v26 = vpop.f32.mrb[25].mxu1  ;;  %v4267_v3 = vsel %vm2921_vm5, %v4257_v17, 0.0 }
 0xc65   :  { %v17210_v61 = vadd.f32 %v4133_v26, %v3022_v13  ;;  %4268 = vadd.xlane.f32.xlu1 %v4267_v3  ;;  %v4264_v4 = vsel %vm2921_vm5, %v4256_v34, 0.0 }
 0xc66   :  { %19666 = vst [vmem:[#allocation148_spill] sm:$0xff] %v17207_v47  ;;  %4265 = vadd.xlane.f32.xlu0 %v4264_v4  ;;  %v4259_v17 = vmul.f32 %v17207_v47, %v17207_v47 }
 0xc67   :  { %19667 = vst [vmem:[#allocation149_spill] sm:$0xff] %v17210_v61  ;;  %v12704_v9 = vpop.f32.mrb[26].mxu1  ;;  %v4258_v32 = vmul.f32 %v17210_v61, %v17210_v61 }
 0xc68   :  { %v17215_v60 = vadd.f32 %v12704_v9, %v12606_v40  ;;  %v4143_v36 = vpop.f32.mrb[27].mxu1  ;;  %v4273_v40 = vsel %vm2921_vm5, %v4259_v17, 0.0 }
 0xc69   :  { %v17217_v24 = vadd.f32 %v4143_v36, %v3032_v63  ;;  %v4270_v1 = vsel %vm2921_vm5, %v4258_v32, 0.0 }
 0xc6a   :  { %19668 = vst [vmem:[#allocation150_spill] sm:$0xff] %v17215_v60  ;;  %4271 = vadd.xlane.f32.xlu0 %v4270_v1  ;;  %v4261_v63 = vmul.f32 %v17215_v60, %v17215_v60 }
 0xc6b   :  { %19669 = vst [vmem:[#allocation151_spill] sm:$0xff] %v17217_v24  ;;  %v12707_v26 = vpop.f32.mrb[28].mxu1  ;;  %v4260_v3 = vmul.f32 %v17217_v24, %v17217_v24 }
 0xc6c   :  { %v17224_v22 = vadd.f32 %v12707_v26, %v12609_v10  ;;  %v4153_v13 = vpop.f32.mrb[29].mxu1  ;;  %v4279_v9 = vsel %vm2921_vm5, %v4261_v63, 0.0 }
 0xc6d   :  { %v17226_v34 = vadd.f32 %v4153_v13, %v3042_v38  ;;  %v4276_v36 = vsel %vm2921_vm5, %v4260_v3, 0.0 }
 0xc6e   :  { %19670 = vst [vmem:[#allocation152_spill] sm:$0xff] %v17224_v22  ;;  %4274 = vadd.xlane.f32.xlu0 %v4273_v40  ;;  %4277 = vadd.xlane.f32.xlu1 %v4276_v36  ;;  %v4263_v38 = vmul.f32 %v17224_v22, %v17224_v22 }
 0xc6f   :  { %19671 = vst [vmem:[#allocation153_spill] sm:$0xff] %v17226_v34  ;;  %v4262_v4 = vmul.f32 %v17226_v34, %v17226_v34 }
 0xc70   :  { %v4285_v32 = vsel %vm2921_vm5, %v4263_v38, 0.0 }
 0xc71   :  { %v4282_v10 = vsel %vm2921_vm5, %v4262_v4, 0.0 }
 0xc72   :  { %4280 = vadd.xlane.f32.xlu0 %v4279_v9  ;;  %4283 = vadd.xlane.f32.xlu1 %v4282_v10 }
 0xc76   :  { %4286 = vadd.xlane.f32.xlu0 %v4285_v32 }
 0xcf2   :  { %v4269_v1 = vpop.xlane.xlu1 %4268 }
 0xcf3   :  { %15123 = vrsqrt.f32 %v4269_v1  ;;  %v4266_v17 = vpop.xlane.xlu0 %4265  ;;  %vm4297_vm2 = vcmp.eq.f32.partialorder %v4269_v1, inf  ;;  %v4300_v4 = vand.u32 2147483648, %v4269_v1  ;;  %vm4299_vm8 = vcmp.eq.f32.partialorder %v4269_v1, 0.0 }
 0xcf4   :  { %15125 = vrsqrt.f32 %v4266_v17  ;;  %vm4290_vm14 = vcmp.eq.f32.partialorder %v4266_v17, inf  ;;  %v4293_v5 = vand.u32 2147483648, %v4266_v17  ;;  %vm4292_vm13 = vcmp.eq.f32.partialorder %v4266_v17, 0.0 }
 0xcf7   :  { %v4272_v26 = vpop.xlane.xlu0 %4271 }
 0xcf8   :  { %15127 = vrsqrt.f32 %v4272_v26  ;;  %vm4304_vm10 = vcmp.eq.f32.partialorder %v4272_v26, inf  ;;  %vm4306_vm4 = vcmp.eq.f32.partialorder %v4272_v26, 0.0 }
 0xcfb   :  { %v4275_v3 = vpop.xlane.xlu0 %4274  ;;  %v4278_v13 = vpop.xlane.xlu1 %4277 }
 0xcfc   :  { %15129 = vrsqrt.f32 %v4275_v3  ;;  %vm4311_vm7 = vcmp.eq.f32.partialorder %v4275_v3, inf  ;;  %vm4313_vm11 = vcmp.eq.f32.partialorder %v4275_v3, 0.0  ;;  %vm4318_vm12 = vcmp.eq.f32.partialorder %v4278_v13, inf }
 0xcfd   :  { %v15124_v40 = vpop.eup %15123  ;;  %15131 = vrsqrt.f32 %v4278_v13  ;;  %vm4320_vm15 = vcmp.eq.f32.partialorder %v4278_v13, 0.0 }
 0xcfe   :  { %v15126_v36 = vpop.eup %15125  ;;  %v4296_v63 = vmul.f32 %v15124_v40, %v4269_v1 }
 0xcff   :  { %v4289_v9 = vmul.f32 %v15126_v36, %v4266_v17  ;;  %v4281_v10 = vpop.xlane.xlu0 %4280  ;;  %v4284_v12 = vpop.xlane.xlu1 %4283  ;;  %v4307_v36 = vand.u32 2147483648, %v4272_v26 }
 0xd00   :  { %v4298_v38 = vsel %vm4297_vm2, %v4269_v1, %v4296_v63  ;;  %15133 = vrsqrt.f32 %v4281_v10  ;;  %vm4325_vm1 = vcmp.eq.f32.partialorder %v4281_v10, inf  ;;  %vm4327_vm2 = vcmp.eq.f32.partialorder %v4281_v10, 0.0 }
 0xd01   :  { %v4301_v32 = vsel %vm4299_vm8, %v4300_v4, %v4298_v38  ;;  %v4291_v18 = vsel %vm4290_vm14, %v4266_v17, %v4289_v9  ;;  %15135 = vrsqrt.f32 %v4284_v12  ;;  %vm4332_vm8 = vcmp.eq.f32.partialorder %v4284_v12, inf }
 0xd02   :  { %v15128_v42 = vpop.eup %15127  ;;  %v4345_v25 = vmax.f32 %v4301_v32, 1e-12  ;;  %v4294_v40 = vsel %vm4292_vm13, %v4293_v5, %v4291_v18  ;;  %vm4334_vm14 = vcmp.eq.f32.partialorder %v4284_v12, 0.0 }
 0xd03   :  { %v4303_v21 = vmul.f32 %v15128_v42, %v4272_v26  ;;  %v17239_v53 = vpop.xlane.xlu0 %4286  ;;  %v4344_v1 = vmax.f32 %v4294_v40, 1e-12  ;;  %v4314_v42 = vand.u32 2147483648, %v4275_v3 }
 0xd04   :  { %15137 = vrcp.f32 %v4345_v25  ;;  %v4321_v25 = vand.u32 2147483648, %v4278_v13  ;;  %vm4339_vm13 = vcmp.eq.f32.partialorder %v17239_v53, inf }
 0xd05   :  { %v4305_v55 = vsel %vm4304_vm10, %v4272_v26, %v4303_v21  ;;  %15139 = vrsqrt.f32 %v17239_v53  ;;  %vm4341_vm10 = vcmp.eq.f32.partialorder %v17239_v53, 0.0 }
 0xd06   :  { %v15130_v63 = vpop.eup %15129  ;;  %v4308_v4 = vsel %vm4306_vm4, %v4307_v36, %v4305_v55  ;;  %15141 = vrcp.f32 %v4344_v1  ;;  %v4328_v1 = vand.u32 2147483648, %v4281_v10  ;;  %vm4448_vm4 = vcmask 1046528  }
 0xd07   :  { %v15132_v9 = vpop.eup %15131  ;;  %v4346_v38 = vmax.f32 %v4308_v4, 1e-12  ;;  %v4310_v37 = vmul.f32 %v15130_v63, %v4275_v3 }
 0xd08   :  { %v4317_v17 = vmul.f32 %v15132_v9, %v4278_v13  ;;  %v4335_v9 = vand.u32 2147483648, %v4284_v12 }
 0xd09   :  { %15143 = vrcp.f32 %v4346_v38  ;;  %v4312_v5 = vsel %vm4311_vm7, %v4275_v3, %v4310_v37  ;;  %vm19672_vm7 = vcmask 523264  }
 0xd0a   :  { %v15134_v18 = vpop.eup %15133  ;;  %v4315_v21 = vsel %vm4313_vm11, %v4314_v42, %v4312_v5  ;;  %v4319_v26 = vsel %vm4318_vm12, %v4278_v13, %v4317_v17  ;;  %vm19673_vm11 = vmmov %vm19672_vm7 }
 0xd0b   :  { %v15136_v32 = vpop.eup %15135  ;;  %v4347_v40 = vmax.f32 %v4315_v21, 1e-12  ;;  %v4322_v57 = vsel %vm4320_vm15, %v4321_v25, %v4319_v26  ;;  %v4324_v55 = vmul.f32 %v15134_v18, %v4281_v10 }
 0xd0c   :  { %v4348_v36 = vmax.f32 %v4322_v57, 1e-12  ;;  %v4331_v63 = vmul.f32 %v15136_v32, %v4284_v12 }
 0xd0d   :  { %15145 = vrcp.f32 %v4347_v40  ;;  %v4326_v4 = vsel %vm4325_vm1, %v4281_v10, %v4324_v55  ;;  %v4342_v10 = vand.u32 2147483648, %v17239_v53 }
 0xd0e   :  { %v15138_v37 = vpop.eup %15137  ;;  %15147 = vrcp.f32 %v4348_v36  ;;  %v4329_v3 = vsel %vm4327_vm2, %v4328_v1, %v4326_v4  ;;  %v4333_v38 = vsel %vm4332_vm8, %v4284_v12, %v4331_v63  ;;  %vm19678_vm8 = vmmov %vm19672_vm7 }
 0xd0f   :  { %v15140_v42 = vpop.eup %15139  ;;  %v4349_v13 = vmax.f32 %v4329_v3, 1e-12  ;;  %v4336_v17 = vsel %vm4334_vm14, %v4335_v9, %v4333_v38  ;;  %v4355_v5 = vmul.f32 %v15138_v37, %v17199_v39  ;;  %v4408_v38 = vld [vmem:[%s19194_s9] sm:$0xff]  ;;  %vm19679_vm14 = vmmov %vm19672_vm7 }
 0xd10   :  { %v4350_v25 = vmax.f32 %v4336_v17, 1e-12  ;;  %v4338_v57 = vmul.f32 %v15140_v42, %v17239_v53  ;;  %v15142_v18 = vpop.eup %15141  ;;  %v4409_v42 = vld [vmem:[%s19194_s9 + $0x8] sm:$0xff] }
 0xd11   :  { %15149 = vrcp.f32 %v4349_v13  ;;  %4369 = vst.msk [vmem:[%s19205_s20 + $0x8] sm:$0xff] %vm2921_vm5, %v4355_v5  ;;  %v4353_v21 = vmul.f32 %v15142_v18, %v17201_v30  ;;  %v4410_v13 = vld [vmem:[%s19194_s9 + $0x10] sm:$0xff] }
 0xd12   :  { %15151 = vrcp.f32 %v4350_v25  ;;  %v4340_v12 = vsel %vm4339_vm13, %v17239_v53, %v4338_v57  ;;  %v4411_v25 = vld [vmem:[%s19194_s9 + $0x18] sm:$0xff]  ;;  %vm19680_vm13 = vmmov %vm19672_vm7 }
 0xd13   :  { %v15144_v26 = vpop.eup %15143  ;;  %v4343_v32 = vsel %vm4341_vm10, %v4342_v10, %v4340_v12  ;;  %4368 = vst.msk [vmem:[%s19205_s20] sm:$0xff] %vm2921_vm5, %v4353_v21  ;;  %4376 = vxpose.xlu1.b32.start [1/8] (short) (narrow) %v4353_v21, 8  ;;  %v14071_v18 = vpack.c.bf16 %v4411_v25, %v4410_v13  ;;  %v4412_v10 = vld [vmem:[%s19194_s9 + $0x20] sm:$0xff]  ;;  %v4413_v12 = vld [vmem:[%s19194_s9 + $0x28] sm:$0xff]  ;;  %vm19486_vm10 = vcmask 130048  }
 0xd14   :  { %v4351_v40 = vmax.f32 %v4343_v32, 1e-12  ;;  %v4357_v55 = vmul.f32 %v15144_v26, %v17210_v61  ;;  %v14074_v21 = vpack.c.bf16 %v4413_v12, %v4412_v10  ;;  %v4414_v26 = vld [vmem:[%s19194_s9 + $0x30] sm:$0xff]  ;;  %v4415_v32 = vld [vmem:[%s19194_s9 + $0x38] sm:$0xff] }
 0xd16   :  { %15153 = vrcp.f32 %v4351_v40  ;;  %4370 = vst.msk [vmem:[%s19205_s20 + $0x10] sm:$0xff] %vm2921_vm5, %v4357_v55  ;;  %v14077_v40 = vpack.c.bf16 %v4415_v32, %v4414_v26  ;;  %v4425_v26 = vld [vmem:[%s19195_s10 + $0x8] sm:$0xff] }
 0xd17   :  { %v15146_v53 = vpop.eup %15145  ;;  %4377 = vxpose.xlu1.b32.cont [2/8] (short) (narrow) %v4355_v5, 8  ;;  %v14068_v5 = vpack.c.bf16 %v4409_v42, %v4408_v38  ;;  %v4422_v38 = vld [vmem:[%s19194_s9 + $0x70] sm:$0xff]  ;;  %v4423_v42 = vld [vmem:[%s19194_s9 + $0x78] sm:$0xff] }
 0xd18   :  { %v15148_v36 = vpop.eup %15147  ;;  %v4359_v1 = vmul.f32 %v15146_v53, %v17207_v47  ;;  %v4417_v53 = vld [vmem:[%s19194_s9 + $0x48] sm:$0xff]  ;;  %v14089_v13 = vpack.c.bf16 %v4423_v42, %v4422_v38  ;;  %v4432_v42 = vld [vmem:[%s19195_s10 + $0x40] sm:$0xff] }
 0xd19   :  { %v4361_v63 = vmul.f32 %v15148_v36, %v17217_v24  ;;  %14069 = vmatpush3.bf16.msra.mxu0 %v14068_v5 }
 0xd1a   :  { %4371 = vst.msk [vmem:[%s19205_s20 + $0x18] sm:$0xff] %vm2921_vm5, %v4359_v1  ;;  %14070 = vmatprep.subr.bf16.mxu0 %v19621_v49 }
 0xd1b   :  { %v15150_v4 = vpop.eup %15149  ;;  %4372 = vst.msk [vmem:[%s19205_s20 + $0x20] sm:$0xff] %vm2921_vm5, %v4361_v63  ;;  %4378 = vxpose.xlu1.b32.cont [3/8] (short) (narrow) %v4357_v55, 8  ;;  %v4416_v55 = vld [vmem:[%s19194_s9 + $0x40] sm:$0xff] }
 0xd1c   :  { %v15152_v9 = vpop.eup %15151  ;;  %v4363_v37 = vmul.f32 %v15150_v4, %v17215_v60  ;;  %v14080_v36 = vpack.c.bf16 %v4417_v53, %v4416_v55  ;;  %v4426_v55 = vld [vmem:[%s19195_s10 + $0x10] sm:$0xff]  ;;  %v4427_v53 = vld [vmem:[%s19195_s10 + $0x18] sm:$0xff] }
 0xd1d   :  { %v4365_v3 = vmul.f32 %v15152_v9, %v17226_v34  ;;  %14072 = vmatpush3.bf16.msra.mxu0 %v14071_v18  ;;  %v4420_v9 = vld [vmem:[%s19194_s9 + $0x60] sm:$0xff] }
 0xd1e   :  { %4373 = vst.msk [vmem:[%s19205_s20 + $0x28] sm:$0xff] %vm2921_vm5, %v4363_v37  ;;  %14073 = vmatprep.subr.bf16.mxu0 %v19621_v49 }
 0xd1f   :  { %4374 = vst.msk [vmem:[%s19205_s20 + $0x30] sm:$0xff] %vm2921_vm5, %v4365_v3  ;;  %4379 = vxpose.xlu1.b32.cont [4/8] (short) (narrow) %v4359_v1, 8  ;;  %v4418_v1 = vld [vmem:[%s19194_s9 + $0x50] sm:$0xff] }
 0xd20   :  { %v15154_v17 = vpop.eup %15153 }
 0xd21   :  { %v4367_v57 = vmul.f32 %v15154_v17, %v17224_v22  ;;  %14075 = vmatpush3.bf16.msra.mxu0 %v14074_v21  ;;  %v4424_v21 = vld [vmem:[%s19195_s10] sm:$0xff] }
 0xd22   :  { %14076 = vmatprep.subr.bf16.mxu0 %v19621_v49  ;;  %v14092_v32 = vpack.c.bf16 %v4425_v26, %v4424_v21 }
 0xd23   :  { %4375 = vst.msk [vmem:[%s19205_s20 + $0x38] sm:$0xff] %vm2921_vm5, %v4367_v57  ;;  %4380 = vxpose.xlu1.b32.cont [5/8] (short) (narrow) %v4361_v63, 8  ;;  %v4419_v63 = vld [vmem:[%s19194_s9 + $0x58] sm:$0xff] }
 0xd24   :  { %v14083_v4 = vpack.c.bf16 %v4419_v63, %v4418_v1  ;;  %v14095_v1 = vpack.c.bf16 %v4427_v53, %v4426_v55  ;;  %v4428_v63 = vld [vmem:[%s19195_s10 + $0x20] sm:$0xff] }
 0xd25   :  { %14078 = vmatpush3.bf16.msra.mxu0 %v14077_v40 }
 0xd26   :  { %14079 = vmatprep.subr.bf16.mxu0 %v19621_v49 }
 0xd27   :  { %4381 = vxpose.xlu1.b32.cont [6/8] (short) (narrow) %v4363_v37, 8  ;;  %v4421_v37 = vld [vmem:[%s19194_s9 + $0x68] sm:$0xff] }
 0xd29   :  { %14081 = vmatpush3.bf16.msra.mxu0 %v14080_v36 }
 0xd2a   :  { %14082 = vmatprep.subr.bf16.mxu0 %v19621_v49 }
 0xd2b   :  { %4382 = vxpose.xlu1.b32.cont [7/8] (short) (narrow) %v4365_v3, 8  ;;  %v14086_v3 = vpack.c.bf16 %v4421_v37, %v4420_v9  ;;  %v4430_v37 = vld [vmem:[%s19195_s10 + $0x30] sm:$0xff] }
 0xd2d   :  { %14084 = vmatpush3.bf16.msra.mxu0 %v14083_v4  ;;  %v4429_v4 = vld [vmem:[%s19195_s10 + $0x28] sm:$0xff] }
 0xd2e   :  { %14085 = vmatprep.subr.bf16.mxu0 %v19621_v49  ;;  %v14098_v9 = vpack.c.bf16 %v4429_v4, %v4428_v63 }
 0xd2f   :  { %4383 = vxpose.xlu1.b32.end [8/8] (short) (narrow) %v4367_v57, 8 }
 0xd31   :  { %14087 = vmatpush3.bf16.msra.mxu0 %v14086_v3  ;;  %v4431_v3 = vld [vmem:[%s19195_s10 + $0x38] sm:$0xff] }
 0xd32   :  { %14088 = vmatprep.subr.bf16.mxu0 %v19621_v49  ;;  %v14101_v38 = vpack.c.bf16 %v4431_v3, %v4430_v37 }
 0xd35   :  { %14090 = vmatpush3.bf16.msra.mxu0 %v14089_v13  ;;  %v4433_v13 = vld [vmem:[%s19195_s10 + $0x48] sm:$0xff] }
 0xd36   :  { %14091 = vmatprep.subr.bf16.mxu0 %v19621_v49 }
 0xd93   :  { %v4392_v17 = vpop.trf.xlu1 }
 0xd94   :  { %v4442_v5 = vrot.slane %v4392_v17, 7  ;;  %v14104_v17 = vpack.c.bf16 %v4433_v13, %v4432_v42 }
 0xd96   :  { %v4444_v25 = vsel %vm212_vm0, 0.0, %v4442_v5  ;;  %v4445_v57 = vsel %vm212_vm0, %v4442_v5, 0.0  ;;  %v4434_v5 = vld [vmem:[%s19195_s10 + $0x50] sm:$0xff] }
 0xd97   :  { %v4449_v18 = vrot.slane %v4444_v25, 1  ;;  %v4450_v10 = vrot.slane %v4445_v57, 1 }
 0xd99   :  { %v4451_v12 = vsel %vm4448_vm4, %v4449_v18, %v4450_v10 }
 0xd9a   :  { %4452 = vrot.lane.b32.xlu0 %v4451_v12, %s19524_s1  ;;  %v4437_v12 = vld [vmem:[%s19195_s10 + $0x68] sm:$0xff] }
 0xd9e   :  { %4456 = vrot.lane.b32.xlu0 %v4450_v10, %s19524_s1  ;;  %v4436_v10 = vld [vmem:[%s19195_s10 + $0x60] sm:$0xff] }
 0xd9f   :  { %v14110_v26 = vpack.c.bf16 %v4437_v12, %v4436_v10  ;;  %v4808_v12 = vld [vmem:[%s19198_s13] sm:$0xff] }
 0xe0c   :  { %v4453_v40 = vpop.permute.xlu0 %4452 }
 0xe0d   :  { %v4455_v36 = vsel %vm19672_vm7, %v4444_v25, %v4453_v40  ;;  %v4435_v25 = vld [vmem:[%s19195_s10 + $0x58] sm:$0xff] }
 0xe0e   :  { %12741 = vmatmul.mubr.f32.vlgmr.msra.gmra.mrb[42].mxu0 %v4455_v36  ;;  %v14107_v18 = vpack.c.bf16 %v4435_v25, %v4434_v5  ;;  %v4439_v40 = vld [vmem:[%s19195_s10 + $0x78] sm:$0xff]  ;;  %v4532_v63 = vrot.slane %v4455_v36, 1  ;;  %v4792_v5 = vld [vmem:[%s19197_s12] sm:$0xff]  ;;  %v4793_v25 = vld [vmem:[%s19197_s12 + $0x8] sm:$0xff] }
 0xe0f   :  { %14093 = vmatpush3.bf16.msra.mxu0 %v14092_v32  ;;  %12775 = vmatprep.mubr.msk.f32.mxu0 %vm15252_vm6, %v19594_v56  ;;  %v4438_v32 = vld [vmem:[%s19195_s10 + $0x70] sm:$0xff]  ;;  %v14115_v10 = vpack.c.bf16 %v4793_v25, %v4792_v5 }
 0xe10   :  { %14094 = vmatprep.subr.bf16.mxu0 %v19621_v49  ;;  %v4457_v21 = vpop.permute.xlu0 %4456  ;;  %v14113_v53 = vpack.c.bf16 %v4439_v40, %v4438_v32  ;;  %v4796_v40 = vld [vmem:[%s19197_s12 + $0x20] sm:$0xff]  ;;  %v4814_v25 = vld [vmem:[%s19198_s13 + $0x30] sm:$0xff] }
 0xe11   :  { %v4459_v55 = vsel %vm19673_vm11, %v4445_v57, %v4457_v21  ;;  %v4809_v21 = vld [vmem:[%s19198_s13 + $0x8] sm:$0xff] }
 0xe12   :  { %v14147_v32 = vpack.c.bf16 %v4809_v21, %v4808_v12  ;;  %v4801_v12 = vld [vmem:[%s19197_s12 + $0x48] sm:$0xff] }
 0xe13   :  { %14096 = vmatpush3.bf16.msra.mxu0 %v14095_v1  ;;  %v4533_v1 = vrot.slane %v4459_v55, 1  ;;  %v4797_v55 = vld [vmem:[%s19197_s12 + $0x28] sm:$0xff] }
 0xe14   :  { %14097 = vmatprep.subr.bf16.mxu0 %v19621_v49  ;;  %14148 = vmatprep.subr.bf16.mxu1 %v14147_v32 }
 0xe15   :  { %v4534_v4 = vsel %vm4448_vm4, %v4532_v63, %v4533_v1  ;;  %v4811_v1 = vld [vmem:[%s19198_s13 + $0x18] sm:$0xff]  ;;  %14150 = vmatpush3.bf16.msra.mxu1 %v14147_v32  ;;  %v4816_v32 = vld [vmem:[%s19198_s13 + $0x40] sm:$0xff] }
 0xe17   :  { %14099 = vmatpush3.bf16.msra.mxu0 %v14098_v9  ;;  %v17409_v9 = vmul.u32 2, %v15402_v20 }
 0xe18   :  { %14100 = vmatprep.subr.bf16.mxu0 %v19621_v49 }
 0xe19   :  { %v17412_v37 = vadd.s32 1, %v17409_v9  ;;  %vm4607_vm1 = vcmp.eq.s32.totalorder %v15395_v15, %v17409_v9  ;;  %vm4608_vm2 = vcmp.eq.s32.totalorder %v19596_v45, %v17409_v9 }
 0xe1b   :  { %14102 = vmatpush3.bf16.msra.mxu0 %v14101_v38  ;;  %vm4614_vm12 = vcmp.eq.s32.totalorder %v15395_v15, %v17412_v37  ;;  %vm4615_vm15 = vcmp.eq.s32.totalorder %v19596_v45, %v17412_v37  ;;  %v17438_v15 = vsel %vm4608_vm2, 1.0, %v19594_v56  ;;  %v4795_v45 = vld [vmem:[%s19197_s12 + $0x18] sm:$0xff]  ;;  %vm5020_vm7 = vcmp.eq.s32.totalorder %v19597_v58, %v17412_v37  ;;  %vm19688_vm2 = vmmov %vm19678_vm8 }
 0xe1c   :  { %14103 = vmatprep.subr.bf16.mxu0 %v19621_v49  ;;  %v17417_v57 = vsel %vm4614_vm12, 1.0, %v19594_v56  ;;  %v17426_v42 = vsel %vm4615_vm15, 1.0, %v19594_v56  ;;  %19677 = vst [vmem:[#allocation157_spill] sm:$0xff] %v17438_v15  ;;  %vm5021_vm11 = vcmp.eq.s32.totalorder %v19599_v50, %v17412_v37  ;;  %vm5014_vm12 = vcmp.eq.s32.totalorder %v19597_v58, %v17409_v9 }
 0xe1d   :  { %19674 = vst [vmem:[#allocation154_spill] sm:$0xff] %v17417_v57  ;;  %19675 = vst [vmem:[#allocation155_spill] sm:$0xff] %v17426_v42  ;;  %vm5015_vm15 = vcmp.eq.s32.totalorder %v19599_v50, %v17409_v9  ;;  %v5232_v50 = vld [vmem:[%s19200_s15 + $0x8] sm:$0xff] }
 0xe1e   :  { %v17585_v58 = vsel %vm5015_vm15, 1.0, %v19594_v56  ;;  %vm19695_vm15 = vmmov %vm19688_vm2 }
 0xe1f   :  { %14105 = vmatpush3.bf16.msra.mxu0 %v14104_v17  ;;  %v17429_v17 = vsel %vm4607_vm1, 1.0, %v19594_v56  ;;  %19684 = vst [vmem:[#allocation161_spill] sm:$0xff] %v17585_v58  ;;  %vm19687_vm1 = vcmask 261120  }
 0xe20   :  { %14106 = vmatprep.subr.bf16.mxu0 %v19621_v49  ;;  %19676 = vst [vmem:[#allocation156_spill] sm:$0xff] %v17429_v17 }
 0xe23   :  { %14108 = vmatpush3.bf16.msra.mxu0 %v14107_v18  ;;  %v4794_v18 = vld [vmem:[%s19197_s12 + $0x10] sm:$0xff] }
 0xe24   :  { %14109 = vmatprep.subr.bf16.mxu0 %v19621_v49 }
 0xe27   :  { %14111 = vmatpush3.bf16.msra.mxu0 %v14110_v26  ;;  %v14119_v26 = vpack.c.bf16 %v4795_v45, %v4794_v18  ;;  %v4815_v18 = vld [vmem:[%s19198_s13 + $0x38] sm:$0xff]  ;;  %v4800_v45 = vld [vmem:[%s19197_s12 + $0x40] sm:$0xff] }
 0xe28   :  { %14112 = vmatprep.subr.bf16.mxu0 %v19621_v49  ;;  %v14159_v21 = vpack.c.bf16 %v4815_v18, %v4814_v25  ;;  %v10699_v25 = vld [vmem:[%s19196_s11] ss:$0 sm:$0xff]  ;;  %v4806_v18 = vld [vmem:[%s19197_s12 + $0x70] sm:$0xff] }
 0xe2b   :  { %14114 = vmatpush3.bf16.msra.mxu0 %v14113_v53  ;;  %v4810_v53 = vld [vmem:[%s19198_s13 + $0x10] sm:$0xff] }
 0xe2c   :  { %v14151_v63 = vpack.c.bf16 %v4811_v1, %v4810_v53  ;;  %v4803_v53 = vld [vmem:[%s19197_s12 + $0x58] sm:$0xff] }
 0xe2e   :  { %12776 = vmatmul.mubr.f32.vlgmr.msra.gmra.mrb[44].mxu0 %v4534_v4  ;;  %v4812_v4 = vld [vmem:[%s19198_s13 + $0x20] sm:$0xff]  ;;  %14152 = vmatprep.subr.bf16.mxu1 %v14151_v63 }
 0xe2f   :  { %12780 = vmatprep.mubr.msk.f32.mxu0 %vm2921_vm5, %v17417_v57  ;;  %14154 = vmatpush3.bf16.msra.mxu1 %v14151_v63  ;;  %v4818_v63 = vld [vmem:[%s19198_s13 + $0x50] sm:$0xff] }
 0xee1   :  { %v4526_v36 = vpop.f32.mrb[42].mxu0 }
 0xee2   :  { %v12742_v3 = vpop.f32.mrb[43].mxu0 }
 0xee3   :  { %v14123_v3 = vpack.c.bf16 %v4797_v55, %v4796_v40  ;;  %v14131_v40 = vpack.c.bf16 %v4801_v12, %v4800_v45  ;;  %v4802_v55 = vld [vmem:[%s19197_s12 + $0x50] sm:$0xff]  ;;  %v4820_v45 = vld [vmem:[%s19198_s13 + $0x60] sm:$0xff] }
 0xf01   :  { %v4602_v38 = vpop.f32.mrb[44].mxu0 }
 0xf02   :  { %v12777_v13 = vpop.f32.mrb[45].mxu0  ;;  %12778 = vmatprep.subr.mxu0 %v4602_v38 }
 0xf03   :  { %12779 = vmatpush3.msra.mxu0 %v4602_v38  ;;  %v4798_v38 = vld [vmem:[%s19197_s12 + $0x30] sm:$0xff]  ;;  %v4799_v13 = vld [vmem:[%s19197_s12 + $0x38] sm:$0xff] }
 0xf04   :  { %12781 = vmatmul.mubr.msk.f32.vlgmr.msra.gmra.mrb[46].mxu0 %vm2921_vm5, %v17426_v42  ;;  %12783 = vmatprep.subr.mxu0 %v4526_v36 }
 0xf05   :  { %12784 = vmatpush3.msra.mxu0 %v4526_v36  ;;  %12785 = vmatprep.mubr.msk.f32.mxu0 %vm2921_vm5, %v17429_v17  ;;  %v4813_v36 = vld [vmem:[%s19198_s13 + $0x28] sm:$0xff] }
 0xf06   :  { %14116 = vmatprep.subr.bf16.mxu0 %v14115_v10  ;;  %v14155_v5 = vpack.c.bf16 %v4813_v36, %v4812_v4  ;;  %v4819_v4 = vld [vmem:[%s19198_s13 + $0x58] sm:$0xff]  ;;  %v14135_v36 = vpack.c.bf16 %v4803_v53, %v4802_v55 }
 0xf08   :  { %14156 = vmatprep.subr.bf16.mxu1 %v14155_v5 }
 0xf09   :  { %14158 = vmatpush3.bf16.msra.mxu1 %v14155_v5 }
 0xf0a   :  { %14160 = vmatprep.subr.bf16.mxu1 %v14159_v21 }
 0xf0c   :  { %12786 = vmatmul.mubr.msk.f32.vlgmr.msra.gmra.mrb[46].mxu0 %vm2921_vm5, %v17438_v15 }
 0xf0d   :  { %14118 = vmatpush3.bf16.msra.mxu0 %v14115_v10  ;;  %v14127_v10 = vpack.c.bf16 %v4799_v13, %v4798_v38  ;;  %14162 = vmatpush3.bf16.msra.mxu1 %v14159_v21  ;;  %v4805_v38 = vld [vmem:[%s19197_s12 + $0x68] sm:$0xff]  ;;  %v14167_v13 = vpack.c.bf16 %v4819_v4, %v4818_v63  ;;  %v4823_v63 = vld [vmem:[%s19198_s13 + $0x78] sm:$0xff] }
 0xf0e   :  { %14120 = vmatprep.subr.bf16.mxu0 %v14119_v26  ;;  %v4821_v21 = vld [vmem:[%s19198_s13 + $0x68] sm:$0xff] }
 0xf11   :  { %14122 = vmatpush3.bf16.msra.mxu0 %v14119_v26  ;;  %v4817_v26 = vld [vmem:[%s19198_s13 + $0x48] sm:$0xff] }
 0xf12   :  { %14124 = vmatprep.subr.bf16.mxu0 %v14123_v3  ;;  %v14163_v1 = vpack.c.bf16 %v4817_v26, %v4816_v32  ;;  %v14171_v26 = vpack.c.bf16 %v4821_v21, %v4820_v45 }
 0xf14   :  { %14164 = vmatprep.subr.bf16.mxu1 %v14163_v1 }
 0xf15   :  { %14126 = vmatpush3.bf16.msra.mxu0 %v14123_v3  ;;  %v4804_v3 = vld [vmem:[%s19197_s12 + $0x60] sm:$0xff]  ;;  %14166 = vmatpush3.bf16.msra.mxu1 %v14163_v1  ;;  %v4822_v1 = vld [vmem:[%s19198_s13 + $0x70] sm:$0xff] }
 0xf16   :  { %14128 = vmatprep.subr.bf16.mxu0 %v14127_v10  ;;  %v14139_v5 = vpack.c.bf16 %v4805_v38, %v4804_v3  ;;  %14168 = vmatprep.subr.bf16.mxu1 %v14167_v13 }
 0xf19   :  { %14130 = vmatpush3.bf16.msra.mxu0 %v14127_v10  ;;  %14170 = vmatpush3.bf16.msra.mxu1 %v14167_v13  ;;  %v4807_v10 = vld [vmem:[%s19197_s12 + $0x78] sm:$0xff] }
 0xf1a   :  { %14132 = vmatprep.subr.bf16.mxu0 %v14131_v40  ;;  %v14143_v12 = vpack.c.bf16 %v4807_v10, %v4806_v18  ;;  %14172 = vmatprep.subr.bf16.mxu1 %v14171_v26 }
 0xf1d   :  { %14134 = vmatpush3.bf16.msra.mxu0 %v14131_v40  ;;  %14174 = vmatpush3.bf16.msra.mxu1 %v14171_v26 }
 0xf1e   :  { %14136 = vmatprep.subr.bf16.mxu0 %v14135_v36 }
 0xf21   :  { %14138 = vmatpush3.bf16.msra.mxu0 %v14135_v36  ;;  %v14175_v36 = vpack.c.bf16 %v4823_v63, %v4822_v1 }
 0xf22   :  { %14140 = vmatprep.subr.bf16.mxu0 %v14139_v5 }
 0xf23   :  { %14176 = vmatprep.subr.bf16.mxu1 %v14175_v36 }
 0xf24   :  { %14178 = vmatpush3.bf16.msra.mxu1 %v14175_v36 }
 0xf25   :  { %14142 = vmatpush3.bf16.msra.mxu0 %v14139_v5 }
 0xf26   :  { %14144 = vmatprep.subr.bf16.mxu0 %v14143_v12 }
 0xf29   :  { %14146 = vmatpush3.bf16.msra.mxu0 %v14143_v12 }
 0xfdf   :  { %v12787_v32 = vpop.f32.mrb[46].mxu0 }
 0xfe0   :  { %v4789_v40 = vadd.f32 %v12787_v32, %v10699_v25  ;;  %v4773_v55 = vpop.f32.mrb[47].mxu0 }
 0xfe1   :  { %v4788_v53 = vadd.f32 %v10699_v25, %v4773_v55 }
 0xfe2   :  { %v4791_v4 = vmax.f32 %v4789_v40, 0.0 }
 0xfe3   :  { %v4790_v3 = vmax.f32 %v4788_v53, 0.0 }
 0xfe4   :  { %v4828_v38 = vrot.slane %v4791_v4, 7 }
 0xfe5   :  { %v4827_v13 = vrot.slane %v4790_v3, 7 }
 0xfe6   :  { %v4834_v5 = vsel %vm212_vm0, %v4828_v38, 0.0 }
 0xfe7   :  { %v4840_v25 = vrot.slane %v4834_v5, 1  ;;  %v4829_v18 = vsel %vm212_vm0, %v4827_v13, %v4828_v38  ;;  %v4833_v10 = vsel %vm212_vm0, 0.0, %v4827_v13 }
 0xfe8   :  { %v4837_v45 = vrot.slane %v4833_v10, 1  ;;  %v4838_v12 = vrot.slane %v4829_v18, 1 }
 0xfea   :  { %v4839_v21 = vsel %vm4448_vm4, %v4837_v45, %v4838_v12  ;;  %v4841_v32 = vsel %vm4448_vm4, %v4838_v12, %v4840_v25 }
 0xfeb   :  { %v15093_v26 = vpack.i.bf16 %v4841_v32, %v4839_v21 }
 0xfed   :  { %15094 = vrot.lane.b32.xlu0 %v15093_v26, %s19524_s1 }
 0xff1   :  { %4850 = vrot.lane.b32.xlu0 %v4840_v25, %s19524_s1 }
0x105f   :  { %v15095_v40 = vpop.permute.xlu0 %15094 }
0x1060   :  { %v15097_v55 = vunpack.i.h.bf16 %v15095_v40  ;;  %v15096_v53 = vunpack.i.l.bf16 %v15095_v40  ;;  %v17567_v40 = vsel %vm5021_vm11, 1.0, %v19594_v56  ;;  %vm19693_vm11 = vmmov %vm19688_vm2 }
0x1061   :  { %19682 = vst [vmem:[#allocation159_spill] sm:$0xff] %v17567_v40 }
0x1062   :  { %v4848_v1 = vsel %vm19678_vm8, %v4833_v10, %v15096_v53  ;;  %v4849_v63 = vsel %vm19679_vm14, %v4829_v18, %v15097_v55  ;;  %v17576_v55 = vsel %vm5014_vm12, 1.0, %v19594_v56  ;;  %v5231_v53 = vld [vmem:[%s19200_s15] sm:$0xff]  ;;  %vm19689_vm8 = vmmov %vm19687_vm1 }
0x1063   :  { %v4851_v4 = vpop.permute.xlu0 %4850  ;;  %12820 = vmatprep.mubr.f32.mxu0 %v4848_v1  ;;  %v4932_v36 = vrot.slane %v4848_v1, 1  ;;  %v4933_v3 = vrot.slane %v4849_v63, 1  ;;  %19683 = vst [vmem:[#allocation160_spill] sm:$0xff] %v17576_v55  ;;  %v5233_v1 = vld [vmem:[%s19200_s15 + $0x10] sm:$0xff]  ;;  %vm19690_vm14 = vmmov %vm19688_vm2 }
0x1064   :  { %v4853_v38 = vsel %vm19680_vm13, %v4834_v5, %v4851_v4  ;;  %12821 = vmatmul.mubr.f32.vlgmr.msra.gmra.mrb[48].mxu0 %v4849_v63  ;;  %v17558_v5 = vsel %vm5020_vm7, 1.0, %v19594_v56  ;;  %v14187_v63 = vpack.c.bf16 %v5232_v50, %v5231_v53  ;;  %v5234_v4 = vld [vmem:[%s19200_s15 + $0x18] sm:$0xff]  ;;  %v10712_v53 = vld [vmem:[%s19199_s14] ss:$0 sm:$0xff]  ;;  %vm19691_vm13 = vmmov %vm19687_vm1 }
0x1065   :  { %v4935_v13 = vrot.slane %v4853_v38, 1  ;;  %v4934_v45 = vsel %vm4448_vm4, %v4932_v36, %v4933_v3  ;;  %12862 = vmatprep.mubr.msk.f32.mxu0 %vm19486_vm10, %v17417_v57  ;;  %19681 = vst [vmem:[#allocation158_spill] sm:$0xff] %v17558_v5  ;;  %v5239_v36 = vld [vmem:[%s19201_s16] sm:$0xff]  ;;  %v14191_v38 = vpack.c.bf16 %v5234_v4, %v5233_v1  ;;  %v5244_v4 = vld [vmem:[%s19201_s16 + $0x28] sm:$0xff]  ;;  %vm19692_vm7 = vmmov %vm19688_vm2 }
0x1066   :  { %12855 = vmatprep.mubr.f32.mxu1 %v4934_v45  ;;  %v5235_v45 = vld [vmem:[%s19200_s15 + $0x20] sm:$0xff]  ;;  %vm19694_vm12 = vmmov %vm19687_vm1 }
0x1067   :  { %v4936_v25 = vsel %vm4448_vm4, %v4933_v3, %v4935_v13  ;;  %v5240_v3 = vld [vmem:[%s19201_s16 + $0x8] sm:$0xff] }
0x1068   :  { %12856 = vmatmul.mubr.f32.vlgmr.msra.gmra.mrb[30].mxu1 %v4936_v25  ;;  %v14203_v13 = vpack.c.bf16 %v5240_v3, %v5239_v36  ;;  %v5236_v25 = vld [vmem:[%s19200_s15 + $0x28] sm:$0xff] }
0x106a   :  { %14204 = vmatprep.subr.bf16.mxu1 %v14203_v13 }
0x106b   :  { %14206 = vmatpush3.bf16.msra.mxu1 %v14203_v13 }
0x1137   :  { %v12822_v10 = vpop.f32.mrb[48].mxu0 }
0x1138   :  { %v4920_v18 = vpop.f32.mrb[49].mxu0 }
0x1139   :  { %v14183_v12 = vpack.c.bf16 %v12822_v10, %v4920_v18  ;;  %v14195_v10 = vpack.c.bf16 %v5236_v25, %v5235_v45  ;;  %v5241_v18 = vld [vmem:[%s19201_s16 + $0x10] sm:$0xff] }
0x113b   :  { %v12857_v21 = vpop.f32.mrb[30].mxu1 }
0x113c   :  { %v5005_v32 = vpop.f32.mrb[31].mxu1 }
0x113d   :  { %v14179_v26 = vpack.c.bf16 %v12857_v21, %v5005_v32  ;;  %v5237_v32 = vld [vmem:[%s19200_s15 + $0x30] sm:$0xff] }
0x113f   :  { %14180 = vmatprep.subr.bf16.mxu0 %v14179_v26 }
0x1140   :  { %14182 = vmatpush3.bf16.msra.mxu0 %v14179_v26  ;;  %v5238_v26 = vld [vmem:[%s19200_s15 + $0x38] sm:$0xff] }
0x1141   :  { %14184 = vmatprep.subr.bf16.mxu0 %v14183_v12  ;;  %v14199_v50 = vpack.c.bf16 %v5238_v26, %v5237_v32 }
0x1143   :  { %12863 = vmatmul.mubr.msk.f32.vlgmr.msra.gmra.mrb[50].mxu0 %vm19486_vm10, %v17426_v42 }
0x1144   :  { %14186 = vmatpush3.bf16.msra.mxu0 %v14183_v12  ;;  %12865 = vmatprep.mubr.msk.f32.mxu0 %vm19486_vm10, %v17558_v5  ;;  %v5242_v12 = vld [vmem:[%s19201_s16 + $0x18] sm:$0xff] }
0x1145   :  { %14188 = vmatprep.subr.bf16.mxu0 %v14187_v63  ;;  %v14207_v21 = vpack.c.bf16 %v5242_v12, %v5241_v18  ;;  %v5245_v18 = vld [vmem:[%s19201_s16 + $0x30] sm:$0xff]  ;;  %v5246_v12 = vld [vmem:[%s19201_s16 + $0x38] sm:$0xff] }
0x1147   :  { %12866 = vmatmul.mubr.msk.f32.gmra.mrb[52].mxu0 %vm19486_vm10, %v17567_v40  ;;  %14208 = vmatprep.subr.bf16.mxu1 %v14207_v21 }
0x1148   :  { %12872 = vmatprep.mubr.msk.f32.mxu0 %vm19486_vm10, %v17429_v17  ;;  %14210 = vmatpush3.bf16.msra.mxu1 %v14207_v21 }
0x114b   :  { %12873 = vmatmul.mubr.msk.f32.vlgmr.msra.gmra.mrb[50].mxu0 %vm19486_vm10, %v17438_v15 }
0x114c   :  { %12875 = vmatprep.mubr.msk.f32.mxu0 %vm19486_vm10, %v17576_v55  ;;  %14190 = vmatpush3.bf16.msra.mxu0 %v14187_v63  ;;  %v5243_v63 = vld [vmem:[%s19201_s16 + $0x20] sm:$0xff] }
0x114d   :  { %14192 = vmatprep.subr.bf16.mxu0 %v14191_v38 }
0x114f   :  { %12876 = vmatmul.mubr.msk.f32.gmra.mrb[52].mxu0 %vm19486_vm10, %v17585_v58 }
0x1150   :  { %14194 = vmatpush3.bf16.msra.mxu0 %v14191_v38  ;;  %v14211_v38 = vpack.c.bf16 %v5244_v4, %v5243_v63 }
0x1151   :  { %14196 = vmatprep.subr.bf16.mxu0 %v14195_v10 }
0x1152   :  { %14212 = vmatprep.subr.bf16.mxu1 %v14211_v38 }
0x1153   :  { %14214 = vmatpush3.bf16.msra.mxu1 %v14211_v38 }
0x1154   :  { %14198 = vmatpush3.bf16.msra.mxu0 %v14195_v10 }
0x1155   :  { %14200 = vmatprep.subr.bf16.mxu0 %v14199_v50 }
0x1158   :  { %14202 = vmatpush3.bf16.msra.mxu0 %v14199_v50 }
0x121e   :  { %v12874_v1 = vpop.f32.mrb[50].mxu0 }
0x121f   :  { %v5224_v36 = vadd.f32 %v12874_v1, %v10712_v53  ;;  %v5198_v3 = vpop.f32.mrb[51].mxu0  ;;  %v14215_v1 = vpack.c.bf16 %v5246_v12, %v5245_v18 }
0x1220   :  { %v5223_v13 = vadd.f32 %v10712_v53, %v5198_v3 }
0x1221   :  { %v5228_v45 = vmax.f32 %v5224_v36, 0.0  ;;  %14216 = vmatprep.subr.bf16.mxu1 %v14215_v1 }
0x1222   :  { %v5227_v25 = vmax.f32 %v5223_v13, 0.0  ;;  %v12877_v10 = vpop.f32.mrb[52].mxu0  ;;  %14218 = vmatpush3.bf16.msra.mxu1 %v14215_v1  ;;  %v10746_v1 = vld [vmem:[%s19494_s2 + $0x40] sm:$0xff] }
0x1223   :  { %v5253_v21 = vrot.slane %v5228_v45, 7  ;;  %v5226_v32 = vadd.f32 %v12877_v10, %v10712_v53  ;;  %v5208_v26 = vpop.f32.mrb[53].mxu0 }
0x1224   :  { %v5252_v50 = vrot.slane %v5227_v25, 7  ;;  %v5225_v63 = vadd.f32 %v10712_v53, %v5208_v26 }
0x1225   :  { %v5230_v4 = vmax.f32 %v5226_v32, 0.0 }
0x1226   :  { %v5254_v36 = vsel %vm212_vm0, %v5252_v50, %v5253_v21  ;;  %v5264_v3 = vsel %vm212_vm0, 0.0, %v5252_v50  ;;  %v5229_v38 = vmax.f32 %v5225_v63, 0.0  ;;  %v6810_v63 = vld [vmem:[%s19190_s5] sm:$0xff] }
0x1227   :  { %v5268_v13 = vrot.slane %v5264_v3, 1  ;;  %v5257_v22 = vrot.slane %v5230_v4, 7  ;;  %v5269_v34 = vrot.slane %v5254_v36, 1 }
0x1228   :  { %v5255_v60 = vrot.slane %v5229_v38, 7 }
0x1229   :  { %v5270_v24 = vsel %vm4448_vm4, %v5268_v13, %v5269_v34  ;;  %v5265_v12 = vsel %vm212_vm0, %v5257_v22, 0.0  ;;  %v10748_v13 = vld [vmem:[%s19494_s2 + $0x50] sm:$0xff] }
0x122a   :  { %v5256_v45 = vsel %vm212_vm0, %v5253_v21, %v5255_v60  ;;  %v5258_v10 = vsel %vm212_vm0, %v5255_v60, %v5257_v22  ;;  %5277 = vrot.lane.b32.xlu0 %v5270_v24, %s19685_s22  ;;  %v5275_v32 = vrot.slane %v5265_v12, 1  ;;  %v10747_v60 = vld [vmem:[%s19494_s2 + $0x48] sm:$0xff]  ;;  %v5820_v24 = vrot.slane %v10746_v1, 7 }
0x122b   :  { %v5271_v53 = vrot.slane %v5256_v45, 1  ;;  %v5273_v18 = vrot.slane %v5258_v10, 1 }
0x122d   :  { %v5272_v25 = vsel %vm4448_vm4, %v5269_v34, %v5271_v53  ;;  %v5274_v26 = vsel %vm4448_vm4, %v5271_v53, %v5273_v18  ;;  %v5821_v34 = vrot.slane %v10747_v60, 7  ;;  %v5276_v22 = vsel %vm4448_vm4, %v5273_v18, %v5275_v32  ;;  %v10749_v53 = vld [vmem:[%s19494_s2 + $0x58] sm:$0xff] }
0x122e   :  { %5279 = vrot.lane.b32.xlu0 %v5272_v25, %s19685_s22  ;;  %v5823_v18 = vrot.slane %v10748_v13, 7 }
0x122f   :  { %v5822_v21 = vsel %vm212_vm0, %v5820_v24, %v5821_v34 }
0x1230   :  { %v17659_v50 = vpack.c.bf16 %v5822_v21, %v5820_v24  ;;  %v5824_v13 = vsel %vm212_vm0, %v5821_v34, %v5823_v18 }
0x1232   :  { %5281 = vrot.lane.b32.xlu0 %v5274_v26, %s19685_s22  ;;  %14237 = vmatprep.subr.msk.bf16.mxu1 %vm15385_vm3, %v17659_v50  ;;  %v5825_v26 = vrot.slane %v10749_v53, 7 }
0x1234   :  { %v5826_v53 = vsel %vm212_vm0, %v5823_v18, %v5825_v26 }
0x1236   :  { %5283 = vrot.lane.b32.xlu0 %v5276_v22, %s19685_s22 }
0x123a   :  { %5293 = vrot.lane.b32.xlu0 %v5275_v32, %s19685_s22  ;;  %v10750_v32 = vld [vmem:[%s19494_s2 + $0x60] sm:$0xff] }
0x123b   :  { %v5827_v21 = vrot.slane %v10750_v32, 7 }
0x129c   :  { %v5278_v4 = vpop.permute.xlu0 %5277 }
0x129d   :  { %v5289_v38 = vsel %vm19687_vm1, %v5264_v3, %v5278_v4  ;;  %v10751_v3 = vld [vmem:[%s19494_s2 + $0x68] sm:$0xff]  ;;  %vm19696_vm1 = vmmov %vm19688_vm2 }
0x129e   :  { %12894 = vmatprep.mubr.msk.f32.mxu0 %vm19688_vm2, %v5289_v38  ;;  %v5395_v60 = vrot.slane %v5289_v38, 1  ;;  %v5829_v47 = vrot.slane %v10751_v3, 7  ;;  %v10753_v38 = vld [vmem:[%s19494_s2 + $0x78] sm:$0xff]  ;;  %vm19697_vm2 = vmmov %vm19689_vm8 }
0x12a0   :  { %v5280_v25 = vpop.permute.xlu0 %5279  ;;  %v5830_v61 = vsel %vm212_vm0, %v5827_v21, %v5829_v47 }
0x12a1   :  { %v5290_v1 = vsel %vm19689_vm8, %v5254_v36, %v5280_v25  ;;  %v10752_v36 = vld [vmem:[%s19494_s2 + $0x70] sm:$0xff]  ;;  %vm19698_vm8 = vmmov %vm19697_vm2  ;;  %s19751_s2 = smov 1  }
0x12a2   :  { %v5396_v24 = vrot.slane %v5290_v1, 1  ;;  %12895 = vmatmul.mubr.msk.f32.vlgmr.msra.gmra.mrb[54].mxu0 %vm19690_vm14, %v5290_v1  ;;  %v17694_v1 = vpack.c.bf16 %v5826_v53, %v5824_v13  ;;  %v5831_v34 = vrot.slane %v10752_v36, 7  ;;  %vm19699_vm14 = vmmov %vm19696_vm1 }
0x12a4   :  { %v5282_v22 = vpop.permute.xlu0 %5281  ;;  %v5397_v4 = vsel %vm4448_vm4, %v5395_v60, %v5396_v24  ;;  %v5828_v60 = vsel %vm212_vm0, %v5825_v26, %v5827_v21 }
0x12a5   :  { %v5291_v25 = vsel %vm19691_vm13, %v5256_v45, %v5282_v22  ;;  %12916 = vmatprep.mubr.msk.f32.mxu1 %vm19692_vm7, %v5397_v4  ;;  %v5833_v45 = vrot.slane %v10753_v38, 7  ;;  %v17706_v13 = vpack.c.bf16 %v5830_v61, %v5828_v60  ;;  %vm19700_vm13 = vmmov %vm19696_vm1  ;;  %vm19702_vm7 = vcmask 539648   ;;  %v19705_v38 = vld [vmem:[#allocation12_spill] sm:$0xff]  ;;  %v19717_v60 = vld [vmem:[#allocation14_spill] sm:$0xff] }
0x12a6   :  { %v5398_v32 = vrot.slane %v5291_v25, 1  ;;  %12897 = vmatprep.mubr.msk.f32.mxu0 %vm19693_vm11, %v5291_v25  ;;  %vm19703_vm11 = vcmask 1041408  }
0x12a7   :  { %v5834_v21 = vsel %vm212_vm0, %v5831_v34, %v5833_v45 }
0x12a8   :  { %v5284_v18 = vpop.permute.xlu0 %5283  ;;  %v5399_v3 = vsel %vm4448_vm4, %v5396_v24, %v5398_v32 }
0x12a9   :  { %v5292_v22 = vsel %vm19694_vm12, %v5258_v10, %v5284_v18  ;;  %12917 = vmatmul.mubr.msk.f32.vlgmr.msra.gmra.mrb[32].mxu1 %vm19695_vm15, %v5399_v3  ;;  %v5832_v10 = vsel %vm212_vm0, %v5829_v47, %v5831_v34  ;;  %v19701_v47 = vld [vmem:[#allocation8_spill] sm:$0xff]  ;;  %vm19704_vm12 = vmmov %vm19703_vm11  ;;  %v19709_v34 = vld [vmem:[#allocation18_spill] sm:$0xff] }
0x12aa   :  { %v5400_v4 = vrot.slane %v5292_v22, 1  ;;  %12898 = vmatmul.mubr.msk.f32.gmra.mrb[56].mxu0 %vm19696_vm1, %v5292_v22  ;;  %14240 = vmatpush3.bf16.msk.msra.mxu1 %vm15385_vm3, %v17659_v50  ;;  %v17717_v61 = vpack.c.bf16 %v5834_v21, %v5832_v10  ;;  %vm19706_vm15 = vmmov %vm19702_vm7  ;;  %v19711_v18 = vld [vmem:[#allocation10_spill] sm:$0xff]  ;;  %v19715_v3 = vld [vmem:[#allocation13_spill] sm:$0xff] }
0x12ab   :  { %14242 = vmatprep.subr.bf16.mxu1 %v17694_v1  ;;  %12930 = vmatprep.mubr.msk.f32.mxu0 %vm19697_vm2, %v17417_v57  ;;  %vm19708_vm1 = vmmov %vm19702_vm7  ;;  %v19721_v22 = vld [vmem:[#allocation17_spill] sm:$0xff]  ;;  %v19866_v57 = vld [vmem:[#allocation64_spill] sm:$0xff] }
0x12ac   :  { %v5294_v26 = vpop.permute.xlu0 %5293  ;;  %v5401_v24 = vsel %vm4448_vm4, %v5398_v32, %v5400_v4  ;;  %v19707_v32 = vld [vmem:[#allocation16_spill] sm:$0xff]  ;;  %vm19710_vm2 = vmmov %vm19708_vm1 }
0x12ad   :  { %v5296_v53 = vsel %vm19698_vm8, %v5265_v12, %v5294_v26  ;;  %12919 = vmatprep.mubr.msk.f32.mxu1 %vm19699_vm14, %v5401_v24  ;;  %v17726_v12 = vsel %vm212_vm0, %v5833_v45, 0.0  ;;  %vm19712_vm8 = vmmov %vm19708_vm1  ;;  %v19719_v45 = vld [vmem:[#allocation15_spill] sm:$0xff]  ;;  %v19729_v24 = vld [vmem:[#allocation25_spill] sm:$0xff] }
0x12ae   :  { %v5402_v36 = vrot.slane %v5296_v53, 1  ;;  %14244 = vmatpush3.bf16.msra.mxu1 %v17694_v1  ;;  %vm19713_vm14 = vmmov %vm19703_vm11  ;;  %v19727_v26 = vld [vmem:[#allocation23_spill] sm:$0xff] }
0x12af   :  { %14246 = vmatprep.subr.bf16.mxu1 %v17706_v13 }
0x12b0   :  { %v5403_v25 = vsel %vm4448_vm4, %v5400_v4, %v5402_v36  ;;  %v19725_v4 = vld [vmem:[#allocation21_spill] sm:$0xff] }
0x12b1   :  { %12920 = vmatmul.mubr.msk.f32.gmra.mrb[34].mxu1 %vm19700_vm13, %v5403_v25  ;;  %vm19714_vm13 = vmmov %vm19703_vm11 }
0x12b2   :  { %14248 = vmatpush3.bf16.msra.mxu1 %v17706_v13  ;;  %12980 = vmatprep.mubr.msk.f32.mxu1 %vm19702_vm7, %v19701_v47  ;;  %vm19716_vm7 = vmmov %vm19708_vm1 }
0x12b3   :  { %14250 = vmatprep.subr.bf16.mxu1 %v17717_v61 }
0x12b6   :  { %14252 = vmatpush3.bf16.msra.mxu1 %v17717_v61 }
0x12b7   :  { %12978 = vmatprep.subr.msk.mxu1 %vm19703_vm11, %v17726_v12  ;;  %vm19718_vm11 = vmmov %vm19708_vm1 }
0x12ba   :  { %12979 = vmatpush3.msk.msra.mxu1 %vm19704_vm12, %v17726_v12  ;;  %vm19720_vm12 = vmmov %vm19708_vm1 }
0x12bb   :  { %14255 = vmatprep.subr.msk.bf16.mxu1 %vm15385_vm3, %v17659_v50  ;;  %12981 = vmatmul.mubr.msk.f32.vlgmr.msra.gmra.mrb[36].mxu1 %vm19706_vm15, %v19705_v38  ;;  %vm19722_vm15 = vmmov %vm19708_vm1 }
0x12bc   :  { %14258 = vmatpush3.bf16.msk.msra.mxu1 %vm15385_vm3, %v17659_v50  ;;  %12983 = vmatprep.mubr.msk.f32.mxu1 %vm19708_vm1, %v19707_v32  ;;  %vm19723_vm1 = vmmov %vm19714_vm13 }
0x12bd   :  { %14260 = vmatprep.subr.bf16.mxu1 %v17694_v1 }
0x12bf   :  { %12984 = vmatmul.mubr.msk.f32.gmra.mrb[38].mxu1 %vm19710_vm2, %v19709_v34  ;;  %vm19724_vm2 = vmmov %vm19723_vm1 }
0x12c0   :  { %14262 = vmatpush3.bf16.msra.mxu1 %v17694_v1  ;;  %13004 = vmatprep.mubr.msk.f32.mxu1 %vm19712_vm8, %v19711_v18  ;;  %vm19726_vm8 = vmmov %vm19716_vm7 }
0x12c1   :  { %14264 = vmatprep.subr.bf16.mxu1 %v17706_v13 }
0x12c4   :  { %14266 = vmatpush3.bf16.msra.mxu1 %v17706_v13 }
0x12c5   :  { %14268 = vmatprep.subr.bf16.mxu1 %v17717_v61 }
0x12c8   :  { %14270 = vmatpush3.bf16.msra.mxu1 %v17717_v61 }
0x12c9   :  { %13002 = vmatprep.subr.msk.mxu1 %vm19713_vm14, %v17726_v12  ;;  %vm19728_vm14 = vmmov %vm19716_vm7 }
0x12cc   :  { %13003 = vmatpush3.msk.msra.mxu1 %vm19714_vm13, %v17726_v12  ;;  %vm19730_vm13 = vmmov %vm19716_vm7 }
0x12cd   :  { %13005 = vmatmul.mubr.msk.f32.vlgmr.msra.gmra.mrb[40].mxu1 %vm19716_vm7, %v19715_v3  ;;  %14291 = vmatprep.subr.msk.bf16.mxu1 %vm15385_vm3, %v17659_v50  ;;  %vm19731_vm7 = vcmask 277504  }
0x12ce   :  { %13007 = vmatprep.mubr.msk.f32.mxu1 %vm19718_vm11, %v19717_v60  ;;  %14294 = vmatpush3.bf16.msk.msra.mxu1 %vm15385_vm3, %v17659_v50  ;;  %vm5509_vm11 = vcmp.eq.s32.totalorder %v16766_v48, %v17412_v37 }
0x12cf   :  { %14296 = vmatprep.subr.bf16.mxu1 %v17694_v1 }
0x12d1   :  { %13008 = vmatmul.mubr.msk.f32.gmra.mrb[42].mxu1 %vm19720_vm12, %v19719_v45  ;;  %vm19732_vm12 = vcmask 261120  }
0x12d2   :  { %14298 = vmatpush3.bf16.msra.mxu1 %v17694_v1  ;;  %13052 = vmatprep.mubr.msk.f32.mxu1 %vm19722_vm15, %v19721_v22  ;;  %vm19733_vm15 = vmmov %vm19732_vm12 }
0x12d3   :  { %14300 = vmatprep.subr.bf16.mxu1 %v17706_v13 }
0x12d6   :  { %14302 = vmatpush3.bf16.msra.mxu1 %v17706_v13 }
0x12d7   :  { %14304 = vmatprep.subr.bf16.mxu1 %v17717_v61 }
0x12da   :  { %14306 = vmatpush3.bf16.msra.mxu1 %v17717_v61 }
0x12db   :  { %13050 = vmatprep.subr.msk.mxu1 %vm19723_vm1, %v17726_v12  ;;  %vm5510_vm1 = vcmp.eq.s32.totalorder %v16776_v31, %v17412_v37 }
0x12de   :  { %13051 = vmatpush3.msk.msra.mxu1 %vm19724_vm2, %v17726_v12  ;;  %vm5511_vm2 = vcmp.eq.s32.totalorder %v16782_v33, %v17412_v37 }
0x12df   :  { %13053 = vmatmul.mubr.msk.f32.vlgmr.msra.gmra.mrb[44].mxu1 %vm19726_vm8, %v19725_v4  ;;  %vm19735_vm8 = vmmov %vm19732_vm12 }
0x12e0   :  { %13055 = vmatprep.mubr.msk.f32.mxu1 %vm19728_vm14, %v19727_v26  ;;  %vm19736_vm14 = vmmov %vm19735_vm8 }
0x12e3   :  { %13056 = vmatmul.mubr.msk.f32.gmra.mrb[46].mxu1 %vm19730_vm13, %v19729_v24  ;;  %v17796_v24 = vsel %vm5509_vm11, 1.0, %v19594_v56  ;;  %vm5512_vm13 = vcmp.eq.s32.totalorder %v16798_v14, %v17412_v37 }
0x12e4   :  { %13089 = vmatprep.mubr.msk.f32.mxu1 %vm19731_vm7, %v19711_v18  ;;  %19734 = vst [vmem:[#allocation6_spill] sm:$0xff] %v17796_v24  ;;  %vm19739_vm7 = vmmov %vm19735_vm8 }
0x12e5   :  { %vm19740_vm11 = vmmov %vm19739_vm7 }
0x1375   :  { %v12896_v10 = vpop.f32.mrb[54].mxu0 }
0x1376   :  { %v5375_v21 = vpop.f32.mrb[55].mxu0 }
0x1377   :  { %v14227_v53 = vpack.c.bf16 %v12896_v10, %v5375_v21  ;;  %v17811_v10 = vsel %vm5510_vm1, 1.0, %v19594_v56  ;;  %v17814_v21 = vsel %vm5511_vm2, 1.0, %v19594_v56  ;;  %vm5497_vm1 = vcmp.eq.s32.totalorder %v16766_v48, %v17409_v9  ;;  %vm19744_vm2 = vmmov %vm19739_vm7 }
0x1378   :  { %19737 = vst [vmem:[#allocation8_spill] sm:$0xff] %v17811_v10  ;;  %19738 = vst [vmem:[#allocation12_spill] sm:$0xff] %v17814_v21  ;;  %v17847_v37 = vsel %vm5497_vm1, 1.0, %v19594_v56 }
0x1379   :  { %19746 = vst [vmem:[#allocation18_spill] sm:$0xff] %v17847_v37  ;;  %vm19753_vm1 = vmmov %vm19744_vm2 }
0x137c   :  { %v12918_v36 = vpop.f32.mrb[32].mxu1 }
0x137d   :  { %v12899_v25 = vpop.f32.mrb[56].mxu0  ;;  %v5478_v32 = vpop.f32.mrb[33].mxu1 }
0x137e   :  { %v14219_v34 = vpack.c.bf16 %v12918_v36, %v5478_v32  ;;  %v5385_v60 = vpop.f32.mrb[57].mxu0 }
0x137f   :  { %v14231_v45 = vpack.c.bf16 %v12899_v25, %v5385_v60  ;;  %v17830_v25 = vsel %vm5512_vm13, 1.0, %v19594_v56  ;;  %vm5499_vm13 = vcmp.eq.s32.totalorder %v16782_v33, %v17409_v9  ;;  %v19764_v60 = vld [vmem:[#allocation24_spill] sm:$0xff] }
0x1380   :  { %14220 = vmatprep.subr.bf16.mxu0 %v14219_v34  ;;  %19741 = vst [vmem:[#allocation16_spill] sm:$0xff] %v17830_v25 }
0x1381   :  { %14222 = vmatpush3.bf16.msra.mxu0 %v14219_v34 }
0x1384   :  { %v12921_v39 = vpop.f32.mrb[34].mxu1 }
0x1385   :  { %v5488_v30 = vpop.f32.mrb[35].mxu1 }
0x1386   :  { %v14223_v26 = vpack.c.bf16 %v12921_v39, %v5488_v30 }
0x1388   :  { %14224 = vmatprep.subr.bf16.mxu0 %v14223_v26 }
0x1389   :  { %14226 = vmatpush3.bf16.msra.mxu0 %v14223_v26 }
0x138a   :  { %14228 = vmatprep.subr.bf16.mxu0 %v14227_v53 }
0x138c   :  { %12931 = vmatmul.mubr.msk.f32.vlgmr.msra.gmra.mrb[58].mxu0 %vm19732_vm12, %v17426_v42  ;;  %vm19742_vm12 = vmmov %vm19739_vm7  ;;  %v19865_v42 = vld [vmem:[#allocation63_spill] sm:$0xff] }
0x138d   :  { %14230 = vmatpush3.bf16.msra.mxu0 %v14227_v53  ;;  %12933 = vmatprep.mubr.msk.f32.mxu0 %vm19733_vm15, %v17558_v5  ;;  %vm19743_vm15 = vmmov %vm19739_vm7  ;;  %v19860_v5 = vld [vmem:[#allocation58_spill] sm:$0xff] }
0x138e   :  { %14232 = vmatprep.subr.bf16.mxu0 %v14231_v45  ;;  %v17800_v30 = vpop.f32.mrb[36].mxu1 }
0x138f   :  { %v17804_v39 = vpop.f32.mrb[37].mxu1 }
0x1390   :  { %12934 = vmatmul.mubr.msk.f32.gmra.mrb[60].mxu0 %vm19735_vm8, %v17567_v40  ;;  %vm19745_vm8 = vmmov %vm19744_vm2  ;;  %v19859_v40 = vld [vmem:[#allocation57_spill] sm:$0xff] }
0x1391   :  { %14234 = vmatpush3.bf16.msra.mxu0 %v14231_v45  ;;  %12936 = vmatprep.mubr.msk.f32.mxu0 %vm19736_vm14, %v17796_v24  ;;  %vm5498_vm14 = vcmp.eq.s32.totalorder %v16776_v31, %v17409_v9  ;;  %v17863_v31 = vsel %vm5499_vm13, 1.0, %v19594_v56  ;;  %v19858_v24 = vld [vmem:[#allocation56_spill] sm:$0xff] }
0x1392   :  { %14273 = vmatprep.subr.msk.bf16.mxu0 %vm15385_vm3, %v17659_v50  ;;  %v17821_v53 = vpop.f32.mrb[38].mxu1  ;;  %19750 = vst [vmem:[#allocation13_spill] sm:$0xff] %v17863_v31 }
0x1393   :  { %v17823_v36 = vpop.f32.mrb[39].mxu1 }
0x1394   :  { %12937 = vmatmul.mubr.msk.f32.gmra.mrb[62].mxu0 %vm19739_vm7, %v17811_v10  ;;  %vm19747_vm7 = vmmov %vm19744_vm2  ;;  %v19857_v10 = vld [vmem:[#allocation55_spill] sm:$0xff] }
0x1395   :  { %12939 = vmatprep.mubr.msk.f32.mxu0 %vm19740_vm11, %v17814_v21  ;;  %vm19748_vm11 = vmmov %vm19744_vm2 }
0x1398   :  { %12940 = vmatmul.mubr.msk.f32.gmra.mrb[64].mxu0 %vm19742_vm12, %v17830_v25  ;;  %vm5500_vm12 = vcmp.eq.s32.totalorder %v16798_v14, %v17409_v9  ;;  %v19756_v14 = vld [vmem:[#allocation19_spill] sm:$0xff]  ;;  %v19760_v9 = vld [vmem:[#allocation20_spill] sm:$0xff] }
0x1399   :  { %12950 = vmatprep.mubr.msk.f32.mxu0 %vm19743_vm15, %v17429_v17  ;;  %vm19752_vm15 = vmmov %vm19744_vm2  ;;  %v19864_v17 = vld [vmem:[#allocation62_spill] sm:$0xff] }
0x139c   :  { %12951 = vmatmul.mubr.msk.f32.vlgmr.msra.gmra.mrb[58].mxu0 %vm19744_vm2, %v17438_v15  ;;  %vm19755_vm2 = vmmov %vm19753_vm1  ;;  %v19863_v15 = vld [vmem:[#allocation61_spill] sm:$0xff] }
0x139d   :  { %14276 = vmatpush3.bf16.msk.msra.mxu0 %vm15385_vm3, %v17659_v50  ;;  %12953 = vmatprep.mubr.msk.f32.mxu0 %vm19745_vm8, %v17576_v55  ;;  %v17859_v50 = vsel %vm5498_vm14, 1.0, %v19594_v56  ;;  %vm19757_vm8 = vcmask 539648   ;;  %vm19758_vm14 = vcmask 1041408   ;;  %v19862_v55 = vld [vmem:[#allocation60_spill] sm:$0xff] }
0x139e   :  { %14278 = vmatprep.subr.bf16.mxu0 %v17694_v1  ;;  %19749 = vst [vmem:[#allocation10_spill] sm:$0xff] %v17859_v50  ;;  %vm19759_vm13 = vmmov %vm19758_vm14 }
0x13a0   :  { %12954 = vmatmul.mubr.msk.f32.gmra.mrb[60].mxu0 %vm19747_vm7, %v17585_v58  ;;  %v13006_v48 = vpop.f32.mrb[40].mxu1  ;;  %vm19761_vm7 = vmmov %vm19757_vm8  ;;  %v19861_v58 = vld [vmem:[#allocation59_spill] sm:$0xff] }
0x13a1   :  { %14280 = vmatpush3.bf16.msra.mxu0 %v17694_v1  ;;  %12956 = vmatprep.mubr.msk.f32.mxu0 %vm19748_vm11, %v17847_v37  ;;  %v6000_v32 = vpop.f32.mrb[41].mxu1  ;;  %v17874_v1 = vsel %vm5500_vm12, 1.0, %v19594_v56  ;;  %vm19763_vm11 = vmmov %vm19761_vm7 }
0x13a2   :  { %14282 = vmatprep.subr.bf16.mxu0 %v17706_v13  ;;  %6195 = vrot.lane.b32.xlu0 %v13006_v48, %s19751_s2  ;;  %19754 = vst [vmem:[#allocation14_spill] sm:$0xff] %v17874_v1  ;;  %vm19765_vm12 = vmmov %vm19761_vm7 }
0x13a4   :  { %12957 = vmatmul.mubr.msk.f32.gmra.mrb[62].mxu0 %vm19752_vm15, %v17859_v50  ;;  %v13009_v33 = vpop.f32.mrb[42].mxu1  ;;  %vm19767_vm15 = vcmask 1043456  }
0x13a5   :  { %14284 = vmatpush3.bf16.msra.mxu0 %v17706_v13  ;;  %12959 = vmatprep.mubr.msk.f32.mxu0 %vm19753_vm1, %v17863_v31  ;;  %v6010_v34 = vpop.f32.mrb[43].mxu1  ;;  %v19762_v13 = vld [vmem:[#allocation22_spill] sm:$0xff]  ;;  %vm19768_vm1 = vmmov %vm19767_vm15 }
0x13a6   :  { %14286 = vmatprep.subr.bf16.mxu0 %v17717_v61  ;;  %6193 = vrot.lane.b32.xlu0 %v6000_v32, %s19751_s2 }
0x13a7   :  { %6197 = vrot.lane.b32.xlu1 %v6010_v34, %s19751_s2 }
0x13a8   :  { %12960 = vmatmul.mubr.msk.f32.gmra.mrb[64].mxu0 %vm19755_vm2, %v17874_v1  ;;  %vm19769_vm2 = vcmask 7168  }
0x13a9   :  { %14288 = vmatpush3.bf16.msra.mxu0 %v17717_v61  ;;  %13028 = vmatprep.mubr.msk.f32.mxu0 %vm19757_vm8, %v19756_v14  ;;  %vm19770_vm8 = vmmov %vm19769_vm2 }
0x13aa   :  { %13026 = vmatprep.subr.msk.mxu0 %vm19758_vm14, %v17726_v12  ;;  %6199 = vrot.lane.b32.xlu0 %v13009_v33, %s19751_s2  ;;  %vm19771_vm14 = vmmov %vm19769_vm2  ;;  %s19773_s2 = smov 2  }
0x13ad   :  { %13027 = vmatpush3.msk.msra.mxu0 %vm19759_vm13, %v17726_v12  ;;  %v10745_v12 = vld [vmem:[#allocation2] ss:$0 sm:$0xff]  ;;  %vm19772_vm13 = vmmov %vm19769_vm2 }
0x13ae   :  { %13029 = vmatmul.mubr.msk.f32.vlgmr.msra.gmra.mrb[66].mxu0 %vm19761_vm7, %v19760_v9  ;;  %vm19774_vm7 = vmmov %vm19769_vm2 }
0x13af   :  { %13031 = vmatprep.mubr.msk.f32.mxu0 %vm19763_vm11, %v19762_v13  ;;  %vm19775_vm11 = vmmov %vm19769_vm2 }
0x13b2   :  { %13032 = vmatmul.mubr.msk.f32.gmra.mrb[68].mxu0 %vm19765_vm12, %v19764_v60  ;;  %v13054_v61 = vpop.f32.mrb[44].mxu1  ;;  %vm19776_vm12 = vmmov %vm19769_vm2 }
0x13b3   :  { %6227 = vrot.lane.b32.xlu0 %v13054_v61, %s19766_s25  ;;  %v6170_v45 = vpop.f32.mrb[45].mxu1 }
0x13b6   :  { %v13057_v26 = vpop.f32.mrb[46].mxu1 }
0x13b7   :  { %6225 = vrot.lane.b32.xlu0 %v6170_v45, %s19766_s25  ;;  %v6180_v48 = vpop.f32.mrb[47].mxu1 }
0x13bb   :  { %6229 = vrot.lane.b32.xlu0 %v6180_v48, %s19766_s25  ;;  %v5810_v48 = vld [vmem:[%s19517_s26] sm:$0xf] }
0x13bc   :  { %13058 = vmatprep.subr.msk.mxu0 %vm19767_vm15, %v5810_v48  ;;  %vm19777_vm15 = vmmov %vm19769_vm2 }
0x13bd   :  { %13059 = vmatpush3.msk.msra.mxu0 %vm19768_vm1, %v5810_v48  ;;  %vm19778_vm1 = vmmov %vm19769_vm2 }
0x1419   :  { %v6198_v21 = vpop.permute.xlu1 %6197 }
0x146f   :  { %v12952_v32 = vpop.f32.mrb[58].mxu0 }
0x1470   :  { %v5778_v33 = vadd.f32 %v12952_v32, %v10745_v12  ;;  %v5732_v34 = vpop.f32.mrb[59].mxu0 }
0x1471   :  { %v5777_v1 = vadd.f32 %v10745_v12, %v5732_v34 }
0x1472   :  { %15155 = vtanh.f32 %v5778_v33 }
0x1473   :  { %15157 = vtanh.f32 %v5777_v1  ;;  %v12955_v13 = vpop.f32.mrb[60].mxu0 }
0x1474   :  { %v5780_v31 = vadd.f32 %v12955_v13, %v10745_v12  ;;  %v5742_v60 = vpop.f32.mrb[61].mxu0 }
0x1475   :  { %v5779_v50 = vadd.f32 %v10745_v12, %v5742_v60 }
0x1476   :  { %15159 = vtanh.f32 %v5780_v31 }
0x1477   :  { %15161 = vtanh.f32 %v5779_v50  ;;  %v12958_v61 = vpop.f32.mrb[62].mxu0 }
0x1478   :  { %v5782_v37 = vadd.f32 %v12958_v61, %v10745_v12  ;;  %v5752_v45 = vpop.f32.mrb[63].mxu0 }
0x1479   :  { %v5781_v25 = vadd.f32 %v10745_v12, %v5752_v45 }
0x147a   :  { %15163 = vtanh.f32 %v5782_v37 }
0x147b   :  { %15165 = vtanh.f32 %v5781_v25  ;;  %v12961_v32 = vpop.f32.mrb[64].mxu0 }
0x147c   :  { %v15156_v1 = vpop.eup %15155  ;;  %v5784_v33 = vadd.f32 %v12961_v32, %v10745_v12  ;;  %v5762_v34 = vpop.f32.mrb[65].mxu0 }
0x147d   :  { %v15158_v31 = vpop.eup %15157  ;;  %5794 = vst.msk [vmem:[%s19203_s18 + $0x8] sm:$0xff] %vm19769_vm2, %v15156_v1  ;;  %v5783_v50 = vadd.f32 %v10745_v12, %v5762_v34  ;;  %vm19779_vm2 = vmmov %vm19778_vm1 }
0x147e   :  { %5793 = vst.msk [vmem:[%s19203_s18] sm:$0xff] %vm19770_vm8, %v15158_v31  ;;  %15167 = vtanh.f32 %v5784_v33  ;;  %v6196_v33 = vpop.permute.xlu0 %6195  ;;  %vm19780_vm8 = vcmask 15360  }
0x147f   :  { %15169 = vtanh.f32 %v5783_v50 }
0x1480   :  { %v15160_v25 = vpop.eup %15159 }
0x1481   :  { %v15162_v37 = vpop.eup %15161  ;;  %5796 = vst.msk [vmem:[%s19203_s18 + $0x18] sm:$0xff] %vm19771_vm14, %v15160_v25  ;;  %v13030_v13 = vpop.f32.mrb[66].mxu0  ;;  %vm19781_vm14 = vmmov %vm19780_vm8 }
0x1482   :  { %5795 = vst.msk [vmem:[%s19203_s18 + $0x10] sm:$0xff] %vm19772_vm13, %v15162_v37  ;;  %6211 = vrot.lane.b32.xlu0 %v13030_v13, %s19773_s2  ;;  %v6085_v12 = vpop.f32.mrb[67].mxu0  ;;  %v6194_v34 = vpop.permute.xlu0 %6193  ;;  %vm19782_vm13 = vcmask 23552  }
0x1484   :  { %v15164_v60 = vpop.eup %15163 }
0x1485   :  { %v15166_v61 = vpop.eup %15165  ;;  %5798 = vst.msk [vmem:[%s19203_s18 + $0x28] sm:$0xff] %vm19774_vm7, %v15164_v60  ;;  %v13033_v45 = vpop.f32.mrb[68].mxu0  ;;  %v6237_v60 = vsel %vm19779_vm2, %v17804_v39, %v6194_v34  ;;  %vm19783_vm7 = vmmov %vm19782_vm13 }
0x1486   :  { %5797 = vst.msk [vmem:[%s19203_s18 + $0x20] sm:$0xff] %vm19775_vm11, %v15166_v61  ;;  %6209 = vrot.lane.b32.xlu0 %v6085_v12, %s19773_s2  ;;  %v6095_v48 = vpop.f32.mrb[69].mxu0  ;;  %v6200_v31 = vpop.permute.xlu0 %6199  ;;  %v6238_v12 = vsel %vm19778_vm1, %v17800_v30, %v6196_v33  ;;  %vm19784_vm11 = vcmask 31744   ;;  %vm19788_vm2 = vmmov %vm19783_vm7 }
0x1488   :  { %v15168_v32 = vpop.eup %15167 }
0x1489   :  { %v15170_v1 = vpop.eup %15169  ;;  %5800 = vst.msk [vmem:[%s19203_s18 + $0x38] sm:$0xff] %vm19776_vm12, %v15168_v32  ;;  %vm19785_vm12 = vmmov %vm19784_vm11 }
0x148a   :  { %5799 = vst.msk [vmem:[%s19203_s18 + $0x30] sm:$0xff] %vm19777_vm15, %v15170_v1  ;;  %6215 = vrot.lane.b32.xlu0 %v13033_v45, %s19773_s2  ;;  %v6228_v50 = vpop.permute.xlu0 %6227  ;;  %vm19786_vm15 = vmmov %vm19778_vm1 }
0x148b   :  { %v6239_v30 = vsel %vm19786_vm15, %v17823_v36, %v6198_v21  ;;  %vm19787_vm1 = vmmov %vm19780_vm8  ;;  %v10782_v21 = vld [vmem:[%s19518_s29] ss:$0 sm:$0xff]  ;;  %s19897_s29 = smov 88  }
0x148e   :  { %6213 = vrot.lane.b32.xlu0 %v6095_v48, %s19773_s2  ;;  %v6226_v25 = vpop.permute.xlu0 %6225  ;;  %s19899_s2 = smov 72  }
0x1492   :  { %6231 = vrot.lane.b32.xlu0 %v13057_v26, %s19766_s25  ;;  %v6230_v37 = vpop.permute.xlu0 %6229  ;;  %s19843_s25 = sld [smem:[#allocation167_spill]] }
0x14f4   :  { %v6212_v13 = vpop.permute.xlu0 %6211 }
0x14f5   :  { %v6242_v61 = vsel %vm19780_vm8, %v6238_v12, %v6212_v13  ;;  %vm19789_vm8 = vmmov %vm19786_vm15  ;;  %vm19794_vm15 = vcmask 1041408  }
0x14f6   :  { %v6246_v32 = vsel %vm19783_vm7, %v6242_v61, %v6228_v50  ;;  %v6240_v13 = vsel %vm19789_vm8, %v17821_v53, %v6200_v31  ;;  %vm19792_vm7 = vmmov %vm19788_vm2 }
0x14f8   :  { %v6210_v45 = vpop.permute.xlu0 %6209 }
0x14f9   :  { %v6241_v48 = vsel %vm19781_vm14, %v6237_v60, %v6210_v45  ;;  %vm19790_vm14 = vmmov %vm19784_vm11 }
0x14fa   :  { %v6245_v26 = vsel %vm19782_vm13, %v6241_v48, %v6226_v25  ;;  %vm19791_vm13 = vmmov %vm19787_vm1 }
0x14fb   :  { %13060 = vmatprep.mubr.msk.f32.mxu0 %vm19784_vm11, %v6245_v26 }
0x14fc   :  { %13061 = vmatmul.mubr.msk.f32.vlgmr.msra.gmra.mrb[70].mxu0 %vm19785_vm12, %v6246_v32  ;;  %v6216_v1 = vpop.permute.xlu0 %6215  ;;  %vm19793_vm12 = vcmask 277504  }
0x14fd   :  { %v6244_v50 = vsel %vm19791_vm13, %v6240_v13, %v6216_v1  ;;  %vm19799_vm13 = vmmov %vm19793_vm12 }
0x1500   :  { %v6214_v33 = vpop.permute.xlu0 %6213 }
0x1501   :  { %v6243_v39 = vsel %vm19787_vm1, %v6239_v30, %v6214_v33  ;;  %vm19795_vm1 = vmmov %vm19794_vm15 }
0x1502   :  { %v6247_v34 = vsel %vm19788_vm2, %v6243_v39, %v6230_v37  ;;  %vm19796_vm2 = vmmov %vm19795_vm1 }
0x1503   :  { %13063 = vmatprep.mubr.msk.f32.mxu0 %vm19790_vm14, %v6247_v34  ;;  %vm19797_vm8 = vmmov %vm19795_vm1 }
0x1504   :  { %v6232_v25 = vpop.permute.xlu0 %6231  ;;  %vm19798_vm14 = vmmov %vm19793_vm12 }
0x1505   :  { %v6248_v12 = vsel %vm19792_vm7, %v6244_v50, %v6232_v25  ;;  %vm19800_vm7 = vmmov %vm19793_vm12 }
0x1506   :  { %13064 = vmatmul.mubr.msk.f32.gmra.mrb[72].mxu0 %vm19784_vm11, %v6248_v12  ;;  %vm19801_vm11 = vmmov %vm19800_vm7 }
0x1507   :  { %13076 = vmatprep.mubr.msk.f32.mxu0 %vm19793_vm12, %v19701_v47  ;;  %vm19802_vm12 = vmmov %vm19795_vm1 }
0x15cf   :  { %v13062_v36 = vpop.f32.mrb[70].mxu0 }
0x15d0   :  { %v6342_v37 = vadd.f32 %v13062_v36, %v10782_v21  ;;  %v6336_v60 = vpop.f32.mrb[71].mxu0 }
0x15d1   :  { %v6337_v53 = vadd.f32 %v10782_v21, %v6336_v60 }
0x15d2   :  { %v6356_v31 = vmax.f32 %v6342_v37, 0.0 }
0x15d3   :  { %v6355_v61 = vmax.f32 %v6337_v53, 0.0 }
0x15d4   :  { %v6381_v45 = vrot.slane %v6356_v31, 7  ;;  %v6363_v31 = vld [vmem:[%s19519_s21 + $0x20] sm:$0xff] }
0x15d5   :  { %v6380_v48 = vrot.slane %v6355_v61, 7  ;;  %v6364_v61 = vld [vmem:[%s19519_s21 + $0x28] sm:$0xff] }
0x15d7   :  { %v6382_v26 = vsel %vm212_vm0, %v6380_v48, %v6381_v45 }
0x15d8   :  { %v14307_v32 = vpack.c.bf16 %v6382_v26, %v6380_v48  ;;  %v6365_v48 = vld [vmem:[%s19519_s21 + $0x30] sm:$0xff]  ;;  %v6366_v26 = vld [vmem:[%s19519_s21 + $0x38] sm:$0xff] }
0x15d9   :  { %v13065_v1 = vpop.f32.mrb[72].mxu0 }
0x15da   :  { %v6352_v30 = vadd.f32 %v13065_v1, %v10782_v21  ;;  %v6346_v33 = vpop.f32.mrb[73].mxu0  ;;  %14309 = vmatprep.subr.msk.bf16.mxu0 %vm15385_vm3, %v14307_v32  ;;  %14319 = vmatprep.subr.msk.bf16.mxu1 %vm15385_vm3, %v14307_v32  ;;  %v6367_v1 = vld [vmem:[%s19519_s21 + $0x40] sm:$0xff] }
0x15db   :  { %v6347_v39 = vadd.f32 %v10782_v21, %v6346_v33  ;;  %14312 = vmatpush3.bf16.msk.msra.mxu0 %vm15385_vm3, %v14307_v32  ;;  %14322 = vmatpush3.bf16.msk.msra.mxu1 %vm15385_vm3, %v14307_v32 }
0x15dc   :  { %v6358_v34 = vmax.f32 %v6352_v30, 0.0  ;;  %v6368_v30 = vld [vmem:[%s19519_s21 + $0x48] sm:$0xff] }
0x15dd   :  { %v6357_v13 = vmax.f32 %v6347_v39, 0.0  ;;  %v14363_v33 = vpack.c.bf16 %v6368_v30, %v6367_v1  ;;  %v6369_v39 = vld [vmem:[%s19519_s21 + $0x50] sm:$0xff] }
0x15de   :  { %v6385_v50 = vrot.slane %v6358_v34, 7  ;;  %v6370_v34 = vld [vmem:[%s19519_s21 + $0x58] sm:$0xff] }
0x15df   :  { %v6383_v25 = vrot.slane %v6357_v13, 7  ;;  %v14367_v13 = vpack.c.bf16 %v6370_v34, %v6369_v39 }
0x15e0   :  { %v6393_v60 = vsel %vm212_vm0, %v6385_v50, 0.0 }
0x15e1   :  { %v6384_v12 = vsel %vm212_vm0, %v6381_v45, %v6383_v25  ;;  %v6386_v36 = vsel %vm212_vm0, %v6383_v25, %v6385_v50  ;;  %v14355_v45 = vpack.c.bf16 %v6364_v61, %v6363_v31  ;;  %v6371_v50 = vld [vmem:[%s19519_s21 + $0x60] sm:$0xff]  ;;  %v6372_v25 = vld [vmem:[%s19519_s21 + $0x68] sm:$0xff] }
0x15e2   :  { %v14313_v37 = vpack.c.bf16 %v6386_v36, %v6384_v12  ;;  %v14371_v36 = vpack.c.bf16 %v6372_v25, %v6371_v50 }
0x15e4   :  { %14314 = vmatprep.subr.bf16.mxu0 %v14313_v37  ;;  %14324 = vmatprep.subr.bf16.mxu1 %v14313_v37 }
0x15e5   :  { %14316 = vmatpush3.bf16.msra.mxu0 %v14313_v37  ;;  %14326 = vmatpush3.bf16.msra.mxu1 %v14313_v37 }
0x15e6   :  { %13074 = vmatprep.subr.msk.mxu0 %vm19794_vm15, %v6393_v60  ;;  %13087 = vmatprep.subr.msk.mxu1 %vm19795_vm1, %v6393_v60  ;;  %vm19803_vm15 = vmmov %vm19795_vm1 }
0x15e9   :  { %13075 = vmatpush3.msk.msra.mxu0 %vm19796_vm2, %v6393_v60  ;;  %13088 = vmatpush3.msk.msra.mxu1 %vm19797_vm8, %v6393_v60  ;;  %vm19804_vm2 = vmmov %vm19795_vm1 }
0x15ea   :  { %13090 = vmatmul.mubr.msk.f32.vlgmr.msra.gmra.mrb[48].mxu1 %vm19798_vm14, %v19715_v3  ;;  %14329 = vmatprep.subr.msk.bf16.mxu0 %vm15385_vm3, %v14307_v32  ;;  %vm19805_vm8 = vmmov %vm19800_vm7  ;;  %v6360_v3 = vld [vmem:[%s19519_s21 + $0x8] sm:$0xff] }
0x15eb   :  { %14339 = vmatprep.subr.msk.bf16.mxu1 %vm15385_vm3, %v14307_v32  ;;  %13077 = vmatmul.mubr.msk.f32.vlgmr.msra.gmra.mrb[74].mxu0 %vm19799_vm13, %v19705_v38  ;;  %vm19806_vm14 = vmmov %vm19800_vm7  ;;  %v6359_v38 = vld [vmem:[%s19519_s21] sm:$0xff]  ;;  %vm19807_vm13 = vcmask 261120  }
0x15ec   :  { %14332 = vmatpush3.bf16.msk.msra.mxu0 %vm15385_vm3, %v14307_v32  ;;  %14342 = vmatpush3.bf16.msk.msra.mxu1 %vm15385_vm3, %v14307_v32  ;;  %v14347_v21 = vpack.c.bf16 %v6360_v3, %v6359_v38  ;;  %v14359_v32 = vpack.c.bf16 %v6366_v26, %v6365_v48 }
0x15ed   :  { %14334 = vmatprep.subr.bf16.mxu0 %v14313_v37  ;;  %14344 = vmatprep.subr.bf16.mxu1 %v14313_v37 }
0x15ee   :  { %13102 = vmatprep.mubr.msk.f32.mxu0 %vm19800_vm7, %v19756_v14  ;;  %13115 = vmatprep.mubr.msk.f32.mxu1 %vm19801_vm11, %v19721_v22  ;;  %vm19808_vm7 = vmmov %vm19807_vm13  ;;  %vm19809_vm11 = vcmask 523264  }
0x15f0   :  { %14336 = vmatpush3.bf16.msra.mxu0 %v14313_v37  ;;  %14346 = vmatpush3.bf16.msra.mxu1 %v14313_v37 }
0x15f1   :  { %13100 = vmatprep.subr.msk.mxu0 %vm19802_vm12, %v6393_v60  ;;  %13113 = vmatprep.subr.msk.mxu1 %vm19803_vm15, %v6393_v60  ;;  %vm19810_vm12 = vmmov %vm19809_vm11  ;;  %vm19811_vm15 = vcmask 785408  }
0x15f4   :  { %13101 = vmatpush3.msk.msra.mxu0 %vm19795_vm1, %v6393_v60  ;;  %13114 = vmatpush3.msk.msra.mxu1 %vm19804_vm2, %v6393_v60  ;;  %vm19812_vm1 = vmmov %vm19811_vm15 }
0x15f5   :  { %13103 = vmatmul.mubr.msk.f32.vlgmr.msra.gmra.mrb[76].mxu0 %vm19805_vm8, %v19760_v9  ;;  %13116 = vmatmul.mubr.msk.f32.vlgmr.msra.gmra.mrb[50].mxu1 %vm19806_vm14, %v19725_v4  ;;  %v6361_v9 = vld [vmem:[%s19519_s21 + $0x10] sm:$0xff]  ;;  %v6362_v4 = vld [vmem:[%s19519_s21 + $0x18] sm:$0xff]  ;;  %vm19817_vm8 = vcmask 146432   ;;  %vm19818_vm14 = vmmov %vm19804_vm2 }
0x15f6   :  { %14379 = vmatprep.subr.bf16.mxu1 %v19621_v49  ;;  %13159 = vmatprep.mubr.msk.f32.mxu1 %vm15252_vm6, %v19594_v56  ;;  %v14351_v53 = vpack.c.bf16 %v6362_v4, %v6361_v9  ;;  %v6373_v9 = vld [vmem:[%s19519_s21 + $0x70] sm:$0xff] }
0x15f7   :  { %14348 = vmatprep.subr.bf16.mxu0 %v14347_v21 }
0x15f8   :  { %14350 = vmatpush3.bf16.msra.mxu0 %v14347_v21  ;;  %v6374_v21 = vld [vmem:[%s19519_s21 + $0x78] sm:$0xff] }
0x15f9   :  { %14352 = vmatprep.subr.bf16.mxu0 %v14351_v53  ;;  %v14375_v4 = vpack.c.bf16 %v6374_v21, %v6373_v9 }
0x15fc   :  { %14354 = vmatpush3.bf16.msra.mxu0 %v14351_v53 }
0x15fd   :  { %14356 = vmatprep.subr.bf16.mxu0 %v14355_v45 }
0x1600   :  { %14358 = vmatpush3.bf16.msra.mxu0 %v14355_v45 }
0x1601   :  { %14360 = vmatprep.subr.bf16.mxu0 %v14359_v32 }
0x1604   :  { %14362 = vmatpush3.bf16.msra.mxu0 %v14359_v32 }
0x1605   :  { %14364 = vmatprep.subr.bf16.mxu0 %v14363_v33 }
0x1608   :  { %14366 = vmatpush3.bf16.msra.mxu0 %v14363_v33 }
0x1609   :  { %14368 = vmatprep.subr.bf16.mxu0 %v14367_v13 }
0x160c   :  { %14370 = vmatpush3.bf16.msra.mxu0 %v14367_v13 }
0x160d   :  { %14372 = vmatprep.subr.bf16.mxu0 %v14371_v36 }
0x1610   :  { %14374 = vmatpush3.bf16.msra.mxu0 %v14371_v36 }
0x1611   :  { %14376 = vmatprep.subr.bf16.mxu0 %v14375_v4 }
0x1614   :  { %14378 = vmatpush3.bf16.msra.mxu0 %v14375_v4  ;;  %v19815_v4 = vld [vmem:[#allocation43_spill] sm:$0xff] }
0x1615   :  { %14429 = vmatprep.subr.msk.bf16.mxu0 %vm15879_vm9, %v15883_v29 }
0x16bd   :  { %v13091_v12 = vpop.f32.mrb[48].mxu1 }
0x16be   :  { %v6538_v37 = vpop.f32.mrb[49].mxu1  ;;  %v13078_v60 = vpop.f32.mrb[74].mxu0 }
0x16bf   :  { %v15098_v38 = vpack.i.bf16 %v13091_v12, %v6538_v37  ;;  %v6463_v3 = vpop.f32.mrb[75].mxu0 }
0x16c1   :  { %15099 = vrot.lane.b32.xlu0 %v15098_v38, %s19685_s22 }
0x16c8   :  { %v13104_v53 = vpop.f32.mrb[76].mxu0  ;;  %v13117_v31 = vpop.f32.mrb[50].mxu1 }
0x16c9   :  { %v6613_v61 = vpop.f32.mrb[77].mxu0  ;;  %v6688_v45 = vpop.f32.mrb[51].mxu1 }
0x16ca   :  { %v15103_v48 = vpack.i.bf16 %v13104_v53, %v6613_v61  ;;  %v15108_v26 = vpack.i.bf16 %v13117_v31, %v6688_v45  ;;  %v19816_v53 = vld [vmem:[#allocation45_spill] sm:$0xff] }
0x16cb   :  { %v10808_v31 = vld [vmem:[%s19520_s3] ss:$0 sm:$0xff] }
0x16cc   :  { %15104 = vrot.lane.b32.xlu0 %v15103_v48, %s19524_s1 }
0x16d0   :  { %15109 = vrot.lane.b32.xlu0 %v15108_v26, %s19601_s6 }
0x1733   :  { %v15100_v32 = vpop.permute.xlu0 %15099 }
0x1734   :  { %v15102_v30 = vunpack.i.h.bf16 %v15100_v32  ;;  %v15101_v33 = vunpack.i.l.bf16 %v15100_v32 }
0x1736   :  { %v6722_v50 = vsel %vm19807_vm13, %v13078_v60, %v15102_v30  ;;  %v6721_v36 = vsel %vm19808_vm7, %v6463_v3, %v15101_v33  ;;  %v19813_v60 = vld [vmem:[#allocation27_spill] sm:$0xff]  ;;  %v19814_v3 = vld [vmem:[#allocation41_spill] sm:$0xff]  ;;  %vm19819_vm13 = vmmov %vm19817_vm8 }
0x1737   :  { %vm19820_vm7 = vmmov %vm19804_vm2 }
0x173e   :  { %v15105_v1 = vpop.permute.xlu0 %15104 }
0x173f   :  { %v15107_v39 = vunpack.i.h.bf16 %v15105_v1  ;;  %v15106_v34 = vunpack.i.l.bf16 %v15105_v1 }
0x1741   :  { %v6723_v37 = vsel %vm19809_vm11, %v6721_v36, %v15106_v34  ;;  %v6724_v38 = vsel %vm19810_vm12, %v6722_v50, %v15107_v39  ;;  %vm19821_vm11 = vmmov %vm19817_vm8  ;;  %v6811_v50 = vld [vmem:[%s19190_s5 + $0x8] sm:$0xff] }
0x1742   :  { %v15110_v13 = vpop.permute.xlu0 %15109  ;;  %vm19822_vm12 = vmmov %vm19804_vm2 }
0x1743   :  { %v15112_v25 = vunpack.i.h.bf16 %v15110_v13  ;;  %v15111_v12 = vunpack.i.l.bf16 %v15110_v13 }
0x1745   :  { %v6725_v9 = vsel %vm19811_vm15, %v6723_v37, %v15111_v12  ;;  %v6726_v21 = vsel %vm19812_vm1, %v6724_v38, %v15112_v25  ;;  %vm19823_vm15 = vmmov %vm19817_vm8  ;;  %v6829_v25 = vld [vmem:[%s19190_s5 + $0x98] sm:$0xff]  ;;  %v14397_v12 = vpack.c.bf16 %v6811_v50, %v6810_v63  ;;  %v6812_v37 = vld [vmem:[%s19190_s5 + $0x10] sm:$0xff] }
0x1746   :  { %13150 = vmatprep.mubr.f32.mxu0 %v6725_v9  ;;  %v6813_v38 = vld [vmem:[%s19190_s5 + $0x18] sm:$0xff]  ;;  %v6830_v9 = vld [vmem:[%s19190_s5 + $0xa0] sm:$0xff]  ;;  %v6836_v50 = vld [vmem:[%s19190_s5 + $0xd0] sm:$0xff] }
0x1747   :  { %13151 = vmatmul.mubr.f32.vlgmr.msra.gmra.mrb[78].mxu0 %v6726_v21  ;;  %v6831_v21 = vld [vmem:[%s19190_s5 + $0xa8] sm:$0xff]  ;;  %v6818_v63 = vld [vmem:[%s19190_s5 + $0x40] sm:$0xff] }
0x1748   :  { %14432 = vmatpush3.bf16.xpose.msk.msra.mxu0 %vm15879_vm9, %v15902_v41 }
0x1749   :  { %14435 = vmatprep.subr.msk.bf16.mxu0 %vm15879_vm9, %v15913_v44 }
0x1750   :  { %14438 = vmatpush3.bf16.xpose.msk.msra.mxu0 %vm15879_vm9, %v15928_v59 }
0x1751   :  { %14441 = vmatprep.subr.msk.bf16.mxu0 %vm15879_vm9, %v15936_v62 }
0x1758   :  { %14444 = vmatpush3.bf16.xpose.msk.msra.mxu0 %vm15879_vm9, %v15950_v7 }
0x1759   :  { %14447 = vmatprep.subr.msk.bf16.mxu0 %vm15879_vm9, %v15958_v11 }
0x1760   :  { %14450 = vmatpush3.bf16.xpose.msk.msra.mxu0 %vm15879_vm9, %v15972_v16 }
0x1761   :  { %14453 = vmatprep.subr.msk.bf16.mxu0 %vm15879_vm9, %v15980_v19 }
0x1768   :  { %14456 = vmatpush3.bf16.xpose.msk.msra.mxu0 %vm15879_vm9, %v15994_v23 }
0x1769   :  { %14459 = vmatprep.subr.msk.bf16.mxu0 %vm15879_vm9, %v16002_v28 }
0x1770   :  { %14462 = vmatpush3.bf16.xpose.msk.msra.mxu0 %vm15879_vm9, %v16016_v35 }
0x1771   :  { %14465 = vmatprep.subr.msk.bf16.mxu0 %vm15879_vm9, %v16024_v43 }
0x1778   :  { %14468 = vmatpush3.bf16.xpose.msk.msra.mxu0 %vm15879_vm9, %v19813_v60 }
0x1779   :  { %14471 = vmatprep.subr.msk.bf16.mxu0 %vm15879_vm9, %v19814_v3 }
0x1780   :  { %14474 = vmatpush3.bf16.xpose.msk.msra.mxu0 %vm15879_vm9, %v19815_v4 }
0x1781   :  { %14525 = vmatprep.subr.msk.bf16.mxu0 %vm15879_vm9, %v19816_v53 }
0x181a   :  { %v13152_v61 = vpop.f32.mrb[78].mxu0 }
0x181b   :  { %v6805_v45 = vadd.f32 %v13152_v61, %v10808_v31  ;;  %v6799_v48 = vpop.f32.mrb[79].mxu0  ;;  %v14403_v61 = vpack.c.bf16 %v6831_v21, %v6830_v9  ;;  %v6839_v9 = vld [vmem:[%s19190_s5 + $0xe8] sm:$0xff] }
0x181c   :  { %v6800_v26 = vadd.f32 %v10808_v31, %v6799_v48  ;;  %v14401_v31 = vpack.c.bf16 %v6813_v38, %v6812_v37  ;;  %v6815_v48 = vld [vmem:[%s19190_s5 + $0x28] sm:$0xff]  ;;  %v6821_v37 = vld [vmem:[%s19190_s5 + $0x58] sm:$0xff]  ;;  %v6838_v38 = vld [vmem:[%s19190_s5 + $0xe0] sm:$0xff] }
0x181d   :  { %v6809_v32 = vmax.f32 %v6805_v45, 0.0  ;;  %v6814_v45 = vld [vmem:[%s19190_s5 + $0x20] sm:$0xff] }
0x181e   :  { %v6808_v1 = vmax.f32 %v6800_v26, 0.0  ;;  %v6832_v26 = vld [vmem:[%s19190_s5 + $0xb0] sm:$0xff] }
0x181f   :  { %v6846_v30 = vrot.slane %v6809_v32, 7  ;;  %v6833_v32 = vld [vmem:[%s19190_s5 + $0xb8] sm:$0xff] }
0x1820   :  { %v6845_v33 = vrot.slane %v6808_v1, 7  ;;  %v14405_v1 = vpack.c.bf16 %v6815_v48, %v6814_v45  ;;  %v6823_v45 = vld [vmem:[%s19190_s5 + $0x68] sm:$0xff] }
0x1821   :  { %v6852_v13 = vsel %vm212_vm0, %v6846_v30, 0.0 }
0x1822   :  { %v6847_v39 = vsel %vm212_vm0, %v6845_v33, %v6846_v30  ;;  %v14407_v30 = vpack.c.bf16 %v6833_v32, %v6832_v26 }
0x1823   :  { %v14380_v34 = vpack.c.bf16 %v6847_v39, %v6845_v33  ;;  %v6816_v33 = vld [vmem:[%s19190_s5 + $0x30] sm:$0xff]  ;;  %v6817_v39 = vld [vmem:[%s19190_s5 + $0x38] sm:$0xff] }
0x1825   :  { %14382 = vmatpush3.bf16.msk.msra.mxu1 %vm15385_vm3, %v14380_v34 }
0x1826   :  { %13157 = vmatprep.subr.mxu1 %v19594_v56 }
0x1829   :  { %13158 = vmatpush3.msk.msra.mxu1 %vm19804_vm2, %v6852_v13 }
0x182a   :  { %14383 = vmatprep.subr.bf16.mxu1 %v19621_v49  ;;  %13160 = vmatmul.mubr.msk.f32.vlgmr.msra.gmra.mrb[52].mxu1 %vm19817_vm8, %v19701_v47  ;;  %v6826_v47 = vld [vmem:[%s19190_s5 + $0x80] sm:$0xff] }
0x182b   :  { %14386 = vmatpush3.bf16.msk.msra.mxu1 %vm15385_vm3, %v14380_v34  ;;  %13168 = vmatprep.mubr.msk.f32.mxu1 %vm15252_vm6, %v19594_v56 }
0x182c   :  { %13166 = vmatprep.subr.mxu1 %v19594_v56 }
0x182f   :  { %13167 = vmatpush3.msk.msra.mxu1 %vm19818_vm14, %v6852_v13 }
0x1830   :  { %14387 = vmatprep.subr.bf16.mxu1 %v19621_v49  ;;  %13169 = vmatmul.mubr.msk.f32.vlgmr.msra.gmra.mrb[54].mxu1 %vm19819_vm13, %v19711_v18  ;;  %v6827_v18 = vld [vmem:[%s19190_s5 + $0x88] sm:$0xff] }
0x1831   :  { %14390 = vmatpush3.bf16.msk.msra.mxu1 %vm15385_vm3, %v14380_v34  ;;  %13177 = vmatprep.mubr.msk.f32.mxu1 %vm15252_vm6, %v19594_v56 }
0x1832   :  { %13175 = vmatprep.subr.mxu1 %v19594_v56 }
0x1835   :  { %13176 = vmatpush3.msk.msra.mxu1 %vm19820_vm7, %v6852_v13 }
0x1836   :  { %14391 = vmatprep.subr.bf16.mxu1 %v19621_v49  ;;  %13178 = vmatmul.mubr.msk.f32.vlgmr.msra.gmra.mrb[56].mxu1 %vm19821_vm11, %v19756_v14  ;;  %v14395_v14 = vpack.c.bf16 %v6827_v18, %v6826_v47  ;;  %v14409_v47 = vpack.c.bf16 %v6817_v39, %v6816_v33  ;;  %v19868_v49 = vld [vmem:[#allocation66_spill] sm:$0xff] }
0x1837   :  { %14394 = vmatpush3.bf16.msk.msra.mxu1 %vm15385_vm3, %v14380_v34  ;;  %13186 = vmatprep.mubr.msk.f32.mxu1 %vm15252_vm6, %v19594_v56  ;;  %v6834_v34 = vld [vmem:[%s19190_s5 + $0xc0] sm:$0xff]  ;;  %vm19825_vm3 = vcmask 523264  }
0x1838   :  { %13184 = vmatprep.subr.mxu1 %v19594_v56  ;;  %vm19826_vm1 = vmmov %vm19825_vm3  ;;  %v19867_v56 = vld [vmem:[#allocation65_spill] sm:$0xff] }
0x1839   :  { %vm19844_vm2 = vmmov %vm19826_vm1 }
0x183a   :  { %vm19845_vm8 = vmmov %vm19826_vm1 }
0x183b   :  { %13185 = vmatpush3.msk.msra.mxu1 %vm19822_vm12, %v6852_v13  ;;  %v6835_v13 = vld [vmem:[%s19190_s5 + $0xc8] sm:$0xff]  ;;  %vm19846_vm14 = vmmov %vm19826_vm1 }
0x183c   :  { %13187 = vmatmul.mubr.msk.f32.vlgmr.msra.gmra.mrb[58].mxu1 %vm19823_vm15, %v19721_v22  ;;  %v6828_v22 = vld [vmem:[%s19190_s5 + $0x90] sm:$0xff]  ;;  %14396 = vmatprep.subr.bf16.mxu1 %v14395_v14  ;;  %v14411_v18 = vpack.c.bf16 %v6835_v13, %v6834_v34  ;;  %v6819_v14 = vld [vmem:[%s19190_s5 + $0x48] sm:$0xff]  ;;  %v6825_v13 = vld [vmem:[%s19190_s5 + $0x78] sm:$0xff] }
0x183d   :  { %v14399_v36 = vpack.c.bf16 %v6829_v25, %v6828_v22  ;;  %14398 = vmatpush3.bf16.msra.mxu1 %v14397_v12  ;;  %v6837_v22 = vld [vmem:[%s19190_s5 + $0xd8] sm:$0xff]  ;;  %v14413_v25 = vpack.c.bf16 %v6819_v14, %v6818_v63  ;;  %v6824_v34 = vld [vmem:[%s19190_s5 + $0x70] sm:$0xff]  ;;  %v19824_v63 = vld [vmem:[#allocation26_spill] sm:$0xff] }
0x183e   :  { %v14415_v12 = vpack.c.bf16 %v6837_v22, %v6836_v50  ;;  %vm19847_vm13 = vmmov %vm19826_vm1 }
0x183f   :  { %14400 = vmatprep.subr.bf16.mxu1 %v14399_v36  ;;  %v6820_v36 = vld [vmem:[%s19190_s5 + $0x50] sm:$0xff]  ;;  %vm19848_vm7 = vmmov %vm19826_vm1 }
0x1840   :  { %v14417_v21 = vpack.c.bf16 %v6821_v37, %v6820_v36  ;;  %vm19849_vm11 = vmmov %vm19826_vm1 }
0x1841   :  { %14402 = vmatpush3.bf16.msra.mxu1 %v14401_v31  ;;  %v14419_v31 = vpack.c.bf16 %v6839_v9, %v6838_v38  ;;  %vm19872_vm12 = vmmov %vm19826_vm1 }
0x1842   :  { %14404 = vmatprep.subr.bf16.mxu1 %v14403_v61  ;;  %v6822_v61 = vld [vmem:[%s19190_s5 + $0x60] sm:$0xff]  ;;  %vm19873_vm15 = vmmov %vm19826_vm1 }
0x1843   :  { %v14421_v48 = vpack.c.bf16 %v6823_v45, %v6822_v61  ;;  %v19828_v61 = vld [vmem:[#allocation29_spill] sm:$0xff]  ;;  %v19829_v45 = vld [vmem:[#allocation30_spill] sm:$0xff] }
0x1845   :  { %14406 = vmatpush3.bf16.msra.mxu1 %v14405_v1  ;;  %v6840_v1 = vld [vmem:[%s19190_s5 + $0xf0] sm:$0xff] }
0x1846   :  { %14408 = vmatprep.subr.bf16.mxu1 %v14407_v30  ;;  %v6841_v30 = vld [vmem:[%s19190_s5 + $0xf8] sm:$0xff] }
0x1847   :  { %v14423_v39 = vpack.c.bf16 %v6841_v30, %v6840_v1  ;;  %v19833_v1 = vld [vmem:[#allocation34_spill] sm:$0xff]  ;;  %v19834_v30 = vld [vmem:[#allocation35_spill] sm:$0xff] }
0x1849   :  { %14410 = vmatpush3.bf16.msra.mxu1 %v14409_v47 }
0x184a   :  { %14412 = vmatprep.subr.bf16.mxu1 %v14411_v18  ;;  %v14425_v18 = vpack.c.bf16 %v6825_v13, %v6824_v34  ;;  %v19837_v34 = vld [vmem:[#allocation38_spill] sm:$0xff]  ;;  %v19838_v13 = vld [vmem:[#allocation39_spill] sm:$0xff] }
0x184d   :  { %14414 = vmatpush3.bf16.msra.mxu1 %v14413_v25 }
0x184e   :  { %14416 = vmatprep.subr.bf16.mxu1 %v14415_v12 }
0x1851   :  { %14418 = vmatpush3.bf16.msra.mxu1 %v14417_v21 }
0x1852   :  { %14420 = vmatprep.subr.bf16.mxu1 %v14419_v31  ;;  %v19827_v31 = vld [vmem:[#allocation28_spill] sm:$0xff] }
0x1855   :  { %14422 = vmatpush3.bf16.msra.mxu1 %v14421_v48  ;;  %v19830_v48 = vld [vmem:[#allocation31_spill] sm:$0xff] }
0x1856   :  { %14424 = vmatprep.subr.bf16.mxu1 %v14423_v39  ;;  %v19836_v39 = vld [vmem:[#allocation37_spill] sm:$0xff] }
0x1859   :  { %14426 = vmatpush3.bf16.msra.mxu1 %v14425_v18  ;;  %v19840_v18 = vld [vmem:[#allocation42_spill] sm:$0xff] }
0x185a   :  { %14477 = vmatprep.subr.msk.bf16.mxu1 %vm15879_vm9, %v19824_v63 }
0x18fd   :  { %v6922_v26 = vpop.f32.mrb[52].mxu1 }
0x18fe   :  { %v13161_v32 = vpop.f32.mrb[53].mxu1 }
0x18ff   :  { %v19831_v32 = vld [vmem:[#allocation32_spill] sm:$0xff] }
0x1903   :  { %v6992_v33 = vpop.f32.mrb[54].mxu1 }
0x1904   :  { %v13170_v47 = vpop.f32.mrb[55].mxu1 }
0x1905   :  { %v19839_v47 = vld [vmem:[#allocation40_spill] sm:$0xff] }
0x1909   :  { %v7062_v14 = vpop.f32.mrb[56].mxu1 }
0x190a   :  { %v13179_v50 = vpop.f32.mrb[57].mxu1 }
0x190b   :  { %v19842_v50 = vld [vmem:[#allocation46_spill] sm:$0xff] }
0x190f   :  { %v7132_v22 = vpop.f32.mrb[58].mxu1 }
0x1910   :  { %v15113_v25 = vpack.i.bf16 %v6992_v33, %v7132_v22  ;;  %v13188_v12 = vpop.f32.mrb[59].mxu1  ;;  %v19835_v33 = vld [vmem:[#allocation36_spill] sm:$0xff] }
0x1912   :  { %15114 = vrot.lane.b32.xlu1 %v15113_v25, %s19524_s1  ;;  %v10825_v25 = vld [vmem:[%s19843_s25] ss:$0 sm:$0xff] }
0x1984   :  { %v15115_v36 = vpop.permute.xlu1 %15114 }
0x1985   :  { %v15117_v37 = vunpack.i.h.bf16 %v15115_v36  ;;  %v15116_v38 = vunpack.i.l.bf16 %v15115_v36 }
0x1987   :  { %v7145_v9 = vsel %vm19825_vm3, %v7062_v14, %v15116_v38  ;;  %v7144_v21 = vsel %vm19826_vm1, %v6922_v26, %v15117_v37  ;;  %v19832_v26 = vld [vmem:[#allocation33_spill] sm:$0xff]  ;;  %v19841_v14 = vld [vmem:[#allocation44_spill] sm:$0xff] }
0x1988   :  { %7216 = vmatprep.mubr.f32.mxu1 %v7145_v9  ;;  %v19850_v9 = vld [vmem:[#allocation48_spill] sm:$0xff] }
0x1989   :  { %7217 = vmatmul.mubr.f32.vlgmr.msra.gmra.mrb[60].mxu1 %v7144_v21  ;;  %v19851_v21 = vld [vmem:[#allocation49_spill] sm:$0xff] }
0x198a   :  { %14480 = vmatpush3.bf16.xpose.msk.msra.mxu1 %vm15879_vm9, %v19827_v31 }
0x198b   :  { %14483 = vmatprep.subr.msk.bf16.mxu1 %vm15879_vm9, %v19828_v61 }
0x1992   :  { %14486 = vmatpush3.bf16.xpose.msk.msra.mxu1 %vm15879_vm9, %v19829_v45 }
0x1993   :  { %14489 = vmatprep.subr.msk.bf16.mxu1 %vm15879_vm9, %v19830_v48 }
0x199a   :  { %14492 = vmatpush3.bf16.xpose.msk.msra.mxu1 %vm15879_vm9, %v19831_v32 }
0x199b   :  { %14495 = vmatprep.subr.msk.bf16.mxu1 %vm15879_vm9, %v19832_v26 }
0x19a2   :  { %14498 = vmatpush3.bf16.xpose.msk.msra.mxu1 %vm15879_vm9, %v19833_v1 }
0x19a3   :  { %14501 = vmatprep.subr.msk.bf16.mxu1 %vm15879_vm9, %v19834_v30 }
0x19aa   :  { %14504 = vmatpush3.bf16.xpose.msk.msra.mxu1 %vm15879_vm9, %v19835_v33 }
0x19ab   :  { %14507 = vmatprep.subr.msk.bf16.mxu1 %vm15879_vm9, %v19836_v39 }
0x19b2   :  { %14510 = vmatpush3.bf16.xpose.msk.msra.mxu1 %vm15879_vm9, %v19837_v34 }
0x19b3   :  { %14513 = vmatprep.subr.msk.bf16.mxu1 %vm15879_vm9, %v19838_v13 }
0x19ba   :  { %14516 = vmatpush3.bf16.xpose.msk.msra.mxu1 %vm15879_vm9, %v19839_v47 }
0x19bb   :  { %14519 = vmatprep.subr.msk.bf16.mxu1 %vm15879_vm9, %v19840_v18 }
0x19c2   :  { %14522 = vmatpush3.bf16.xpose.msk.msra.mxu1 %vm15879_vm9, %v19841_v14 }
0x19c3   :  { %14573 = vmatprep.subr.msk.bf16.mxu1 %vm15879_vm9, %v19842_v50 }
0x1a5c   :  { %v11882_v22 = vpop.f32.mrb[60].mxu1 }
0x1a5d   :  { %v11883_v12 = vpop.f32.mrb[61].mxu1 }
0x1a5e   :  { %v11884_v36 = vadd.f32 %v11883_v12, %v11882_v22  ;;  %v19852_v22 = vld [vmem:[#allocation50_spill] sm:$0xff]  ;;  %v19854_v12 = vld [vmem:[#allocation52_spill] sm:$0xff] }
0x1a60   :  { %v7219_v37 = vadd.f32 %v11884_v36, %v10825_v25  ;;  %v19853_v25 = vld [vmem:[#allocation51_spill] sm:$0xff]  ;;  %v19855_v36 = vld [vmem:[#allocation53_spill] sm:$0xff] }
0x1a62   :  { %v18307_v38 = vmax.f32 %v7219_v37, 0.0  ;;  %v19856_v37 = vld [vmem:[#allocation54_spill] sm:$0xff] }
0x1a64   :  { %11917 = vmatprep.mubr.msk.f32.mxu0 %vm19844_vm2, %v18307_v38  ;;  %11951 = vmatprep.mubr.msk.f32.mxu1 %vm19845_vm8, %v18307_v38 }
0x1a65   :  { %11918 = vmatmul.mubr.msk.f32.vlgmr.msra.gmra.mrb[80].mxu0 %vm19846_vm14, %v18307_v38  ;;  %11952 = vmatmul.mubr.msk.f32.vlgmr.msra.gmra.mrb[62].mxu1 %vm19847_vm13, %v18307_v38 }
0x1a66   :  { %14528 = vmatpush3.bf16.xpose.msk.msra.mxu0 %vm15879_vm9, %v16285_v2  ;;  %14576 = vmatpush3.bf16.xpose.msk.msra.mxu1 %vm15879_vm9, %v16287_v46 }
0x1a67   :  { %11985 = vmatprep.mubr.msk.f32.mxu0 %vm19848_vm7, %v18307_v38  ;;  %12019 = vmatprep.mubr.msk.f32.mxu1 %vm19849_vm11, %v18307_v38 }
0x1a68   :  { %14531 = vmatprep.subr.msk.bf16.mxu0 %vm15879_vm9, %v16293_v6  ;;  %14579 = vmatprep.subr.msk.bf16.mxu1 %vm15879_vm9, %v16295_v0 }
0x1a6e   :  { %14534 = vmatpush3.bf16.xpose.msk.msra.mxu0 %vm15879_vm9, %v16341_v8  ;;  %14582 = vmatpush3.bf16.xpose.msk.msra.mxu1 %vm15879_vm9, %v16343_v54 }
0x1a6f   :  { %14537 = vmatprep.subr.msk.bf16.mxu0 %vm15879_vm9, %v16345_v52  ;;  %14585 = vmatprep.subr.msk.bf16.mxu1 %vm15879_vm9, %v16347_v51 }
0x1a76   :  { %14540 = vmatpush3.bf16.xpose.msk.msra.mxu0 %vm15879_vm9, %v19850_v9  ;;  %14588 = vmatpush3.bf16.xpose.msk.msra.mxu1 %vm15879_vm9, %v19851_v21 }
0x1a77   :  { %14543 = vmatprep.subr.msk.bf16.mxu0 %vm15879_vm9, %v19852_v22  ;;  %14591 = vmatprep.subr.msk.bf16.mxu1 %vm15879_vm9, %v19853_v25 }
0x1a7e   :  { %14546 = vmatpush3.bf16.xpose.msk.msra.mxu0 %vm15879_vm9, %v19854_v12  ;;  %14594 = vmatpush3.bf16.xpose.msk.msra.mxu1 %vm15879_vm9, %v19855_v36 }
0x1a7f   :  { %14549 = vmatprep.subr.msk.bf16.mxu0 %vm15879_vm9, %v19856_v37  ;;  %14597 = vmatprep.subr.msk.bf16.mxu1 %vm15879_vm9, %v19857_v10 }
0x1a86   :  { %14552 = vmatpush3.bf16.xpose.msk.msra.mxu0 %vm15879_vm9, %v19858_v24  ;;  %14600 = vmatpush3.bf16.xpose.msk.msra.mxu1 %vm15879_vm9, %v19859_v40 }
0x1a87   :  { %14555 = vmatprep.subr.msk.bf16.mxu0 %vm15879_vm9, %v19860_v5  ;;  %14603 = vmatprep.subr.msk.bf16.mxu1 %vm15879_vm9, %v19861_v58 }
0x1a8e   :  { %14558 = vmatpush3.bf16.xpose.msk.msra.mxu0 %vm15879_vm9, %v19862_v55  ;;  %14606 = vmatpush3.bf16.xpose.msk.msra.mxu1 %vm15879_vm9, %v19863_v15  ;;  %v19869_v15 = vld [vmem:[#allocation67_spill] sm:$0xff] }
0x1a8f   :  { %14561 = vmatprep.subr.msk.bf16.mxu0 %vm15879_vm9, %v19864_v17  ;;  %14609 = vmatprep.subr.msk.bf16.mxu1 %vm15879_vm9, %v19865_v42  ;;  %v19870_v17 = vld [vmem:[#allocation68_spill] sm:$0xff]  ;;  %v19871_v42 = vld [vmem:[#allocation69_spill] sm:$0xff] }
0x1a96   :  { %14564 = vmatpush3.bf16.xpose.msk.msra.mxu0 %vm15879_vm9, %v19866_v57  ;;  %14612 = vmatpush3.bf16.xpose.msk.msra.mxu1 %vm15879_vm9, %v19867_v56 }
0x1a97   :  { %14567 = vmatprep.subr.msk.bf16.mxu0 %vm15879_vm9, %v19868_v49  ;;  %14615 = vmatprep.subr.msk.bf16.mxu1 %vm15879_vm9, %v19869_v15 }
0x1a9e   :  { %14570 = vmatpush3.bf16.xpose.msk.msra.mxu0 %vm15879_vm9, %v19870_v17  ;;  %14618 = vmatpush3.bf16.xpose.msk.msra.mxu1 %vm15879_vm9, %v19871_v42 }
0x1a9f   :  { %14620 = vmatprep.subr.bf16.mxu0 %v15883_v29  ;;  %14652 = vmatprep.subr.bf16.mxu1 %v19824_v63  ;;  %v19875_v63 = vld [vmem:[#allocation71_spill] sm:$0xff] }
0x1aa5   :  { %11986 = vmatmul.mubr.msk.f32.vlgmr.msra.gmra.mrb[82].mxu0 %vm19872_vm12, %v18307_v38  ;;  %12020 = vmatmul.mubr.msk.f32.vlgmr.msra.gmra.mrb[64].mxu1 %vm19873_vm15, %v18307_v38 }
0x1aa6   :  { %14622 = vmatpush3.bf16.msra.mxu0 %v15902_v41  ;;  %14654 = vmatpush3.bf16.msra.mxu1 %v19827_v31 }
0x1aa7   :  { %14624 = vmatprep.subr.bf16.mxu0 %v15913_v44  ;;  %14656 = vmatprep.subr.bf16.mxu1 %v19828_v61  ;;  %v19876_v61 = vld [vmem:[#allocation74_spill] sm:$0xff] }
0x1aaa   :  { %14626 = vmatpush3.bf16.msra.mxu0 %v15928_v59  ;;  %14658 = vmatpush3.bf16.msra.mxu1 %v19829_v45 }
0x1aab   :  { %14628 = vmatprep.subr.bf16.mxu0 %v15936_v62  ;;  %14660 = vmatprep.subr.bf16.mxu1 %v19830_v48  ;;  %v19877_v48 = vld [vmem:[#allocation75_spill] sm:$0xff] }
0x1aae   :  { %14630 = vmatpush3.bf16.msra.mxu0 %v15950_v7  ;;  %14662 = vmatpush3.bf16.msra.mxu1 %v19831_v32 }
0x1aaf   :  { %14632 = vmatprep.subr.bf16.mxu0 %v15958_v11  ;;  %14664 = vmatprep.subr.bf16.mxu1 %v19832_v26  ;;  %v19878_v26 = vld [vmem:[#allocation72_spill] sm:$0xff] }
0x1ab2   :  { %14634 = vmatpush3.bf16.msra.mxu0 %v15972_v16  ;;  %14666 = vmatpush3.bf16.msra.mxu1 %v19833_v1 }
0x1ab3   :  { %14636 = vmatprep.subr.bf16.mxu0 %v15980_v19  ;;  %14668 = vmatprep.subr.bf16.mxu1 %v19834_v30  ;;  %v19879_v30 = vld [vmem:[#allocation73_spill] sm:$0xff] }
0x1ab6   :  { %14638 = vmatpush3.bf16.msra.mxu0 %v15994_v23  ;;  %14670 = vmatpush3.bf16.msra.mxu1 %v19835_v33 }
0x1ab7   :  { %14640 = vmatprep.subr.bf16.mxu0 %v16002_v28  ;;  %14672 = vmatprep.subr.bf16.mxu1 %v19836_v39  ;;  %v19880_v39 = vld [vmem:[#allocation76_spill] sm:$0xff] }
0x1aba   :  { %14642 = vmatpush3.bf16.msra.mxu0 %v16016_v35  ;;  %14674 = vmatpush3.bf16.msra.mxu1 %v19837_v34 }
0x1abb   :  { %14644 = vmatprep.subr.bf16.mxu0 %v16024_v43  ;;  %14676 = vmatprep.subr.bf16.mxu1 %v19838_v13  ;;  %v19881_v13 = vld [vmem:[#allocation77_spill] sm:$0xff] }
0x1abe   :  { %14646 = vmatpush3.bf16.msra.mxu0 %v19813_v60  ;;  %14678 = vmatpush3.bf16.msra.mxu1 %v19839_v47 }
0x1abf   :  { %14648 = vmatprep.subr.bf16.mxu0 %v19814_v3  ;;  %14680 = vmatprep.subr.bf16.mxu1 %v19840_v18 }
0x1ac2   :  { %14650 = vmatpush3.bf16.msra.mxu0 %v19815_v4  ;;  %14682 = vmatpush3.bf16.msra.mxu1 %v19841_v14  ;;  %v19874_v4 = vld [vmem:[#allocation70_spill] sm:$0xff] }
0x1ac3   :  { %14684 = vmatprep.subr.bf16.mxu0 %v19816_v53  ;;  %14716 = vmatprep.subr.bf16.mxu1 %v19842_v50 }
0x1b38   :  { %v7292_v27 = vpop.f32.mrb[80].mxu0  ;;  %v7363_v29 = vpop.f32.mrb[62].mxu1 }
0x1b39   :  { %v7294_v41 = vpop.f32.mrb[81].mxu0  ;;  %v7365_v44 = vpop.f32.mrb[63].mxu1  ;;  %v7510_v59 = vmul.f32 2.0, %v7292_v27  ;;  %v7512_v62 = vmul.f32 2.0, %v7363_v29 }
0x1b3a   :  { %v7511_v7 = vmul.f32 2.0, %v7294_v41  ;;  %v7513_v11 = vmul.f32 2.0, %v7365_v44 }
0x1b3b   :  { %v7518_v53 = vsub.f32 %v19874_v4, %v7510_v59  ;;  %v7520_v31 = vsub.f32 %v19875_v63, %v7512_v62  ;;  %v19887_v4 = vld [vmem:[#allocation83_spill] sm:$0xff]  ;;  %v19888_v63 = vld [vmem:[#allocation84_spill] sm:$0xff] }
0x1b3c   :  { %v7519_v1 = vsub.f32 %v19878_v26, %v7511_v7  ;;  %v7521_v33 = vsub.f32 %v19879_v30, %v7513_v11  ;;  %v19882_v7 = vld [vmem:[#allocation78_spill] sm:$0xff] }
0x1b78   :  { %v7434_v16 = vpop.f32.mrb[82].mxu0  ;;  %v7505_v19 = vpop.f32.mrb[64].mxu1 }
0x1b79   :  { %v7514_v23 = vmul.f32 2.0, %v7434_v16  ;;  %v7516_v28 = vmul.f32 2.0, %v7505_v19  ;;  %v7436_v35 = vpop.f32.mrb[83].mxu0  ;;  %v7507_v43 = vpop.f32.mrb[65].mxu1  ;;  %v19883_v16 = vld [vmem:[#allocation79_spill] sm:$0xff] }
0x1b7a   :  { %v7515_v60 = vmul.f32 2.0, %v7436_v35  ;;  %v7517_v3 = vmul.f32 2.0, %v7507_v43  ;;  %v19885_v35 = vld [vmem:[#allocation81_spill] sm:$0xff] }
0x1b7b   :  { %v7522_v45 = vsub.f32 %v19876_v61, %v7514_v23  ;;  %v7524_v32 = vsub.f32 %v19877_v48, %v7516_v28  ;;  %v19884_v23 = vld [vmem:[#allocation80_spill] sm:$0xff] }
0x1b7c   :  { %v7523_v34 = vsub.f32 %v19880_v39, %v7515_v60  ;;  %v7525_v47 = vsub.f32 %v19881_v13, %v7517_v3  ;;  %v19886_v60 = vld [vmem:[#allocation82_spill] sm:$0xff] }
0x1b7d   :  { %v7526_v18 = vmin.f32 %v7518_v53, %v7522_v45  ;;  %v7528_v14 = vmin.f32 %v7520_v31, %v7524_v32 }
0x1b7e   :  { %v7527_v50 = vmin.f32 %v7519_v1, %v7523_v34  ;;  %v7529_v27 = vmin.f32 %v7521_v33, %v7525_v47 }
0x1b80   :  { %v7530_v29 = vmin.f32 %v7526_v18, %v7527_v50  ;;  %v7531_v41 = vmin.f32 %v7528_v14, %v7529_v27 }
0x1b82   :  { %v7532_v44 = vmin.f32 %v7530_v29, %v7531_v41 }
0x1b84   :  { %7533 = vmin.xlane.f32.xlu0 %v7532_v44  ;;  %v19889_v44 = vmov 1.0  }
0x1c11   :  { %v7534_v59 = vpop.xlane.xlu0 %7533 }
0x1c12   :  { %vm7535_vm9 = vcmp.eq.f32.partialorder %v7518_v53, %v7534_v59  ;;  %vm7536_vm3 = vcmp.eq.f32.partialorder %v7519_v1, %v7534_v59  ;;  %vm7537_vm1 = vcmp.eq.f32.partialorder %v7520_v31, %v7534_v59  ;;  %vm7538_vm2 = vcmp.eq.f32.partialorder %v7521_v33, %v7534_v59 }
0x1c13   :  { %vm7539_vm8 = vcmp.eq.f32.partialorder %v7522_v45, %v7534_v59  ;;  %vm7540_vm14 = vcmp.eq.f32.partialorder %v7523_v34, %v7534_v59  ;;  %vm7541_vm13 = vcmp.eq.f32.partialorder %v7524_v32, %v7534_v59  ;;  %vm7542_vm7 = vcmp.eq.f32.partialorder %v7525_v47, %v7534_v59  ;;  %v19905_v59 = vld [vmem:[#allocation107_spill] sm:$0xff] }
0x1c14   :  { %v7543_v62 = vsel %vm7535_vm9, %v15402_v20, 1024  ;;  %v7544_v11 = vsel %vm7536_vm3, %v19882_v7, 1024  ;;  %v7545_v19 = vsel %vm7537_vm1, %v19883_v16, 1024  ;;  %v7546_v28 = vsel %vm7538_vm2, %v19884_v23, 1024 }
0x1c15   :  { %v7547_v43 = vsel %vm7539_vm8, %v19885_v35, 1024  ;;  %v7548_v3 = vsel %vm7540_vm14, %v19886_v60, 1024  ;;  %v7549_v53 = vsel %vm7541_vm13, %v19887_v4, 1024  ;;  %v7550_v31 = vsel %vm7542_vm7, %v19888_v63, 1024 }
0x1c16   :  { %vm7551_vm11 = vcmp.lt.s32.totalorder %v7543_v62, %v7547_v43  ;;  %vm7553_vm12 = vcmp.lt.s32.totalorder %v7544_v11, %v7548_v3  ;;  %vm7555_vm15 = vcmp.lt.s32.totalorder %v7545_v19, %v7549_v53  ;;  %vm7557_vm10 = vcmp.lt.s32.totalorder %v7546_v28, %v7550_v31 }
0x1c17   :  { %v7552_v61 = vsel %vm7551_vm11, %v7543_v62, %v7547_v43  ;;  %v7554_v45 = vsel %vm7553_vm12, %v7544_v11, %v7548_v3  ;;  %v7556_v48 = vsel %vm7555_vm15, %v7545_v19, %v7549_v53  ;;  %v7558_v32 = vsel %vm7557_vm10, %v7546_v28, %v7550_v31  ;;  %v19906_v62 = vld [vmem:[#allocation109_spill] sm:$0xff]  ;;  %v19908_v11 = vld [vmem:[#allocation7_spill] sm:$0xff]  ;;  %v19911_v28 = vld [vmem:[#allocation86_spill] sm:$0xff] }
0x1c18   :  { %vm7559_vm9 = vcmp.lt.s32.totalorder %v7552_v61, %v7554_v45  ;;  %vm7561_vm3 = vcmp.lt.s32.totalorder %v7556_v48, %v7558_v32  ;;  %v19909_v19 = vld [vmem:[#allocation9_spill] sm:$0xff]  ;;  %v19913_v43 = vld [vmem:[#allocation88_spill] sm:$0xff]  ;;  %v19915_v3 = vld [vmem:[#allocation90_spill] sm:$0xff] }
0x1c19   :  { %v7560_v26 = vsel %vm7559_vm9, %v7552_v61, %v7554_v45  ;;  %v7562_v1 = vsel %vm7561_vm3, %v7556_v48, %v7558_v32  ;;  %v19918_v31 = vld [vmem:[#allocation94_spill] sm:$0xff]  ;;  %v19919_v61 = vld [vmem:[#allocation95_spill] sm:$0xff]  ;;  %v19920_v45 = vld [vmem:[#allocation96_spill] sm:$0xff] }
0x1c1a   :  { %vm7563_vm1 = vcmp.lt.s32.totalorder %v7560_v26, %v7562_v1  ;;  %v19921_v48 = vld [vmem:[#allocation98_spill] sm:$0xff]  ;;  %v19922_v32 = vld [vmem:[#allocation100_spill] sm:$0xff] }
0x1c1b   :  { %v7564_v30 = vsel %vm7563_vm1, %v7560_v26, %v7562_v1  ;;  %v19923_v26 = vld [vmem:[#allocation102_spill] sm:$0xff]  ;;  %v19924_v1 = vld [vmem:[#allocation104_spill] sm:$0xff] }
0x1c1c   :  { %v7566_v33 = vshra.s32 %v7564_v30, 16  ;;  %v7565_v34 = vand.u32 65535, %v7564_v30 }
0x1c1e   :  { %v7568_v39 = vcvt.s32.f32 %v7566_v33  ;;  %v7567_v47 = vcvt.s32.f32 %v7565_v34  ;;  %v19925_v33 = vld [vmem:[#allocation106_spill] sm:$0xff] }
0x1c1f   :  { %v19927_v34 = vld [vmem:[#allocation110_spill] sm:$0xff] }
0x1c20   :  { %7569 = vmin.xlane.f32.xlu1 %v7568_v39 }
0x1cad   :  { %v7570_v13 = vpop.xlane.xlu1 %7569 }
0x1cae   :  { %vm7571_vm2 = vcmp.eq.f32.partialorder %v7568_v39, %v7570_v13  ;;  %v7576_v14 = vcvt.f32.s32 %v7570_v13  ;;  %v19926_v39 = vld [vmem:[#allocation108_spill] sm:$0xff]  ;;  %v19928_v13 = vld [vmem:[#allocation111_spill] sm:$0xff] }
0x1caf   :  { %v7572_v18 = vsel %vm7571_vm2, %v7567_v47, inf  ;;  %v19929_v47 = vld [vmem:[#allocation112_spill] sm:$0xff] }
0x1cb0   :  { %7573 = vmin.xlane.f32.xlu0 %v7572_v18  ;;  %v7577_v27 = vshll.u32 %v7576_v14, 16  ;;  %v19930_v18 = vld [vmem:[#allocation113_spill] sm:$0xff]  ;;  %v19931_v14 = vld [vmem:[#allocation114_spill] sm:$0xff] }
0x1d3d   :  { %v7574_v50 = vpop.xlane.xlu0 %7573 }
0x1d3e   :  { %v7575_v29 = vcvt.f32.s32 %v7574_v50  ;;  %v19932_v50 = vld [vmem:[#allocation115_spill] sm:$0xff] }
0x1d40   :  { %v7578_v41 = vadd.s32 %v7577_v27, %v7575_v29  ;;  %v19933_v29 = vld [vmem:[#allocation116_spill] sm:$0xff] }
0x1d42   :  { %vm7580_vm10 = vcmp.eq.s32.totalorder %v19882_v7, %v7578_v41  ;;  %vm7582_vm8 = vcmp.eq.s32.totalorder %v19884_v23, %v7578_v41  ;;  %vm7579_vm14 = vcmp.eq.s32.totalorder %v15402_v20, %v7578_v41  ;;  %vm7581_vm13 = vcmp.eq.s32.totalorder %v19883_v16, %v7578_v41  ;;  %v19890_v20 = vld [vmem:[#allocation61_spill] sm:$0xff]  ;;  %v19910_v23 = vld [vmem:[#allocation11_spill] sm:$0xff] }
0x1d43   :  { %10966 = vmatprep.mubr.msk.f32.mxu0 %vm7580_vm10, %v19889_v44  ;;  %10968 = vmatprep.mubr.msk.f32.mxu1 %vm7582_vm8, %v19889_v44  ;;  %vm7584_vm7 = vcmp.eq.s32.totalorder %v19886_v60, %v7578_v41  ;;  %vm7586_vm11 = vcmp.eq.s32.totalorder %v19888_v63, %v7578_v41  ;;  %vm7583_vm12 = vcmp.eq.s32.totalorder %v19885_v35, %v7578_v41  ;;  %v19907_v7 = vld [vmem:[#allocation85_spill] sm:$0xff]  ;;  %v19912_v35 = vld [vmem:[#allocation87_spill] sm:$0xff] }
0x1d44   :  { %10967 = vmatmul.mubr.msk.f32.vlgmr.msra.gmra.mrb[84].mxu0 %vm7579_vm14, %v19889_v44  ;;  %10969 = vmatmul.mubr.msk.f32.vlgmr.msra.gmra.mrb[66].mxu1 %vm7581_vm13, %v19889_v44  ;;  %vm7585_vm15 = vcmp.eq.s32.totalorder %v19887_v4, %v7578_v41  ;;  %v19914_v60 = vld [vmem:[#allocation89_spill] sm:$0xff]  ;;  %v19916_v4 = vld [vmem:[#allocation92_spill] sm:$0xff] }
0x1d45   :  { %14686 = vmatpush3.bf16.msra.mxu0 %v16285_v2  ;;  %14718 = vmatpush3.bf16.msra.mxu1 %v16287_v46  ;;  %v19895_v2 = vmov 0.0   ;;  %v19917_v63 = vld [vmem:[#allocation93_spill] sm:$0xff] }
0x1d46   :  { %10970 = vmatprep.mubr.msk.f32.mxu0 %vm7584_vm7, %v19889_v44  ;;  %10972 = vmatprep.mubr.msk.f32.mxu1 %vm7586_vm11, %v19889_v44  ;;  %v19934_v41 = vld [vmem:[#allocation117_spill] sm:$0xff] }
0x1d47   :  { %14688 = vmatprep.subr.bf16.mxu0 %v16293_v6  ;;  %14720 = vmatprep.subr.bf16.mxu1 %v16295_v0  ;;  %v19894_v0 = vld [vmem:[#allocation91_spill] sm:$0xff] }
0x1d49   :  { %14690 = vmatpush3.bf16.msra.mxu0 %v16341_v8  ;;  %14722 = vmatpush3.bf16.msra.mxu1 %v16343_v54  ;;  %v19893_v54 = vmov 0.0|0.0  }
0x1d4a   :  { %14692 = vmatprep.subr.bf16.mxu0 %v16345_v52  ;;  %14724 = vmatprep.subr.bf16.mxu1 %v16347_v51  ;;  %v19891_v51 = vld [vmem:[#allocation62_spill] sm:$0xff]  ;;  %v19892_v52 = vld [vmem:[#allocation63_spill] sm:$0xff] }
0x1d4d   :  { %14694 = vmatpush3.bf16.msra.mxu0 %v19850_v9  ;;  %14726 = vmatpush3.bf16.msra.mxu1 %v19851_v21  ;;  %v19900_v21 = vld [vmem:[#allocation97_spill] sm:$0xff] }
0x1d4e   :  { %14696 = vmatprep.subr.bf16.mxu0 %v19852_v22  ;;  %14728 = vmatprep.subr.bf16.mxu1 %v19853_v25  ;;  %v19901_v25 = vld [vmem:[#allocation99_spill] sm:$0xff] }
0x1d51   :  { %14698 = vmatpush3.bf16.msra.mxu0 %v19854_v12  ;;  %14730 = vmatpush3.bf16.msra.mxu1 %v19855_v36  ;;  %v19902_v12 = vld [vmem:[#allocation101_spill] sm:$0xff]  ;;  %v19903_v36 = vld [vmem:[#allocation103_spill] sm:$0xff] }
0x1d52   :  { %14700 = vmatprep.subr.bf16.mxu0 %v19856_v37  ;;  %14732 = vmatprep.subr.bf16.mxu1 %v19857_v10  ;;  %v19904_v37 = vld [vmem:[#allocation105_spill] sm:$0xff] }
0x1d55   :  { %14702 = vmatpush3.bf16.msra.mxu0 %v19858_v24  ;;  %14734 = vmatpush3.bf16.msra.mxu1 %v19859_v40 }
0x1d56   :  { %14704 = vmatprep.subr.bf16.mxu0 %v19860_v5  ;;  %14736 = vmatprep.subr.bf16.mxu1 %v19861_v58 }
0x1d59   :  { %14706 = vmatpush3.bf16.msra.mxu0 %v19862_v55  ;;  %14738 = vmatpush3.bf16.msra.mxu1 %v19890_v20  ;;  %v19936_v20 = vld [vmem:[#allocation119_spill] sm:$0xff] }
0x1d5a   :  { %14708 = vmatprep.subr.bf16.mxu0 %v19891_v51  ;;  %14740 = vmatprep.subr.bf16.mxu1 %v19892_v52  ;;  %v19937_v51 = vld [vmem:[#allocation120_spill] sm:$0xff]  ;;  %v19938_v52 = vld [vmem:[#allocation121_spill] sm:$0xff] }
0x1d5d   :  { %14710 = vmatpush3.bf16.msra.mxu0 %v19866_v57  ;;  %14742 = vmatpush3.bf16.msra.mxu1 %v19867_v56 }
0x1d5e   :  { %14712 = vmatprep.subr.bf16.mxu0 %v19868_v49  ;;  %14744 = vmatprep.subr.bf16.mxu1 %v19869_v15 }
0x1d61   :  { %14714 = vmatpush3.bf16.msra.mxu0 %v19870_v17  ;;  %14746 = vmatpush3.bf16.msra.mxu1 %v19871_v42 }
0x1d62   :  { %14747 = vmatprep.subr.bf16.mxu1 %v19893_v54 }
0x1d64   :  { %10971 = vmatmul.mubr.msk.f32.vlgmr.msra.gmra.mrb[86].mxu0 %vm7583_vm12, %v19889_v44  ;;  %10973 = vmatmul.mubr.msk.f32.vlgmr.msra.gmra.mrb[68].mxu1 %vm7585_vm15, %v19889_v44  ;;  %v19935_v44 = vld [vmem:[#allocation118_spill] sm:$0xff] }
0x1d65   :  { %13191 = vmatprep.mubr.msk.f32.mxu0 %vm2921_vm5, %v19894_v0  ;;  %13333 = vmatprep.mubr.msk.f32.mxu1 %vm15252_vm6, %v19895_v2  ;;  %v19939_v0 = vld [vmem:[#allocation122_spill] sm:$0xff] }
0x1e17   :  { %v12053_v46 = vpop.f32.mrb[84].mxu0  ;;  %v12088_v6 = vpop.f32.mrb[66].mxu1 }
0x1e18   :  { %v12054_v8 = vpop.f32.mrb[85].mxu0  ;;  %v12089_v56 = vpop.f32.mrb[67].mxu1 }
0x1e19   :  { %v12055_v49 = vadd.f32 %v12054_v8, %v12053_v46  ;;  %v12090_v57 = vadd.f32 %v12089_v56, %v12088_v6  ;;  %v19940_v46 = vld [vmem:[#allocation123_spill] sm:$0xff]  ;;  %v19941_v8 = vld [vmem:[#allocation124_spill] sm:$0xff]  ;;  %v19942_v56 = vld [vmem:[#allocation125_spill] sm:$0xff] }
0x1e1b   :  { %v7740_v42 = vadd.f32 %v12090_v57, %v12055_v49  ;;  %v19943_v49 = vld [vmem:[#allocation126_spill] sm:$0xff]  ;;  %v19944_v57 = vld [vmem:[#allocation127_spill] sm:$0xff] }
0x1e37   :  { %v12123_v17 = vpop.f32.mrb[86].mxu0  ;;  %v12158_v15 = vpop.f32.mrb[68].mxu1 }
0x1e38   :  { %v12124_v5 = vpop.f32.mrb[87].mxu0  ;;  %v12159_v40 = vpop.f32.mrb[69].mxu1 }
0x1e39   :  { %v12125_v55 = vadd.f32 %v12124_v5, %v12123_v17  ;;  %v12160_v58 = vadd.f32 %v12159_v40, %v12158_v15  ;;  %v19946_v17 = vld [vmem:[#allocation129_spill] sm:$0xff]  ;;  %v19947_v15 = vld [vmem:[#allocation130_spill] sm:$0xff]  ;;  %v19948_v5 = vld [vmem:[#allocation131_spill] sm:$0xff] }
0x1e3a   :  { %v19949_v40 = vld [vmem:[#allocation132_spill] sm:$0xff] }
0x1e3b   :  { %v7810_v24 = vadd.f32 %v12125_v55, %v7740_v42  ;;  %v19945_v42 = vld [vmem:[#allocation128_spill] sm:$0xff]  ;;  %v19950_v55 = vld [vmem:[#allocation133_spill] sm:$0xff] }
0x1e3d   :  { %v7880_v10 = vadd.f32 %v12160_v58, %v7810_v24  ;;  %v19951_v58 = vld [vmem:[#allocation134_spill] sm:$0xff]  ;;  %v19952_v24 = vld [vmem:[#allocation135_spill] sm:$0xff] }
0x1e3f   :  { %8097 = vrot.lane.b32.xlu1 %v7880_v10, %s15255_s27  ;;  %7884 = vrot.lane.b32.xlu0 %v7880_v10, %s15258_s4 }
0x1e43   :  { %8213 = vrot.lane.b32.xlu1 %v7880_v10, %s19896_s23  ;;  %8329 = vrot.lane.b32.xlu0 %v7880_v10, %s19601_s6 }
0x1e47   :  { %8445 = vrot.lane.b32.xlu1 %v7880_v10, %s19897_s29  ;;  %8561 = vrot.lane.b32.xlu0 %v7880_v10, %s19898_s0 }
0x1e4b   :  { %8677 = vrot.lane.b32.xlu1 %v7880_v10, %s19899_s2 }
0x1eb1   :  { %v7885_v9 = vpop.permute.xlu0 %7884  ;;  %v8098_v22 = vpop.permute.xlu1 %8097 }
0x1eb2   :  { %13189 = vmatprep.subr.mxu0 %v7885_v9 }
0x1eb3   :  { %13190 = vmatpush3.msra.mxu0 %v7885_v9  ;;  %v19954_v9 = vld [vmem:[#allocation137_spill] sm:$0xff] }
0x1eb4   :  { %13192 = vmatmul.mubr.msk.f32.vlgmr.msra.gmra.mrb[88].mxu0 %vm2921_vm5, %v19900_v21  ;;  %13203 = vmatprep.subr.mxu0 %v7880_v10  ;;  %v19955_v21 = vld [vmem:[#allocation138_spill] sm:$0xff] }
0x1eb5   :  { %13204 = vmatpush3.msra.mxu0 %v7880_v10  ;;  %13194 = vmatprep.mubr.msk.f32.mxu0 %vm2921_vm5, %v19901_v25  ;;  %v8214_v16 = vpop.permute.xlu1 %8213  ;;  %v8330_v53 = vpop.permute.xlu0 %8329  ;;  %v19953_v10 = vld [vmem:[#allocation136_spill] sm:$0xff] }
0x1eb6   :  { %13217 = vmatprep.subr.mxu0 %v8098_v22  ;;  %v19957_v25 = vld [vmem:[#allocation140_spill] sm:$0xff] }
0x1eb8   :  { %13195 = vmatmul.mubr.msk.f32.gmra.mrb[90].mxu0 %vm2921_vm5, %v19902_v12  ;;  %v19958_v12 = vld [vmem:[#allocation141_spill] sm:$0xff] }
0x1eb9   :  { %13197 = vmatprep.mubr.msk.f32.mxu0 %vm2921_vm5, %v19903_v36  ;;  %v8446_v30 = vpop.permute.xlu1 %8445  ;;  %v8562_v27 = vpop.permute.xlu0 %8561  ;;  %v19959_v36 = vld [vmem:[#allocation142_spill] sm:$0xff] }
0x1ebc   :  { %13198 = vmatmul.mubr.msk.f32.gmra.mrb[92].mxu0 %vm2921_vm5, %v19904_v37  ;;  %v19960_v37 = vld [vmem:[#allocation143_spill] sm:$0xff] }
0x1ebd   :  { %13200 = vmatprep.mubr.msk.f32.mxu0 %vm2921_vm5, %v19905_v59  ;;  %v8678_v6 = vpop.permute.xlu1 %8677  ;;  %v19961_v59 = vld [vmem:[#allocation144_spill] sm:$0xff] }
0x1ec0   :  { %13201 = vmatmul.mubr.msk.f32.gmra.mrb[94].mxu0 %vm2921_vm5, %v19906_v62  ;;  %v19962_v62 = vld [vmem:[#allocation145_spill] sm:$0xff] }
0x1ec1   :  { %13205 = vmatprep.mubr.msk.f32.mxu0 %vm2921_vm5, %v19907_v7 }
0x1ec4   :  { %13206 = vmatmul.mubr.msk.f32.vlgmr.msra.gmra.mrb[88].mxu0 %vm2921_vm5, %v19908_v11 }
0x1ec5   :  { %13218 = vmatpush3.msra.mxu0 %v8098_v22  ;;  %13208 = vmatprep.mubr.msk.f32.mxu0 %vm2921_vm5, %v19909_v19  ;;  %v19956_v22 = vld [vmem:[#allocation139_spill] sm:$0xff] }
0x1ec6   :  { %13231 = vmatprep.subr.mxu0 %v8214_v16 }
0x1ec8   :  { %13209 = vmatmul.mubr.msk.f32.gmra.mrb[90].mxu0 %vm2921_vm5, %v19910_v23 }
0x1ec9   :  { %13211 = vmatprep.mubr.msk.f32.mxu0 %vm2921_vm5, %v19911_v28 }
0x1ecc   :  { %13212 = vmatmul.mubr.msk.f32.gmra.mrb[92].mxu0 %vm2921_vm5, %v19912_v35 }
0x1ecd   :  { %13214 = vmatprep.mubr.msk.f32.mxu0 %vm2921_vm5, %v19913_v43 }
0x1ed0   :  { %13215 = vmatmul.mubr.msk.f32.gmra.mrb[94].mxu0 %vm2921_vm5, %v19914_v60 }
0x1ed1   :  { %13219 = vmatprep.mubr.msk.f32.mxu0 %vm2921_vm5, %v19915_v3 }
0x1ed4   :  { %13220 = vmatmul.mubr.msk.f32.vlgmr.msra.gmra.mrb[88].mxu0 %vm2921_vm5, %v19916_v4 }
0x1ed5   :  { %13232 = vmatpush3.msra.mxu0 %v8214_v16  ;;  %13222 = vmatprep.mubr.msk.f32.mxu0 %vm2921_vm5, %v19917_v63 }
0x1ed6   :  { %13245 = vmatprep.subr.mxu0 %v8330_v53 }
0x1ed8   :  { %13223 = vmatmul.mubr.msk.f32.gmra.mrb[90].mxu0 %vm2921_vm5, %v19918_v31 }
0x1ed9   :  { %13225 = vmatprep.mubr.msk.f32.mxu0 %vm2921_vm5, %v19919_v61 }
0x1edc   :  { %13226 = vmatmul.mubr.msk.f32.gmra.mrb[92].mxu0 %vm2921_vm5, %v19920_v45 }
0x1edd   :  { %13228 = vmatprep.mubr.msk.f32.mxu0 %vm2921_vm5, %v19921_v48 }
0x1ee0   :  { %13229 = vmatmul.mubr.msk.f32.gmra.mrb[94].mxu0 %vm2921_vm5, %v19922_v32 }
0x1ee1   :  { %13233 = vmatprep.mubr.msk.f32.mxu0 %vm2921_vm5, %v19923_v26 }
0x1ee4   :  { %13234 = vmatmul.mubr.msk.f32.vlgmr.msra.gmra.mrb[88].mxu0 %vm2921_vm5, %v19924_v1 }
0x1ee5   :  { %13246 = vmatpush3.msra.mxu0 %v8330_v53  ;;  %13236 = vmatprep.mubr.msk.f32.mxu0 %vm2921_vm5, %v19925_v33 }
0x1ee6   :  { %13259 = vmatprep.subr.mxu0 %v8446_v30 }
0x1ee8   :  { %13237 = vmatmul.mubr.msk.f32.gmra.mrb[90].mxu0 %vm2921_vm5, %v19926_v39 }
0x1ee9   :  { %13239 = vmatprep.mubr.msk.f32.mxu0 %vm2921_vm5, %v19927_v34 }
0x1eec   :  { %13240 = vmatmul.mubr.msk.f32.gmra.mrb[92].mxu0 %vm2921_vm5, %v19928_v13 }
0x1eed   :  { %13242 = vmatprep.mubr.msk.f32.mxu0 %vm2921_vm5, %v19929_v47 }
0x1ef0   :  { %13243 = vmatmul.mubr.msk.f32.gmra.mrb[94].mxu0 %vm2921_vm5, %v19930_v18 }
0x1ef1   :  { %13247 = vmatprep.mubr.msk.f32.mxu0 %vm2921_vm5, %v19931_v14 }
0x1ef4   :  { %13248 = vmatmul.mubr.msk.f32.vlgmr.msra.gmra.mrb[88].mxu0 %vm2921_vm5, %v19932_v50 }
0x1ef5   :  { %13260 = vmatpush3.msra.mxu0 %v8446_v30  ;;  %13250 = vmatprep.mubr.msk.f32.mxu0 %vm2921_vm5, %v19933_v29 }
0x1ef6   :  { %13273 = vmatprep.subr.mxu0 %v8562_v27 }
0x1ef8   :  { %13251 = vmatmul.mubr.msk.f32.gmra.mrb[90].mxu0 %vm2921_vm5, %v19934_v41 }
0x1ef9   :  { %13253 = vmatprep.mubr.msk.f32.mxu0 %vm2921_vm5, %v19935_v44 }
0x1efc   :  { %13254 = vmatmul.mubr.msk.f32.gmra.mrb[92].mxu0 %vm2921_vm5, %v19936_v20 }
0x1efd   :  { %13256 = vmatprep.mubr.msk.f32.mxu0 %vm2921_vm5, %v19937_v51 }
0x1f00   :  { %13257 = vmatmul.mubr.msk.f32.gmra.mrb[94].mxu0 %vm2921_vm5, %v19938_v52 }
0x1f01   :  { %13261 = vmatprep.mubr.msk.f32.mxu0 %vm2921_vm5, %v19939_v0 }
0x1f04   :  { %13262 = vmatmul.mubr.msk.f32.vlgmr.msra.gmra.mrb[88].mxu0 %vm2921_vm5, %v19940_v46 }
0x1f05   :  { %13274 = vmatpush3.msra.mxu0 %v8562_v27  ;;  %13264 = vmatprep.mubr.msk.f32.mxu0 %vm2921_vm5, %v19941_v8 }
0x1f06   :  { %13287 = vmatprep.subr.mxu0 %v8678_v6 }
0x1f08   :  { %13265 = vmatmul.mubr.msk.f32.gmra.mrb[90].mxu0 %vm2921_vm5, %v19942_v56 }
0x1f09   :  { %13267 = vmatprep.mubr.msk.f32.mxu0 %vm2921_vm5, %v19943_v49 }
0x1f0c   :  { %13268 = vmatmul.mubr.msk.f32.gmra.mrb[92].mxu0 %vm2921_vm5, %v19944_v57 }
0x1f0d   :  { %13270 = vmatprep.mubr.msk.f32.mxu0 %vm2921_vm5, %v19945_v42 }
0x1f10   :  { %13271 = vmatmul.mubr.msk.f32.gmra.mrb[94].mxu0 %vm2921_vm5, %v19946_v17 }
0x1f11   :  { %13275 = vmatprep.mubr.msk.f32.mxu0 %vm2921_vm5, %v19947_v15 }
0x1f14   :  { %13276 = vmatmul.mubr.msk.f32.vlgmr.msra.gmra.mrb[88].mxu0 %vm2921_vm5, %v19948_v5 }
0x1f15   :  { %13288 = vmatpush3.msra.mxu0 %v8678_v6  ;;  %13278 = vmatprep.mubr.msk.f32.mxu0 %vm2921_vm5, %v19949_v40 }
0x1f18   :  { %13279 = vmatmul.mubr.msk.f32.gmra.mrb[90].mxu0 %vm2921_vm5, %v19950_v55 }
0x1f19   :  { %13281 = vmatprep.mubr.msk.f32.mxu0 %vm2921_vm5, %v19951_v58 }
0x1f1c   :  { %13282 = vmatmul.mubr.msk.f32.gmra.mrb[92].mxu0 %vm2921_vm5, %v19952_v24 }
0x1f1d   :  { %13284 = vmatprep.mubr.msk.f32.mxu0 %vm2921_vm5, %v19953_v10 }
0x1f20   :  { %13285 = vmatmul.mubr.msk.f32.gmra.mrb[94].mxu0 %vm2921_vm5, %v19954_v9 }
0x1f21   :  { %13289 = vmatprep.mubr.msk.f32.mxu0 %vm2921_vm5, %v19955_v21 }
0x1f24   :  { %13290 = vmatmul.mubr.msk.f32.vlgmr.msra.gmra.mrb[88].mxu0 %vm2921_vm5, %v19956_v22 }
0x1f25   :  { %13292 = vmatprep.mubr.msk.f32.mxu0 %vm2921_vm5, %v19957_v25 }
0x1f28   :  { %13293 = vmatmul.mubr.msk.f32.gmra.mrb[90].mxu0 %vm2921_vm5, %v19958_v12 }
0x1f29   :  { %13295 = vmatprep.mubr.msk.f32.mxu0 %vm2921_vm5, %v19959_v36 }
0x1f2c   :  { %13296 = vmatmul.mubr.msk.f32.gmra.mrb[92].mxu0 %vm2921_vm5, %v19960_v37 }
0x1f2d   :  { %13298 = vmatprep.mubr.msk.f32.mxu0 %vm2921_vm5, %v19961_v59 }
0x1f30   :  { %13299 = vmatmul.mubr.msk.f32.gmra.mrb[94].mxu0 %vm2921_vm5, %v19962_v62 }
0x1ff7   :  { %v18649_v7 = vpop.f32.mrb[88].mxu0 }
0x1ff8   :  { %v18651_v11 = vpop.f32.mrb[89].mxu0  ;;  %v8880_v16 = vmul.f32 %v18649_v7, %v18649_v7 }
0x1ff9   :  { %v8879_v19 = vmul.f32 %v18651_v11, %v18651_v11 }
0x1ffa   :  { %v8890_v23 = vsel %vm2921_vm5, %v8880_v16, 0.0 }
0x1ffb   :  { %8891 = vadd.xlane.f32.xlu1 %v8890_v23  ;;  %v18658_v28 = vpop.f32.mrb[90].mxu0  ;;  %v8887_v35 = vsel %vm2921_vm5, %v8879_v19, 0.0 }
0x1ffc   :  { %8888 = vadd.xlane.f32.xlu0 %v8887_v35  ;;  %v18661_v43 = vpop.f32.mrb[91].mxu0  ;;  %v8882_v53 = vmul.f32 %v18658_v28, %v18658_v28 }
0x1ffd   :  { %v8881_v60 = vmul.f32 %v18661_v43, %v18661_v43 }
0x1ffe   :  { %v8896_v48 = vsel %vm2921_vm5, %v8882_v53, 0.0 }
0x1fff   :  { %v18665_v3 = vpop.f32.mrb[92].mxu0  ;;  %v8893_v4 = vsel %vm2921_vm5, %v8881_v60, 0.0 }
0x2000   :  { %8894 = vadd.xlane.f32.xlu0 %v8893_v4  ;;  %v18670_v63 = vpop.f32.mrb[93].mxu0  ;;  %v8884_v61 = vmul.f32 %v18665_v3, %v18665_v3 }
0x2001   :  { %v8883_v31 = vmul.f32 %v18670_v63, %v18670_v63 }
0x2002   :  { %v8902_v33 = vsel %vm2921_vm5, %v8884_v61, 0.0 }
0x2003   :  { %v18676_v45 = vpop.f32.mrb[94].mxu0  ;;  %v8899_v32 = vsel %vm2921_vm5, %v8883_v31, 0.0 }
0x2004   :  { %8897 = vadd.xlane.f32.xlu0 %v8896_v48  ;;  %8900 = vadd.xlane.f32.xlu1 %v8899_v32  ;;  %v18680_v26 = vpop.f32.mrb[95].mxu0  ;;  %v8886_v30 = vmul.f32 %v18676_v45, %v18676_v45 }
0x2005   :  { %v8885_v1 = vmul.f32 %v18680_v26, %v18680_v26 }
0x2006   :  { %v8908_v34 = vsel %vm2921_vm5, %v8886_v30, 0.0 }
0x2007   :  { %v8905_v39 = vsel %vm2921_vm5, %v8885_v1, 0.0 }
0x2008   :  { %8903 = vadd.xlane.f32.xlu0 %v8902_v33  ;;  %8906 = vadd.xlane.f32.xlu1 %v8905_v39 }
0x200c   :  { %8909 = vadd.xlane.f32.xlu0 %v8908_v34 }
0x2088   :  { %v8892_v13 = vpop.xlane.xlu1 %8891 }
0x2089   :  { %15171 = vrsqrt.f32 %v8892_v13  ;;  %v8889_v47 = vpop.xlane.xlu0 %8888  ;;  %vm8920_vm9 = vcmp.eq.f32.partialorder %v8892_v13, inf  ;;  %vm8922_vm3 = vcmp.eq.f32.partialorder %v8892_v13, 0.0  ;;  %v8923_v44 = vand.u32 2147483648, %v8892_v13 }
0x208a   :  { %15173 = vrsqrt.f32 %v8889_v47  ;;  %vm8913_vm1 = vcmp.eq.f32.partialorder %v8889_v47, inf  ;;  %v8916_v46 = vand.u32 2147483648, %v8889_v47  ;;  %vm8915_vm2 = vcmp.eq.f32.partialorder %v8889_v47, 0.0 }
0x208d   :  { %v8895_v18 = vpop.xlane.xlu0 %8894 }
0x208e   :  { %15175 = vrsqrt.f32 %v8895_v18  ;;  %vm8927_vm10 = vcmp.eq.f32.partialorder %v8895_v18, inf  ;;  %v8930_v5 = vand.u32 2147483648, %v8895_v18  ;;  %vm8929_vm8 = vcmp.eq.f32.partialorder %v8895_v18, 0.0 }
0x2091   :  { %v8898_v14 = vpop.xlane.xlu0 %8897  ;;  %v8901_v50 = vpop.xlane.xlu1 %8900 }
0x2092   :  { %15177 = vrsqrt.f32 %v8898_v14  ;;  %vm8934_vm14 = vcmp.eq.f32.partialorder %v8898_v14, inf  ;;  %vm8936_vm13 = vcmp.eq.f32.partialorder %v8898_v14, 0.0  ;;  %v8937_v21 = vand.u32 2147483648, %v8898_v14 }
0x2093   :  { %v15172_v27 = vpop.eup %15171  ;;  %15179 = vrsqrt.f32 %v8901_v50  ;;  %vm8941_vm7 = vcmp.eq.f32.partialorder %v8901_v50, inf  ;;  %v8944_v12 = vand.u32 2147483648, %v8901_v50  ;;  %vm8943_vm11 = vcmp.eq.f32.partialorder %v8901_v50, 0.0 }
0x2094   :  { %v15174_v29 = vpop.eup %15173  ;;  %v8919_v41 = vmul.f32 %v15172_v27, %v8892_v13 }
0x2095   :  { %v8912_v20 = vmul.f32 %v15174_v29, %v8889_v47  ;;  %v8904_v51 = vpop.xlane.xlu0 %8903  ;;  %v8907_v52 = vpop.xlane.xlu1 %8906 }
0x2096   :  { %v8921_v0 = vsel %vm8920_vm9, %v8892_v13, %v8919_v41  ;;  %15181 = vrsqrt.f32 %v8904_v51  ;;  %vm8948_vm12 = vcmp.eq.f32.partialorder %v8904_v51, inf  ;;  %vm8950_vm15 = vcmp.eq.f32.partialorder %v8904_v51, 0.0 }
0x2097   :  { %v8924_v6 = vsel %vm8922_vm3, %v8923_v44, %v8921_v0  ;;  %v8914_v8 = vsel %vm8913_vm1, %v8889_v47, %v8912_v20  ;;  %15183 = vrsqrt.f32 %v8907_v52  ;;  %v8951_v60 = vand.u32 2147483648, %v8904_v51 }
0x2098   :  { %v15176_v56 = vpop.eup %15175  ;;  %v8968_v49 = vmax.f32 %v8924_v6, 1e-12  ;;  %v8917_v57 = vsel %vm8915_vm2, %v8916_v46, %v8914_v8  ;;  %vm8955_vm9 = vcmp.eq.f32.partialorder %v8907_v52, inf  ;;  %v8958_v31 = vand.u32 2147483648, %v8907_v52 }
0x2099   :  { %v8967_v42 = vmax.f32 %v8917_v57, 1e-12  ;;  %v8926_v17 = vmul.f32 %v15176_v56, %v8895_v18  ;;  %v18689_v15 = vpop.xlane.xlu0 %8909  ;;  %vm8957_vm3 = vcmp.eq.f32.partialorder %v8907_v52, 0.0 }
0x209a   :  { %15185 = vrcp.f32 %v8968_v49  ;;  %vm8962_vm1 = vcmp.eq.f32.partialorder %v18689_v15, inf  ;;  %vm8964_vm2 = vcmp.eq.f32.partialorder %v18689_v15, 0.0 }
0x209b   :  { %15187 = vrcp.f32 %v8967_v42  ;;  %v8928_v40 = vsel %vm8927_vm10, %v8895_v18, %v8926_v17  ;;  %v9032_v42 = vld [vmem:[%s19194_s9] sm:$0xff]  ;;  %v9033_v17 = vld [vmem:[%s19194_s9 + $0x8] sm:$0xff]  ;;  %vm19963_vm10 = vcmask 523264  }
0x209c   :  { %v15178_v55 = vpop.eup %15177  ;;  %v8931_v58 = vsel %vm8929_vm8, %v8930_v5, %v8928_v40  ;;  %15189 = vrsqrt.f32 %v18689_v15  ;;  %v14748_v5 = vpack.c.bf16 %v9033_v17, %v9032_v42  ;;  %v9035_v40 = vld [vmem:[%s19194_s9 + $0x18] sm:$0xff]  ;;  %v9062_v42 = vld [vmem:[%s19195_s10 + $0x70] sm:$0xff] }
0x209d   :  { %v15180_v24 = vpop.eup %15179  ;;  %v8969_v10 = vmax.f32 %v8931_v58, 1e-12  ;;  %v8933_v9 = vmul.f32 %v15178_v55, %v8898_v14  ;;  %v9037_v58 = vld [vmem:[%s19194_s9 + $0x28] sm:$0xff]  ;;  %v9063_v17 = vld [vmem:[%s19195_s10 + $0x78] sm:$0xff] }
0x209e   :  { %v8940_v22 = vmul.f32 %v15180_v24, %v8901_v50  ;;  %14749 = vmatpush3.bf16.msra.mxu1 %v14748_v5  ;;  %v14793_v5 = vpack.c.bf16 %v9063_v17, %v9062_v42  ;;  %v9403_v42 = vld [vmem:[%s19197_s12 + $0x70] sm:$0xff]  ;;  %v9404_v17 = vld [vmem:[%s19197_s12 + $0x78] sm:$0xff] }
0x209f   :  { %15191 = vrcp.f32 %v8969_v10  ;;  %v8935_v25 = vsel %vm8934_vm14, %v8898_v14, %v8933_v9  ;;  %v8965_v14 = vand.u32 2147483648, %v18689_v15  ;;  %14750 = vmatprep.subr.bf16.mxu1 %v19893_v54  ;;  %v9038_v10 = vld [vmem:[%s19194_s9 + $0x30] sm:$0xff]  ;;  %v9039_v9 = vld [vmem:[%s19194_s9 + $0x38] sm:$0xff] }
0x20a0   :  { %v15182_v36 = vpop.eup %15181  ;;  %v8938_v37 = vsel %vm8936_vm13, %v8937_v21, %v8935_v25  ;;  %v8942_v59 = vsel %vm8941_vm7, %v8901_v50, %v8940_v22  ;;  %v14757_v21 = vpack.c.bf16 %v9039_v9, %v9038_v10  ;;  %v9040_v22 = vld [vmem:[%s19194_s9 + $0x40] sm:$0xff]  ;;  %v9041_v25 = vld [vmem:[%s19194_s9 + $0x48] sm:$0xff]  ;;  %vm19972_vm7 = vcmask 130048  }
0x20a1   :  { %v15184_v62 = vpop.eup %15183  ;;  %v8970_v16 = vmax.f32 %v8938_v37, 1e-12  ;;  %v8945_v19 = vsel %vm8943_vm11, %v8944_v12, %v8942_v59  ;;  %v8947_v23 = vmul.f32 %v15182_v36, %v8904_v51  ;;  %v14760_v12 = vpack.c.bf16 %v9041_v25, %v9040_v22  ;;  %v9042_v36 = vld [vmem:[%s19194_s9 + $0x50] sm:$0xff]  ;;  %v9043_v37 = vld [vmem:[%s19194_s9 + $0x58] sm:$0xff]  ;;  %vm19973_vm11 = vmmov %vm19972_vm7 }
0x20a2   :  { %v8971_v35 = vmax.f32 %v8945_v19, 1e-12  ;;  %v8954_v4 = vmul.f32 %v15184_v62, %v8907_v52  ;;  %v14763_v59 = vpack.c.bf16 %v9043_v37, %v9042_v36  ;;  %v9044_v62 = vld [vmem:[%s19194_s9 + $0x60] sm:$0xff]  ;;  %v19966_v22 = vld [vmem:[#allocation155_spill] sm:$0xff] }
0x20a3   :  { %15193 = vrcp.f32 %v8970_v16  ;;  %v8949_v53 = vsel %vm8948_vm12, %v8904_v51, %v8947_v23  ;;  %v9045_v16 = vld [vmem:[%s19194_s9 + $0x68] sm:$0xff]  ;;  %v9046_v23 = vld [vmem:[%s19194_s9 + $0x70] sm:$0xff]  ;;  %v19968_v25 = vld [vmem:[#allocation157_spill] sm:$0xff] }
0x20a4   :  { %v15186_v61 = vpop.eup %15185  ;;  %15195 = vrcp.f32 %v8971_v35  ;;  %v8952_v48 = vsel %vm8950_vm15, %v8951_v60, %v8949_v53  ;;  %v8956_v32 = vsel %vm8955_vm9, %v8907_v52, %v8954_v4  ;;  %v14766_v19 = vpack.c.bf16 %v9045_v16, %v9044_v62  ;;  %v9047_v35 = vld [vmem:[%s19194_s9 + $0x78] sm:$0xff]  ;;  %v9390_v36 = vld [vmem:[%s19197_s12 + $0x8] sm:$0xff]  ;;  %v9391_v37 = vld [vmem:[%s19197_s12 + $0x10] sm:$0xff] }
0x20a5   :  { %v15188_v1 = vpop.eup %15187  ;;  %v8972_v30 = vmax.f32 %v8952_v48, 1e-12  ;;  %v8959_v33 = vsel %vm8957_vm3, %v8958_v31, %v8956_v32  ;;  %v8978_v39 = vmul.f32 %v15186_v61, %v18649_v7  ;;  %v14769_v60 = vpack.c.bf16 %v9047_v35, %v9046_v23  ;;  %v9392_v62 = vld [vmem:[%s19197_s12 + $0x18] sm:$0xff]  ;;  %v9405_v16 = vld [vmem:[%s19198_s13] sm:$0xff]  ;;  %vm19974_vm12 = vmmov %vm19972_vm7 }
0x20a6   :  { %v15190_v34 = vpop.eup %15189  ;;  %v8973_v13 = vmax.f32 %v8959_v33, 1e-12  ;;  %v8976_v47 = vmul.f32 %v15188_v1, %v18651_v11  ;;  %v9049_v33 = vld [vmem:[%s19195_s10 + $0x8] sm:$0xff]  ;;  %v14799_v23 = vpack.c.bf16 %v9392_v62, %v9391_v37  ;;  %vm19976_vm15 = vmmov %vm19972_vm7 }
0x20a7   :  { %15197 = vrcp.f32 %v8972_v30  ;;  %v8961_v18 = vmul.f32 %v15190_v34, %v18689_v15  ;;  %11039 = vst.msk [vmem:[%s19205_s20 + $0x48] sm:$0xff] %vm2921_vm5, %v8978_v39  ;;  %v9048_v30 = vld [vmem:[%s19195_s10] sm:$0xff]  ;;  %vm19977_vm9 = vmmov %vm19972_vm7 }
0x20a8   :  { %15199 = vrcp.f32 %v8973_v13  ;;  %11038 = vst.msk [vmem:[%s19205_s20 + $0x40] sm:$0xff] %vm2921_vm5, %v8976_v47  ;;  %9000 = vxpose.xlu1.b32.start [1/8] (short) (narrow) %v8976_v47, 8  ;;  %v9050_v13 = vld [vmem:[%s19195_s10 + $0x10] sm:$0xff]  ;;  %v9051_v47 = vld [vmem:[%s19195_s10 + $0x18] sm:$0xff]  ;;  %vm19979_vm3 = vmmov %vm19972_vm7 }
0x20a9   :  { %v15192_v50 = vpop.eup %15191  ;;  %v8963_v27 = vsel %vm8962_vm1, %v18689_v15, %v8961_v18  ;;  %v9034_v15 = vld [vmem:[%s19194_s9 + $0x10] sm:$0xff]  ;;  %vm19981_vm1 = vmmov %vm19979_vm3 }
0x20aa   :  { %v8966_v29 = vsel %vm8964_vm2, %v8965_v14, %v8963_v27  ;;  %v8980_v41 = vmul.f32 %v15192_v50, %v18661_v43  ;;  %v14751_v55 = vpack.c.bf16 %v9035_v40, %v9034_v15  ;;  %v14775_v14 = vpack.c.bf16 %v9051_v47, %v9050_v13  ;;  %v9052_v50 = vld [vmem:[%s19195_s10 + $0x20] sm:$0xff]  ;;  %v9053_v27 = vld [vmem:[%s19195_s10 + $0x28] sm:$0xff]  ;;  %v9412_v13 = vld [vmem:[%s19198_s13 + $0x38] sm:$0xff] }
0x20ab   :  { %v8974_v44 = vmax.f32 %v8966_v29, 1e-12  ;;  %v14778_v29 = vpack.c.bf16 %v9053_v27, %v9052_v50  ;;  %v9413_v27 = vld [vmem:[%s19198_s13 + $0x40] sm:$0xff]  ;;  %vm19983_vm2 = vmmov %vm19981_vm1 }
0x20ac   :  { %9001 = vxpose.xlu1.b32.cont [2/8] (short) (narrow) %v8978_v39, 8  ;;  %11040 = vst.msk [vmem:[%s19205_s20 + $0x50] sm:$0xff] %vm2921_vm5, %v8980_v41  ;;  %14752 = vmatpush3.bf16.msra.mxu1 %v14751_v55  ;;  %v14772_v39 = vpack.c.bf16 %v9049_v33, %v9048_v30  ;;  %v9395_v30 = vld [vmem:[%s19197_s12 + $0x30] sm:$0xff]  ;;  %v9396_v33 = vld [vmem:[%s19197_s12 + $0x38] sm:$0xff] }
0x20ad   :  { %v15194_v20 = vpop.eup %15193  ;;  %15201 = vrcp.f32 %v8974_v44  ;;  %14753 = vmatprep.subr.bf16.mxu1 %v19893_v54  ;;  %v14807_v47 = vpack.c.bf16 %v9396_v33, %v9395_v30 }
0x20ae   :  { %v15196_v51 = vpop.eup %15195  ;;  %v8982_v52 = vmul.f32 %v15194_v20, %v18658_v28  ;;  %v9056_v20 = vld [vmem:[%s19195_s10 + $0x40] sm:$0xff] }
0x20af   :  { %v8984_v0 = vmul.f32 %v15196_v51, %v18670_v63  ;;  %v9057_v51 = vld [vmem:[%s19195_s10 + $0x48] sm:$0xff] }
0x20b0   :  { %9002 = vxpose.xlu1.b32.cont [3/8] (short) (narrow) %v8980_v41, 8  ;;  %11041 = vst.msk [vmem:[%s19205_s20 + $0x58] sm:$0xff] %vm2921_vm5, %v8982_v52  ;;  %v9054_v41 = vld [vmem:[%s19195_s10 + $0x30] sm:$0xff] }
0x20b1   :  { %v15198_v46 = vpop.eup %15197  ;;  %11042 = vst.msk [vmem:[%s19205_s20 + $0x60] sm:$0xff] %vm2921_vm5, %v8984_v0 }
0x20b2   :  { %v15200_v6 = vpop.eup %15199  ;;  %v8986_v8 = vmul.f32 %v15198_v46, %v18665_v3  ;;  %v9059_v46 = vld [vmem:[%s19195_s10 + $0x58] sm:$0xff] }
0x20b3   :  { %v8988_v56 = vmul.f32 %v15200_v6, %v18680_v26 }
0x20b4   :  { %9003 = vxpose.xlu1.b32.cont [4/8] (short) (narrow) %v8982_v52, 8  ;;  %11043 = vst.msk [vmem:[%s19205_s20 + $0x68] sm:$0xff] %vm2921_vm5, %v8986_v8  ;;  %v14784_v52 = vpack.c.bf16 %v9057_v51, %v9056_v20  ;;  %v9415_v51 = vld [vmem:[%s19198_s13 + $0x50] sm:$0xff] }
0x20b5   :  { %11044 = vst.msk [vmem:[%s19205_s20 + $0x70] sm:$0xff] %vm2921_vm5, %v8988_v56 }
0x20b7   :  { %v15202_v49 = vpop.eup %15201 }
0x20b8   :  { %9004 = vxpose.xlu1.b32.cont [5/8] (short) (narrow) %v8984_v0, 8  ;;  %v8990_v57 = vmul.f32 %v15202_v49, %v18676_v45  ;;  %v9058_v0 = vld [vmem:[%s19195_s10 + $0x50] sm:$0xff] }
0x20b9   :  { %v14787_v6 = vpack.c.bf16 %v9059_v46, %v9058_v0  ;;  %v9401_v46 = vld [vmem:[%s19197_s12 + $0x60] sm:$0xff] }
0x20ba   :  { %11045 = vst.msk [vmem:[%s19205_s20 + $0x78] sm:$0xff] %vm2921_vm5, %v8990_v57 }
0x20bc   :  { %9005 = vxpose.xlu1.b32.cont [6/8] (short) (narrow) %v8986_v8, 8  ;;  %v9060_v8 = vld [vmem:[%s19195_s10 + $0x60] sm:$0xff] }
0x20c0   :  { %9006 = vxpose.xlu1.b32.cont [7/8] (short) (narrow) %v8988_v56, 8  ;;  %v9061_v56 = vld [vmem:[%s19195_s10 + $0x68] sm:$0xff] }
0x20c4   :  { %9007 = vxpose.xlu1.b32.end [8/8] (short) (narrow) %v8990_v57, 8  ;;  %v14790_v57 = vpack.c.bf16 %v9061_v56, %v9060_v8 }
0x20c8   :  { %8793 = vxpose.xlu1.b32.start.end [1/1] (short) (narrow) %v18307_v38, 64  ;;  %v9036_v38 = vld [vmem:[%s19194_s9 + $0x20] sm:$0xff] }
0x20c9   :  { %v14754_v24 = vpack.c.bf16 %v9037_v58, %v9036_v38  ;;  %v19965_v58 = vld [vmem:[#allocation154_spill] sm:$0xff] }
0x20cb   :  { %14755 = vmatpush3.bf16.msra.mxu1 %v14754_v24 }
0x20cc   :  { %14756 = vmatprep.subr.bf16.mxu1 %v19893_v54 }
0x20cf   :  { %14758 = vmatpush3.bf16.msra.mxu1 %v14757_v21 }
0x20d0   :  { %14759 = vmatprep.subr.bf16.mxu1 %v19893_v54 }
0x20d3   :  { %14761 = vmatpush3.bf16.msra.mxu1 %v14760_v12  ;;  %v9389_v12 = vld [vmem:[%s19197_s12] sm:$0xff] }
0x20d4   :  { %14762 = vmatprep.subr.bf16.mxu1 %v19893_v54 }
0x20d7   :  { %14764 = vmatpush3.bf16.msra.mxu1 %v14763_v59  ;;  %v14795_v59 = vpack.c.bf16 %v9390_v36, %v9389_v12  ;;  %v9419_v12 = vld [vmem:[%s19198_s13 + $0x70] sm:$0xff]  ;;  %v9420_v36 = vld [vmem:[%s19198_s13 + $0x78] sm:$0xff] }
0x20d8   :  { %14765 = vmatprep.subr.bf16.mxu1 %v19893_v54 }
0x20db   :  { %14767 = vmatpush3.bf16.msra.mxu1 %v14766_v19  ;;  %v9406_v19 = vld [vmem:[%s19198_s13 + $0x8] sm:$0xff] }
0x20dc   :  { %14768 = vmatprep.subr.bf16.mxu1 %v19893_v54  ;;  %v14827_v35 = vpack.c.bf16 %v9406_v19, %v9405_v16 }
0x20de   :  { %14828 = vmatprep.subr.bf16.mxu0 %v14827_v35 }
0x20df   :  { %14770 = vmatpush3.bf16.msra.mxu1 %v14769_v60  ;;  %v9393_v60 = vld [vmem:[%s19197_s12 + $0x20] sm:$0xff]  ;;  %14830 = vmatpush3.bf16.msra.mxu0 %v14827_v35 }
0x20e0   :  { %14771 = vmatprep.subr.bf16.mxu1 %v19893_v54 }
0x2128   :  { %v9016_v4 = vpop.trf.xlu1 }
0x2129   :  { %v9066_v53 = vrot.slane %v9016_v4, 7  ;;  %v9394_v4 = vld [vmem:[%s19197_s12 + $0x28] sm:$0xff] }
0x212b   :  { %v9068_v31 = vsel %vm212_vm0, 0.0, %v9066_v53  ;;  %v9069_v61 = vsel %vm212_vm0, %v9066_v53, 0.0  ;;  %v9407_v53 = vld [vmem:[%s19198_s13 + $0x10] sm:$0xff] }
0x212c   :  { %v9072_v48 = vrot.slane %v9068_v31, 1  ;;  %v9073_v32 = vrot.slane %v9069_v61, 1 }
0x212e   :  { %v9074_v1 = vsel %vm4448_vm4, %v9072_v48, %v9073_v32  ;;  %v9409_v48 = vld [vmem:[%s19198_s13 + $0x20] sm:$0xff] }
0x212f   :  { %9075 = vrot.lane.b32.xlu0 %v9074_v1, %s19524_s1  ;;  %v14803_v1 = vpack.c.bf16 %v9394_v4, %v9393_v60 }
0x2133   :  { %9079 = vrot.lane.b32.xlu0 %v9073_v32, %s19524_s1  ;;  %v9410_v32 = vld [vmem:[%s19198_s13 + $0x28] sm:$0xff] }
0x21a1   :  { %v9076_v34 = vpop.permute.xlu0 %9075 }
0x21a2   :  { %v9078_v18 = vsel %vm19963_vm10, %v9068_v31, %v9076_v34  ;;  %v9408_v31 = vld [vmem:[%s19198_s13 + $0x18] sm:$0xff]  ;;  %v9411_v34 = vld [vmem:[%s19198_s13 + $0x30] sm:$0xff] }
0x21a3   :  { %13334 = vmatmul.mubr.f32.vlgmr.msra.gmra.mrb[70].mxu1 %v9078_v18  ;;  %v9155_v55 = vrot.slane %v9078_v18, 1  ;;  %v9397_v18 = vld [vmem:[%s19197_s12 + $0x40] sm:$0xff]  ;;  %v14839_v50 = vpack.c.bf16 %v9412_v13, %v9411_v34 }
0x21a4   :  { %14773 = vmatpush3.bf16.msra.mxu1 %v14772_v39  ;;  %13368 = vmatprep.mubr.msk.f32.mxu1 %vm15252_vm6, %v19895_v2  ;;  %v9055_v2 = vld [vmem:[%s19195_s10 + $0x38] sm:$0xff]  ;;  %vm19964_vm6 = vmmov %vm19963_vm10  ;;  %v14835_v39 = vpack.c.bf16 %v9410_v32, %v9409_v48  ;;  %vm19985_vm10 = vcmask 261120  }
0x21a5   :  { %14774 = vmatprep.subr.bf16.mxu1 %v19893_v54  ;;  %v14781_v44 = vpack.c.bf16 %v9055_v2, %v9054_v41  ;;  %v9080_v49 = vpop.permute.xlu0 %9079  ;;  %v9399_v2 = vld [vmem:[%s19197_s12 + $0x50] sm:$0xff]  ;;  %vm19969_vm8 = vmmov %vm19964_vm6 }
0x21a6   :  { %v9082_v15 = vsel %vm19964_vm6, %v9069_v61, %v9080_v49  ;;  %v14831_v61 = vpack.c.bf16 %v9408_v31, %v9407_v53  ;;  %v11050_v49 = vld [vmem:[%s19196_s11] ss:$0 sm:$0xff]  ;;  %vm19970_vm14 = vmmov %vm19964_vm6 }
0x21a7   :  { %v9156_v40 = vrot.slane %v9082_v15, 1  ;;  %v9417_v15 = vld [vmem:[%s19198_s13 + $0x60] sm:$0xff]  ;;  %vm19971_vm13 = vmmov %vm19964_vm6 }
0x21a8   :  { %14776 = vmatpush3.bf16.msra.mxu1 %v14775_v14  ;;  %14832 = vmatprep.subr.bf16.mxu0 %v14831_v61  ;;  %v9398_v14 = vld [vmem:[%s19197_s12 + $0x48] sm:$0xff] }
0x21a9   :  { %14777 = vmatprep.subr.bf16.mxu1 %v19893_v54  ;;  %v9157_v38 = vsel %vm4448_vm4, %v9155_v55, %v9156_v40  ;;  %14834 = vmatpush3.bf16.msra.mxu0 %v14831_v61  ;;  %v14811_v41 = vpack.c.bf16 %v9398_v14, %v9397_v18  ;;  %v14823_v55 = vpack.c.bf16 %v9404_v17, %v9403_v42  ;;  %v9803_v42 = vld [vmem:[%s19201_s16] sm:$0xff]  ;;  %v9804_v17 = vld [vmem:[%s19201_s16 + $0x8] sm:$0xff] }
0x21aa   :  { %14836 = vmatprep.subr.bf16.mxu0 %v14835_v39 }
0x21ac   :  { %14779 = vmatpush3.bf16.msra.mxu1 %v14778_v29  ;;  %v9414_v29 = vld [vmem:[%s19198_s13 + $0x48] sm:$0xff] }
0x21ad   :  { %14780 = vmatprep.subr.bf16.mxu1 %v19893_v54  ;;  %14838 = vmatpush3.bf16.msra.mxu0 %v14835_v39  ;;  %v14843_v20 = vpack.c.bf16 %v9414_v29, %v9413_v27 }
0x21ae   :  { %14840 = vmatprep.subr.bf16.mxu0 %v14839_v50 }
0x21b0   :  { %14782 = vmatpush3.bf16.msra.mxu1 %v14781_v44  ;;  %v9400_v44 = vld [vmem:[%s19197_s12 + $0x58] sm:$0xff] }
0x21b1   :  { %14783 = vmatprep.subr.bf16.mxu1 %v19893_v54  ;;  %14842 = vmatpush3.bf16.msra.mxu0 %v14839_v50  ;;  %v14815_v0 = vpack.c.bf16 %v9400_v44, %v9399_v2 }
0x21b2   :  { %14844 = vmatprep.subr.bf16.mxu0 %v14843_v20 }
0x21b4   :  { %14785 = vmatpush3.bf16.msra.mxu1 %v14784_v52  ;;  %v9416_v52 = vld [vmem:[%s19198_s13 + $0x58] sm:$0xff] }
0x21b5   :  { %14786 = vmatprep.subr.bf16.mxu1 %v19893_v54  ;;  %v14847_v8 = vpack.c.bf16 %v9416_v52, %v9415_v51  ;;  %14846 = vmatpush3.bf16.msra.mxu0 %v14843_v20  ;;  %v19975_v51 = vld [vmem:[#allocation160_spill] sm:$0xff]  ;;  %v19978_v52 = vld [vmem:[#allocation161_spill] sm:$0xff] }
0x21b7   :  { %14848 = vmatprep.subr.bf16.mxu0 %v14847_v8 }
0x21b8   :  { %14788 = vmatpush3.bf16.msra.mxu1 %v14787_v6  ;;  %v9402_v6 = vld [vmem:[%s19197_s12 + $0x68] sm:$0xff] }
0x21b9   :  { %14789 = vmatprep.subr.bf16.mxu1 %v19893_v54  ;;  %v14819_v56 = vpack.c.bf16 %v9402_v6, %v9401_v46  ;;  %14850 = vmatpush3.bf16.msra.mxu0 %v14847_v8  ;;  %v19982_v46 = vld [vmem:[#allocation159_spill] sm:$0xff]  ;;  %v9795_v6 = vld [vmem:[%s19200_s15] sm:$0xff] }
0x21ba   :  { %v9796_v8 = vld [vmem:[%s19200_s15 + $0x8] sm:$0xff] }
0x21bc   :  { %14791 = vmatpush3.bf16.msra.mxu1 %v14790_v57 }
0x21bd   :  { %14792 = vmatprep.subr.bf16.mxu1 %v19893_v54  ;;  %v19967_v54 = vld [vmem:[#allocation156_spill] sm:$0xff] }
0x21c0   :  { %14794 = vmatpush3.bf16.msra.mxu1 %v14793_v5 }
0x21c3   :  { %13369 = vmatmul.mubr.f32.vlgmr.msra.gmra.mrb[72].mxu1 %v9157_v38  ;;  %v9418_v38 = vld [vmem:[%s19198_s13 + $0x68] sm:$0xff] }
0x21c4   :  { %13373 = vmatprep.mubr.msk.f32.mxu1 %vm2921_vm5, %v19965_v58 }
0x2276   :  { %v9149_v24 = vpop.f32.mrb[70].mxu1 }
0x2277   :  { %v13335_v10 = vpop.f32.mrb[71].mxu1 }
0x2278   :  { %v14851_v10 = vpack.c.bf16 %v9418_v38, %v9417_v15 }
0x227a   :  { %14852 = vmatprep.subr.bf16.mxu0 %v14851_v10 }
0x227b   :  { %14854 = vmatpush3.bf16.msra.mxu0 %v14851_v10 }
0x2296   :  { %v9225_v9 = vpop.f32.mrb[72].mxu1 }
0x2297   :  { %v13370_v21 = vpop.f32.mrb[73].mxu1  ;;  %13371 = vmatprep.subr.mxu1 %v9225_v9 }
0x2298   :  { %13372 = vmatpush3.msra.mxu1 %v9225_v9 }
0x2299   :  { %13374 = vmatmul.mubr.msk.f32.vlgmr.msra.gmra.mrb[74].mxu1 %vm2921_vm5, %v19966_v22  ;;  %13376 = vmatprep.subr.mxu1 %v9149_v24 }
0x229a   :  { %13377 = vmatpush3.msra.mxu1 %v9149_v24  ;;  %13378 = vmatprep.mubr.msk.f32.mxu1 %vm2921_vm5, %v19967_v54 }
0x229b   :  { %14796 = vmatprep.subr.bf16.mxu1 %v14795_v59 }
0x22a1   :  { %13379 = vmatmul.mubr.msk.f32.vlgmr.msra.gmra.mrb[74].mxu1 %vm2921_vm5, %v19968_v25 }
0x22a2   :  { %14798 = vmatpush3.bf16.msra.mxu1 %v14795_v59  ;;  %v14855_v59 = vpack.c.bf16 %v9420_v36, %v9419_v12  ;;  %v9805_v36 = vld [vmem:[%s19201_s16 + $0x10] sm:$0xff] }
0x22a3   :  { %14800 = vmatprep.subr.bf16.mxu1 %v14799_v23 }
0x22a4   :  { %14856 = vmatprep.subr.bf16.mxu0 %v14855_v59 }
0x22a5   :  { %14858 = vmatpush3.bf16.msra.mxu0 %v14855_v59 }
0x22a6   :  { %14802 = vmatpush3.bf16.msra.mxu1 %v14799_v23 }
0x22a7   :  { %14804 = vmatprep.subr.bf16.mxu1 %v14803_v1 }
0x22aa   :  { %14806 = vmatpush3.bf16.msra.mxu1 %v14803_v1 }
0x22ab   :  { %14808 = vmatprep.subr.bf16.mxu1 %v14807_v47 }
0x22ae   :  { %14810 = vmatpush3.bf16.msra.mxu1 %v14807_v47 }
0x22af   :  { %14812 = vmatprep.subr.bf16.mxu1 %v14811_v41 }
0x22b2   :  { %14814 = vmatpush3.bf16.msra.mxu1 %v14811_v41 }
0x22b3   :  { %14816 = vmatprep.subr.bf16.mxu1 %v14815_v0 }
0x22b6   :  { %14818 = vmatpush3.bf16.msra.mxu1 %v14815_v0  ;;  %v19980_v0 = vld [vmem:[#allocation158_spill] sm:$0xff] }
0x22b7   :  { %14820 = vmatprep.subr.bf16.mxu1 %v14819_v56 }
0x22ba   :  { %14822 = vmatpush3.bf16.msra.mxu1 %v14819_v56  ;;  %v9797_v56 = vld [vmem:[%s19200_s15 + $0x10] sm:$0xff] }
0x22bb   :  { %14824 = vmatprep.subr.bf16.mxu1 %v14823_v55 }
0x22be   :  { %14826 = vmatpush3.bf16.msra.mxu1 %v14823_v55  ;;  %v9800_v55 = vld [vmem:[%s19200_s15 + $0x28] sm:$0xff] }
0x2374   :  { %v13380_v57 = vpop.f32.mrb[74].mxu1 }
0x2375   :  { %v9386_v5 = vadd.f32 %v13380_v57, %v11050_v49  ;;  %v9370_v40 = vpop.f32.mrb[75].mxu1  ;;  %v9798_v57 = vld [vmem:[%s19200_s15 + $0x18] sm:$0xff] }
0x2376   :  { %v9385_v24 = vadd.f32 %v11050_v49, %v9370_v40  ;;  %v14867_v49 = vpack.c.bf16 %v9796_v8, %v9795_v6  ;;  %v14871_v15 = vpack.c.bf16 %v9798_v57, %v9797_v56  ;;  %v9799_v40 = vld [vmem:[%s19200_s15 + $0x20] sm:$0xff] }
0x2377   :  { %v9388_v9 = vmax.f32 %v9386_v5, 0.0  ;;  %v14883_v5 = vpack.c.bf16 %v9804_v17, %v9803_v42  ;;  %v14875_v38 = vpack.c.bf16 %v9800_v55, %v9799_v40 }
0x2378   :  { %v9387_v21 = vmax.f32 %v9385_v24, 0.0 }
0x2379   :  { %v9425_v37 = vrot.slane %v9388_v9, 7 }
0x237a   :  { %v9424_v62 = vrot.slane %v9387_v21, 7  ;;  %v11059_v21 = vld [vmem:[%s19199_s14] ss:$0 sm:$0xff] }
0x237b   :  { %v9431_v16 = vsel %vm212_vm0, %v9425_v37, 0.0 }
0x237c   :  { %v9437_v19 = vrot.slane %v9431_v16, 1  ;;  %v9426_v23 = vsel %vm212_vm0, %v9424_v62, %v9425_v37  ;;  %v9430_v35 = vsel %vm212_vm0, 0.0, %v9424_v62  ;;  %v9806_v37 = vld [vmem:[%s19201_s16 + $0x18] sm:$0xff] }
0x237d   :  { %v9434_v60 = vrot.slane %v9430_v35, 1  ;;  %v9435_v4 = vrot.slane %v9426_v23, 1 }
0x237f   :  { %v9436_v53 = vsel %vm4448_vm4, %v9434_v60, %v9435_v4  ;;  %v9438_v31 = vsel %vm4448_vm4, %v9435_v4, %v9437_v19 }
0x2380   :  { %v15118_v61 = vpack.i.bf16 %v9438_v31, %v9436_v53 }
0x2382   :  { %15119 = vrot.lane.b32.xlu0 %v15118_v61, %s19524_s1 }
0x2386   :  { %9447 = vrot.lane.b32.xlu0 %v9437_v19, %s19524_s1  ;;  %v14887_v19 = vpack.c.bf16 %v9806_v37, %v9805_v36 }
0x23f4   :  { %v15120_v48 = vpop.permute.xlu0 %15119 }
0x23f5   :  { %v15122_v32 = vunpack.i.h.bf16 %v15120_v48  ;;  %v15121_v1 = vunpack.i.l.bf16 %v15120_v48  ;;  %v9807_v48 = vld [vmem:[%s19201_s16 + $0x20] sm:$0xff] }
0x23f7   :  { %v9445_v30 = vsel %vm19969_vm8, %v9430_v35, %v15121_v1  ;;  %v9446_v33 = vsel %vm19970_vm14, %v9426_v23, %v15122_v32  ;;  %v9801_v23 = vld [vmem:[%s19200_s15 + $0x30] sm:$0xff]  ;;  %v9802_v35 = vld [vmem:[%s19200_s15 + $0x38] sm:$0xff]  ;;  %v9808_v32 = vld [vmem:[%s19201_s16 + $0x28] sm:$0xff] }
0x23f8   :  { %v9448_v39 = vpop.permute.xlu0 %9447  ;;  %13413 = vmatprep.mubr.f32.mxu1 %v9445_v30  ;;  %v9529_v34 = vrot.slane %v9445_v30, 1  ;;  %v9530_v13 = vrot.slane %v9446_v33, 1  ;;  %v14879_v4 = vpack.c.bf16 %v9802_v35, %v9801_v23  ;;  %vm19987_vm8 = vmmov %vm19964_vm6 }
0x23f9   :  { %v9450_v47 = vsel %vm19971_vm13, %v9431_v16, %v9448_v39  ;;  %13414 = vmatmul.mubr.f32.vlgmr.msra.gmra.mrb[76].mxu1 %v9446_v33  ;;  %v14891_v39 = vpack.c.bf16 %v9808_v32, %v9807_v48  ;;  %vm19989_vm13 = vmmov %vm19964_vm6 }
0x23fa   :  { %v9532_v18 = vrot.slane %v9450_v47, 1  ;;  %v9531_v14 = vsel %vm4448_vm4, %v9529_v34, %v9530_v13  ;;  %13465 = vmatprep.mubr.msk.f32.mxu1 %vm19972_vm7, %v19967_v54  ;;  %vm19990_vm7 = vmmov %vm19964_vm6 }
0x23fb   :  { %13448 = vmatprep.mubr.f32.mxu0 %v9531_v14 }
0x23fc   :  { %v9533_v50 = vsel %vm4448_vm4, %v9530_v13, %v9532_v18 }
0x23fd   :  { %13449 = vmatmul.mubr.f32.vlgmr.msra.gmra.mrb[96].mxu0 %v9533_v50 }
0x23fe   :  { %13455 = vmatprep.mubr.msk.f32.mxu0 %vm19973_vm11, %v19965_v58 }
0x24cc   :  { %v13415_v27 = vpop.f32.mrb[76].mxu1 }
0x24cd   :  { %v9517_v29 = vpop.f32.mrb[77].mxu1 }
0x24ce   :  { %v14863_v41 = vpack.c.bf16 %v13415_v27, %v9517_v29  ;;  %v9809_v27 = vld [vmem:[%s19201_s16 + $0x30] sm:$0xff]  ;;  %v9810_v29 = vld [vmem:[%s19201_s16 + $0x38] sm:$0xff]  ;;  %s15260_s16 = smov [#allocation3]  }
0x24d0   :  { %v13450_v2 = vpop.f32.mrb[96].mxu0  ;;  %14864 = vmatprep.subr.bf16.mxu1 %v14863_v41 }
0x24d1   :  { %v9602_v44 = vpop.f32.mrb[97].mxu0  ;;  %14866 = vmatpush3.bf16.msra.mxu1 %v14863_v41 }
0x24d2   :  { %v14859_v20 = vpack.c.bf16 %v13450_v2, %v9602_v44  ;;  %14868 = vmatprep.subr.bf16.mxu1 %v14867_v49  ;;  %v14895_v2 = vpack.c.bf16 %v9810_v29, %v9809_v27 }
0x24d4   :  { %14860 = vmatprep.subr.bf16.mxu0 %v14859_v20  ;;  %13466 = vmatmul.mubr.msk.f32.vlgmr.msra.gmra.mrb[78].mxu1 %vm19974_vm12, %v19968_v25  ;;  %vm19992_vm12 = vmmov %vm19964_vm6 }
0x24d5   :  { %14862 = vmatpush3.bf16.msra.mxu0 %v14859_v20  ;;  %13468 = vmatprep.mubr.msk.f32.mxu1 %vm19976_vm15, %v19975_v51  ;;  %vm19993_vm15 = vmmov %vm19964_vm6 }
0x24d6   :  { %14870 = vmatpush3.bf16.msra.mxu1 %v14867_v49  ;;  %14884 = vmatprep.subr.bf16.mxu0 %v14883_v5 }
0x24d7   :  { %14872 = vmatprep.subr.bf16.mxu1 %v14871_v15 }
0x24d8   :  { %13456 = vmatmul.mubr.msk.f32.vlgmr.msra.gmra.mrb[98].mxu0 %vm19977_vm9, %v19966_v22  ;;  %13469 = vmatmul.mubr.msk.f32.gmra.mrb[80].mxu1 %vm19979_vm3, %v19978_v52 }
0x24d9   :  { %13458 = vmatprep.mubr.msk.f32.mxu0 %vm19981_vm1, %v19980_v0  ;;  %14886 = vmatpush3.bf16.msra.mxu0 %v14883_v5  ;;  %vm19996_vm1 = vmmov %vm19964_vm6 }
0x24da   :  { %14874 = vmatpush3.bf16.msra.mxu1 %v14871_v15  ;;  %14888 = vmatprep.subr.bf16.mxu0 %v14887_v19 }
0x24db   :  { %14876 = vmatprep.subr.bf16.mxu1 %v14875_v38 }
0x24dc   :  { %13459 = vmatmul.mubr.msk.f32.gmra.mrb[100].mxu0 %vm19983_vm2, %v19982_v46  ;;  %vm19997_vm2 = vmmov %vm19996_vm1 }
0x24dd   :  { %14890 = vmatpush3.bf16.msra.mxu0 %v14887_v19 }
0x24de   :  { %14878 = vmatpush3.bf16.msra.mxu1 %v14875_v38  ;;  %14892 = vmatprep.subr.bf16.mxu0 %v14891_v39 }
0x24df   :  { %14880 = vmatprep.subr.bf16.mxu1 %v14879_v4 }
0x24e1   :  { %14894 = vmatpush3.bf16.msra.mxu0 %v14891_v39  ;;  %v8809_v39 = vpop.trf.xlu1 }
0x24e2   :  { %14882 = vmatpush3.bf16.msra.mxu1 %v14879_v4  ;;  %14896 = vmatprep.subr.bf16.mxu0 %v14895_v2 }
0x24e5   :  { %14898 = vmatpush3.bf16.msra.mxu0 %v14895_v2 }
0x25a7   :  { %v13467_v24 = vpop.f32.mrb[78].mxu1 }
0x25a8   :  { %v9762_v10 = vpop.f32.mrb[79].mxu1 }
0x25ab   :  { %v13457_v9 = vpop.f32.mrb[98].mxu0  ;;  %v13470_v12 = vpop.f32.mrb[80].mxu1 }
0x25ac   :  { %v9768_v59 = vadd.f32 %v13467_v24, %v13457_v9  ;;  %v9677_v62 = vpop.f32.mrb[99].mxu0  ;;  %v9772_v16 = vpop.f32.mrb[81].mxu1 }
0x25ad   :  { %v9763_v60 = vadd.f32 %v9762_v10, %v9677_v62 }
0x25ae   :  { %v9788_v53 = vadd.f32 %v11059_v21, %v9768_v59 }
0x25af   :  { %v9787_v31 = vadd.f32 %v11059_v21, %v9763_v60  ;;  %v13460_v61 = vpop.f32.mrb[100].mxu0 }
0x25b0   :  { %v9792_v1 = vmax.f32 %v9788_v53, 0.0  ;;  %v9778_v30 = vadd.f32 %v13470_v12, %v13460_v61  ;;  %v9687_v33 = vpop.f32.mrb[101].mxu0 }
0x25b1   :  { %v9791_v34 = vmax.f32 %v9787_v31, 0.0  ;;  %v9773_v13 = vadd.f32 %v9772_v16, %v9687_v33 }
0x25b2   :  { %v9817_v47 = vrot.slane %v9792_v1, 7  ;;  %v9790_v18 = vadd.f32 %v11059_v21, %v9778_v30 }
0x25b3   :  { %v9816_v14 = vrot.slane %v9791_v34, 7  ;;  %v9789_v50 = vadd.f32 %v11059_v21, %v9773_v13  ;;  %v19984_v21 = vld [vmem:[#allocation47_spill] sm:$0xff]  ;;  %v8810_v34 = vpop.trf.xlu1 }
0x25b4   :  { %v9794_v41 = vmax.f32 %v9790_v18, 0.0  ;;  %v8826_v29 = vsub.f32 %v18649_v7, %v8810_v34 }
0x25b5   :  { %v9818_v44 = vsel %vm212_vm0, %v9816_v14, %v9817_v47  ;;  %v9828_v20 = vsel %vm212_vm0, 0.0, %v9816_v14  ;;  %v9793_v6 = vmax.f32 %v9789_v50, 0.0  ;;  %v8825_v14 = vsub.f32 %v18651_v11, %v8809_v39 }
0x25b6   :  { %v9832_v8 = vrot.slane %v9828_v20, 1  ;;  %v9821_v56 = vrot.slane %v9794_v41, 7  ;;  %v9833_v49 = vrot.slane %v9818_v44, 1 }
0x25b7   :  { %v9819_v57 = vrot.slane %v9793_v6, 7  ;;  %v8811_v13 = vpop.trf.xlu1  ;;  %v19999_v6 = vld [vmem:[#allocation146_spill] sm:$0xff] }
0x25b8   :  { %v9834_v42 = vsel %vm4448_vm4, %v9832_v8, %v9833_v49  ;;  %v9829_v38 = vsel %vm212_vm0, %v9821_v56, 0.0 }
0x25b9   :  { %v9820_v17 = vsel %vm212_vm0, %v9817_v47, %v9819_v57  ;;  %v9822_v15 = vsel %vm212_vm0, %v9819_v57, %v9821_v56  ;;  %9841 = vrot.lane.b32.xlu0 %v9834_v42, %s19685_s22  ;;  %v9839_v24 = vrot.slane %v9829_v38, 1  ;;  %vm19986_vm0 = vmmov %vm19985_vm10  ;;  %v8834_v57 = vmul.f32 %v8826_v29, %v8826_v29  ;;  %v20005_v29 = vld [vmem:[#allocation152_spill] sm:$0xff] }
0x25ba   :  { %v9835_v5 = vrot.slane %v9820_v17, 1  ;;  %v9837_v55 = vrot.slane %v9822_v15, 1  ;;  %vm19988_vm14 = vmmov %vm19986_vm0 }
0x25bb   :  { %vm19991_vm11 = vmmov %vm19986_vm0  ;;  %v8812_v47 = vpop.trf.xlu1 }
0x25bc   :  { %v9836_v40 = vsel %vm4448_vm4, %v9833_v49, %v9835_v5  ;;  %v9838_v10 = vsel %vm4448_vm4, %v9835_v5, %v9837_v55  ;;  %v9840_v9 = vsel %vm4448_vm4, %v9837_v55, %v9839_v24  ;;  %vm19994_vm9 = vmmov %vm19986_vm0  ;;  %v8828_v42 = vsub.f32 %v18658_v28, %v8812_v47  ;;  %v20004_v47 = vld [vmem:[#allocation153_spill] sm:$0xff] }
0x25bd   :  { %9843 = vrot.lane.b32.xlu0 %v9836_v40, %s19685_s22  ;;  %vm19995_vm3 = vmmov %vm19986_vm0 }
0x25bf   :  { %v8813_v41 = vpop.trf.xlu1 }
0x25c1   :  { %9845 = vrot.lane.b32.xlu0 %v9838_v10, %s19685_s22  ;;  %v8829_v10 = vsub.f32 %v18670_v63, %v8813_v41 }
0x25c3   :  { %v8814_v55 = vpop.trf.xlu1 }
0x25c5   :  { %9847 = vrot.lane.b32.xlu0 %v9840_v9, %s19685_s22 }
0x25c9   :  { %9857 = vrot.lane.b32.xlu0 %v9839_v24, %s19685_s22  ;;  %v8844_v24 = vsel %vm2921_vm5, %v8834_v57, 0.0  ;;  %s10313_s22 = sshll.u32 %s15260_s16, 4  ;;  %s10314_s22 = int_to_ptr.vmem [resolvable:$true] %s10313_s22 }
0x25ca   :  { %s15219_s27 = scalar_lea.vmem %s10314_s22, 16  ;;  %s15223_s6 = scalar_lea.vmem %s10314_s22, 32 }
0x25cb   :  { %p15220_p0 = scmp.ne.s32.totalorder %s10314_s22, %s15219_s27  ;;  %p15224_p1 = scmp.lt.s32.totalorder %s10314_s22, %s10314_s22 }
0x25cc   :  { %p15225_p2 = scmp.lt.s32.totalorder %s15223_s6, %s15219_s27 }
0x25ce   :  { %p15226_p3 = por %p15225_p2, %p15224_p1 }
0x25d0   :  { %p15227_p4 = pnand %p15226_p3, %p15220_p0 }
0x25e7   :  { %4170 = vxpose.xlu0.b32.start.end [1/1] (short) (narrow) %v19984_v21, 64  ;;  %v20001_v21 = vld [vmem:[#allocation148_spill] sm:$0xff] }
0x262b   :  { %v9842_v12 = vpop.permute.xlu0 %9841 }
0x262c   :  { %v9853_v36 = vsel %vm19985_vm10, %v9828_v20, %v9842_v12  ;;  %v8827_v20 = vsub.f32 %v18661_v43, %v8811_v13  ;;  %v8836_v43 = vmul.f32 %v8828_v42, %v8828_v42  ;;  %vm20008_vm10 = vmmov %vm19986_vm0 }
0x262d   :  { %13487 = vmatprep.mubr.msk.f32.mxu1 %vm19964_vm6, %v9853_v36  ;;  %v9959_v62 = vrot.slane %v9853_v36, 1  ;;  %v8830_v36 = vsub.f32 %v18665_v3, %v8814_v55  ;;  %vm20010_vm6 = vmmov %vm19986_vm0 }
0x262f   :  { %v9844_v37 = vpop.permute.xlu0 %9843  ;;  %v8838_v63 = vmul.f32 %v8830_v36, %v8830_v36 }
0x2630   :  { %v9854_v59 = vsel %vm19986_vm0, %v9818_v44, %v9844_v37  ;;  %v8833_v44 = vmul.f32 %v8825_v14, %v8825_v14  ;;  %v8815_v37 = vpop.trf.xlu1 }
0x2631   :  { %v9960_v16 = vrot.slane %v9854_v59, 1  ;;  %13488 = vmatmul.mubr.msk.f32.vlgmr.msra.gmra.mrb[82].mxu1 %vm19987_vm8, %v9854_v59  ;;  %v8856_v39 = vsel %vm2921_vm5, %v8838_v63, 0.0  ;;  %vm20013_vm8 = vmmov %vm19986_vm0 }
0x2632   :  { %v8841_v40 = vsel %vm2921_vm5, %v8833_v44, 0.0 }
0x2633   :  { %v9846_v19 = vpop.permute.xlu0 %9845  ;;  %v9961_v23 = vsel %vm4448_vm4, %v9959_v62, %v9960_v16  ;;  %v8850_v62 = vsel %vm2921_vm5, %v8836_v43, 0.0 }
0x2634   :  { %v9855_v35 = vsel %vm19988_vm14, %v9820_v17, %v9846_v19  ;;  %13509 = vmatprep.mubr.msk.f32.mxu0 %vm19989_vm13, %v9961_v23  ;;  %v8835_v17 = vmul.f32 %v8827_v20, %v8827_v20  ;;  %v20002_v23 = vld [vmem:[#allocation151_spill] sm:$0xff]  ;;  %vm20015_vm14 = vmmov %vm19986_vm0 }
0x2635   :  { %v9962_v60 = vrot.slane %v9855_v35, 1  ;;  %13490 = vmatprep.mubr.msk.f32.mxu1 %vm19990_vm7, %v9855_v35  ;;  %vm20016_vm13 = vmmov %vm19986_vm0  ;;  %vm10303_vm7 = vcmask 0  }
0x2636   :  { %v8847_v12 = vsel %vm2921_vm5, %v8835_v17, 0.0 }
0x2637   :  { %v9963_v4 = vsel %vm4448_vm4, %v9960_v16, %v9962_v60  ;;  %v9848_v53 = vpop.permute.xlu0 %9847  ;;  %v8837_v16 = vmul.f32 %v8829_v10, %v8829_v10 }
0x2638   :  { %v9856_v31 = vsel %vm19991_vm11, %v9822_v15, %v9848_v53  ;;  %13510 = vmatmul.mubr.msk.f32.vlgmr.msra.gmra.mrb[102].mxu0 %vm19992_vm12, %v9963_v4  ;;  %v20000_v15 = vld [vmem:[#allocation149_spill] sm:$0xff]  ;;  %v8831_v4 = vsub.f32 %v18680_v26, %v8815_v37  ;;  %vm20017_vm11 = vmmov %vm19986_vm0 }
0x2639   :  { %v9964_v61 = vrot.slane %v9856_v31, 1  ;;  %13491 = vmatmul.mubr.msk.f32.gmra.mrb[84].mxu1 %vm19993_vm15, %v9856_v31  ;;  %vm20018_vm12 = vmmov %vm19986_vm0 }
0x263a   :  { %13523 = vmatprep.mubr.msk.f32.mxu1 %vm19994_vm9, %v19965_v58  ;;  %v19998_v58 = vld [vmem:[#allocation147_spill] sm:$0xff]  ;;  %vm20019_vm15 = vmmov %vm19986_vm0 }
0x263b   :  { %v9858_v48 = vpop.permute.xlu0 %9857  ;;  %v9965_v32 = vsel %vm4448_vm4, %v9962_v60, %v9964_v61  ;;  %vm20021_vm9 = vmmov %vm19986_vm0 }
0x263c   :  { %v9860_v1 = vsel %vm19995_vm3, %v9829_v38, %v9858_v48  ;;  %13512 = vmatprep.mubr.msk.f32.mxu0 %vm19996_vm1, %v9965_v32  ;;  %v8853_v32 = vsel %vm2921_vm5, %v8837_v16, 0.0  ;;  %vm20023_vm3 = vmmov %vm19986_vm0 }
0x263d   :  { %v9966_v30 = vrot.slane %v9860_v1, 1  ;;  %v8816_v1 = vpop.trf.xlu1  ;;  %vm20025_vm1 = vmmov %vm19986_vm0 }
0x263e   :  { %v8832_v34 = vsub.f32 %v18676_v45, %v8816_v1 }
0x263f   :  { %v9967_v33 = vsel %vm4448_vm4, %v9964_v61, %v9966_v30  ;;  %v20003_v61 = vld [vmem:[#allocation150_spill] sm:$0xff]  ;;  %v8839_v30 = vmul.f32 %v8831_v4, %v8831_v4  ;;  %vm20007_vm4 = vmmov %vm19986_vm0 }
0x2640   :  { %13513 = vmatmul.mubr.msk.f32.gmra.mrb[104].mxu0 %vm19997_vm2, %v9967_v33  ;;  %vm20027_vm2 = vmmov %vm19986_vm0 }
0x2667   :  { %v4186_v18 = vpop.trf.xlu0 }
0x2668   :  { %v4202_v50 = vsub.f32 %v19998_v58, %v4186_v18  ;;  %v8859_v58 = vsel %vm2921_vm5, %v8839_v30, 0.0 }
0x266a   :  { %v4210_v27 = vmul.f32 %v4202_v50, %v4202_v50  ;;  %v8840_v50 = vmul.f32 %v8832_v34, %v8832_v34 }
0x266b   :  { %v4187_v2 = vpop.trf.xlu0 }
0x266c   :  { %v4203_v8 = vsub.f32 %v19999_v6, %v4187_v2  ;;  %v4218_v56 = vsel %vm2921_vm5, %v4210_v27, 0.0  ;;  %v8862_v20 = vsel %vm2921_vm5, %v8840_v50, 0.0  ;;  %v20009_v50 = vld [vmem:[#allocation6_spill] sm:$0xff] }
0x266d   :  { %4219 = vadd.xlane.f32.xlu1 %v4218_v56 }
0x266e   :  { %v4211_v49 = vmul.f32 %v4203_v8, %v4203_v8 }
0x266f   :  { %v4188_v11 = vpop.trf.xlu0 }
0x2670   :  { %v4204_v5 = vsub.f32 %v20000_v15, %v4188_v11  ;;  %v4221_v7 = vsel %vm2921_vm5, %v4211_v49, 0.0 }
0x2671   :  { %4222 = vadd.xlane.f32.xlu0 %v4221_v7  ;;  %8842 = vadd.xlane.f32.xlu1 %v8841_v40 }
0x2672   :  { %v4212_v9 = vmul.f32 %v4204_v5, %v4204_v5 }
0x2673   :  { %v4189_v38 = vpop.trf.xlu0 }
0x2674   :  { %v4205_v28 = vsub.f32 %v20001_v21, %v4189_v38  ;;  %v4224_v60 = vsel %vm2921_vm5, %v4212_v9, 0.0 }
0x2675   :  { %8845 = vadd.xlane.f32.xlu1 %v8844_v24  ;;  %8848 = vadd.xlane.f32.xlu0 %v8847_v12 }
0x2676   :  { %v4213_v19 = vmul.f32 %v4205_v28, %v4205_v28 }
0x2677   :  { %v4190_v59 = vpop.trf.xlu0 }
0x2678   :  { %v4206_v35 = vsub.f32 %v20002_v23, %v4190_v59  ;;  %v4227_v3 = vsel %vm2921_vm5, %v4213_v19, 0.0 }
0x2679   :  { %4225 = vadd.xlane.f32.xlu1 %v4224_v60  ;;  %8851 = vadd.xlane.f32.xlu0 %v8850_v62 }
0x267a   :  { %v4214_v31 = vmul.f32 %v4206_v35, %v4206_v35 }
0x267b   :  { %v4191_v53 = vpop.trf.xlu0 }
0x267c   :  { %v4207_v48 = vsub.f32 %v20003_v61, %v4191_v53  ;;  %v4230_v18 = vsel %vm2921_vm5, %v4214_v31, 0.0 }
0x267d   :  { %4228 = vadd.xlane.f32.xlu1 %v4227_v3  ;;  %8854 = vadd.xlane.f32.xlu0 %v8853_v32 }
0x267e   :  { %v4215_v13 = vmul.f32 %v4207_v48, %v4207_v48 }
0x267f   :  { %v4192_v33 = vpop.trf.xlu0 }
0x2680   :  { %v4208_v26 = vsub.f32 %v20004_v47, %v4192_v33  ;;  %v4233_v2 = vsel %vm2921_vm5, %v4215_v13, 0.0 }
0x2681   :  { %4231 = vadd.xlane.f32.xlu1 %v4230_v18  ;;  %8857 = vadd.xlane.f32.xlu0 %v8856_v39 }
0x2682   :  { %v4216_v27 = vmul.f32 %v4208_v26, %v4208_v26 }
0x2683   :  { %v4193_v14 = vpop.trf.xlu0 }
0x2684   :  { %v4209_v41 = vsub.f32 %v20005_v29, %v4193_v14  ;;  %v4236_v45 = vsel %vm2921_vm5, %v4216_v27, 0.0 }
0x2685   :  { %4234 = vadd.xlane.f32.xlu1 %v4233_v2  ;;  %8860 = vadd.xlane.f32.xlu0 %v8859_v58  ;;  %v20012_v2 = vld [vmem:[#allocation12_spill] sm:$0xff] }
0x2686   :  { %v4217_v44 = vmul.f32 %v4209_v41, %v4209_v41 }
0x2688   :  { %v4239_v6 = vsel %vm2921_vm5, %v4217_v44, 0.0  ;;  %vm20006_vm5 = vmmov %vm19986_vm0  ;;  %v20014_v44 = vld [vmem:[#allocation16_spill] sm:$0xff] }
0x2689   :  { %4237 = vadd.xlane.f32.xlu1 %v4236_v45  ;;  %8863 = vadd.xlane.f32.xlu0 %v8862_v20 }
0x268d   :  { %4240 = vadd.xlane.f32.xlu1 %v4239_v6 }
0x26fa   :  { %v4220_v8 = vpop.xlane.xlu1 %4219 }
0x26fe   :  { %v4223_v56 = vpop.xlane.xlu0 %4222  ;;  %v8843_v49 = vpop.xlane.xlu1 %8842 }
0x26ff   :  { %v4242_v59 = vadd.f32 %v4223_v56, %v4220_v8  ;;  %v20020_v8 = vld [vmem:[#allocation18_spill] sm:$0xff] }
0x2700   :  { %v20022_v56 = vld [vmem:[#allocation10_spill] sm:$0xff] }
0x2702   :  { %v8849_v57 = vpop.xlane.xlu0 %8848  ;;  %v8846_v42 = vpop.xlane.xlu1 %8845 }
0x2703   :  { %v8865_v40 = vadd.f32 %v8846_v42, %v8843_v49  ;;  %v20026_v49 = vld [vmem:[#allocation14_spill] sm:$0xff] }
0x2704   :  { %v13489_v11 = vpop.f32.mrb[82].mxu1 }
0x2705   :  { %v9939_v17 = vpop.f32.mrb[83].mxu1  ;;  %v8866_v38 = vadd.f32 %v8865_v40, %v8849_v57 }
0x2706   :  { %v14907_v15 = vpack.c.bf16 %v13489_v11, %v9939_v17  ;;  %v8852_v5 = vpop.xlane.xlu0 %8851  ;;  %v4226_v7 = vpop.xlane.xlu1 %4225 }
0x2707   :  { %v8867_v62 = vadd.f32 %v8866_v38, %v8852_v5  ;;  %v4243_v16 = vadd.f32 %v4242_v59, %v4226_v7 }
0x270a   :  { %v8855_v55 = vpop.xlane.xlu0 %8854  ;;  %v4229_v43 = vpop.xlane.xlu1 %4228 }
0x270b   :  { %v13511_v24 = vpop.f32.mrb[102].mxu0  ;;  %v8868_v19 = vadd.f32 %v8867_v62, %v8855_v55  ;;  %v4244_v60 = vadd.f32 %v4243_v16, %v4229_v43 }
0x270c   :  { %v13492_v10 = vpop.f32.mrb[84].mxu1  ;;  %v10042_v9 = vpop.f32.mrb[103].mxu0 }
0x270d   :  { %v14899_v21 = vpack.c.bf16 %v13511_v24, %v10042_v9  ;;  %v9949_v28 = vpop.f32.mrb[85].mxu1 }
0x270e   :  { %v14911_v12 = vpack.c.bf16 %v13492_v10, %v9949_v28  ;;  %v8858_v36 = vpop.xlane.xlu0 %8857  ;;  %v4232_v37 = vpop.xlane.xlu1 %4231 }
0x270f   :  { %14900 = vmatprep.subr.bf16.mxu1 %v14899_v21  ;;  %v8869_v63 = vadd.f32 %v8868_v19, %v8858_v36  ;;  %v4245_v31 = vadd.f32 %v4244_v60, %v4232_v37 }
0x2710   :  { %14902 = vmatpush3.bf16.msra.mxu1 %v14899_v21 }
0x2712   :  { %v8861_v23 = vpop.xlane.xlu0 %8860  ;;  %v4235_v35 = vpop.xlane.xlu1 %4234 }
0x2713   :  { %v13514_v4 = vpop.f32.mrb[104].mxu0  ;;  %v8870_v61 = vadd.f32 %v8869_v63, %v8861_v23  ;;  %v4246_v1 = vadd.f32 %v4245_v31, %v4235_v35 }
0x2714   :  { %v10052_v53 = vpop.f32.mrb[105].mxu0 }
0x2715   :  { %v14903_v48 = vpack.c.bf16 %v13514_v4, %v10052_v53 }
0x2716   :  { %v8864_v3 = vpop.xlane.xlu0 %8863  ;;  %v4238_v32 = vpop.xlane.xlu1 %4237 }
0x2717   :  { %v8871_v30 = vadd.f32 %v8870_v61, %v8864_v3  ;;  %14904 = vmatprep.subr.bf16.mxu1 %v14903_v48  ;;  %v4247_v39 = vadd.f32 %v4246_v1, %v4238_v32 }
0x2718   :  { %14906 = vmatpush3.bf16.msra.mxu1 %v14903_v48 }
0x2719   :  { %v8872_v33 = vrot.slane %v8871_v30, 4  ;;  %14908 = vmatprep.subr.bf16.mxu1 %v14907_v15 }
0x271a   :  { %v4241_v34 = vpop.xlane.xlu1 %4240 }
0x271b   :  { %v8873_v13 = vadd.f32 %v8872_v33, %v8871_v30  ;;  %v4248_v47 = vadd.f32 %v4247_v39, %v4241_v34  ;;  %13524 = vmatmul.mubr.msk.f32.vlgmr.msra.gmra.mrb[86].mxu1 %vm20006_vm5, %v19966_v22  ;;  %v20011_v22 = vld [vmem:[#allocation8_spill] sm:$0xff] }
0x271c   :  { %14910 = vmatpush3.bf16.msra.mxu1 %v14907_v15  ;;  %13526 = vmatprep.mubr.msk.f32.mxu1 %vm20007_vm4, %v19980_v0 }
0x271d   :  { %v8874_v26 = vrot.slane %v8873_v13, 2  ;;  %v4249_v18 = vrot.slane %v4248_v47, 4  ;;  %14912 = vmatprep.subr.bf16.mxu1 %v14911_v12 }
0x271f   :  { %v8875_v14 = vadd.f32 %v8874_v26, %v8873_v13  ;;  %v4250_v58 = vadd.f32 %v4249_v18, %v4248_v47  ;;  %13527 = vmatmul.mubr.msk.f32.gmra.mrb[88].mxu1 %vm20008_vm10, %v19982_v46 }
0x2720   :  { %14914 = vmatpush3.bf16.msra.mxu1 %v14911_v12  ;;  %13529 = vmatprep.mubr.msk.f32.mxu1 %vm20010_vm6, %v20009_v50 }
0x2721   :  { %v4251_v27 = vrot.slane %v4250_v58, 2  ;;  %v8876_v29 = vrot.slane %v8875_v14, 1 }
0x2723   :  { %v4252_v41 = vadd.f32 %v4251_v27, %v4250_v58  ;;  %13530 = vmatmul.mubr.msk.f32.gmra.mrb[90].mxu1 %vm19986_vm0, %v20011_v22  ;;  %v8877_v20 = vadd.f32 %v8876_v29, %v8875_v14 }
0x2724   :  { %13532 = vmatprep.mubr.msk.f32.mxu1 %vm20013_vm8, %v20012_v2 }
0x2725   :  { %v4253_v0 = vrot.slane %v4252_v41, 1 }
0x2727   :  { %13533 = vmatmul.mubr.msk.f32.gmra.mrb[92].mxu1 %vm20015_vm14, %v20014_v44  ;;  %v4254_v45 = vadd.f32 %v4253_v0, %v4252_v41 }
0x2728   :  { %13543 = vmatprep.mubr.msk.f32.mxu1 %vm20016_vm13, %v19967_v54  ;;  %v20024_v54 = vld [vmem:[#allocation13_spill] sm:$0xff] }
0x2729   :  { %v8878_v46 = vadd.f32 %v8877_v20, %v4254_v45 }
0x272b   :  { %13544 = vmatmul.mubr.msk.f32.vlgmr.msra.gmra.mrb[86].mxu1 %vm20017_vm11, %v19968_v25  ;;  %v10302_v6 = vmul.f32 0.0012207031, %v8878_v46 }
0x272c   :  { %13546 = vmatprep.mubr.msk.f32.mxu1 %vm20018_vm12, %v19975_v51 }
0x272d   :  { %10304 = vst.msk [vmem:[#allocation3] sm:$0x1] %vm10303_vm7, %v10302_v6 }
0x272f   :  { %13547 = vmatmul.mubr.msk.f32.gmra.mrb[88].mxu1 %vm20019_vm15, %v19978_v52 }
0x2730   :  { %13549 = vmatprep.mubr.msk.f32.mxu1 %vm20021_vm9, %v20020_v8 }
0x2733   :  { %13550 = vmatmul.mubr.msk.f32.gmra.mrb[90].mxu1 %vm20023_vm3, %v20022_v56 }
0x2734   :  { %13552 = vmatprep.mubr.msk.f32.mxu1 %vm20025_vm1, %v20024_v54 }
0x2737   :  { %13553 = vmatmul.mubr.msk.f32.gmra.mrb[92].mxu1 %vm20027_vm2, %v20026_v49 }
0x2738   :  { %15230 = shalt.err (!%p15227_p4)
}
0x2739   :  { %s20028_s20 = sld [smem:[#allocation168_spill]] }
0x273f   :  { %s15231_s24 = scalar_lea.hbm %s20028_s20, 16 }
0x2740   :  { %p15232_p5 = scmp.ne.s32.totalorder %s20028_s20, %s15231_s24  ;;  %p15235_p6 = scmp.lt.u32.totalorder %s15231_s24, %s20028_s20 }
0x2742   :  { %p15237_p7 = pnand %p15235_p6, %p15232_p5 }
0x2744   :  { %15240 = shalt.err (!%p15237_p7)
}
0x2745   :  { %10316 = dma.vmem_to_hbm [thread:$0]  %s10314_s22, 16, %s20028_s20, [#allocation4]   ;;  %v11084_v25 = vld [vmem:[#allocation2] ss:$0 sm:$0xff]  ;;  %vm20029_vm5 = vcmask 7168  }
0x2746   :  { %vm20030_vm4 = vmmov %vm20029_vm5 }
0x2747   :  { %vm20031_vm10 = vmmov %vm20030_vm4 }
0x2748   :  { %vm20032_vm6 = vmmov %vm20030_vm4 }
0x2749   :  { %vm20033_vm0 = vmmov %vm20030_vm4 }
0x274a   :  { %vm20034_vm8 = vmmov %vm20033_vm0 }
0x274b   :  { %vm20035_vm14 = vmmov %vm20033_vm0 }
0x274c   :  { %vm20036_vm13 = vmmov %vm20033_vm0 }
0x27fe   :  { %v13545_v51 = vpop.f32.mrb[86].mxu1 }
0x27ff   :  { %v10278_v52 = vadd.f32 %v13545_v51, %v11084_v25  ;;  %v10232_v57 = vpop.f32.mrb[87].mxu1 }
0x2800   :  { %v10277_v42 = vadd.f32 %v11084_v25, %v10232_v57 }
0x2801   :  { %15203 = vtanh.f32 %v10278_v52 }
0x2802   :  { %15205 = vtanh.f32 %v10277_v42  ;;  %v13548_v11 = vpop.f32.mrb[88].mxu1 }
0x2803   :  { %v10280_v17 = vadd.f32 %v13548_v11, %v11084_v25  ;;  %v10242_v15 = vpop.f32.mrb[89].mxu1 }
0x2804   :  { %v10279_v5 = vadd.f32 %v11084_v25, %v10242_v15 }
0x2805   :  { %15207 = vtanh.f32 %v10280_v17 }
0x2806   :  { %15209 = vtanh.f32 %v10279_v5  ;;  %v13551_v7 = vpop.f32.mrb[90].mxu1 }
0x2807   :  { %v10282_v40 = vadd.f32 %v13551_v7, %v11084_v25  ;;  %v10252_v55 = vpop.f32.mrb[91].mxu1 }
0x2808   :  { %v10281_v43 = vadd.f32 %v11084_v25, %v10252_v55 }
0x2809   :  { %15211 = vtanh.f32 %v10282_v40 }
0x280a   :  { %15213 = vtanh.f32 %v10281_v43  ;;  %v13554_v38 = vpop.f32.mrb[92].mxu1 }
0x280b   :  { %v15204_v24 = vpop.eup %15203  ;;  %v10284_v10 = vadd.f32 %v13554_v38, %v11084_v25  ;;  %v10262_v9 = vpop.f32.mrb[93].mxu1 }
0x280c   :  { %v15206_v21 = vpop.eup %15205  ;;  %11086 = vst.msk [vmem:[%s19203_s18 + $0x48] sm:$0xff] %vm20029_vm5, %v15204_v24  ;;  %v10283_v28 = vadd.f32 %v11084_v25, %v10262_v9 }
0x280d   :  { %11085 = vst.msk [vmem:[%s19203_s18 + $0x40] sm:$0xff] %vm20030_vm4, %v15206_v21  ;;  %15215 = vtanh.f32 %v10284_v10 }
0x280e   :  { %15217 = vtanh.f32 %v10283_v28 }
0x280f   :  { %v15208_v12 = vpop.eup %15207 }
0x2810   :  { %v15210_v36 = vpop.eup %15209  ;;  %11088 = vst.msk [vmem:[%s19203_s18 + $0x58] sm:$0xff] %vm20031_vm10, %v15208_v12 }
0x2811   :  { %11087 = vst.msk [vmem:[%s19203_s18 + $0x50] sm:$0xff] %vm20032_vm6, %v15210_v36 }
0x2813   :  { %v15212_v37 = vpop.eup %15211 }
0x2814   :  { %v15214_v59 = vpop.eup %15213  ;;  %11090 = vst.msk [vmem:[%s19203_s18 + $0x68] sm:$0xff] %vm20033_vm0, %v15212_v37 }
0x2815   :  { %11089 = vst.msk [vmem:[%s19203_s18 + $0x60] sm:$0xff] %vm20034_vm8, %v15214_v59 }
0x2817   :  { %v15216_v62 = vpop.eup %15215 }
0x2818   :  { %v15218_v16 = vpop.eup %15217  ;;  %11092 = vst.msk [vmem:[%s19203_s18 + $0x78] sm:$0xff] %vm20035_vm14, %v15216_v62 }
0x2819   :  { %11091 = vst.msk [vmem:[%s19203_s18 + $0x70] sm:$0xff] %vm20036_vm13, %v15218_v16 }
0x281a   :  { %15241 = dma.done.wait [#allocation4], 16  }
0x281b   :  { %15242 = vsyncadd [#allocation4], 4294967280 }
0x281c   :  { %10326 = vsyncpa [#allocation4], 1 }

</bundles_post_ra>
